<compile_context>
chip_gen: v7x
topology: tpu7x:2x2x1
jax: 0.10.0
libtpu: 0.0.40
codegen_flags: <defaults>
</compile_context>

<pallas_src>
import jax
import jax.numpy as jnp
from jax.experimental import pallas as pl
from jax.experimental.pallas import tpu as pltpu


def _block_diag(a, b):
    m, n = a.shape
    p, q = b.shape
    top = jnp.concatenate([a, jnp.zeros((m, q), a.dtype)], axis=1)
    bot = jnp.concatenate([jnp.zeros((p, n), b.dtype), b], axis=1)
    return jnp.concatenate([top, bot], axis=0)


@jax.jit
def bigru_forward(X, wx0, whh0, bg0, bhn0, wnat1, wrev1, whh1, bg1, bhn1,
                  whead, bhead):
    """Fused 2-layer bidirectional GRU + Linear + Softmax forward.

    X: (B, T, D) float32, batch_first (like the PyTorch module).
    Returns (logits, probs), each (B, O).
    """
    B, T, D = X.shape
    H2 = whh0.shape[-1]          # 2 * hidden
    O = bhead.shape[-1]
    f32 = jnp.float32

    # Pair each timestep with its mirror so both directions share one row block:
    #   xp[s*B + b] = [x[s, b] | x[T-1-s, b]]            -> (T*B, 2D)
    x = jnp.transpose(X.astype(f32), (1, 0, 2))           # (T, B, D)
    xp = jnp.concatenate([x, jnp.flip(x, axis=0)], axis=-1).reshape(T * B, 2 * D)

    def kernel(xp_ref, wx0_ref, whh0_ref, bg0_ref, bhn0_ref,
               wnat1_ref, wrev1_ref, whh1_ref, bg1_ref, bhn1_ref,
               whead_ref, bhead_ref,
               logits_ref, probs_ref,
               gi_r, gi_z, gi_n, nat, rev):

        def gru_layer(whh_ref, bhn_ref, head_w_ref=None):
            """Fused fwd+bwd recurrence over gi_{r,z,n} (already in VMEM).

            State at loop step s is [h_fwd(time s) | h_bwd(time T-1-s)].
            If head_w_ref is None, per-step states are written to nat/rev
            (natural / mirrored loop order) for the next layer's hoisted
            projection; otherwise the Linear head is accumulated instead.
            """
            w_r = whh_ref[0]
            w_z = whh_ref[1]
            w_n = whh_ref[2]
            bhn = bhn_ref[...]
            h = jnp.zeros((B, H2), f32)
            acc = jnp.zeros((B, O), f32)
            # Static unroll (T = 21): all slice offsets stay compile-time
            # constants, equivalent to lax.fori_loop(..., unroll=True).
            for s in range(T):
                rows = pl.ds(s * B, B)
                r = jax.nn.sigmoid(
                    gi_r[rows, :] + jnp.dot(h, w_r, preferred_element_type=f32))
                z = jax.nn.sigmoid(
                    gi_z[rows, :] + jnp.dot(h, w_z, preferred_element_type=f32))
                n = jnp.tanh(
                    gi_n[rows, :]
                    + r * (jnp.dot(h, w_n, preferred_element_type=f32) + bhn))
                h = (1.0 - z) * n + z * h
                if head_w_ref is None:
                    nat[rows, :] = h
                    rev[pl.ds((T - 1 - s) * B, B), :] = h
                else:
                    acc = acc + jnp.dot(h, head_w_ref[s],
                                        preferred_element_type=f32)
            return acc

        # ----- layer 0: hoisted input projection (both directions fused) -----
        xv = xp_ref[...]
        gi_r[...] = jnp.dot(xv, wx0_ref[0], preferred_element_type=f32) + bg0_ref[0]
        gi_z[...] = jnp.dot(xv, wx0_ref[1], preferred_element_type=f32) + bg0_ref[1]
        gi_n[...] = jnp.dot(xv, wx0_ref[2], preferred_element_type=f32) + bg0_ref[2]
        gru_layer(whh0_ref, bhn0_ref)

        # ----- layer 1: hoisted input projection from layer-0 outputs -----
        bn = nat[...]
        br = rev[...]
        gi_r[...] = (jnp.dot(bn, wnat1_ref[0], preferred_element_type=f32)
                     + jnp.dot(br, wrev1_ref[0], preferred_element_type=f32)
                     + bg1_ref[0])
        gi_z[...] = (jnp.dot(bn, wnat1_ref[1], preferred_element_type=f32)
                     + jnp.dot(br, wrev1_ref[1], preferred_element_type=f32)
                     + bg1_ref[1])
        gi_n[...] = (jnp.dot(bn, wnat1_ref[2], preferred_element_type=f32)
                     + jnp.dot(br, wrev1_ref[2], preferred_element_type=f32)
                     + bg1_ref[2])
        acc = gru_layer(whh1_ref, bhn1_ref, head_w_ref=whead_ref)

        # ----- fused Linear + Softmax(dim=1) head -----
        logits = acc + bhead_ref[...]
        logits_ref[...] = logits
        m = jnp.max(logits, axis=1, keepdims=True)
        e = jnp.exp(logits - m)
        probs_ref[...] = e / jnp.sum(e, axis=1, keepdims=True)

    vmem = pl.BlockSpec(memory_space=pltpu.MemorySpace.VMEM)
    logits, probs = pl.pallas_call(
        kernel,
        out_shape=(jax.ShapeDtypeStruct((B, O), f32),
                   jax.ShapeDtypeStruct((B, O), f32)),
        in_specs=[vmem] * 12,
        out_specs=(vmem, vmem),
        scratch_shapes=[pltpu.VMEM((T * B, H2), f32)] * 5,   # gi_r, gi_z, gi_n, nat, rev
    )(xp, wx0, whh0, bg0, bhn0, wnat1, wrev1, whh1, bg1, bhn1, whead, bhead)
    return logits, probs


class BiGRUPallas:
    """Pallas port of the PyTorch BiGRU module (eval-mode forward).

    Parameters are generated with the torch layout/init convention
    (weight_ih_l{k}[_reverse]: (3H, in), gates ordered [r|z|n]) and re-packed
    at init into the fused layouts consumed by the kernel.
    """

    def __init__(self, key, num_inputs=2, num_hiddens=32, num_layers=2,
                 output_size=2, seq_len=21, dropout=0.3):
        assert num_layers == 2, "kernel fuses exactly the module's 2 GRU layers"
        self.num_inputs = num_inputs
        self.H = num_hiddens
        self.num_layers = num_layers
        self.output_size = output_size
        self.seq_len = seq_len      # linear1 expects num_hiddens * 2 * 21 features
        # TODO(synk): nn.GRU inter-layer dropout (p=0.3) is train-mode only; the
        # eval-mode forward implemented here has no dropout.

        H = num_hiddens
        scale = 1.0 / jnp.sqrt(jnp.float32(H))
        self.gru = {}
        for layer in range(num_layers):
            in_dim = num_inputs if layer == 0 else 2 * H
            for d in range(2):                      # 0 = forward, 1 = reverse
                key, k1, k2, k3, k4 = jax.random.split(key, 5)
                self.gru[(layer, d)] = dict(
                    w_ih=jax.random.uniform(k1, (3 * H, in_dim), jnp.float32, -scale, scale),
                    w_hh=jax.random.uniform(k2, (3 * H, H), jnp.float32, -scale, scale),
                    b_ih=jax.random.uniform(k3, (3 * H,), jnp.float32, -scale, scale),
                    b_hh=jax.random.uniform(k4, (3 * H,), jnp.float32, -scale, scale),
                )
        feat = 2 * H * seq_len
        lscale = 1.0 / jnp.sqrt(jnp.float32(feat))
        key, k5, k6 = jax.random.split(key, 3)
        self.w_lin = jax.random.uniform(k5, (output_size, feat), jnp.float32, -lscale, lscale)
        self.b_lin = jax.random.uniform(k6, (output_size,), jnp.float32, -lscale, lscale)

        self._build_fused()

    # -- fused-layout construction (init-time, plain JAX) --------------------
    def _build_fused(self):
        H, T, O = self.H, self.seq_len, self.output_size

        def gate(w, g):
            return w[g * H:(g + 1) * H, :]

        def gate_b(b, g):
            return b[g * H:(g + 1) * H]

        l0f, l0b = self.gru[(0, 0)], self.gru[(0, 1)]
        l1f, l1b = self.gru[(1, 0)], self.gru[(1, 1)]

        wx0, whh0, bg0 = [], [], []
        wnat1, wrev1, whh1, bg1 = [], [], [], []
        zhh = jnp.zeros((H, H), jnp.float32)
        for g in range(3):
            # layer 0: x-projection and recurrence, directions block-diagonal.
            wx0.append(_block_diag(gate(l0f["w_ih"], g).T, gate(l0b["w_ih"], g).T))
            whh0.append(_block_diag(gate(l0f["w_hh"], g).T, gate(l0b["w_hh"], g).T))
            bf, bb = gate_b(l0f["b_ih"], g), gate_b(l0b["b_ih"], g)
            if g < 2:   # r, z: fold hidden bias into the hoisted projection
                bf = bf + gate_b(l0f["b_hh"], g)
                bb = bb + gate_b(l0b["b_hh"], g)
            bg0.append(jnp.concatenate([bf, bb])[None, :])

            # layer 1: split the (2H -> H) input weights into the parts reading
            # the fwd / bwd halves of the layer-0 output and route them through
            # the "natural" (nat[s] = [h_f(s) | h_b(T-1-s)]) and "mirrored"
            # (rev[s] = [h_f(T-1-s) | h_b(s)]) buffers written by the kernel.
            wfT = gate(l1f["w_ih"], g).T        # (2H, H)
            wbT = gate(l1b["w_ih"], g).T        # (2H, H)
            a_ff, a_fb = wfT[:H, :], wfT[H:, :]
            b_ff, b_fb = wbT[:H, :], wbT[H:, :]
            wnat1.append(_block_diag(a_ff, b_fb))
            wrev1.append(jnp.concatenate(
                [jnp.concatenate([zhh, b_ff], axis=1),
                 jnp.concatenate([a_fb, zhh], axis=1)], axis=0))
            whh1.append(_block_diag(gate(l1f["w_hh"], g).T, gate(l1b["w_hh"], g).T))
            bf, bb = gate_b(l1f["b_ih"], g), gate_b(l1b["b_ih"], g)
            if g < 2:
                bf = bf + gate_b(l1f["b_hh"], g)
                bb = bb + gate_b(l1b["b_hh"], g)
            bg1.append(jnp.concatenate([bf, bb])[None, :])

        self.wx0 = jnp.stack(wx0)                  # (3, 2D, 2H)
        self.whh0 = jnp.stack(whh0)                # (3, 2H, 2H)
        self.bg0 = jnp.stack(bg0)                  # (3, 1, 2H)
        self.bhn0 = jnp.concatenate(
            [gate_b(l0f["b_hh"], 2), gate_b(l0b["b_hh"], 2)])[None, :]
        self.wnat1 = jnp.stack(wnat1)              # (3, 2H, 2H)
        self.wrev1 = jnp.stack(wrev1)              # (3, 2H, 2H)
        self.whh1 = jnp.stack(whh1)                # (3, 2H, 2H)
        self.bg1 = jnp.stack(bg1)                  # (3, 1, 2H)
        self.bhn1 = jnp.concatenate(
            [gate_b(l1f["b_hh"], 2), gate_b(l1b["b_hh"], 2)])[None, :]

        # head: logits = sum_t h_f1[t] @ Wf[t] + h_b1[t] @ Wb[t] + b, packed so
        # the loop-step-s state [h_f1(s) | h_b1(T-1-s)] needs a single dot.
        wt = self.w_lin.T.reshape(T, 2 * H, O)
        self.whead = jnp.concatenate(
            [wt[:, :H, :], jnp.flip(wt, axis=0)[:, H:, :]], axis=1)   # (T, 2H, O)
        self.bhead = self.b_lin[None, :]                              # (1, O)

    def __call__(self, X):
        # X: (B, T, num_inputs), batch_first like the PyTorch module.
        assert X.shape[1] == self.seq_len and X.shape[2] == self.num_inputs
        return bigru_forward(X.astype(jnp.float32),
                             self.wx0, self.whh0, self.bg0, self.bhn0,
                             self.wnat1, self.wrev1, self.whh1, self.bg1,
                             self.bhn1, self.whead, self.bhead)


def _reference_forward(model, X):
    """Pure-JAX (non-Pallas) eval-mode forward, straight from torch semantics."""
    H, T = model.H, model.seq_len
    B = X.shape[0]
    hp = jax.lax.Precision.HIGHEST

    def cell(p, x, h):
        gi = jnp.dot(x, p["w_ih"].T, precision=hp) + p["b_ih"]
        gh = jnp.dot(h, p["w_hh"].T, precision=hp) + p["b_hh"]
        r = jax.nn.sigmoid(gi[:, :H] + gh[:, :H])
        z = jax.nn.sigmoid(gi[:, H:2 * H] + gh[:, H:2 * H])
        n = jnp.tanh(gi[:, 2 * H:] + r * gh[:, 2 * H:])
        return (1.0 - z) * n + z * h

    y = X.astype(jnp.float32)                          # (B, T, D)
    for layer in range(model.num_layers):
        pf, pb = model.gru[(layer, 0)], model.gru[(layer, 1)]
        hf = jnp.zeros((B, H), jnp.float32)
        outs_f = []
        for t in range(T):
            hf = cell(pf, y[:, t], hf)
            outs_f.append(hf)
        hb = jnp.zeros((B, H), jnp.float32)
        outs_b = [None] * T
        for t in range(T - 1, -1, -1):
            hb = cell(pb, y[:, t], hb)
            outs_b[t] = hb
        y = jnp.stack([jnp.concatenate([outs_f[t], outs_b[t]], axis=-1)
                       for t in range(T)], axis=1)     # (B, T, 2H)
    feats = y.reshape(B, -1)
    logits = jnp.dot(feats, model.w_lin.T, precision=hp) + model.b_lin
    return logits, jax.nn.softmax(logits, axis=1)


if __name__ == "__main__":
    key = jax.random.PRNGKey(0)
    k_params, k_x = jax.random.split(key)

    # Small shapes consistent with the module: seq_len=21 is fixed by linear1
    # (num_hiddens * 2 * 21 input features); hidden=32, batch=2, num_inputs=2.
    model = BiGRUPallas(k_params, num_inputs=2, num_hiddens=32,
                        num_layers=2, output_size=2, seq_len=21)
    X = jax.random.normal(k_x, (2, 21, 2), dtype=jnp.float32)

    logits, probs = model(X)
    jax.block_until_ready((logits, probs))
    assert logits.shape == (2, 2) and probs.shape == (2, 2)

    # Numerical check against a plain-JAX implementation of the same module.
    ref_logits, ref_probs = _reference_forward(model, X)
    assert jnp.allclose(logits, ref_logits, rtol=2e-3, atol=2e-3)
    assert jnp.allclose(probs, ref_probs, rtol=2e-3, atol=2e-3)

    print("KERNEL_OK")
</pallas_src>

<mosaic_0001>
module attributes {stable_mosaic.version = 11 : i64} {
  func.func @kernel(%arg0: memref<42x4xf32, #tpu.memory_space<vmem>>, %arg1: memref<3x4x64xf32, #tpu.memory_space<vmem>>, %arg2: memref<3x64x64xf32, #tpu.memory_space<vmem>>, %arg3: memref<3x1x64xf32, #tpu.memory_space<vmem>>, %arg4: memref<1x64xf32, #tpu.memory_space<vmem>>, %arg5: memref<3x64x64xf32, #tpu.memory_space<vmem>>, %arg6: memref<3x64x64xf32, #tpu.memory_space<vmem>>, %arg7: memref<3x64x64xf32, #tpu.memory_space<vmem>>, %arg8: memref<3x1x64xf32, #tpu.memory_space<vmem>>, %arg9: memref<1x64xf32, #tpu.memory_space<vmem>>, %arg10: memref<21x64x2xf32, #tpu.memory_space<vmem>>, %arg11: memref<1x2xf32, #tpu.memory_space<vmem>>, %arg12: memref<2x2xf32, #tpu.memory_space<vmem>>, %arg13: memref<2x2xf32, #tpu.memory_space<vmem>>, %arg14: memref<42x64xf32, #tpu.memory_space<vmem>>, %arg15: memref<42x64xf32, #tpu.memory_space<vmem>>, %arg16: memref<42x64xf32, #tpu.memory_space<vmem>>, %arg17: memref<42x64xf32, #tpu.memory_space<vmem>>, %arg18: memref<42x64xf32, #tpu.memory_space<vmem>>) attributes {dimension_semantics = [], scalar_prefetch = 0 : i64, scratch_operands = 5 : i64, tpu.core_type = #tpu.core_type<tc>} {
    %c0 = arith.constant 0 : index
    %c0_0 = arith.constant 0 : index
    %0 = vector.load %arg0[%c0, %c0_0] : memref<42x4xf32, #tpu.memory_space<vmem>>, vector<42x4xf32>
    %c0_1 = arith.constant 0 : index
    %c0_2 = arith.constant 0 : index
    %c0_3 = arith.constant 0 : index
    %1 = vector.load %arg1[%c0_1, %c0_2, %c0_3] : memref<3x4x64xf32, #tpu.memory_space<vmem>>, vector<1x4x64xf32>
    %2 = vector.shape_cast %1 : vector<1x4x64xf32> to vector<4x64xf32>
    %cst = arith.constant dense<0.000000e+00> : vector<42x64xf32>
    %3 = tpu.matmul %0, %2, %cst {dimension_numbers = #tpu.dot_dimension_numbers<[1], [0], [0], [1], [0, 0, 1, 1], [], []>} : vector<42x4xf32>, vector<4x64xf32>, vector<42x64xf32> -> vector<42x64xf32>
    %c0_4 = arith.constant 0 : index
    %c0_5 = arith.constant 0 : index
    %c0_6 = arith.constant 0 : index
    %4 = vector.load %arg3[%c0_4, %c0_5, %c0_6] : memref<3x1x64xf32, #tpu.memory_space<vmem>>, vector<1x1x64xf32>
    %5 = vector.shape_cast %4 : vector<1x1x64xf32> to vector<1x64xf32>
    %6 = vector.broadcast %5 : vector<1x64xf32> to vector<42x64xf32>
    %7 = arith.addf %3, %6 : vector<42x64xf32>
    %c0_7 = arith.constant 0 : index
    %c0_8 = arith.constant 0 : index
    %8 = vector.load %arg14[%c0_7, %c0_8] : memref<42x64xf32, #tpu.memory_space<vmem>>, vector<42x64xf32>
    tpu.vector_store %arg14[%c0_7, %c0_8], %7 {strides = array<i32>} : memref<42x64xf32, #tpu.memory_space<vmem>>, vector<42x64xf32>,
    %c1 = arith.constant 1 : index
    %c0_9 = arith.constant 0 : index
    %c0_10 = arith.constant 0 : index
    %9 = vector.load %arg1[%c1, %c0_9, %c0_10] : memref<3x4x64xf32, #tpu.memory_space<vmem>>, vector<1x4x64xf32>
    %10 = vector.shape_cast %9 : vector<1x4x64xf32> to vector<4x64xf32>
    %cst_11 = arith.constant dense<0.000000e+00> : vector<42x64xf32>
    %11 = tpu.matmul %0, %10, %cst_11 {dimension_numbers = #tpu.dot_dimension_numbers<[1], [0], [0], [1], [0, 0, 1, 1], [], []>} : vector<42x4xf32>, vector<4x64xf32>, vector<42x64xf32> -> vector<42x64xf32>
    %c1_12 = arith.constant 1 : index
    %c0_13 = arith.constant 0 : index
    %c0_14 = arith.constant 0 : index
    %12 = vector.load %arg3[%c1_12, %c0_13, %c0_14] : memref<3x1x64xf32, #tpu.memory_space<vmem>>, vector<1x1x64xf32>
    %13 = vector.shape_cast %12 : vector<1x1x64xf32> to vector<1x64xf32>
    %14 = vector.broadcast %13 : vector<1x64xf32> to vector<42x64xf32>
    %15 = arith.addf %11, %14 : vector<42x64xf32>
    %c0_15 = arith.constant 0 : index
    %c0_16 = arith.constant 0 : index
    %16 = vector.load %arg15[%c0_15, %c0_16] : memref<42x64xf32, #tpu.memory_space<vmem>>, vector<42x64xf32>
    tpu.vector_store %arg15[%c0_15, %c0_16], %15 {strides = array<i32>} : memref<42x64xf32, #tpu.memory_space<vmem>>, vector<42x64xf32>,
    %c2 = arith.constant 2 : index
    %c0_17 = arith.constant 0 : index
    %c0_18 = arith.constant 0 : index
    %17 = vector.load %arg1[%c2, %c0_17, %c0_18] : memref<3x4x64xf32, #tpu.memory_space<vmem>>, vector<1x4x64xf32>
    %18 = vector.shape_cast %17 : vector<1x4x64xf32> to vector<4x64xf32>
    %cst_19 = arith.constant dense<0.000000e+00> : vector<42x64xf32>
    %19 = tpu.matmul %0, %18, %cst_19 {dimension_numbers = #tpu.dot_dimension_numbers<[1], [0], [0], [1], [0, 0, 1, 1], [], []>} : vector<42x4xf32>, vector<4x64xf32>, vector<42x64xf32> -> vector<42x64xf32>
    %c2_20 = arith.constant 2 : index
    %c0_21 = arith.constant 0 : index
    %c0_22 = arith.constant 0 : index
    %20 = vector.load %arg3[%c2_20, %c0_21, %c0_22] : memref<3x1x64xf32, #tpu.memory_space<vmem>>, vector<1x1x64xf32>
    %21 = vector.shape_cast %20 : vector<1x1x64xf32> to vector<1x64xf32>
    %22 = vector.broadcast %21 : vector<1x64xf32> to vector<42x64xf32>
    %23 = arith.addf %19, %22 : vector<42x64xf32>
    %c0_23 = arith.constant 0 : index
    %c0_24 = arith.constant 0 : index
    %24 = vector.load %arg16[%c0_23, %c0_24] : memref<42x64xf32, #tpu.memory_space<vmem>>, vector<42x64xf32>
    tpu.vector_store %arg16[%c0_23, %c0_24], %23 {strides = array<i32>} : memref<42x64xf32, #tpu.memory_space<vmem>>, vector<42x64xf32>,
    %c0_25 = arith.constant 0 : index
    %c0_26 = arith.constant 0 : index
    %c0_27 = arith.constant 0 : index
    %25 = vector.load %arg2[%c0_25, %c0_26, %c0_27] : memref<3x64x64xf32, #tpu.memory_space<vmem>>, vector<1x64x64xf32>
    %26 = vector.shape_cast %25 : vector<1x64x64xf32> to vector<64x64xf32>
    %c1_28 = arith.constant 1 : index
    %c0_29 = arith.constant 0 : index
    %c0_30 = arith.constant 0 : index
    %27 = vector.load %arg2[%c1_28, %c0_29, %c0_30] : memref<3x64x64xf32, #tpu.memory_space<vmem>>, vector<1x64x64xf32>
    %28 = vector.shape_cast %27 : vector<1x64x64xf32> to vector<64x64xf32>
    %c2_31 = arith.constant 2 : index
    %c0_32 = arith.constant 0 : index
    %c0_33 = arith.constant 0 : index
    %29 = vector.load %arg2[%c2_31, %c0_32, %c0_33] : memref<3x64x64xf32, #tpu.memory_space<vmem>>, vector<1x64x64xf32>
    %30 = vector.shape_cast %29 : vector<1x64x64xf32> to vector<64x64xf32>
    %c0_34 = arith.constant 0 : index
    %c0_35 = arith.constant 0 : index
    %31 = vector.load %arg4[%c0_34, %c0_35] : memref<1x64xf32, #tpu.memory_space<vmem>>, vector<1x64xf32>
    %cst_36 = arith.constant 0.000000e+00 : f32
    %32 = vector.broadcast %cst_36 : f32 to vector<2x64xf32>
    %c0_37 = arith.constant 0 : index
    %c0_38 = arith.constant 0 : index
    %33 = vector.load %arg14[%c0_37, %c0_38] : memref<42x64xf32, #tpu.memory_space<vmem>>, vector<2x64xf32>
    %cst_39 = arith.constant dense<0.000000e+00> : vector<2x64xf32>
    %34 = tpu.matmul %32, %26, %cst_39 {dimension_numbers = #tpu.dot_dimension_numbers<[1], [0], [0], [1], [0, 0, 1, 1], [], []>} : vector<2x64xf32>, vector<64x64xf32>, vector<2x64xf32> -> vector<2x64xf32>
    %35 = arith.addf %33, %34 : vector<2x64xf32>
    %36 = arith.negf %35 : vector<2x64xf32>
    %37 = math.exp %36 : vector<2x64xf32>
    %cst_40 = arith.constant 1.000000e+00 : f32
    %38 = vector.broadcast %cst_40 : f32 to vector<2x64xf32>
    %39 = arith.addf %38, %37 : vector<2x64xf32>
    %40 = arith.divf %38, %39 : vector<2x64xf32>
    %c0_41 = arith.constant 0 : index
    %c0_42 = arith.constant 0 : index
    %41 = vector.load %arg15[%c0_41, %c0_42] : memref<42x64xf32, #tpu.memory_space<vmem>>, vector<2x64xf32>
    %cst_43 = arith.constant dense<0.000000e+00> : vector<2x64xf32>
    %42 = tpu.matmul %32, %28, %cst_43 {dimension_numbers = #tpu.dot_dimension_numbers<[1], [0], [0], [1], [0, 0, 1, 1], [], []>} : vector<2x64xf32>, vector<64x64xf32>, vector<2x64xf32> -> vector<2x64xf32>
    %43 = arith.addf %41, %42 : vector<2x64xf32>
    %44 = arith.negf %43 : vector<2x64xf32>
    %45 = math.exp %44 : vector<2x64xf32>
    %cst_44 = arith.constant 1.000000e+00 : f32
    %46 = vector.broadcast %cst_44 : f32 to vector<2x64xf32>
    %47 = arith.addf %46, %45 : vector<2x64xf32>
    %48 = arith.divf %46, %47 : vector<2x64xf32>
    %c0_45 = arith.constant 0 : index
    %c0_46 = arith.constant 0 : index
    %49 = vector.load %arg16[%c0_45, %c0_46] : memref<42x64xf32, #tpu.memory_space<vmem>>, vector<2x64xf32>
    %cst_47 = arith.constant dense<0.000000e+00> : vector<2x64xf32>
    %50 = tpu.matmul %32, %30, %cst_47 {dimension_numbers = #tpu.dot_dimension_numbers<[1], [0], [0], [1], [0, 0, 1, 1], [], []>} : vector<2x64xf32>, vector<64x64xf32>, vector<2x64xf32> -> vector<2x64xf32>
    %51 = vector.broadcast %31 : vector<1x64xf32> to vector<2x64xf32>
    %52 = arith.addf %50, %51 : vector<2x64xf32>
    %53 = arith.mulf %40, %52 : vector<2x64xf32>
    %54 = arith.addf %49, %53 : vector<2x64xf32>
    %55 = math.tanh %54 : vector<2x64xf32>
    %cst_48 = arith.constant 1.000000e+00 : f32
    %56 = vector.broadcast %cst_48 : f32 to vector<2x64xf32>
    %57 = arith.subf %56, %48 : vector<2x64xf32>
    %58 = arith.mulf %57, %55 : vector<2x64xf32>
    %59 = arith.mulf %48, %32 : vector<2x64xf32>
    %60 = arith.addf %58, %59 : vector<2x64xf32>
    %c0_49 = arith.constant 0 : index
    %c0_50 = arith.constant 0 : index
    %61 = vector.load %arg17[%c0_49, %c0_50] : memref<42x64xf32, #tpu.memory_space<vmem>>, vector<2x64xf32>
    tpu.vector_store %arg17[%c0_49, %c0_50], %60 {strides = array<i32>} : memref<42x64xf32, #tpu.memory_space<vmem>>, vector<2x64xf32>,
    %c40 = arith.constant 40 : index
    %c0_51 = arith.constant 0 : index
    %62 = vector.load %arg18[%c40, %c0_51] : memref<42x64xf32, #tpu.memory_space<vmem>>, vector<2x64xf32>
    tpu.vector_store %arg18[%c40, %c0_51], %60 {strides = array<i32>} : memref<42x64xf32, #tpu.memory_space<vmem>>, vector<2x64xf32>,
    %c2_52 = arith.constant 2 : index
    %c0_53 = arith.constant 0 : index
    %63 = vector.load %arg14[%c2_52, %c0_53] : memref<42x64xf32, #tpu.memory_space<vmem>>, vector<2x64xf32>
    %cst_54 = arith.constant dense<0.000000e+00> : vector<2x64xf32>
    %64 = tpu.matmul %60, %26, %cst_54 {dimension_numbers = #tpu.dot_dimension_numbers<[1], [0], [0], [1], [0, 0, 1, 1], [], []>} : vector<2x64xf32>, vector<64x64xf32>, vector<2x64xf32> -> vector<2x64xf32>
    %65 = arith.addf %63, %64 : vector<2x64xf32>
    %66 = arith.negf %65 : vector<2x64xf32>
    %67 = math.exp %66 : vector<2x64xf32>
    %cst_55 = arith.constant 1.000000e+00 : f32
    %68 = vector.broadcast %cst_55 : f32 to vector<2x64xf32>
    %69 = arith.addf %68, %67 : vector<2x64xf32>
    %70 = arith.divf %68, %69 : vector<2x64xf32>
    %c2_56 = arith.constant 2 : index
    %c0_57 = arith.constant 0 : index
    %71 = vector.load %arg15[%c2_56, %c0_57] : memref<42x64xf32, #tpu.memory_space<vmem>>, vector<2x64xf32>
    %cst_58 = arith.constant dense<0.000000e+00> : vector<2x64xf32>
    %72 = tpu.matmul %60, %28, %cst_58 {dimension_numbers = #tpu.dot_dimension_numbers<[1], [0], [0], [1], [0, 0, 1, 1], [], []>} : vector<2x64xf32>, vector<64x64xf32>, vector<2x64xf32> -> vector<2x64xf32>
    %73 = arith.addf %71, %72 : vector<2x64xf32>
    %74 = arith.negf %73 : vector<2x64xf32>
    %75 = math.exp %74 : vector<2x64xf32>
    %cst_59 = arith.constant 1.000000e+00 : f32
    %76 = vector.broadcast %cst_59 : f32 to vector<2x64xf32>
    %77 = arith.addf %76, %75 : vector<2x64xf32>
    %78 = arith.divf %76, %77 : vector<2x64xf32>
    %c2_60 = arith.constant 2 : index
    %c0_61 = arith.constant 0 : index
    %79 = vector.load %arg16[%c2_60, %c0_61] : memref<42x64xf32, #tpu.memory_space<vmem>>, vector<2x64xf32>
    %cst_62 = arith.constant dense<0.000000e+00> : vector<2x64xf32>
    %80 = tpu.matmul %60, %30, %cst_62 {dimension_numbers = #tpu.dot_dimension_numbers<[1], [0], [0], [1], [0, 0, 1, 1], [], []>} : vector<2x64xf32>, vector<64x64xf32>, vector<2x64xf32> -> vector<2x64xf32>
    %81 = vector.broadcast %31 : vector<1x64xf32> to vector<2x64xf32>
    %82 = arith.addf %80, %81 : vector<2x64xf32>
    %83 = arith.mulf %70, %82 : vector<2x64xf32>
    %84 = arith.addf %79, %83 : vector<2x64xf32>
    %85 = math.tanh %84 : vector<2x64xf32>
    %cst_63 = arith.constant 1.000000e+00 : f32
    %86 = vector.broadcast %cst_63 : f32 to vector<2x64xf32>
    %87 = arith.subf %86, %78 : vector<2x64xf32>
    %88 = arith.mulf %87, %85 : vector<2x64xf32>
    %89 = arith.mulf %78, %60 : vector<2x64xf32>
    %90 = arith.addf %88, %89 : vector<2x64xf32>
    %c2_64 = arith.constant 2 : index
    %c0_65 = arith.constant 0 : index
    %91 = vector.load %arg17[%c2_64, %c0_65] : memref<42x64xf32, #tpu.memory_space<vmem>>, vector<2x64xf32>
    tpu.vector_store %arg17[%c2_64, %c0_65], %90 {strides = array<i32>} : memref<42x64xf32, #tpu.memory_space<vmem>>, vector<2x64xf32>,
    %c38 = arith.constant 38 : index
    %c0_66 = arith.constant 0 : index
    %92 = vector.load %arg18[%c38, %c0_66] : memref<42x64xf32, #tpu.memory_space<vmem>>, vector<2x64xf32>
    tpu.vector_store %arg18[%c38, %c0_66], %90 {strides = array<i32>} : memref<42x64xf32, #tpu.memory_space<vmem>>, vector<2x64xf32>,
    %c4 = arith.constant 4 : index
    %c0_67 = arith.constant 0 : index
    %93 = vector.load %arg14[%c4, %c0_67] : memref<42x64xf32, #tpu.memory_space<vmem>>, vector<2x64xf32>
    %cst_68 = arith.constant dense<0.000000e+00> : vector<2x64xf32>
    %94 = tpu.matmul %90, %26, %cst_68 {dimension_numbers = #tpu.dot_dimension_numbers<[1], [0], [0], [1], [0, 0, 1, 1], [], []>} : vector<2x64xf32>, vector<64x64xf32>, vector<2x64xf32> -> vector<2x64xf32>
    %95 = arith.addf %93, %94 : vector<2x64xf32>
    %96 = arith.negf %95 : vector<2x64xf32>
    %97 = math.exp %96 : vector<2x64xf32>
    %cst_69 = arith.constant 1.000000e+00 : f32
    %98 = vector.broadcast %cst_69 : f32 to vector<2x64xf32>
    %99 = arith.addf %98, %97 : vector<2x64xf32>
    %100 = arith.divf %98, %99 : vector<2x64xf32>
    %c4_70 = arith.constant 4 : index
    %c0_71 = arith.constant 0 : index
    %101 = vector.load %arg15[%c4_70, %c0_71] : memref<42x64xf32, #tpu.memory_space<vmem>>, vector<2x64xf32>
    %cst_72 = arith.constant dense<0.000000e+00> : vector<2x64xf32>
    %102 = tpu.matmul %90, %28, %cst_72 {dimension_numbers = #tpu.dot_dimension_numbers<[1], [0], [0], [1], [0, 0, 1, 1], [], []>} : vector<2x64xf32>, vector<64x64xf32>, vector<2x64xf32> -> vector<2x64xf32>
    %103 = arith.addf %101, %102 : vector<2x64xf32>
    %104 = arith.negf %103 : vector<2x64xf32>
    %105 = math.exp %104 : vector<2x64xf32>
    %cst_73 = arith.constant 1.000000e+00 : f32
    %106 = vector.broadcast %cst_73 : f32 to vector<2x64xf32>
    %107 = arith.addf %106, %105 : vector<2x64xf32>
    %108 = arith.divf %106, %107 : vector<2x64xf32>
    %c4_74 = arith.constant 4 : index
    %c0_75 = arith.constant 0 : index
    %109 = vector.load %arg16[%c4_74, %c0_75] : memref<42x64xf32, #tpu.memory_space<vmem>>, vector<2x64xf32>
    %cst_76 = arith.constant dense<0.000000e+00> : vector<2x64xf32>
    %110 = tpu.matmul %90, %30, %cst_76 {dimension_numbers = #tpu.dot_dimension_numbers<[1], [0], [0], [1], [0, 0, 1, 1], [], []>} : vector<2x64xf32>, vector<64x64xf32>, vector<2x64xf32> -> vector<2x64xf32>
    %111 = vector.broadcast %31 : vector<1x64xf32> to vector<2x64xf32>
    %112 = arith.addf %110, %111 : vector<2x64xf32>
    %113 = arith.mulf %100, %112 : vector<2x64xf32>
    %114 = arith.addf %109, %113 : vector<2x64xf32>
    %115 = math.tanh %114 : vector<2x64xf32>
    %cst_77 = arith.constant 1.000000e+00 : f32
    %116 = vector.broadcast %cst_77 : f32 to vector<2x64xf32>
    %117 = arith.subf %116, %108 : vector<2x64xf32>
    %118 = arith.mulf %117, %115 : vector<2x64xf32>
    %119 = arith.mulf %108, %90 : vector<2x64xf32>
    %120 = arith.addf %118, %119 : vector<2x64xf32>
    %c4_78 = arith.constant 4 : index
    %c0_79 = arith.constant 0 : index
    %121 = vector.load %arg17[%c4_78, %c0_79] : memref<42x64xf32, #tpu.memory_space<vmem>>, vector<2x64xf32>
    tpu.vector_store %arg17[%c4_78, %c0_79], %120 {strides = array<i32>} : memref<42x64xf32, #tpu.memory_space<vmem>>, vector<2x64xf32>,
    %c36 = arith.constant 36 : index
    %c0_80 = arith.constant 0 : index
    %122 = vector.load %arg18[%c36, %c0_80] : memref<42x64xf32, #tpu.memory_space<vmem>>, vector<2x64xf32>
    tpu.vector_store %arg18[%c36, %c0_80], %120 {strides = array<i32>} : memref<42x64xf32, #tpu.memory_space<vmem>>, vector<2x64xf32>,
    %c6 = arith.constant 6 : index
    %c0_81 = arith.constant 0 : index
    %123 = vector.load %arg14[%c6, %c0_81] : memref<42x64xf32, #tpu.memory_space<vmem>>, vector<2x64xf32>
    %cst_82 = arith.constant dense<0.000000e+00> : vector<2x64xf32>
    %124 = tpu.matmul %120, %26, %cst_82 {dimension_numbers = #tpu.dot_dimension_numbers<[1], [0], [0], [1], [0, 0, 1, 1], [], []>} : vector<2x64xf32>, vector<64x64xf32>, vector<2x64xf32> -> vector<2x64xf32>
    %125 = arith.addf %123, %124 : vector<2x64xf32>
    %126 = arith.negf %125 : vector<2x64xf32>
    %127 = math.exp %126 : vector<2x64xf32>
    %cst_83 = arith.constant 1.000000e+00 : f32
    %128 = vector.broadcast %cst_83 : f32 to vector<2x64xf32>
    %129 = arith.addf %128, %127 : vector<2x64xf32>
    %130 = arith.divf %128, %129 : vector<2x64xf32>
    %c6_84 = arith.constant 6 : index
    %c0_85 = arith.constant 0 : index
    %131 = vector.load %arg15[%c6_84, %c0_85] : memref<42x64xf32, #tpu.memory_space<vmem>>, vector<2x64xf32>
    %cst_86 = arith.constant dense<0.000000e+00> : vector<2x64xf32>
    %132 = tpu.matmul %120, %28, %cst_86 {dimension_numbers = #tpu.dot_dimension_numbers<[1], [0], [0], [1], [0, 0, 1, 1], [], []>} : vector<2x64xf32>, vector<64x64xf32>, vector<2x64xf32> -> vector<2x64xf32>
    %133 = arith.addf %131, %132 : vector<2x64xf32>
    %134 = arith.negf %133 : vector<2x64xf32>
    %135 = math.exp %134 : vector<2x64xf32>
    %cst_87 = arith.constant 1.000000e+00 : f32
    %136 = vector.broadcast %cst_87 : f32 to vector<2x64xf32>
    %137 = arith.addf %136, %135 : vector<2x64xf32>
    %138 = arith.divf %136, %137 : vector<2x64xf32>
    %c6_88 = arith.constant 6 : index
    %c0_89 = arith.constant 0 : index
    %139 = vector.load %arg16[%c6_88, %c0_89] : memref<42x64xf32, #tpu.memory_space<vmem>>, vector<2x64xf32>
    %cst_90 = arith.constant dense<0.000000e+00> : vector<2x64xf32>
    %140 = tpu.matmul %120, %30, %cst_90 {dimension_numbers = #tpu.dot_dimension_numbers<[1], [0], [0], [1], [0, 0, 1, 1], [], []>} : vector<2x64xf32>, vector<64x64xf32>, vector<2x64xf32> -> vector<2x64xf32>
    %141 = vector.broadcast %31 : vector<1x64xf32> to vector<2x64xf32>
    %142 = arith.addf %140, %141 : vector<2x64xf32>
    %143 = arith.mulf %130, %142 : vector<2x64xf32>
    %144 = arith.addf %139, %143 : vector<2x64xf32>
    %145 = math.tanh %144 : vector<2x64xf32>
    %cst_91 = arith.constant 1.000000e+00 : f32
    %146 = vector.broadcast %cst_91 : f32 to vector<2x64xf32>
    %147 = arith.subf %146, %138 : vector<2x64xf32>
    %148 = arith.mulf %147, %145 : vector<2x64xf32>
    %149 = arith.mulf %138, %120 : vector<2x64xf32>
    %150 = arith.addf %148, %149 : vector<2x64xf32>
    %c6_92 = arith.constant 6 : index
    %c0_93 = arith.constant 0 : index
    %151 = vector.load %arg17[%c6_92, %c0_93] : memref<42x64xf32, #tpu.memory_space<vmem>>, vector<2x64xf32>
    tpu.vector_store %arg17[%c6_92, %c0_93], %150 {strides = array<i32>} : memref<42x64xf32, #tpu.memory_space<vmem>>, vector<2x64xf32>,
    %c34 = arith.constant 34 : index
    %c0_94 = arith.constant 0 : index
    %152 = vector.load %arg18[%c34, %c0_94] : memref<42x64xf32, #tpu.memory_space<vmem>>, vector<2x64xf32>
    tpu.vector_store %arg18[%c34, %c0_94], %150 {strides = array<i32>} : memref<42x64xf32, #tpu.memory_space<vmem>>, vector<2x64xf32>,
    %c8 = arith.constant 8 : index
    %c0_95 = arith.constant 0 : index
    %153 = vector.load %arg14[%c8, %c0_95] : memref<42x64xf32, #tpu.memory_space<vmem>>, vector<2x64xf32>
    %cst_96 = arith.constant dense<0.000000e+00> : vector<2x64xf32>
    %154 = tpu.matmul %150, %26, %cst_96 {dimension_numbers = #tpu.dot_dimension_numbers<[1], [0], [0], [1], [0, 0, 1, 1], [], []>} : vector<2x64xf32>, vector<64x64xf32>, vector<2x64xf32> -> vector<2x64xf32>
    %155 = arith.addf %153, %154 : vector<2x64xf32>
    %156 = arith.negf %155 : vector<2x64xf32>
    %157 = math.exp %156 : vector<2x64xf32>
    %cst_97 = arith.constant 1.000000e+00 : f32
    %158 = vector.broadcast %cst_97 : f32 to vector<2x64xf32>
    %159 = arith.addf %158, %157 : vector<2x64xf32>
    %160 = arith.divf %158, %159 : vector<2x64xf32>
    %c8_98 = arith.constant 8 : index
    %c0_99 = arith.constant 0 : index
    %161 = vector.load %arg15[%c8_98, %c0_99] : memref<42x64xf32, #tpu.memory_space<vmem>>, vector<2x64xf32>
    %cst_100 = arith.constant dense<0.000000e+00> : vector<2x64xf32>
    %162 = tpu.matmul %150, %28, %cst_100 {dimension_numbers = #tpu.dot_dimension_numbers<[1], [0], [0], [1], [0, 0, 1, 1], [], []>} : vector<2x64xf32>, vector<64x64xf32>, vector<2x64xf32> -> vector<2x64xf32>
    %163 = arith.addf %161, %162 : vector<2x64xf32>
    %164 = arith.negf %163 : vector<2x64xf32>
    %165 = math.exp %164 : vector<2x64xf32>
    %cst_101 = arith.constant 1.000000e+00 : f32
    %166 = vector.broadcast %cst_101 : f32 to vector<2x64xf32>
    %167 = arith.addf %166, %165 : vector<2x64xf32>
    %168 = arith.divf %166, %167 : vector<2x64xf32>
    %c8_102 = arith.constant 8 : index
    %c0_103 = arith.constant 0 : index
    %169 = vector.load %arg16[%c8_102, %c0_103] : memref<42x64xf32, #tpu.memory_space<vmem>>, vector<2x64xf32>
    %cst_104 = arith.constant dense<0.000000e+00> : vector<2x64xf32>
    %170 = tpu.matmul %150, %30, %cst_104 {dimension_numbers = #tpu.dot_dimension_numbers<[1], [0], [0], [1], [0, 0, 1, 1], [], []>} : vector<2x64xf32>, vector<64x64xf32>, vector<2x64xf32> -> vector<2x64xf32>
    %171 = vector.broadcast %31 : vector<1x64xf32> to vector<2x64xf32>
    %172 = arith.addf %170, %171 : vector<2x64xf32>
    %173 = arith.mulf %160, %172 : vector<2x64xf32>
    %174 = arith.addf %169, %173 : vector<2x64xf32>
    %175 = math.tanh %174 : vector<2x64xf32>
    %cst_105 = arith.constant 1.000000e+00 : f32
    %176 = vector.broadcast %cst_105 : f32 to vector<2x64xf32>
    %177 = arith.subf %176, %168 : vector<2x64xf32>
    %178 = arith.mulf %177, %175 : vector<2x64xf32>
    %179 = arith.mulf %168, %150 : vector<2x64xf32>
    %180 = arith.addf %178, %179 : vector<2x64xf32>
    %c8_106 = arith.constant 8 : index
    %c0_107 = arith.constant 0 : index
    %181 = vector.load %arg17[%c8_106, %c0_107] : memref<42x64xf32, #tpu.memory_space<vmem>>, vector<2x64xf32>
    tpu.vector_store %arg17[%c8_106, %c0_107], %180 {strides = array<i32>} : memref<42x64xf32, #tpu.memory_space<vmem>>, vector<2x64xf32>,
    %c32 = arith.constant 32 : index
    %c0_108 = arith.constant 0 : index
    %182 = vector.load %arg18[%c32, %c0_108] : memref<42x64xf32, #tpu.memory_space<vmem>>, vector<2x64xf32>
    tpu.vector_store %arg18[%c32, %c0_108], %180 {strides = array<i32>} : memref<42x64xf32, #tpu.memory_space<vmem>>, vector<2x64xf32>,
    %c10 = arith.constant 10 : index
    %c0_109 = arith.constant 0 : index
    %183 = vector.load %arg14[%c10, %c0_109] : memref<42x64xf32, #tpu.memory_space<vmem>>, vector<2x64xf32>
    %cst_110 = arith.constant dense<0.000000e+00> : vector<2x64xf32>
    %184 = tpu.matmul %180, %26, %cst_110 {dimension_numbers = #tpu.dot_dimension_numbers<[1], [0], [0], [1], [0, 0, 1, 1], [], []>} : vector<2x64xf32>, vector<64x64xf32>, vector<2x64xf32> -> vector<2x64xf32>
    %185 = arith.addf %183, %184 : vector<2x64xf32>
    %186 = arith.negf %185 : vector<2x64xf32>
    %187 = math.exp %186 : vector<2x64xf32>
    %cst_111 = arith.constant 1.000000e+00 : f32
    %188 = vector.broadcast %cst_111 : f32 to vector<2x64xf32>
    %189 = arith.addf %188, %187 : vector<2x64xf32>
    %190 = arith.divf %188, %189 : vector<2x64xf32>
    %c10_112 = arith.constant 10 : index
    %c0_113 = arith.constant 0 : index
    %191 = vector.load %arg15[%c10_112, %c0_113] : memref<42x64xf32, #tpu.memory_space<vmem>>, vector<2x64xf32>
    %cst_114 = arith.constant dense<0.000000e+00> : vector<2x64xf32>
    %192 = tpu.matmul %180, %28, %cst_114 {dimension_numbers = #tpu.dot_dimension_numbers<[1], [0], [0], [1], [0, 0, 1, 1], [], []>} : vector<2x64xf32>, vector<64x64xf32>, vector<2x64xf32> -> vector<2x64xf32>
    %193 = arith.addf %191, %192 : vector<2x64xf32>
    %194 = arith.negf %193 : vector<2x64xf32>
    %195 = math.exp %194 : vector<2x64xf32>
    %cst_115 = arith.constant 1.000000e+00 : f32
    %196 = vector.broadcast %cst_115 : f32 to vector<2x64xf32>
    %197 = arith.addf %196, %195 : vector<2x64xf32>
    %198 = arith.divf %196, %197 : vector<2x64xf32>
    %c10_116 = arith.constant 10 : index
    %c0_117 = arith.constant 0 : index
    %199 = vector.load %arg16[%c10_116, %c0_117] : memref<42x64xf32, #tpu.memory_space<vmem>>, vector<2x64xf32>
    %cst_118 = arith.constant dense<0.000000e+00> : vector<2x64xf32>
    %200 = tpu.matmul %180, %30, %cst_118 {dimension_numbers = #tpu.dot_dimension_numbers<[1], [0], [0], [1], [0, 0, 1, 1], [], []>} : vector<2x64xf32>, vector<64x64xf32>, vector<2x64xf32> -> vector<2x64xf32>
    %201 = vector.broadcast %31 : vector<1x64xf32> to vector<2x64xf32>
    %202 = arith.addf %200, %201 : vector<2x64xf32>
    %203 = arith.mulf %190, %202 : vector<2x64xf32>
    %204 = arith.addf %199, %203 : vector<2x64xf32>
    %205 = math.tanh %204 : vector<2x64xf32>
    %cst_119 = arith.constant 1.000000e+00 : f32
    %206 = vector.broadcast %cst_119 : f32 to vector<2x64xf32>
    %207 = arith.subf %206, %198 : vector<2x64xf32>
    %208 = arith.mulf %207, %205 : vector<2x64xf32>
    %209 = arith.mulf %198, %180 : vector<2x64xf32>
    %210 = arith.addf %208, %209 : vector<2x64xf32>
    %c10_120 = arith.constant 10 : index
    %c0_121 = arith.constant 0 : index
    %211 = vector.load %arg17[%c10_120, %c0_121] : memref<42x64xf32, #tpu.memory_space<vmem>>, vector<2x64xf32>
    tpu.vector_store %arg17[%c10_120, %c0_121], %210 {strides = array<i32>} : memref<42x64xf32, #tpu.memory_space<vmem>>, vector<2x64xf32>,
    %c30 = arith.constant 30 : index
    %c0_122 = arith.constant 0 : index
    %212 = vector.load %arg18[%c30, %c0_122] : memref<42x64xf32, #tpu.memory_space<vmem>>, vector<2x64xf32>
    tpu.vector_store %arg18[%c30, %c0_122], %210 {strides = array<i32>} : memref<42x64xf32, #tpu.memory_space<vmem>>, vector<2x64xf32>,
    %c12 = arith.constant 12 : index
    %c0_123 = arith.constant 0 : index
    %213 = vector.load %arg14[%c12, %c0_123] : memref<42x64xf32, #tpu.memory_space<vmem>>, vector<2x64xf32>
    %cst_124 = arith.constant dense<0.000000e+00> : vector<2x64xf32>
    %214 = tpu.matmul %210, %26, %cst_124 {dimension_numbers = #tpu.dot_dimension_numbers<[1], [0], [0], [1], [0, 0, 1, 1], [], []>} : vector<2x64xf32>, vector<64x64xf32>, vector<2x64xf32> -> vector<2x64xf32>
    %215 = arith.addf %213, %214 : vector<2x64xf32>
    %216 = arith.negf %215 : vector<2x64xf32>
    %217 = math.exp %216 : vector<2x64xf32>
    %cst_125 = arith.constant 1.000000e+00 : f32
    %218 = vector.broadcast %cst_125 : f32 to vector<2x64xf32>
    %219 = arith.addf %218, %217 : vector<2x64xf32>
    %220 = arith.divf %218, %219 : vector<2x64xf32>
    %c12_126 = arith.constant 12 : index
    %c0_127 = arith.constant 0 : index
    %221 = vector.load %arg15[%c12_126, %c0_127] : memref<42x64xf32, #tpu.memory_space<vmem>>, vector<2x64xf32>
    %cst_128 = arith.constant dense<0.000000e+00> : vector<2x64xf32>
    %222 = tpu.matmul %210, %28, %cst_128 {dimension_numbers = #tpu.dot_dimension_numbers<[1], [0], [0], [1], [0, 0, 1, 1], [], []>} : vector<2x64xf32>, vector<64x64xf32>, vector<2x64xf32> -> vector<2x64xf32>
    %223 = arith.addf %221, %222 : vector<2x64xf32>
    %224 = arith.negf %223 : vector<2x64xf32>
    %225 = math.exp %224 : vector<2x64xf32>
    %cst_129 = arith.constant 1.000000e+00 : f32
    %226 = vector.broadcast %cst_129 : f32 to vector<2x64xf32>
    %227 = arith.addf %226, %225 : vector<2x64xf32>
    %228 = arith.divf %226, %227 : vector<2x64xf32>
    %c12_130 = arith.constant 12 : index
    %c0_131 = arith.constant 0 : index
    %229 = vector.load %arg16[%c12_130, %c0_131] : memref<42x64xf32, #tpu.memory_space<vmem>>, vector<2x64xf32>
    %cst_132 = arith.constant dense<0.000000e+00> : vector<2x64xf32>
    %230 = tpu.matmul %210, %30, %cst_132 {dimension_numbers = #tpu.dot_dimension_numbers<[1], [0], [0], [1], [0, 0, 1, 1], [], []>} : vector<2x64xf32>, vector<64x64xf32>, vector<2x64xf32> -> vector<2x64xf32>
    %231 = vector.broadcast %31 : vector<1x64xf32> to vector<2x64xf32>
    %232 = arith.addf %230, %231 : vector<2x64xf32>
    %233 = arith.mulf %220, %232 : vector<2x64xf32>
    %234 = arith.addf %229, %233 : vector<2x64xf32>
    %235 = math.tanh %234 : vector<2x64xf32>
    %cst_133 = arith.constant 1.000000e+00 : f32
    %236 = vector.broadcast %cst_133 : f32 to vector<2x64xf32>
    %237 = arith.subf %236, %228 : vector<2x64xf32>
    %238 = arith.mulf %237, %235 : vector<2x64xf32>
    %239 = arith.mulf %228, %210 : vector<2x64xf32>
    %240 = arith.addf %238, %239 : vector<2x64xf32>
    %c12_134 = arith.constant 12 : index
    %c0_135 = arith.constant 0 : index
    %241 = vector.load %arg17[%c12_134, %c0_135] : memref<42x64xf32, #tpu.memory_space<vmem>>, vector<2x64xf32>
    tpu.vector_store %arg17[%c12_134, %c0_135], %240 {strides = array<i32>} : memref<42x64xf32, #tpu.memory_space<vmem>>, vector<2x64xf32>,
    %c28 = arith.constant 28 : index
    %c0_136 = arith.constant 0 : index
    %242 = vector.load %arg18[%c28, %c0_136] : memref<42x64xf32, #tpu.memory_space<vmem>>, vector<2x64xf32>
    tpu.vector_store %arg18[%c28, %c0_136], %240 {strides = array<i32>} : memref<42x64xf32, #tpu.memory_space<vmem>>, vector<2x64xf32>,
    %c14 = arith.constant 14 : index
    %c0_137 = arith.constant 0 : index
    %243 = vector.load %arg14[%c14, %c0_137] : memref<42x64xf32, #tpu.memory_space<vmem>>, vector<2x64xf32>
    %cst_138 = arith.constant dense<0.000000e+00> : vector<2x64xf32>
    %244 = tpu.matmul %240, %26, %cst_138 {dimension_numbers = #tpu.dot_dimension_numbers<[1], [0], [0], [1], [0, 0, 1, 1], [], []>} : vector<2x64xf32>, vector<64x64xf32>, vector<2x64xf32> -> vector<2x64xf32>
    %245 = arith.addf %243, %244 : vector<2x64xf32>
    %246 = arith.negf %245 : vector<2x64xf32>
    %247 = math.exp %246 : vector<2x64xf32>
    %cst_139 = arith.constant 1.000000e+00 : f32
    %248 = vector.broadcast %cst_139 : f32 to vector<2x64xf32>
    %249 = arith.addf %248, %247 : vector<2x64xf32>
    %250 = arith.divf %248, %249 : vector<2x64xf32>
    %c14_140 = arith.constant 14 : index
    %c0_141 = arith.constant 0 : index
    %251 = vector.load %arg15[%c14_140, %c0_141] : memref<42x64xf32, #tpu.memory_space<vmem>>, vector<2x64xf32>
    %cst_142 = arith.constant dense<0.000000e+00> : vector<2x64xf32>
    %252 = tpu.matmul %240, %28, %cst_142 {dimension_numbers = #tpu.dot_dimension_numbers<[1], [0], [0], [1], [0, 0, 1, 1], [], []>} : vector<2x64xf32>, vector<64x64xf32>, vector<2x64xf32> -> vector<2x64xf32>
    %253 = arith.addf %251, %252 : vector<2x64xf32>
    %254 = arith.negf %253 : vector<2x64xf32>
    %255 = math.exp %254 : vector<2x64xf32>
    %cst_143 = arith.constant 1.000000e+00 : f32
    %256 = vector.broadcast %cst_143 : f32 to vector<2x64xf32>
    %257 = arith.addf %256, %255 : vector<2x64xf32>
    %258 = arith.divf %256, %257 : vector<2x64xf32>
    %c14_144 = arith.constant 14 : index
    %c0_145 = arith.constant 0 : index
    %259 = vector.load %arg16[%c14_144, %c0_145] : memref<42x64xf32, #tpu.memory_space<vmem>>, vector<2x64xf32>
    %cst_146 = arith.constant dense<0.000000e+00> : vector<2x64xf32>
    %260 = tpu.matmul %240, %30, %cst_146 {dimension_numbers = #tpu.dot_dimension_numbers<[1], [0], [0], [1], [0, 0, 1, 1], [], []>} : vector<2x64xf32>, vector<64x64xf32>, vector<2x64xf32> -> vector<2x64xf32>
    %261 = vector.broadcast %31 : vector<1x64xf32> to vector<2x64xf32>
    %262 = arith.addf %260, %261 : vector<2x64xf32>
    %263 = arith.mulf %250, %262 : vector<2x64xf32>
    %264 = arith.addf %259, %263 : vector<2x64xf32>
    %265 = math.tanh %264 : vector<2x64xf32>
    %cst_147 = arith.constant 1.000000e+00 : f32
    %266 = vector.broadcast %cst_147 : f32 to vector<2x64xf32>
    %267 = arith.subf %266, %258 : vector<2x64xf32>
    %268 = arith.mulf %267, %265 : vector<2x64xf32>
    %269 = arith.mulf %258, %240 : vector<2x64xf32>
    %270 = arith.addf %268, %269 : vector<2x64xf32>
    %c14_148 = arith.constant 14 : index
    %c0_149 = arith.constant 0 : index
    %271 = vector.load %arg17[%c14_148, %c0_149] : memref<42x64xf32, #tpu.memory_space<vmem>>, vector<2x64xf32>
    tpu.vector_store %arg17[%c14_148, %c0_149], %270 {strides = array<i32>} : memref<42x64xf32, #tpu.memory_space<vmem>>, vector<2x64xf32>,
    %c26 = arith.constant 26 : index
    %c0_150 = arith.constant 0 : index
    %272 = vector.load %arg18[%c26, %c0_150] : memref<42x64xf32, #tpu.memory_space<vmem>>, vector<2x64xf32>
    tpu.vector_store %arg18[%c26, %c0_150], %270 {strides = array<i32>} : memref<42x64xf32, #tpu.memory_space<vmem>>, vector<2x64xf32>,
    %c16 = arith.constant 16 : index
    %c0_151 = arith.constant 0 : index
    %273 = vector.load %arg14[%c16, %c0_151] : memref<42x64xf32, #tpu.memory_space<vmem>>, vector<2x64xf32>
    %cst_152 = arith.constant dense<0.000000e+00> : vector<2x64xf32>
    %274 = tpu.matmul %270, %26, %cst_152 {dimension_numbers = #tpu.dot_dimension_numbers<[1], [0], [0], [1], [0, 0, 1, 1], [], []>} : vector<2x64xf32>, vector<64x64xf32>, vector<2x64xf32> -> vector<2x64xf32>
    %275 = arith.addf %273, %274 : vector<2x64xf32>
    %276 = arith.negf %275 : vector<2x64xf32>
    %277 = math.exp %276 : vector<2x64xf32>
    %cst_153 = arith.constant 1.000000e+00 : f32
    %278 = vector.broadcast %cst_153 : f32 to vector<2x64xf32>
    %279 = arith.addf %278, %277 : vector<2x64xf32>
    %280 = arith.divf %278, %279 : vector<2x64xf32>
    %c16_154 = arith.constant 16 : index
    %c0_155 = arith.constant 0 : index
    %281 = vector.load %arg15[%c16_154, %c0_155] : memref<42x64xf32, #tpu.memory_space<vmem>>, vector<2x64xf32>
    %cst_156 = arith.constant dense<0.000000e+00> : vector<2x64xf32>
    %282 = tpu.matmul %270, %28, %cst_156 {dimension_numbers = #tpu.dot_dimension_numbers<[1], [0], [0], [1], [0, 0, 1, 1], [], []>} : vector<2x64xf32>, vector<64x64xf32>, vector<2x64xf32> -> vector<2x64xf32>
    %283 = arith.addf %281, %282 : vector<2x64xf32>
    %284 = arith.negf %283 : vector<2x64xf32>
    %285 = math.exp %284 : vector<2x64xf32>
    %cst_157 = arith.constant 1.000000e+00 : f32
    %286 = vector.broadcast %cst_157 : f32 to vector<2x64xf32>
    %287 = arith.addf %286, %285 : vector<2x64xf32>
    %288 = arith.divf %286, %287 : vector<2x64xf32>
    %c16_158 = arith.constant 16 : index
    %c0_159 = arith.constant 0 : index
    %289 = vector.load %arg16[%c16_158, %c0_159] : memref<42x64xf32, #tpu.memory_space<vmem>>, vector<2x64xf32>
    %cst_160 = arith.constant dense<0.000000e+00> : vector<2x64xf32>
    %290 = tpu.matmul %270, %30, %cst_160 {dimension_numbers = #tpu.dot_dimension_numbers<[1], [0], [0], [1], [0, 0, 1, 1], [], []>} : vector<2x64xf32>, vector<64x64xf32>, vector<2x64xf32> -> vector<2x64xf32>
    %291 = vector.broadcast %31 : vector<1x64xf32> to vector<2x64xf32>
    %292 = arith.addf %290, %291 : vector<2x64xf32>
    %293 = arith.mulf %280, %292 : vector<2x64xf32>
    %294 = arith.addf %289, %293 : vector<2x64xf32>
    %295 = math.tanh %294 : vector<2x64xf32>
    %cst_161 = arith.constant 1.000000e+00 : f32
    %296 = vector.broadcast %cst_161 : f32 to vector<2x64xf32>
    %297 = arith.subf %296, %288 : vector<2x64xf32>
    %298 = arith.mulf %297, %295 : vector<2x64xf32>
    %299 = arith.mulf %288, %270 : vector<2x64xf32>
    %300 = arith.addf %298, %299 : vector<2x64xf32>
    %c16_162 = arith.constant 16 : index
    %c0_163 = arith.constant 0 : index
    %301 = vector.load %arg17[%c16_162, %c0_163] : memref<42x64xf32, #tpu.memory_space<vmem>>, vector<2x64xf32>
    tpu.vector_store %arg17[%c16_162, %c0_163], %300 {strides = array<i32>} : memref<42x64xf32, #tpu.memory_space<vmem>>, vector<2x64xf32>,
    %c24 = arith.constant 24 : index
    %c0_164 = arith.constant 0 : index
    %302 = vector.load %arg18[%c24, %c0_164] : memref<42x64xf32, #tpu.memory_space<vmem>>, vector<2x64xf32>
    tpu.vector_store %arg18[%c24, %c0_164], %300 {strides = array<i32>} : memref<42x64xf32, #tpu.memory_space<vmem>>, vector<2x64xf32>,
    %c18 = arith.constant 18 : index
    %c0_165 = arith.constant 0 : index
    %303 = vector.load %arg14[%c18, %c0_165] : memref<42x64xf32, #tpu.memory_space<vmem>>, vector<2x64xf32>
    %cst_166 = arith.constant dense<0.000000e+00> : vector<2x64xf32>
    %304 = tpu.matmul %300, %26, %cst_166 {dimension_numbers = #tpu.dot_dimension_numbers<[1], [0], [0], [1], [0, 0, 1, 1], [], []>} : vector<2x64xf32>, vector<64x64xf32>, vector<2x64xf32> -> vector<2x64xf32>
    %305 = arith.addf %303, %304 : vector<2x64xf32>
    %306 = arith.negf %305 : vector<2x64xf32>
    %307 = math.exp %306 : vector<2x64xf32>
    %cst_167 = arith.constant 1.000000e+00 : f32
    %308 = vector.broadcast %cst_167 : f32 to vector<2x64xf32>
    %309 = arith.addf %308, %307 : vector<2x64xf32>
    %310 = arith.divf %308, %309 : vector<2x64xf32>
    %c18_168 = arith.constant 18 : index
    %c0_169 = arith.constant 0 : index
    %311 = vector.load %arg15[%c18_168, %c0_169] : memref<42x64xf32, #tpu.memory_space<vmem>>, vector<2x64xf32>
    %cst_170 = arith.constant dense<0.000000e+00> : vector<2x64xf32>
    %312 = tpu.matmul %300, %28, %cst_170 {dimension_numbers = #tpu.dot_dimension_numbers<[1], [0], [0], [1], [0, 0, 1, 1], [], []>} : vector<2x64xf32>, vector<64x64xf32>, vector<2x64xf32> -> vector<2x64xf32>
    %313 = arith.addf %311, %312 : vector<2x64xf32>
    %314 = arith.negf %313 : vector<2x64xf32>
    %315 = math.exp %314 : vector<2x64xf32>
    %cst_171 = arith.constant 1.000000e+00 : f32
    %316 = vector.broadcast %cst_171 : f32 to vector<2x64xf32>
    %317 = arith.addf %316, %315 : vector<2x64xf32>
    %318 = arith.divf %316, %317 : vector<2x64xf32>
    %c18_172 = arith.constant 18 : index
    %c0_173 = arith.constant 0 : index
    %319 = vector.load %arg16[%c18_172, %c0_173] : memref<42x64xf32, #tpu.memory_space<vmem>>, vector<2x64xf32>
    %cst_174 = arith.constant dense<0.000000e+00> : vector<2x64xf32>
    %320 = tpu.matmul %300, %30, %cst_174 {dimension_numbers = #tpu.dot_dimension_numbers<[1], [0], [0], [1], [0, 0, 1, 1], [], []>} : vector<2x64xf32>, vector<64x64xf32>, vector<2x64xf32> -> vector<2x64xf32>
    %321 = vector.broadcast %31 : vector<1x64xf32> to vector<2x64xf32>
    %322 = arith.addf %320, %321 : vector<2x64xf32>
    %323 = arith.mulf %310, %322 : vector<2x64xf32>
    %324 = arith.addf %319, %323 : vector<2x64xf32>
    %325 = math.tanh %324 : vector<2x64xf32>
    %cst_175 = arith.constant 1.000000e+00 : f32
    %326 = vector.broadcast %cst_175 : f32 to vector<2x64xf32>
    %327 = arith.subf %326, %318 : vector<2x64xf32>
    %328 = arith.mulf %327, %325 : vector<2x64xf32>
    %329 = arith.mulf %318, %300 : vector<2x64xf32>
    %330 = arith.addf %328, %329 : vector<2x64xf32>
    %c18_176 = arith.constant 18 : index
    %c0_177 = arith.constant 0 : index
    %331 = vector.load %arg17[%c18_176, %c0_177] : memref<42x64xf32, #tpu.memory_space<vmem>>, vector<2x64xf32>
    tpu.vector_store %arg17[%c18_176, %c0_177], %330 {strides = array<i32>} : memref<42x64xf32, #tpu.memory_space<vmem>>, vector<2x64xf32>,
    %c22 = arith.constant 22 : index
    %c0_178 = arith.constant 0 : index
    %332 = vector.load %arg18[%c22, %c0_178] : memref<42x64xf32, #tpu.memory_space<vmem>>, vector<2x64xf32>
    tpu.vector_store %arg18[%c22, %c0_178], %330 {strides = array<i32>} : memref<42x64xf32, #tpu.memory_space<vmem>>, vector<2x64xf32>,
    %c20 = arith.constant 20 : index
    %c0_179 = arith.constant 0 : index
    %333 = vector.load %arg14[%c20, %c0_179] : memref<42x64xf32, #tpu.memory_space<vmem>>, vector<2x64xf32>
    %cst_180 = arith.constant dense<0.000000e+00> : vector<2x64xf32>
    %334 = tpu.matmul %330, %26, %cst_180 {dimension_numbers = #tpu.dot_dimension_numbers<[1], [0], [0], [1], [0, 0, 1, 1], [], []>} : vector<2x64xf32>, vector<64x64xf32>, vector<2x64xf32> -> vector<2x64xf32>
    %335 = arith.addf %333, %334 : vector<2x64xf32>
    %336 = arith.negf %335 : vector<2x64xf32>
    %337 = math.exp %336 : vector<2x64xf32>
    %cst_181 = arith.constant 1.000000e+00 : f32
    %338 = vector.broadcast %cst_181 : f32 to vector<2x64xf32>
    %339 = arith.addf %338, %337 : vector<2x64xf32>
    %340 = arith.divf %338, %339 : vector<2x64xf32>
    %c20_182 = arith.constant 20 : index
    %c0_183 = arith.constant 0 : index
    %341 = vector.load %arg15[%c20_182, %c0_183] : memref<42x64xf32, #tpu.memory_space<vmem>>, vector<2x64xf32>
    %cst_184 = arith.constant dense<0.000000e+00> : vector<2x64xf32>
    %342 = tpu.matmul %330, %28, %cst_184 {dimension_numbers = #tpu.dot_dimension_numbers<[1], [0], [0], [1], [0, 0, 1, 1], [], []>} : vector<2x64xf32>, vector<64x64xf32>, vector<2x64xf32> -> vector<2x64xf32>
    %343 = arith.addf %341, %342 : vector<2x64xf32>
    %344 = arith.negf %343 : vector<2x64xf32>
    %345 = math.exp %344 : vector<2x64xf32>
    %cst_185 = arith.constant 1.000000e+00 : f32
    %346 = vector.broadcast %cst_185 : f32 to vector<2x64xf32>
    %347 = arith.addf %346, %345 : vector<2x64xf32>
    %348 = arith.divf %346, %347 : vector<2x64xf32>
    %c20_186 = arith.constant 20 : index
    %c0_187 = arith.constant 0 : index
    %349 = vector.load %arg16[%c20_186, %c0_187] : memref<42x64xf32, #tpu.memory_space<vmem>>, vector<2x64xf32>
    %cst_188 = arith.constant dense<0.000000e+00> : vector<2x64xf32>
    %350 = tpu.matmul %330, %30, %cst_188 {dimension_numbers = #tpu.dot_dimension_numbers<[1], [0], [0], [1], [0, 0, 1, 1], [], []>} : vector<2x64xf32>, vector<64x64xf32>, vector<2x64xf32> -> vector<2x64xf32>
    %351 = vector.broadcast %31 : vector<1x64xf32> to vector<2x64xf32>
    %352 = arith.addf %350, %351 : vector<2x64xf32>
    %353 = arith.mulf %340, %352 : vector<2x64xf32>
    %354 = arith.addf %349, %353 : vector<2x64xf32>
    %355 = math.tanh %354 : vector<2x64xf32>
    %cst_189 = arith.constant 1.000000e+00 : f32
    %356 = vector.broadcast %cst_189 : f32 to vector<2x64xf32>
    %357 = arith.subf %356, %348 : vector<2x64xf32>
    %358 = arith.mulf %357, %355 : vector<2x64xf32>
    %359 = arith.mulf %348, %330 : vector<2x64xf32>
    %360 = arith.addf %358, %359 : vector<2x64xf32>
    %c20_190 = arith.constant 20 : index
    %c0_191 = arith.constant 0 : index
    %361 = vector.load %arg17[%c20_190, %c0_191] : memref<42x64xf32, #tpu.memory_space<vmem>>, vector<2x64xf32>
    tpu.vector_store %arg17[%c20_190, %c0_191], %360 {strides = array<i32>} : memref<42x64xf32, #tpu.memory_space<vmem>>, vector<2x64xf32>,
    %c20_192 = arith.constant 20 : index
    %c0_193 = arith.constant 0 : index
    %362 = vector.load %arg18[%c20_192, %c0_193] : memref<42x64xf32, #tpu.memory_space<vmem>>, vector<2x64xf32>
    tpu.vector_store %arg18[%c20_192, %c0_193], %360 {strides = array<i32>} : memref<42x64xf32, #tpu.memory_space<vmem>>, vector<2x64xf32>,
    %c22_194 = arith.constant 22 : index
    %c0_195 = arith.constant 0 : index
    %363 = vector.load %arg14[%c22_194, %c0_195] : memref<42x64xf32, #tpu.memory_space<vmem>>, vector<2x64xf32>
    %cst_196 = arith.constant dense<0.000000e+00> : vector<2x64xf32>
    %364 = tpu.matmul %360, %26, %cst_196 {dimension_numbers = #tpu.dot_dimension_numbers<[1], [0], [0], [1], [0, 0, 1, 1], [], []>} : vector<2x64xf32>, vector<64x64xf32>, vector<2x64xf32> -> vector<2x64xf32>
    %365 = arith.addf %363, %364 : vector<2x64xf32>
    %366 = arith.negf %365 : vector<2x64xf32>
    %367 = math.exp %366 : vector<2x64xf32>
    %cst_197 = arith.constant 1.000000e+00 : f32
    %368 = vector.broadcast %cst_197 : f32 to vector<2x64xf32>
    %369 = arith.addf %368, %367 : vector<2x64xf32>
    %370 = arith.divf %368, %369 : vector<2x64xf32>
    %c22_198 = arith.constant 22 : index
    %c0_199 = arith.constant 0 : index
    %371 = vector.load %arg15[%c22_198, %c0_199] : memref<42x64xf32, #tpu.memory_space<vmem>>, vector<2x64xf32>
    %cst_200 = arith.constant dense<0.000000e+00> : vector<2x64xf32>
    %372 = tpu.matmul %360, %28, %cst_200 {dimension_numbers = #tpu.dot_dimension_numbers<[1], [0], [0], [1], [0, 0, 1, 1], [], []>} : vector<2x64xf32>, vector<64x64xf32>, vector<2x64xf32> -> vector<2x64xf32>
    %373 = arith.addf %371, %372 : vector<2x64xf32>
    %374 = arith.negf %373 : vector<2x64xf32>
    %375 = math.exp %374 : vector<2x64xf32>
    %cst_201 = arith.constant 1.000000e+00 : f32
    %376 = vector.broadcast %cst_201 : f32 to vector<2x64xf32>
    %377 = arith.addf %376, %375 : vector<2x64xf32>
    %378 = arith.divf %376, %377 : vector<2x64xf32>
    %c22_202 = arith.constant 22 : index
    %c0_203 = arith.constant 0 : index
    %379 = vector.load %arg16[%c22_202, %c0_203] : memref<42x64xf32, #tpu.memory_space<vmem>>, vector<2x64xf32>
    %cst_204 = arith.constant dense<0.000000e+00> : vector<2x64xf32>
    %380 = tpu.matmul %360, %30, %cst_204 {dimension_numbers = #tpu.dot_dimension_numbers<[1], [0], [0], [1], [0, 0, 1, 1], [], []>} : vector<2x64xf32>, vector<64x64xf32>, vector<2x64xf32> -> vector<2x64xf32>
    %381 = vector.broadcast %31 : vector<1x64xf32> to vector<2x64xf32>
    %382 = arith.addf %380, %381 : vector<2x64xf32>
    %383 = arith.mulf %370, %382 : vector<2x64xf32>
    %384 = arith.addf %379, %383 : vector<2x64xf32>
    %385 = math.tanh %384 : vector<2x64xf32>
    %cst_205 = arith.constant 1.000000e+00 : f32
    %386 = vector.broadcast %cst_205 : f32 to vector<2x64xf32>
    %387 = arith.subf %386, %378 : vector<2x64xf32>
    %388 = arith.mulf %387, %385 : vector<2x64xf32>
    %389 = arith.mulf %378, %360 : vector<2x64xf32>
    %390 = arith.addf %388, %389 : vector<2x64xf32>
    %c22_206 = arith.constant 22 : index
    %c0_207 = arith.constant 0 : index
    %391 = vector.load %arg17[%c22_206, %c0_207] : memref<42x64xf32, #tpu.memory_space<vmem>>, vector<2x64xf32>
    tpu.vector_store %arg17[%c22_206, %c0_207], %390 {strides = array<i32>} : memref<42x64xf32, #tpu.memory_space<vmem>>, vector<2x64xf32>,
    %c18_208 = arith.constant 18 : index
    %c0_209 = arith.constant 0 : index
    %392 = vector.load %arg18[%c18_208, %c0_209] : memref<42x64xf32, #tpu.memory_space<vmem>>, vector<2x64xf32>
    tpu.vector_store %arg18[%c18_208, %c0_209], %390 {strides = array<i32>} : memref<42x64xf32, #tpu.memory_space<vmem>>, vector<2x64xf32>,
    %c24_210 = arith.constant 24 : index
    %c0_211 = arith.constant 0 : index
    %393 = vector.load %arg14[%c24_210, %c0_211] : memref<42x64xf32, #tpu.memory_space<vmem>>, vector<2x64xf32>
    %cst_212 = arith.constant dense<0.000000e+00> : vector<2x64xf32>
    %394 = tpu.matmul %390, %26, %cst_212 {dimension_numbers = #tpu.dot_dimension_numbers<[1], [0], [0], [1], [0, 0, 1, 1], [], []>} : vector<2x64xf32>, vector<64x64xf32>, vector<2x64xf32> -> vector<2x64xf32>
    %395 = arith.addf %393, %394 : vector<2x64xf32>
    %396 = arith.negf %395 : vector<2x64xf32>
    %397 = math.exp %396 : vector<2x64xf32>
    %cst_213 = arith.constant 1.000000e+00 : f32
    %398 = vector.broadcast %cst_213 : f32 to vector<2x64xf32>
    %399 = arith.addf %398, %397 : vector<2x64xf32>
    %400 = arith.divf %398, %399 : vector<2x64xf32>
    %c24_214 = arith.constant 24 : index
    %c0_215 = arith.constant 0 : index
    %401 = vector.load %arg15[%c24_214, %c0_215] : memref<42x64xf32, #tpu.memory_space<vmem>>, vector<2x64xf32>
    %cst_216 = arith.constant dense<0.000000e+00> : vector<2x64xf32>
    %402 = tpu.matmul %390, %28, %cst_216 {dimension_numbers = #tpu.dot_dimension_numbers<[1], [0], [0], [1], [0, 0, 1, 1], [], []>} : vector<2x64xf32>, vector<64x64xf32>, vector<2x64xf32> -> vector<2x64xf32>
    %403 = arith.addf %401, %402 : vector<2x64xf32>
    %404 = arith.negf %403 : vector<2x64xf32>
    %405 = math.exp %404 : vector<2x64xf32>
    %cst_217 = arith.constant 1.000000e+00 : f32
    %406 = vector.broadcast %cst_217 : f32 to vector<2x64xf32>
    %407 = arith.addf %406, %405 : vector<2x64xf32>
    %408 = arith.divf %406, %407 : vector<2x64xf32>
    %c24_218 = arith.constant 24 : index
    %c0_219 = arith.constant 0 : index
    %409 = vector.load %arg16[%c24_218, %c0_219] : memref<42x64xf32, #tpu.memory_space<vmem>>, vector<2x64xf32>
    %cst_220 = arith.constant dense<0.000000e+00> : vector<2x64xf32>
    %410 = tpu.matmul %390, %30, %cst_220 {dimension_numbers = #tpu.dot_dimension_numbers<[1], [0], [0], [1], [0, 0, 1, 1], [], []>} : vector<2x64xf32>, vector<64x64xf32>, vector<2x64xf32> -> vector<2x64xf32>
    %411 = vector.broadcast %31 : vector<1x64xf32> to vector<2x64xf32>
    %412 = arith.addf %410, %411 : vector<2x64xf32>
    %413 = arith.mulf %400, %412 : vector<2x64xf32>
    %414 = arith.addf %409, %413 : vector<2x64xf32>
    %415 = math.tanh %414 : vector<2x64xf32>
    %cst_221 = arith.constant 1.000000e+00 : f32
    %416 = vector.broadcast %cst_221 : f32 to vector<2x64xf32>
    %417 = arith.subf %416, %408 : vector<2x64xf32>
    %418 = arith.mulf %417, %415 : vector<2x64xf32>
    %419 = arith.mulf %408, %390 : vector<2x64xf32>
    %420 = arith.addf %418, %419 : vector<2x64xf32>
    %c24_222 = arith.constant 24 : index
    %c0_223 = arith.constant 0 : index
    %421 = vector.load %arg17[%c24_222, %c0_223] : memref<42x64xf32, #tpu.memory_space<vmem>>, vector<2x64xf32>
    tpu.vector_store %arg17[%c24_222, %c0_223], %420 {strides = array<i32>} : memref<42x64xf32, #tpu.memory_space<vmem>>, vector<2x64xf32>,
    %c16_224 = arith.constant 16 : index
    %c0_225 = arith.constant 0 : index
    %422 = vector.load %arg18[%c16_224, %c0_225] : memref<42x64xf32, #tpu.memory_space<vmem>>, vector<2x64xf32>
    tpu.vector_store %arg18[%c16_224, %c0_225], %420 {strides = array<i32>} : memref<42x64xf32, #tpu.memory_space<vmem>>, vector<2x64xf32>,
    %c26_226 = arith.constant 26 : index
    %c0_227 = arith.constant 0 : index
    %423 = vector.load %arg14[%c26_226, %c0_227] : memref<42x64xf32, #tpu.memory_space<vmem>>, vector<2x64xf32>
    %cst_228 = arith.constant dense<0.000000e+00> : vector<2x64xf32>
    %424 = tpu.matmul %420, %26, %cst_228 {dimension_numbers = #tpu.dot_dimension_numbers<[1], [0], [0], [1], [0, 0, 1, 1], [], []>} : vector<2x64xf32>, vector<64x64xf32>, vector<2x64xf32> -> vector<2x64xf32>
    %425 = arith.addf %423, %424 : vector<2x64xf32>
    %426 = arith.negf %425 : vector<2x64xf32>
    %427 = math.exp %426 : vector<2x64xf32>
    %cst_229 = arith.constant 1.000000e+00 : f32
    %428 = vector.broadcast %cst_229 : f32 to vector<2x64xf32>
    %429 = arith.addf %428, %427 : vector<2x64xf32>
    %430 = arith.divf %428, %429 : vector<2x64xf32>
    %c26_230 = arith.constant 26 : index
    %c0_231 = arith.constant 0 : index
    %431 = vector.load %arg15[%c26_230, %c0_231] : memref<42x64xf32, #tpu.memory_space<vmem>>, vector<2x64xf32>
    %cst_232 = arith.constant dense<0.000000e+00> : vector<2x64xf32>
    %432 = tpu.matmul %420, %28, %cst_232 {dimension_numbers = #tpu.dot_dimension_numbers<[1], [0], [0], [1], [0, 0, 1, 1], [], []>} : vector<2x64xf32>, vector<64x64xf32>, vector<2x64xf32> -> vector<2x64xf32>
    %433 = arith.addf %431, %432 : vector<2x64xf32>
    %434 = arith.negf %433 : vector<2x64xf32>
    %435 = math.exp %434 : vector<2x64xf32>
    %cst_233 = arith.constant 1.000000e+00 : f32
    %436 = vector.broadcast %cst_233 : f32 to vector<2x64xf32>
    %437 = arith.addf %436, %435 : vector<2x64xf32>
    %438 = arith.divf %436, %437 : vector<2x64xf32>
    %c26_234 = arith.constant 26 : index
    %c0_235 = arith.constant 0 : index
    %439 = vector.load %arg16[%c26_234, %c0_235] : memref<42x64xf32, #tpu.memory_space<vmem>>, vector<2x64xf32>
    %cst_236 = arith.constant dense<0.000000e+00> : vector<2x64xf32>
    %440 = tpu.matmul %420, %30, %cst_236 {dimension_numbers = #tpu.dot_dimension_numbers<[1], [0], [0], [1], [0, 0, 1, 1], [], []>} : vector<2x64xf32>, vector<64x64xf32>, vector<2x64xf32> -> vector<2x64xf32>
    %441 = vector.broadcast %31 : vector<1x64xf32> to vector<2x64xf32>
    %442 = arith.addf %440, %441 : vector<2x64xf32>
    %443 = arith.mulf %430, %442 : vector<2x64xf32>
    %444 = arith.addf %439, %443 : vector<2x64xf32>
    %445 = math.tanh %444 : vector<2x64xf32>
    %cst_237 = arith.constant 1.000000e+00 : f32
    %446 = vector.broadcast %cst_237 : f32 to vector<2x64xf32>
    %447 = arith.subf %446, %438 : vector<2x64xf32>
    %448 = arith.mulf %447, %445 : vector<2x64xf32>
    %449 = arith.mulf %438, %420 : vector<2x64xf32>
    %450 = arith.addf %448, %449 : vector<2x64xf32>
    %c26_238 = arith.constant 26 : index
    %c0_239 = arith.constant 0 : index
    %451 = vector.load %arg17[%c26_238, %c0_239] : memref<42x64xf32, #tpu.memory_space<vmem>>, vector<2x64xf32>
    tpu.vector_store %arg17[%c26_238, %c0_239], %450 {strides = array<i32>} : memref<42x64xf32, #tpu.memory_space<vmem>>, vector<2x64xf32>,
    %c14_240 = arith.constant 14 : index
    %c0_241 = arith.constant 0 : index
    %452 = vector.load %arg18[%c14_240, %c0_241] : memref<42x64xf32, #tpu.memory_space<vmem>>, vector<2x64xf32>
    tpu.vector_store %arg18[%c14_240, %c0_241], %450 {strides = array<i32>} : memref<42x64xf32, #tpu.memory_space<vmem>>, vector<2x64xf32>,
    %c28_242 = arith.constant 28 : index
    %c0_243 = arith.constant 0 : index
    %453 = vector.load %arg14[%c28_242, %c0_243] : memref<42x64xf32, #tpu.memory_space<vmem>>, vector<2x64xf32>
    %cst_244 = arith.constant dense<0.000000e+00> : vector<2x64xf32>
    %454 = tpu.matmul %450, %26, %cst_244 {dimension_numbers = #tpu.dot_dimension_numbers<[1], [0], [0], [1], [0, 0, 1, 1], [], []>} : vector<2x64xf32>, vector<64x64xf32>, vector<2x64xf32> -> vector<2x64xf32>
    %455 = arith.addf %453, %454 : vector<2x64xf32>
    %456 = arith.negf %455 : vector<2x64xf32>
    %457 = math.exp %456 : vector<2x64xf32>
    %cst_245 = arith.constant 1.000000e+00 : f32
    %458 = vector.broadcast %cst_245 : f32 to vector<2x64xf32>
    %459 = arith.addf %458, %457 : vector<2x64xf32>
    %460 = arith.divf %458, %459 : vector<2x64xf32>
    %c28_246 = arith.constant 28 : index
    %c0_247 = arith.constant 0 : index
    %461 = vector.load %arg15[%c28_246, %c0_247] : memref<42x64xf32, #tpu.memory_space<vmem>>, vector<2x64xf32>
    %cst_248 = arith.constant dense<0.000000e+00> : vector<2x64xf32>
    %462 = tpu.matmul %450, %28, %cst_248 {dimension_numbers = #tpu.dot_dimension_numbers<[1], [0], [0], [1], [0, 0, 1, 1], [], []>} : vector<2x64xf32>, vector<64x64xf32>, vector<2x64xf32> -> vector<2x64xf32>
    %463 = arith.addf %461, %462 : vector<2x64xf32>
    %464 = arith.negf %463 : vector<2x64xf32>
    %465 = math.exp %464 : vector<2x64xf32>
    %cst_249 = arith.constant 1.000000e+00 : f32
    %466 = vector.broadcast %cst_249 : f32 to vector<2x64xf32>
    %467 = arith.addf %466, %465 : vector<2x64xf32>
    %468 = arith.divf %466, %467 : vector<2x64xf32>
    %c28_250 = arith.constant 28 : index
    %c0_251 = arith.constant 0 : index
    %469 = vector.load %arg16[%c28_250, %c0_251] : memref<42x64xf32, #tpu.memory_space<vmem>>, vector<2x64xf32>
    %cst_252 = arith.constant dense<0.000000e+00> : vector<2x64xf32>
    %470 = tpu.matmul %450, %30, %cst_252 {dimension_numbers = #tpu.dot_dimension_numbers<[1], [0], [0], [1], [0, 0, 1, 1], [], []>} : vector<2x64xf32>, vector<64x64xf32>, vector<2x64xf32> -> vector<2x64xf32>
    %471 = vector.broadcast %31 : vector<1x64xf32> to vector<2x64xf32>
    %472 = arith.addf %470, %471 : vector<2x64xf32>
    %473 = arith.mulf %460, %472 : vector<2x64xf32>
    %474 = arith.addf %469, %473 : vector<2x64xf32>
    %475 = math.tanh %474 : vector<2x64xf32>
    %cst_253 = arith.constant 1.000000e+00 : f32
    %476 = vector.broadcast %cst_253 : f32 to vector<2x64xf32>
    %477 = arith.subf %476, %468 : vector<2x64xf32>
    %478 = arith.mulf %477, %475 : vector<2x64xf32>
    %479 = arith.mulf %468, %450 : vector<2x64xf32>
    %480 = arith.addf %478, %479 : vector<2x64xf32>
    %c28_254 = arith.constant 28 : index
    %c0_255 = arith.constant 0 : index
    %481 = vector.load %arg17[%c28_254, %c0_255] : memref<42x64xf32, #tpu.memory_space<vmem>>, vector<2x64xf32>
    tpu.vector_store %arg17[%c28_254, %c0_255], %480 {strides = array<i32>} : memref<42x64xf32, #tpu.memory_space<vmem>>, vector<2x64xf32>,
    %c12_256 = arith.constant 12 : index
    %c0_257 = arith.constant 0 : index
    %482 = vector.load %arg18[%c12_256, %c0_257] : memref<42x64xf32, #tpu.memory_space<vmem>>, vector<2x64xf32>
    tpu.vector_store %arg18[%c12_256, %c0_257], %480 {strides = array<i32>} : memref<42x64xf32, #tpu.memory_space<vmem>>, vector<2x64xf32>,
    %c30_258 = arith.constant 30 : index
    %c0_259 = arith.constant 0 : index
    %483 = vector.load %arg14[%c30_258, %c0_259] : memref<42x64xf32, #tpu.memory_space<vmem>>, vector<2x64xf32>
    %cst_260 = arith.constant dense<0.000000e+00> : vector<2x64xf32>
    %484 = tpu.matmul %480, %26, %cst_260 {dimension_numbers = #tpu.dot_dimension_numbers<[1], [0], [0], [1], [0, 0, 1, 1], [], []>} : vector<2x64xf32>, vector<64x64xf32>, vector<2x64xf32> -> vector<2x64xf32>
    %485 = arith.addf %483, %484 : vector<2x64xf32>
    %486 = arith.negf %485 : vector<2x64xf32>
    %487 = math.exp %486 : vector<2x64xf32>
    %cst_261 = arith.constant 1.000000e+00 : f32
    %488 = vector.broadcast %cst_261 : f32 to vector<2x64xf32>
    %489 = arith.addf %488, %487 : vector<2x64xf32>
    %490 = arith.divf %488, %489 : vector<2x64xf32>
    %c30_262 = arith.constant 30 : index
    %c0_263 = arith.constant 0 : index
    %491 = vector.load %arg15[%c30_262, %c0_263] : memref<42x64xf32, #tpu.memory_space<vmem>>, vector<2x64xf32>
    %cst_264 = arith.constant dense<0.000000e+00> : vector<2x64xf32>
    %492 = tpu.matmul %480, %28, %cst_264 {dimension_numbers = #tpu.dot_dimension_numbers<[1], [0], [0], [1], [0, 0, 1, 1], [], []>} : vector<2x64xf32>, vector<64x64xf32>, vector<2x64xf32> -> vector<2x64xf32>
    %493 = arith.addf %491, %492 : vector<2x64xf32>
    %494 = arith.negf %493 : vector<2x64xf32>
    %495 = math.exp %494 : vector<2x64xf32>
    %cst_265 = arith.constant 1.000000e+00 : f32
    %496 = vector.broadcast %cst_265 : f32 to vector<2x64xf32>
    %497 = arith.addf %496, %495 : vector<2x64xf32>
    %498 = arith.divf %496, %497 : vector<2x64xf32>
    %c30_266 = arith.constant 30 : index
    %c0_267 = arith.constant 0 : index
    %499 = vector.load %arg16[%c30_266, %c0_267] : memref<42x64xf32, #tpu.memory_space<vmem>>, vector<2x64xf32>
    %cst_268 = arith.constant dense<0.000000e+00> : vector<2x64xf32>
    %500 = tpu.matmul %480, %30, %cst_268 {dimension_numbers = #tpu.dot_dimension_numbers<[1], [0], [0], [1], [0, 0, 1, 1], [], []>} : vector<2x64xf32>, vector<64x64xf32>, vector<2x64xf32> -> vector<2x64xf32>
    %501 = vector.broadcast %31 : vector<1x64xf32> to vector<2x64xf32>
    %502 = arith.addf %500, %501 : vector<2x64xf32>
    %503 = arith.mulf %490, %502 : vector<2x64xf32>
    %504 = arith.addf %499, %503 : vector<2x64xf32>
    %505 = math.tanh %504 : vector<2x64xf32>
    %cst_269 = arith.constant 1.000000e+00 : f32
    %506 = vector.broadcast %cst_269 : f32 to vector<2x64xf32>
    %507 = arith.subf %506, %498 : vector<2x64xf32>
    %508 = arith.mulf %507, %505 : vector<2x64xf32>
    %509 = arith.mulf %498, %480 : vector<2x64xf32>
    %510 = arith.addf %508, %509 : vector<2x64xf32>
    %c30_270 = arith.constant 30 : index
    %c0_271 = arith.constant 0 : index
    %511 = vector.load %arg17[%c30_270, %c0_271] : memref<42x64xf32, #tpu.memory_space<vmem>>, vector<2x64xf32>
    tpu.vector_store %arg17[%c30_270, %c0_271], %510 {strides = array<i32>} : memref<42x64xf32, #tpu.memory_space<vmem>>, vector<2x64xf32>,
    %c10_272 = arith.constant 10 : index
    %c0_273 = arith.constant 0 : index
    %512 = vector.load %arg18[%c10_272, %c0_273] : memref<42x64xf32, #tpu.memory_space<vmem>>, vector<2x64xf32>
    tpu.vector_store %arg18[%c10_272, %c0_273], %510 {strides = array<i32>} : memref<42x64xf32, #tpu.memory_space<vmem>>, vector<2x64xf32>,
    %c32_274 = arith.constant 32 : index
    %c0_275 = arith.constant 0 : index
    %513 = vector.load %arg14[%c32_274, %c0_275] : memref<42x64xf32, #tpu.memory_space<vmem>>, vector<2x64xf32>
    %cst_276 = arith.constant dense<0.000000e+00> : vector<2x64xf32>
    %514 = tpu.matmul %510, %26, %cst_276 {dimension_numbers = #tpu.dot_dimension_numbers<[1], [0], [0], [1], [0, 0, 1, 1], [], []>} : vector<2x64xf32>, vector<64x64xf32>, vector<2x64xf32> -> vector<2x64xf32>
    %515 = arith.addf %513, %514 : vector<2x64xf32>
    %516 = arith.negf %515 : vector<2x64xf32>
    %517 = math.exp %516 : vector<2x64xf32>
    %cst_277 = arith.constant 1.000000e+00 : f32
    %518 = vector.broadcast %cst_277 : f32 to vector<2x64xf32>
    %519 = arith.addf %518, %517 : vector<2x64xf32>
    %520 = arith.divf %518, %519 : vector<2x64xf32>
    %c32_278 = arith.constant 32 : index
    %c0_279 = arith.constant 0 : index
    %521 = vector.load %arg15[%c32_278, %c0_279] : memref<42x64xf32, #tpu.memory_space<vmem>>, vector<2x64xf32>
    %cst_280 = arith.constant dense<0.000000e+00> : vector<2x64xf32>
    %522 = tpu.matmul %510, %28, %cst_280 {dimension_numbers = #tpu.dot_dimension_numbers<[1], [0], [0], [1], [0, 0, 1, 1], [], []>} : vector<2x64xf32>, vector<64x64xf32>, vector<2x64xf32> -> vector<2x64xf32>
    %523 = arith.addf %521, %522 : vector<2x64xf32>
    %524 = arith.negf %523 : vector<2x64xf32>
    %525 = math.exp %524 : vector<2x64xf32>
    %cst_281 = arith.constant 1.000000e+00 : f32
    %526 = vector.broadcast %cst_281 : f32 to vector<2x64xf32>
    %527 = arith.addf %526, %525 : vector<2x64xf32>
    %528 = arith.divf %526, %527 : vector<2x64xf32>
    %c32_282 = arith.constant 32 : index
    %c0_283 = arith.constant 0 : index
    %529 = vector.load %arg16[%c32_282, %c0_283] : memref<42x64xf32, #tpu.memory_space<vmem>>, vector<2x64xf32>
    %cst_284 = arith.constant dense<0.000000e+00> : vector<2x64xf32>
    %530 = tpu.matmul %510, %30, %cst_284 {dimension_numbers = #tpu.dot_dimension_numbers<[1], [0], [0], [1], [0, 0, 1, 1], [], []>} : vector<2x64xf32>, vector<64x64xf32>, vector<2x64xf32> -> vector<2x64xf32>
    %531 = vector.broadcast %31 : vector<1x64xf32> to vector<2x64xf32>
    %532 = arith.addf %530, %531 : vector<2x64xf32>
    %533 = arith.mulf %520, %532 : vector<2x64xf32>
    %534 = arith.addf %529, %533 : vector<2x64xf32>
    %535 = math.tanh %534 : vector<2x64xf32>
    %cst_285 = arith.constant 1.000000e+00 : f32
    %536 = vector.broadcast %cst_285 : f32 to vector<2x64xf32>
    %537 = arith.subf %536, %528 : vector<2x64xf32>
    %538 = arith.mulf %537, %535 : vector<2x64xf32>
    %539 = arith.mulf %528, %510 : vector<2x64xf32>
    %540 = arith.addf %538, %539 : vector<2x64xf32>
    %c32_286 = arith.constant 32 : index
    %c0_287 = arith.constant 0 : index
    %541 = vector.load %arg17[%c32_286, %c0_287] : memref<42x64xf32, #tpu.memory_space<vmem>>, vector<2x64xf32>
    tpu.vector_store %arg17[%c32_286, %c0_287], %540 {strides = array<i32>} : memref<42x64xf32, #tpu.memory_space<vmem>>, vector<2x64xf32>,
    %c8_288 = arith.constant 8 : index
    %c0_289 = arith.constant 0 : index
    %542 = vector.load %arg18[%c8_288, %c0_289] : memref<42x64xf32, #tpu.memory_space<vmem>>, vector<2x64xf32>
    tpu.vector_store %arg18[%c8_288, %c0_289], %540 {strides = array<i32>} : memref<42x64xf32, #tpu.memory_space<vmem>>, vector<2x64xf32>,
    %c34_290 = arith.constant 34 : index
    %c0_291 = arith.constant 0 : index
    %543 = vector.load %arg14[%c34_290, %c0_291] : memref<42x64xf32, #tpu.memory_space<vmem>>, vector<2x64xf32>
    %cst_292 = arith.constant dense<0.000000e+00> : vector<2x64xf32>
    %544 = tpu.matmul %540, %26, %cst_292 {dimension_numbers = #tpu.dot_dimension_numbers<[1], [0], [0], [1], [0, 0, 1, 1], [], []>} : vector<2x64xf32>, vector<64x64xf32>, vector<2x64xf32> -> vector<2x64xf32>
    %545 = arith.addf %543, %544 : vector<2x64xf32>
    %546 = arith.negf %545 : vector<2x64xf32>
    %547 = math.exp %546 : vector<2x64xf32>
    %cst_293 = arith.constant 1.000000e+00 : f32
    %548 = vector.broadcast %cst_293 : f32 to vector<2x64xf32>
    %549 = arith.addf %548, %547 : vector<2x64xf32>
    %550 = arith.divf %548, %549 : vector<2x64xf32>
    %c34_294 = arith.constant 34 : index
    %c0_295 = arith.constant 0 : index
    %551 = vector.load %arg15[%c34_294, %c0_295] : memref<42x64xf32, #tpu.memory_space<vmem>>, vector<2x64xf32>
    %cst_296 = arith.constant dense<0.000000e+00> : vector<2x64xf32>
    %552 = tpu.matmul %540, %28, %cst_296 {dimension_numbers = #tpu.dot_dimension_numbers<[1], [0], [0], [1], [0, 0, 1, 1], [], []>} : vector<2x64xf32>, vector<64x64xf32>, vector<2x64xf32> -> vector<2x64xf32>
    %553 = arith.addf %551, %552 : vector<2x64xf32>
    %554 = arith.negf %553 : vector<2x64xf32>
    %555 = math.exp %554 : vector<2x64xf32>
    %cst_297 = arith.constant 1.000000e+00 : f32
    %556 = vector.broadcast %cst_297 : f32 to vector<2x64xf32>
    %557 = arith.addf %556, %555 : vector<2x64xf32>
    %558 = arith.divf %556, %557 : vector<2x64xf32>
    %c34_298 = arith.constant 34 : index
    %c0_299 = arith.constant 0 : index
    %559 = vector.load %arg16[%c34_298, %c0_299] : memref<42x64xf32, #tpu.memory_space<vmem>>, vector<2x64xf32>
    %cst_300 = arith.constant dense<0.000000e+00> : vector<2x64xf32>
    %560 = tpu.matmul %540, %30, %cst_300 {dimension_numbers = #tpu.dot_dimension_numbers<[1], [0], [0], [1], [0, 0, 1, 1], [], []>} : vector<2x64xf32>, vector<64x64xf32>, vector<2x64xf32> -> vector<2x64xf32>
    %561 = vector.broadcast %31 : vector<1x64xf32> to vector<2x64xf32>
    %562 = arith.addf %560, %561 : vector<2x64xf32>
    %563 = arith.mulf %550, %562 : vector<2x64xf32>
    %564 = arith.addf %559, %563 : vector<2x64xf32>
    %565 = math.tanh %564 : vector<2x64xf32>
    %cst_301 = arith.constant 1.000000e+00 : f32
    %566 = vector.broadcast %cst_301 : f32 to vector<2x64xf32>
    %567 = arith.subf %566, %558 : vector<2x64xf32>
    %568 = arith.mulf %567, %565 : vector<2x64xf32>
    %569 = arith.mulf %558, %540 : vector<2x64xf32>
    %570 = arith.addf %568, %569 : vector<2x64xf32>
    %c34_302 = arith.constant 34 : index
    %c0_303 = arith.constant 0 : index
    %571 = vector.load %arg17[%c34_302, %c0_303] : memref<42x64xf32, #tpu.memory_space<vmem>>, vector<2x64xf32>
    tpu.vector_store %arg17[%c34_302, %c0_303], %570 {strides = array<i32>} : memref<42x64xf32, #tpu.memory_space<vmem>>, vector<2x64xf32>,
    %c6_304 = arith.constant 6 : index
    %c0_305 = arith.constant 0 : index
    %572 = vector.load %arg18[%c6_304, %c0_305] : memref<42x64xf32, #tpu.memory_space<vmem>>, vector<2x64xf32>
    tpu.vector_store %arg18[%c6_304, %c0_305], %570 {strides = array<i32>} : memref<42x64xf32, #tpu.memory_space<vmem>>, vector<2x64xf32>,
    %c36_306 = arith.constant 36 : index
    %c0_307 = arith.constant 0 : index
    %573 = vector.load %arg14[%c36_306, %c0_307] : memref<42x64xf32, #tpu.memory_space<vmem>>, vector<2x64xf32>
    %cst_308 = arith.constant dense<0.000000e+00> : vector<2x64xf32>
    %574 = tpu.matmul %570, %26, %cst_308 {dimension_numbers = #tpu.dot_dimension_numbers<[1], [0], [0], [1], [0, 0, 1, 1], [], []>} : vector<2x64xf32>, vector<64x64xf32>, vector<2x64xf32> -> vector<2x64xf32>
    %575 = arith.addf %573, %574 : vector<2x64xf32>
    %576 = arith.negf %575 : vector<2x64xf32>
    %577 = math.exp %576 : vector<2x64xf32>
    %cst_309 = arith.constant 1.000000e+00 : f32
    %578 = vector.broadcast %cst_309 : f32 to vector<2x64xf32>
    %579 = arith.addf %578, %577 : vector<2x64xf32>
    %580 = arith.divf %578, %579 : vector<2x64xf32>
    %c36_310 = arith.constant 36 : index
    %c0_311 = arith.constant 0 : index
    %581 = vector.load %arg15[%c36_310, %c0_311] : memref<42x64xf32, #tpu.memory_space<vmem>>, vector<2x64xf32>
    %cst_312 = arith.constant dense<0.000000e+00> : vector<2x64xf32>
    %582 = tpu.matmul %570, %28, %cst_312 {dimension_numbers = #tpu.dot_dimension_numbers<[1], [0], [0], [1], [0, 0, 1, 1], [], []>} : vector<2x64xf32>, vector<64x64xf32>, vector<2x64xf32> -> vector<2x64xf32>
    %583 = arith.addf %581, %582 : vector<2x64xf32>
    %584 = arith.negf %583 : vector<2x64xf32>
    %585 = math.exp %584 : vector<2x64xf32>
    %cst_313 = arith.constant 1.000000e+00 : f32
    %586 = vector.broadcast %cst_313 : f32 to vector<2x64xf32>
    %587 = arith.addf %586, %585 : vector<2x64xf32>
    %588 = arith.divf %586, %587 : vector<2x64xf32>
    %c36_314 = arith.constant 36 : index
    %c0_315 = arith.constant 0 : index
    %589 = vector.load %arg16[%c36_314, %c0_315] : memref<42x64xf32, #tpu.memory_space<vmem>>, vector<2x64xf32>
    %cst_316 = arith.constant dense<0.000000e+00> : vector<2x64xf32>
    %590 = tpu.matmul %570, %30, %cst_316 {dimension_numbers = #tpu.dot_dimension_numbers<[1], [0], [0], [1], [0, 0, 1, 1], [], []>} : vector<2x64xf32>, vector<64x64xf32>, vector<2x64xf32> -> vector<2x64xf32>
    %591 = vector.broadcast %31 : vector<1x64xf32> to vector<2x64xf32>
    %592 = arith.addf %590, %591 : vector<2x64xf32>
    %593 = arith.mulf %580, %592 : vector<2x64xf32>
    %594 = arith.addf %589, %593 : vector<2x64xf32>
    %595 = math.tanh %594 : vector<2x64xf32>
    %cst_317 = arith.constant 1.000000e+00 : f32
    %596 = vector.broadcast %cst_317 : f32 to vector<2x64xf32>
    %597 = arith.subf %596, %588 : vector<2x64xf32>
    %598 = arith.mulf %597, %595 : vector<2x64xf32>
    %599 = arith.mulf %588, %570 : vector<2x64xf32>
    %600 = arith.addf %598, %599 : vector<2x64xf32>
    %c36_318 = arith.constant 36 : index
    %c0_319 = arith.constant 0 : index
    %601 = vector.load %arg17[%c36_318, %c0_319] : memref<42x64xf32, #tpu.memory_space<vmem>>, vector<2x64xf32>
    tpu.vector_store %arg17[%c36_318, %c0_319], %600 {strides = array<i32>} : memref<42x64xf32, #tpu.memory_space<vmem>>, vector<2x64xf32>,
    %c4_320 = arith.constant 4 : index
    %c0_321 = arith.constant 0 : index
    %602 = vector.load %arg18[%c4_320, %c0_321] : memref<42x64xf32, #tpu.memory_space<vmem>>, vector<2x64xf32>
    tpu.vector_store %arg18[%c4_320, %c0_321], %600 {strides = array<i32>} : memref<42x64xf32, #tpu.memory_space<vmem>>, vector<2x64xf32>,
    %c38_322 = arith.constant 38 : index
    %c0_323 = arith.constant 0 : index
    %603 = vector.load %arg14[%c38_322, %c0_323] : memref<42x64xf32, #tpu.memory_space<vmem>>, vector<2x64xf32>
    %cst_324 = arith.constant dense<0.000000e+00> : vector<2x64xf32>
    %604 = tpu.matmul %600, %26, %cst_324 {dimension_numbers = #tpu.dot_dimension_numbers<[1], [0], [0], [1], [0, 0, 1, 1], [], []>} : vector<2x64xf32>, vector<64x64xf32>, vector<2x64xf32> -> vector<2x64xf32>
    %605 = arith.addf %603, %604 : vector<2x64xf32>
    %606 = arith.negf %605 : vector<2x64xf32>
    %607 = math.exp %606 : vector<2x64xf32>
    %cst_325 = arith.constant 1.000000e+00 : f32
    %608 = vector.broadcast %cst_325 : f32 to vector<2x64xf32>
    %609 = arith.addf %608, %607 : vector<2x64xf32>
    %610 = arith.divf %608, %609 : vector<2x64xf32>
    %c38_326 = arith.constant 38 : index
    %c0_327 = arith.constant 0 : index
    %611 = vector.load %arg15[%c38_326, %c0_327] : memref<42x64xf32, #tpu.memory_space<vmem>>, vector<2x64xf32>
    %cst_328 = arith.constant dense<0.000000e+00> : vector<2x64xf32>
    %612 = tpu.matmul %600, %28, %cst_328 {dimension_numbers = #tpu.dot_dimension_numbers<[1], [0], [0], [1], [0, 0, 1, 1], [], []>} : vector<2x64xf32>, vector<64x64xf32>, vector<2x64xf32> -> vector<2x64xf32>
    %613 = arith.addf %611, %612 : vector<2x64xf32>
    %614 = arith.negf %613 : vector<2x64xf32>
    %615 = math.exp %614 : vector<2x64xf32>
    %cst_329 = arith.constant 1.000000e+00 : f32
    %616 = vector.broadcast %cst_329 : f32 to vector<2x64xf32>
    %617 = arith.addf %616, %615 : vector<2x64xf32>
    %618 = arith.divf %616, %617 : vector<2x64xf32>
    %c38_330 = arith.constant 38 : index
    %c0_331 = arith.constant 0 : index
    %619 = vector.load %arg16[%c38_330, %c0_331] : memref<42x64xf32, #tpu.memory_space<vmem>>, vector<2x64xf32>
    %cst_332 = arith.constant dense<0.000000e+00> : vector<2x64xf32>
    %620 = tpu.matmul %600, %30, %cst_332 {dimension_numbers = #tpu.dot_dimension_numbers<[1], [0], [0], [1], [0, 0, 1, 1], [], []>} : vector<2x64xf32>, vector<64x64xf32>, vector<2x64xf32> -> vector<2x64xf32>
    %621 = vector.broadcast %31 : vector<1x64xf32> to vector<2x64xf32>
    %622 = arith.addf %620, %621 : vector<2x64xf32>
    %623 = arith.mulf %610, %622 : vector<2x64xf32>
    %624 = arith.addf %619, %623 : vector<2x64xf32>
    %625 = math.tanh %624 : vector<2x64xf32>
    %cst_333 = arith.constant 1.000000e+00 : f32
    %626 = vector.broadcast %cst_333 : f32 to vector<2x64xf32>
    %627 = arith.subf %626, %618 : vector<2x64xf32>
    %628 = arith.mulf %627, %625 : vector<2x64xf32>
    %629 = arith.mulf %618, %600 : vector<2x64xf32>
    %630 = arith.addf %628, %629 : vector<2x64xf32>
    %c38_334 = arith.constant 38 : index
    %c0_335 = arith.constant 0 : index
    %631 = vector.load %arg17[%c38_334, %c0_335] : memref<42x64xf32, #tpu.memory_space<vmem>>, vector<2x64xf32>
    tpu.vector_store %arg17[%c38_334, %c0_335], %630 {strides = array<i32>} : memref<42x64xf32, #tpu.memory_space<vmem>>, vector<2x64xf32>,
    %c2_336 = arith.constant 2 : index
    %c0_337 = arith.constant 0 : index
    %632 = vector.load %arg18[%c2_336, %c0_337] : memref<42x64xf32, #tpu.memory_space<vmem>>, vector<2x64xf32>
    tpu.vector_store %arg18[%c2_336, %c0_337], %630 {strides = array<i32>} : memref<42x64xf32, #tpu.memory_space<vmem>>, vector<2x64xf32>,
    %c40_338 = arith.constant 40 : index
    %c0_339 = arith.constant 0 : index
    %633 = vector.load %arg14[%c40_338, %c0_339] : memref<42x64xf32, #tpu.memory_space<vmem>>, vector<2x64xf32>
    %cst_340 = arith.constant dense<0.000000e+00> : vector<2x64xf32>
    %634 = tpu.matmul %630, %26, %cst_340 {dimension_numbers = #tpu.dot_dimension_numbers<[1], [0], [0], [1], [0, 0, 1, 1], [], []>} : vector<2x64xf32>, vector<64x64xf32>, vector<2x64xf32> -> vector<2x64xf32>
    %635 = arith.addf %633, %634 : vector<2x64xf32>
    %636 = arith.negf %635 : vector<2x64xf32>
    %637 = math.exp %636 : vector<2x64xf32>
    %cst_341 = arith.constant 1.000000e+00 : f32
    %638 = vector.broadcast %cst_341 : f32 to vector<2x64xf32>
    %639 = arith.addf %638, %637 : vector<2x64xf32>
    %640 = arith.divf %638, %639 : vector<2x64xf32>
    %c40_342 = arith.constant 40 : index
    %c0_343 = arith.constant 0 : index
    %641 = vector.load %arg15[%c40_342, %c0_343] : memref<42x64xf32, #tpu.memory_space<vmem>>, vector<2x64xf32>
    %cst_344 = arith.constant dense<0.000000e+00> : vector<2x64xf32>
    %642 = tpu.matmul %630, %28, %cst_344 {dimension_numbers = #tpu.dot_dimension_numbers<[1], [0], [0], [1], [0, 0, 1, 1], [], []>} : vector<2x64xf32>, vector<64x64xf32>, vector<2x64xf32> -> vector<2x64xf32>
    %643 = arith.addf %641, %642 : vector<2x64xf32>
    %644 = arith.negf %643 : vector<2x64xf32>
    %645 = math.exp %644 : vector<2x64xf32>
    %cst_345 = arith.constant 1.000000e+00 : f32
    %646 = vector.broadcast %cst_345 : f32 to vector<2x64xf32>
    %647 = arith.addf %646, %645 : vector<2x64xf32>
    %648 = arith.divf %646, %647 : vector<2x64xf32>
    %c40_346 = arith.constant 40 : index
    %c0_347 = arith.constant 0 : index
    %649 = vector.load %arg16[%c40_346, %c0_347] : memref<42x64xf32, #tpu.memory_space<vmem>>, vector<2x64xf32>
    %cst_348 = arith.constant dense<0.000000e+00> : vector<2x64xf32>
    %650 = tpu.matmul %630, %30, %cst_348 {dimension_numbers = #tpu.dot_dimension_numbers<[1], [0], [0], [1], [0, 0, 1, 1], [], []>} : vector<2x64xf32>, vector<64x64xf32>, vector<2x64xf32> -> vector<2x64xf32>
    %651 = vector.broadcast %31 : vector<1x64xf32> to vector<2x64xf32>
    %652 = arith.addf %650, %651 : vector<2x64xf32>
    %653 = arith.mulf %640, %652 : vector<2x64xf32>
    %654 = arith.addf %649, %653 : vector<2x64xf32>
    %655 = math.tanh %654 : vector<2x64xf32>
    %cst_349 = arith.constant 1.000000e+00 : f32
    %656 = vector.broadcast %cst_349 : f32 to vector<2x64xf32>
    %657 = arith.subf %656, %648 : vector<2x64xf32>
    %658 = arith.mulf %657, %655 : vector<2x64xf32>
    %659 = arith.mulf %648, %630 : vector<2x64xf32>
    %660 = arith.addf %658, %659 : vector<2x64xf32>
    %c40_350 = arith.constant 40 : index
    %c0_351 = arith.constant 0 : index
    %661 = vector.load %arg17[%c40_350, %c0_351] : memref<42x64xf32, #tpu.memory_space<vmem>>, vector<2x64xf32>
    tpu.vector_store %arg17[%c40_350, %c0_351], %660 {strides = array<i32>} : memref<42x64xf32, #tpu.memory_space<vmem>>, vector<2x64xf32>,
    %c0_352 = arith.constant 0 : index
    %c0_353 = arith.constant 0 : index
    %662 = vector.load %arg18[%c0_352, %c0_353] : memref<42x64xf32, #tpu.memory_space<vmem>>, vector<2x64xf32>
    tpu.vector_store %arg18[%c0_352, %c0_353], %660 {strides = array<i32>} : memref<42x64xf32, #tpu.memory_space<vmem>>, vector<2x64xf32>,
    %c0_354 = arith.constant 0 : index
    %c0_355 = arith.constant 0 : index
    %663 = vector.load %arg17[%c0_354, %c0_355] : memref<42x64xf32, #tpu.memory_space<vmem>>, vector<42x64xf32>
    %c0_356 = arith.constant 0 : index
    %c0_357 = arith.constant 0 : index
    %664 = vector.load %arg18[%c0_356, %c0_357] : memref<42x64xf32, #tpu.memory_space<vmem>>, vector<42x64xf32>
    %c0_358 = arith.constant 0 : index
    %c0_359 = arith.constant 0 : index
    %c0_360 = arith.constant 0 : index
    %665 = vector.load %arg5[%c0_358, %c0_359, %c0_360] : memref<3x64x64xf32, #tpu.memory_space<vmem>>, vector<1x64x64xf32>
    %666 = vector.shape_cast %665 : vector<1x64x64xf32> to vector<64x64xf32>
    %cst_361 = arith.constant dense<0.000000e+00> : vector<42x64xf32>
    %667 = tpu.matmul %663, %666, %cst_361 {dimension_numbers = #tpu.dot_dimension_numbers<[1], [0], [0], [1], [0, 0, 1, 1], [], []>} : vector<42x64xf32>, vector<64x64xf32>, vector<42x64xf32> -> vector<42x64xf32>
    %c0_362 = arith.constant 0 : index
    %c0_363 = arith.constant 0 : index
    %c0_364 = arith.constant 0 : index
    %668 = vector.load %arg6[%c0_362, %c0_363, %c0_364] : memref<3x64x64xf32, #tpu.memory_space<vmem>>, vector<1x64x64xf32>
    %669 = vector.shape_cast %668 : vector<1x64x64xf32> to vector<64x64xf32>
    %cst_365 = arith.constant dense<0.000000e+00> : vector<42x64xf32>
    %670 = tpu.matmul %664, %669, %cst_365 {dimension_numbers = #tpu.dot_dimension_numbers<[1], [0], [0], [1], [0, 0, 1, 1], [], []>} : vector<42x64xf32>, vector<64x64xf32>, vector<42x64xf32> -> vector<42x64xf32>
    %671 = arith.addf %667, %670 : vector<42x64xf32>
    %c0_366 = arith.constant 0 : index
    %c0_367 = arith.constant 0 : index
    %c0_368 = arith.constant 0 : index
    %672 = vector.load %arg8[%c0_366, %c0_367, %c0_368] : memref<3x1x64xf32, #tpu.memory_space<vmem>>, vector<1x1x64xf32>
    %673 = vector.shape_cast %672 : vector<1x1x64xf32> to vector<1x64xf32>
    %674 = vector.broadcast %673 : vector<1x64xf32> to vector<42x64xf32>
    %675 = arith.addf %671, %674 : vector<42x64xf32>
    %c0_369 = arith.constant 0 : index
    %c0_370 = arith.constant 0 : index
    %676 = vector.load %arg14[%c0_369, %c0_370] : memref<42x64xf32, #tpu.memory_space<vmem>>, vector<42x64xf32>
    tpu.vector_store %arg14[%c0_369, %c0_370], %675 {strides = array<i32>} : memref<42x64xf32, #tpu.memory_space<vmem>>, vector<42x64xf32>,
    %c1_371 = arith.constant 1 : index
    %c0_372 = arith.constant 0 : index
    %c0_373 = arith.constant 0 : index
    %677 = vector.load %arg5[%c1_371, %c0_372, %c0_373] : memref<3x64x64xf32, #tpu.memory_space<vmem>>, vector<1x64x64xf32>
    %678 = vector.shape_cast %677 : vector<1x64x64xf32> to vector<64x64xf32>
    %cst_374 = arith.constant dense<0.000000e+00> : vector<42x64xf32>
    %679 = tpu.matmul %663, %678, %cst_374 {dimension_numbers = #tpu.dot_dimension_numbers<[1], [0], [0], [1], [0, 0, 1, 1], [], []>} : vector<42x64xf32>, vector<64x64xf32>, vector<42x64xf32> -> vector<42x64xf32>
    %c1_375 = arith.constant 1 : index
    %c0_376 = arith.constant 0 : index
    %c0_377 = arith.constant 0 : index
    %680 = vector.load %arg6[%c1_375, %c0_376, %c0_377] : memref<3x64x64xf32, #tpu.memory_space<vmem>>, vector<1x64x64xf32>
    %681 = vector.shape_cast %680 : vector<1x64x64xf32> to vector<64x64xf32>
    %cst_378 = arith.constant dense<0.000000e+00> : vector<42x64xf32>
    %682 = tpu.matmul %664, %681, %cst_378 {dimension_numbers = #tpu.dot_dimension_numbers<[1], [0], [0], [1], [0, 0, 1, 1], [], []>} : vector<42x64xf32>, vector<64x64xf32>, vector<42x64xf32> -> vector<42x64xf32>
    %683 = arith.addf %679, %682 : vector<42x64xf32>
    %c1_379 = arith.constant 1 : index
    %c0_380 = arith.constant 0 : index
    %c0_381 = arith.constant 0 : index
    %684 = vector.load %arg8[%c1_379, %c0_380, %c0_381] : memref<3x1x64xf32, #tpu.memory_space<vmem>>, vector<1x1x64xf32>
    %685 = vector.shape_cast %684 : vector<1x1x64xf32> to vector<1x64xf32>
    %686 = vector.broadcast %685 : vector<1x64xf32> to vector<42x64xf32>
    %687 = arith.addf %683, %686 : vector<42x64xf32>
    %c0_382 = arith.constant 0 : index
    %c0_383 = arith.constant 0 : index
    %688 = vector.load %arg15[%c0_382, %c0_383] : memref<42x64xf32, #tpu.memory_space<vmem>>, vector<42x64xf32>
    tpu.vector_store %arg15[%c0_382, %c0_383], %687 {strides = array<i32>} : memref<42x64xf32, #tpu.memory_space<vmem>>, vector<42x64xf32>,
    %c2_384 = arith.constant 2 : index
    %c0_385 = arith.constant 0 : index
    %c0_386 = arith.constant 0 : index
    %689 = vector.load %arg5[%c2_384, %c0_385, %c0_386] : memref<3x64x64xf32, #tpu.memory_space<vmem>>, vector<1x64x64xf32>
    %690 = vector.shape_cast %689 : vector<1x64x64xf32> to vector<64x64xf32>
    %cst_387 = arith.constant dense<0.000000e+00> : vector<42x64xf32>
    %691 = tpu.matmul %663, %690, %cst_387 {dimension_numbers = #tpu.dot_dimension_numbers<[1], [0], [0], [1], [0, 0, 1, 1], [], []>} : vector<42x64xf32>, vector<64x64xf32>, vector<42x64xf32> -> vector<42x64xf32>
    %c2_388 = arith.constant 2 : index
    %c0_389 = arith.constant 0 : index
    %c0_390 = arith.constant 0 : index
    %692 = vector.load %arg6[%c2_388, %c0_389, %c0_390] : memref<3x64x64xf32, #tpu.memory_space<vmem>>, vector<1x64x64xf32>
    %693 = vector.shape_cast %692 : vector<1x64x64xf32> to vector<64x64xf32>
    %cst_391 = arith.constant dense<0.000000e+00> : vector<42x64xf32>
    %694 = tpu.matmul %664, %693, %cst_391 {dimension_numbers = #tpu.dot_dimension_numbers<[1], [0], [0], [1], [0, 0, 1, 1], [], []>} : vector<42x64xf32>, vector<64x64xf32>, vector<42x64xf32> -> vector<42x64xf32>
    %695 = arith.addf %691, %694 : vector<42x64xf32>
    %c2_392 = arith.constant 2 : index
    %c0_393 = arith.constant 0 : index
    %c0_394 = arith.constant 0 : index
    %696 = vector.load %arg8[%c2_392, %c0_393, %c0_394] : memref<3x1x64xf32, #tpu.memory_space<vmem>>, vector<1x1x64xf32>
    %697 = vector.shape_cast %696 : vector<1x1x64xf32> to vector<1x64xf32>
    %698 = vector.broadcast %697 : vector<1x64xf32> to vector<42x64xf32>
    %699 = arith.addf %695, %698 : vector<42x64xf32>
    %c0_395 = arith.constant 0 : index
    %c0_396 = arith.constant 0 : index
    %700 = vector.load %arg16[%c0_395, %c0_396] : memref<42x64xf32, #tpu.memory_space<vmem>>, vector<42x64xf32>
    tpu.vector_store %arg16[%c0_395, %c0_396], %699 {strides = array<i32>} : memref<42x64xf32, #tpu.memory_space<vmem>>, vector<42x64xf32>,
    %c0_397 = arith.constant 0 : index
    %c0_398 = arith.constant 0 : index
    %c0_399 = arith.constant 0 : index
    %701 = vector.load %arg7[%c0_397, %c0_398, %c0_399] : memref<3x64x64xf32, #tpu.memory_space<vmem>>, vector<1x64x64xf32>
    %702 = vector.shape_cast %701 : vector<1x64x64xf32> to vector<64x64xf32>
    %c1_400 = arith.constant 1 : index
    %c0_401 = arith.constant 0 : index
    %c0_402 = arith.constant 0 : index
    %703 = vector.load %arg7[%c1_400, %c0_401, %c0_402] : memref<3x64x64xf32, #tpu.memory_space<vmem>>, vector<1x64x64xf32>
    %704 = vector.shape_cast %703 : vector<1x64x64xf32> to vector<64x64xf32>
    %c2_403 = arith.constant 2 : index
    %c0_404 = arith.constant 0 : index
    %c0_405 = arith.constant 0 : index
    %705 = vector.load %arg7[%c2_403, %c0_404, %c0_405] : memref<3x64x64xf32, #tpu.memory_space<vmem>>, vector<1x64x64xf32>
    %706 = vector.shape_cast %705 : vector<1x64x64xf32> to vector<64x64xf32>
    %c0_406 = arith.constant 0 : index
    %c0_407 = arith.constant 0 : index
    %707 = vector.load %arg9[%c0_406, %c0_407] : memref<1x64xf32, #tpu.memory_space<vmem>>, vector<1x64xf32>
    %cst_408 = arith.constant 0.000000e+00 : f32
    %708 = vector.broadcast %cst_408 : f32 to vector<2x64xf32>
    %cst_409 = arith.constant 0.000000e+00 : f32
    %709 = vector.broadcast %cst_409 : f32 to vector<2x2xf32>
    %c0_410 = arith.constant 0 : index
    %c0_411 = arith.constant 0 : index
    %710 = vector.load %arg14[%c0_410, %c0_411] : memref<42x64xf32, #tpu.memory_space<vmem>>, vector<2x64xf32>
    %cst_412 = arith.constant dense<0.000000e+00> : vector<2x64xf32>
    %711 = tpu.matmul %708, %702, %cst_412 {dimension_numbers = #tpu.dot_dimension_numbers<[1], [0], [0], [1], [0, 0, 1, 1], [], []>} : vector<2x64xf32>, vector<64x64xf32>, vector<2x64xf32> -> vector<2x64xf32>
    %712 = arith.addf %710, %711 : vector<2x64xf32>
    %713 = arith.negf %712 : vector<2x64xf32>
    %714 = math.exp %713 : vector<2x64xf32>
    %cst_413 = arith.constant 1.000000e+00 : f32
    %715 = vector.broadcast %cst_413 : f32 to vector<2x64xf32>
    %716 = arith.addf %715, %714 : vector<2x64xf32>
    %717 = arith.divf %715, %716 : vector<2x64xf32>
    %c0_414 = arith.constant 0 : index
    %c0_415 = arith.constant 0 : index
    %718 = vector.load %arg15[%c0_414, %c0_415] : memref<42x64xf32, #tpu.memory_space<vmem>>, vector<2x64xf32>
    %cst_416 = arith.constant dense<0.000000e+00> : vector<2x64xf32>
    %719 = tpu.matmul %708, %704, %cst_416 {dimension_numbers = #tpu.dot_dimension_numbers<[1], [0], [0], [1], [0, 0, 1, 1], [], []>} : vector<2x64xf32>, vector<64x64xf32>, vector<2x64xf32> -> vector<2x64xf32>
    %720 = arith.addf %718, %719 : vector<2x64xf32>
    %721 = arith.negf %720 : vector<2x64xf32>
    %722 = math.exp %721 : vector<2x64xf32>
    %cst_417 = arith.constant 1.000000e+00 : f32
    %723 = vector.broadcast %cst_417 : f32 to vector<2x64xf32>
    %724 = arith.addf %723, %722 : vector<2x64xf32>
    %725 = arith.divf %723, %724 : vector<2x64xf32>
    %c0_418 = arith.constant 0 : index
    %c0_419 = arith.constant 0 : index
    %726 = vector.load %arg16[%c0_418, %c0_419] : memref<42x64xf32, #tpu.memory_space<vmem>>, vector<2x64xf32>
    %cst_420 = arith.constant dense<0.000000e+00> : vector<2x64xf32>
    %727 = tpu.matmul %708, %706, %cst_420 {dimension_numbers = #tpu.dot_dimension_numbers<[1], [0], [0], [1], [0, 0, 1, 1], [], []>} : vector<2x64xf32>, vector<64x64xf32>, vector<2x64xf32> -> vector<2x64xf32>
    %728 = vector.broadcast %707 : vector<1x64xf32> to vector<2x64xf32>
    %729 = arith.addf %727, %728 : vector<2x64xf32>
    %730 = arith.mulf %717, %729 : vector<2x64xf32>
    %731 = arith.addf %726, %730 : vector<2x64xf32>
    %732 = math.tanh %731 : vector<2x64xf32>
    %cst_421 = arith.constant 1.000000e+00 : f32
    %733 = vector.broadcast %cst_421 : f32 to vector<2x64xf32>
    %734 = arith.subf %733, %725 : vector<2x64xf32>
    %735 = arith.mulf %734, %732 : vector<2x64xf32>
    %736 = arith.mulf %725, %708 : vector<2x64xf32>
    %737 = arith.addf %735, %736 : vector<2x64xf32>
    %c0_422 = arith.constant 0 : index
    %c0_423 = arith.constant 0 : index
    %c0_424 = arith.constant 0 : index
    %738 = vector.load %arg10[%c0_422, %c0_423, %c0_424] : memref<21x64x2xf32, #tpu.memory_space<vmem>>, vector<1x64x2xf32>
    %739 = vector.shape_cast %738 : vector<1x64x2xf32> to vector<64x2xf32>
    %cst_425 = arith.constant dense<0.000000e+00> : vector<2x2xf32>
    %740 = tpu.matmul %737, %739, %cst_425 {dimension_numbers = #tpu.dot_dimension_numbers<[1], [0], [0], [1], [0, 0, 1, 1], [], []>} : vector<2x64xf32>, vector<64x2xf32>, vector<2x2xf32> -> vector<2x2xf32>
    %741 = arith.addf %709, %740 : vector<2x2xf32>
    %c2_426 = arith.constant 2 : index
    %c0_427 = arith.constant 0 : index
    %742 = vector.load %arg14[%c2_426, %c0_427] : memref<42x64xf32, #tpu.memory_space<vmem>>, vector<2x64xf32>
    %cst_428 = arith.constant dense<0.000000e+00> : vector<2x64xf32>
    %743 = tpu.matmul %737, %702, %cst_428 {dimension_numbers = #tpu.dot_dimension_numbers<[1], [0], [0], [1], [0, 0, 1, 1], [], []>} : vector<2x64xf32>, vector<64x64xf32>, vector<2x64xf32> -> vector<2x64xf32>
    %744 = arith.addf %742, %743 : vector<2x64xf32>
    %745 = arith.negf %744 : vector<2x64xf32>
    %746 = math.exp %745 : vector<2x64xf32>
    %cst_429 = arith.constant 1.000000e+00 : f32
    %747 = vector.broadcast %cst_429 : f32 to vector<2x64xf32>
    %748 = arith.addf %747, %746 : vector<2x64xf32>
    %749 = arith.divf %747, %748 : vector<2x64xf32>
    %c2_430 = arith.constant 2 : index
    %c0_431 = arith.constant 0 : index
    %750 = vector.load %arg15[%c2_430, %c0_431] : memref<42x64xf32, #tpu.memory_space<vmem>>, vector<2x64xf32>
    %cst_432 = arith.constant dense<0.000000e+00> : vector<2x64xf32>
    %751 = tpu.matmul %737, %704, %cst_432 {dimension_numbers = #tpu.dot_dimension_numbers<[1], [0], [0], [1], [0, 0, 1, 1], [], []>} : vector<2x64xf32>, vector<64x64xf32>, vector<2x64xf32> -> vector<2x64xf32>
    %752 = arith.addf %750, %751 : vector<2x64xf32>
    %753 = arith.negf %752 : vector<2x64xf32>
    %754 = math.exp %753 : vector<2x64xf32>
    %cst_433 = arith.constant 1.000000e+00 : f32
    %755 = vector.broadcast %cst_433 : f32 to vector<2x64xf32>
    %756 = arith.addf %755, %754 : vector<2x64xf32>
    %757 = arith.divf %755, %756 : vector<2x64xf32>
    %c2_434 = arith.constant 2 : index
    %c0_435 = arith.constant 0 : index
    %758 = vector.load %arg16[%c2_434, %c0_435] : memref<42x64xf32, #tpu.memory_space<vmem>>, vector<2x64xf32>
    %cst_436 = arith.constant dense<0.000000e+00> : vector<2x64xf32>
    %759 = tpu.matmul %737, %706, %cst_436 {dimension_numbers = #tpu.dot_dimension_numbers<[1], [0], [0], [1], [0, 0, 1, 1], [], []>} : vector<2x64xf32>, vector<64x64xf32>, vector<2x64xf32> -> vector<2x64xf32>
    %760 = vector.broadcast %707 : vector<1x64xf32> to vector<2x64xf32>
    %761 = arith.addf %759, %760 : vector<2x64xf32>
    %762 = arith.mulf %749, %761 : vector<2x64xf32>
    %763 = arith.addf %758, %762 : vector<2x64xf32>
    %764 = math.tanh %763 : vector<2x64xf32>
    %cst_437 = arith.constant 1.000000e+00 : f32
    %765 = vector.broadcast %cst_437 : f32 to vector<2x64xf32>
    %766 = arith.subf %765, %757 : vector<2x64xf32>
    %767 = arith.mulf %766, %764 : vector<2x64xf32>
    %768 = arith.mulf %757, %737 : vector<2x64xf32>
    %769 = arith.addf %767, %768 : vector<2x64xf32>
    %c1_438 = arith.constant 1 : index
    %c0_439 = arith.constant 0 : index
    %c0_440 = arith.constant 0 : index
    %770 = vector.load %arg10[%c1_438, %c0_439, %c0_440] : memref<21x64x2xf32, #tpu.memory_space<vmem>>, vector<1x64x2xf32>
    %771 = vector.shape_cast %770 : vector<1x64x2xf32> to vector<64x2xf32>
    %cst_441 = arith.constant dense<0.000000e+00> : vector<2x2xf32>
    %772 = tpu.matmul %769, %771, %cst_441 {dimension_numbers = #tpu.dot_dimension_numbers<[1], [0], [0], [1], [0, 0, 1, 1], [], []>} : vector<2x64xf32>, vector<64x2xf32>, vector<2x2xf32> -> vector<2x2xf32>
    %773 = arith.addf %741, %772 : vector<2x2xf32>
    %c4_442 = arith.constant 4 : index
    %c0_443 = arith.constant 0 : index
    %774 = vector.load %arg14[%c4_442, %c0_443] : memref<42x64xf32, #tpu.memory_space<vmem>>, vector<2x64xf32>
    %cst_444 = arith.constant dense<0.000000e+00> : vector<2x64xf32>
    %775 = tpu.matmul %769, %702, %cst_444 {dimension_numbers = #tpu.dot_dimension_numbers<[1], [0], [0], [1], [0, 0, 1, 1], [], []>} : vector<2x64xf32>, vector<64x64xf32>, vector<2x64xf32> -> vector<2x64xf32>
    %776 = arith.addf %774, %775 : vector<2x64xf32>
    %777 = arith.negf %776 : vector<2x64xf32>
    %778 = math.exp %777 : vector<2x64xf32>
    %cst_445 = arith.constant 1.000000e+00 : f32
    %779 = vector.broadcast %cst_445 : f32 to vector<2x64xf32>
    %780 = arith.addf %779, %778 : vector<2x64xf32>
    %781 = arith.divf %779, %780 : vector<2x64xf32>
    %c4_446 = arith.constant 4 : index
    %c0_447 = arith.constant 0 : index
    %782 = vector.load %arg15[%c4_446, %c0_447] : memref<42x64xf32, #tpu.memory_space<vmem>>, vector<2x64xf32>
    %cst_448 = arith.constant dense<0.000000e+00> : vector<2x64xf32>
    %783 = tpu.matmul %769, %704, %cst_448 {dimension_numbers = #tpu.dot_dimension_numbers<[1], [0], [0], [1], [0, 0, 1, 1], [], []>} : vector<2x64xf32>, vector<64x64xf32>, vector<2x64xf32> -> vector<2x64xf32>
    %784 = arith.addf %782, %783 : vector<2x64xf32>
    %785 = arith.negf %784 : vector<2x64xf32>
    %786 = math.exp %785 : vector<2x64xf32>
    %cst_449 = arith.constant 1.000000e+00 : f32
    %787 = vector.broadcast %cst_449 : f32 to vector<2x64xf32>
    %788 = arith.addf %787, %786 : vector<2x64xf32>
    %789 = arith.divf %787, %788 : vector<2x64xf32>
    %c4_450 = arith.constant 4 : index
    %c0_451 = arith.constant 0 : index
    %790 = vector.load %arg16[%c4_450, %c0_451] : memref<42x64xf32, #tpu.memory_space<vmem>>, vector<2x64xf32>
    %cst_452 = arith.constant dense<0.000000e+00> : vector<2x64xf32>
    %791 = tpu.matmul %769, %706, %cst_452 {dimension_numbers = #tpu.dot_dimension_numbers<[1], [0], [0], [1], [0, 0, 1, 1], [], []>} : vector<2x64xf32>, vector<64x64xf32>, vector<2x64xf32> -> vector<2x64xf32>
    %792 = vector.broadcast %707 : vector<1x64xf32> to vector<2x64xf32>
    %793 = arith.addf %791, %792 : vector<2x64xf32>
    %794 = arith.mulf %781, %793 : vector<2x64xf32>
    %795 = arith.addf %790, %794 : vector<2x64xf32>
    %796 = math.tanh %795 : vector<2x64xf32>
    %cst_453 = arith.constant 1.000000e+00 : f32
    %797 = vector.broadcast %cst_453 : f32 to vector<2x64xf32>
    %798 = arith.subf %797, %789 : vector<2x64xf32>
    %799 = arith.mulf %798, %796 : vector<2x64xf32>
    %800 = arith.mulf %789, %769 : vector<2x64xf32>
    %801 = arith.addf %799, %800 : vector<2x64xf32>
    %c2_454 = arith.constant 2 : index
    %c0_455 = arith.constant 0 : index
    %c0_456 = arith.constant 0 : index
    %802 = vector.load %arg10[%c2_454, %c0_455, %c0_456] : memref<21x64x2xf32, #tpu.memory_space<vmem>>, vector<1x64x2xf32>
    %803 = vector.shape_cast %802 : vector<1x64x2xf32> to vector<64x2xf32>
    %cst_457 = arith.constant dense<0.000000e+00> : vector<2x2xf32>
    %804 = tpu.matmul %801, %803, %cst_457 {dimension_numbers = #tpu.dot_dimension_numbers<[1], [0], [0], [1], [0, 0, 1, 1], [], []>} : vector<2x64xf32>, vector<64x2xf32>, vector<2x2xf32> -> vector<2x2xf32>
    %805 = arith.addf %773, %804 : vector<2x2xf32>
    %c6_458 = arith.constant 6 : index
    %c0_459 = arith.constant 0 : index
    %806 = vector.load %arg14[%c6_458, %c0_459] : memref<42x64xf32, #tpu.memory_space<vmem>>, vector<2x64xf32>
    %cst_460 = arith.constant dense<0.000000e+00> : vector<2x64xf32>
    %807 = tpu.matmul %801, %702, %cst_460 {dimension_numbers = #tpu.dot_dimension_numbers<[1], [0], [0], [1], [0, 0, 1, 1], [], []>} : vector<2x64xf32>, vector<64x64xf32>, vector<2x64xf32> -> vector<2x64xf32>
    %808 = arith.addf %806, %807 : vector<2x64xf32>
    %809 = arith.negf %808 : vector<2x64xf32>
    %810 = math.exp %809 : vector<2x64xf32>
    %cst_461 = arith.constant 1.000000e+00 : f32
    %811 = vector.broadcast %cst_461 : f32 to vector<2x64xf32>
    %812 = arith.addf %811, %810 : vector<2x64xf32>
    %813 = arith.divf %811, %812 : vector<2x64xf32>
    %c6_462 = arith.constant 6 : index
    %c0_463 = arith.constant 0 : index
    %814 = vector.load %arg15[%c6_462, %c0_463] : memref<42x64xf32, #tpu.memory_space<vmem>>, vector<2x64xf32>
    %cst_464 = arith.constant dense<0.000000e+00> : vector<2x64xf32>
    %815 = tpu.matmul %801, %704, %cst_464 {dimension_numbers = #tpu.dot_dimension_numbers<[1], [0], [0], [1], [0, 0, 1, 1], [], []>} : vector<2x64xf32>, vector<64x64xf32>, vector<2x64xf32> -> vector<2x64xf32>
    %816 = arith.addf %814, %815 : vector<2x64xf32>
    %817 = arith.negf %816 : vector<2x64xf32>
    %818 = math.exp %817 : vector<2x64xf32>
    %cst_465 = arith.constant 1.000000e+00 : f32
    %819 = vector.broadcast %cst_465 : f32 to vector<2x64xf32>
    %820 = arith.addf %819, %818 : vector<2x64xf32>
    %821 = arith.divf %819, %820 : vector<2x64xf32>
    %c6_466 = arith.constant 6 : index
    %c0_467 = arith.constant 0 : index
    %822 = vector.load %arg16[%c6_466, %c0_467] : memref<42x64xf32, #tpu.memory_space<vmem>>, vector<2x64xf32>
    %cst_468 = arith.constant dense<0.000000e+00> : vector<2x64xf32>
    %823 = tpu.matmul %801, %706, %cst_468 {dimension_numbers = #tpu.dot_dimension_numbers<[1], [0], [0], [1], [0, 0, 1, 1], [], []>} : vector<2x64xf32>, vector<64x64xf32>, vector<2x64xf32> -> vector<2x64xf32>
    %824 = vector.broadcast %707 : vector<1x64xf32> to vector<2x64xf32>
    %825 = arith.addf %823, %824 : vector<2x64xf32>
    %826 = arith.mulf %813, %825 : vector<2x64xf32>
    %827 = arith.addf %822, %826 : vector<2x64xf32>
    %828 = math.tanh %827 : vector<2x64xf32>
    %cst_469 = arith.constant 1.000000e+00 : f32
    %829 = vector.broadcast %cst_469 : f32 to vector<2x64xf32>
    %830 = arith.subf %829, %821 : vector<2x64xf32>
    %831 = arith.mulf %830, %828 : vector<2x64xf32>
    %832 = arith.mulf %821, %801 : vector<2x64xf32>
    %833 = arith.addf %831, %832 : vector<2x64xf32>
    %c3 = arith.constant 3 : index
    %c0_470 = arith.constant 0 : index
    %c0_471 = arith.constant 0 : index
    %834 = vector.load %arg10[%c3, %c0_470, %c0_471] : memref<21x64x2xf32, #tpu.memory_space<vmem>>, vector<1x64x2xf32>
    %835 = vector.shape_cast %834 : vector<1x64x2xf32> to vector<64x2xf32>
    %cst_472 = arith.constant dense<0.000000e+00> : vector<2x2xf32>
    %836 = tpu.matmul %833, %835, %cst_472 {dimension_numbers = #tpu.dot_dimension_numbers<[1], [0], [0], [1], [0, 0, 1, 1], [], []>} : vector<2x64xf32>, vector<64x2xf32>, vector<2x2xf32> -> vector<2x2xf32>
    %837 = arith.addf %805, %836 : vector<2x2xf32>
    %c8_473 = arith.constant 8 : index
    %c0_474 = arith.constant 0 : index
    %838 = vector.load %arg14[%c8_473, %c0_474] : memref<42x64xf32, #tpu.memory_space<vmem>>, vector<2x64xf32>
    %cst_475 = arith.constant dense<0.000000e+00> : vector<2x64xf32>
    %839 = tpu.matmul %833, %702, %cst_475 {dimension_numbers = #tpu.dot_dimension_numbers<[1], [0], [0], [1], [0, 0, 1, 1], [], []>} : vector<2x64xf32>, vector<64x64xf32>, vector<2x64xf32> -> vector<2x64xf32>
    %840 = arith.addf %838, %839 : vector<2x64xf32>
    %841 = arith.negf %840 : vector<2x64xf32>
    %842 = math.exp %841 : vector<2x64xf32>
    %cst_476 = arith.constant 1.000000e+00 : f32
    %843 = vector.broadcast %cst_476 : f32 to vector<2x64xf32>
    %844 = arith.addf %843, %842 : vector<2x64xf32>
    %845 = arith.divf %843, %844 : vector<2x64xf32>
    %c8_477 = arith.constant 8 : index
    %c0_478 = arith.constant 0 : index
    %846 = vector.load %arg15[%c8_477, %c0_478] : memref<42x64xf32, #tpu.memory_space<vmem>>, vector<2x64xf32>
    %cst_479 = arith.constant dense<0.000000e+00> : vector<2x64xf32>
    %847 = tpu.matmul %833, %704, %cst_479 {dimension_numbers = #tpu.dot_dimension_numbers<[1], [0], [0], [1], [0, 0, 1, 1], [], []>} : vector<2x64xf32>, vector<64x64xf32>, vector<2x64xf32> -> vector<2x64xf32>
    %848 = arith.addf %846, %847 : vector<2x64xf32>
    %849 = arith.negf %848 : vector<2x64xf32>
    %850 = math.exp %849 : vector<2x64xf32>
    %cst_480 = arith.constant 1.000000e+00 : f32
    %851 = vector.broadcast %cst_480 : f32 to vector<2x64xf32>
    %852 = arith.addf %851, %850 : vector<2x64xf32>
    %853 = arith.divf %851, %852 : vector<2x64xf32>
    %c8_481 = arith.constant 8 : index
    %c0_482 = arith.constant 0 : index
    %854 = vector.load %arg16[%c8_481, %c0_482] : memref<42x64xf32, #tpu.memory_space<vmem>>, vector<2x64xf32>
    %cst_483 = arith.constant dense<0.000000e+00> : vector<2x64xf32>
    %855 = tpu.matmul %833, %706, %cst_483 {dimension_numbers = #tpu.dot_dimension_numbers<[1], [0], [0], [1], [0, 0, 1, 1], [], []>} : vector<2x64xf32>, vector<64x64xf32>, vector<2x64xf32> -> vector<2x64xf32>
    %856 = vector.broadcast %707 : vector<1x64xf32> to vector<2x64xf32>
    %857 = arith.addf %855, %856 : vector<2x64xf32>
    %858 = arith.mulf %845, %857 : vector<2x64xf32>
    %859 = arith.addf %854, %858 : vector<2x64xf32>
    %860 = math.tanh %859 : vector<2x64xf32>
    %cst_484 = arith.constant 1.000000e+00 : f32
    %861 = vector.broadcast %cst_484 : f32 to vector<2x64xf32>
    %862 = arith.subf %861, %853 : vector<2x64xf32>
    %863 = arith.mulf %862, %860 : vector<2x64xf32>
    %864 = arith.mulf %853, %833 : vector<2x64xf32>
    %865 = arith.addf %863, %864 : vector<2x64xf32>
    %c4_485 = arith.constant 4 : index
    %c0_486 = arith.constant 0 : index
    %c0_487 = arith.constant 0 : index
    %866 = vector.load %arg10[%c4_485, %c0_486, %c0_487] : memref<21x64x2xf32, #tpu.memory_space<vmem>>, vector<1x64x2xf32>
    %867 = vector.shape_cast %866 : vector<1x64x2xf32> to vector<64x2xf32>
    %cst_488 = arith.constant dense<0.000000e+00> : vector<2x2xf32>
    %868 = tpu.matmul %865, %867, %cst_488 {dimension_numbers = #tpu.dot_dimension_numbers<[1], [0], [0], [1], [0, 0, 1, 1], [], []>} : vector<2x64xf32>, vector<64x2xf32>, vector<2x2xf32> -> vector<2x2xf32>
    %869 = arith.addf %837, %868 : vector<2x2xf32>
    %c10_489 = arith.constant 10 : index
    %c0_490 = arith.constant 0 : index
    %870 = vector.load %arg14[%c10_489, %c0_490] : memref<42x64xf32, #tpu.memory_space<vmem>>, vector<2x64xf32>
    %cst_491 = arith.constant dense<0.000000e+00> : vector<2x64xf32>
    %871 = tpu.matmul %865, %702, %cst_491 {dimension_numbers = #tpu.dot_dimension_numbers<[1], [0], [0], [1], [0, 0, 1, 1], [], []>} : vector<2x64xf32>, vector<64x64xf32>, vector<2x64xf32> -> vector<2x64xf32>
    %872 = arith.addf %870, %871 : vector<2x64xf32>
    %873 = arith.negf %872 : vector<2x64xf32>
    %874 = math.exp %873 : vector<2x64xf32>
    %cst_492 = arith.constant 1.000000e+00 : f32
    %875 = vector.broadcast %cst_492 : f32 to vector<2x64xf32>
    %876 = arith.addf %875, %874 : vector<2x64xf32>
    %877 = arith.divf %875, %876 : vector<2x64xf32>
    %c10_493 = arith.constant 10 : index
    %c0_494 = arith.constant 0 : index
    %878 = vector.load %arg15[%c10_493, %c0_494] : memref<42x64xf32, #tpu.memory_space<vmem>>, vector<2x64xf32>
    %cst_495 = arith.constant dense<0.000000e+00> : vector<2x64xf32>
    %879 = tpu.matmul %865, %704, %cst_495 {dimension_numbers = #tpu.dot_dimension_numbers<[1], [0], [0], [1], [0, 0, 1, 1], [], []>} : vector<2x64xf32>, vector<64x64xf32>, vector<2x64xf32> -> vector<2x64xf32>
    %880 = arith.addf %878, %879 : vector<2x64xf32>
    %881 = arith.negf %880 : vector<2x64xf32>
    %882 = math.exp %881 : vector<2x64xf32>
    %cst_496 = arith.constant 1.000000e+00 : f32
    %883 = vector.broadcast %cst_496 : f32 to vector<2x64xf32>
    %884 = arith.addf %883, %882 : vector<2x64xf32>
    %885 = arith.divf %883, %884 : vector<2x64xf32>
    %c10_497 = arith.constant 10 : index
    %c0_498 = arith.constant 0 : index
    %886 = vector.load %arg16[%c10_497, %c0_498] : memref<42x64xf32, #tpu.memory_space<vmem>>, vector<2x64xf32>
    %cst_499 = arith.constant dense<0.000000e+00> : vector<2x64xf32>
    %887 = tpu.matmul %865, %706, %cst_499 {dimension_numbers = #tpu.dot_dimension_numbers<[1], [0], [0], [1], [0, 0, 1, 1], [], []>} : vector<2x64xf32>, vector<64x64xf32>, vector<2x64xf32> -> vector<2x64xf32>
    %888 = vector.broadcast %707 : vector<1x64xf32> to vector<2x64xf32>
    %889 = arith.addf %887, %888 : vector<2x64xf32>
    %890 = arith.mulf %877, %889 : vector<2x64xf32>
    %891 = arith.addf %886, %890 : vector<2x64xf32>
    %892 = math.tanh %891 : vector<2x64xf32>
    %cst_500 = arith.constant 1.000000e+00 : f32
    %893 = vector.broadcast %cst_500 : f32 to vector<2x64xf32>
    %894 = arith.subf %893, %885 : vector<2x64xf32>
    %895 = arith.mulf %894, %892 : vector<2x64xf32>
    %896 = arith.mulf %885, %865 : vector<2x64xf32>
    %897 = arith.addf %895, %896 : vector<2x64xf32>
    %c5 = arith.constant 5 : index
    %c0_501 = arith.constant 0 : index
    %c0_502 = arith.constant 0 : index
    %898 = vector.load %arg10[%c5, %c0_501, %c0_502] : memref<21x64x2xf32, #tpu.memory_space<vmem>>, vector<1x64x2xf32>
    %899 = vector.shape_cast %898 : vector<1x64x2xf32> to vector<64x2xf32>
    %cst_503 = arith.constant dense<0.000000e+00> : vector<2x2xf32>
    %900 = tpu.matmul %897, %899, %cst_503 {dimension_numbers = #tpu.dot_dimension_numbers<[1], [0], [0], [1], [0, 0, 1, 1], [], []>} : vector<2x64xf32>, vector<64x2xf32>, vector<2x2xf32> -> vector<2x2xf32>
    %901 = arith.addf %869, %900 : vector<2x2xf32>
    %c12_504 = arith.constant 12 : index
    %c0_505 = arith.constant 0 : index
    %902 = vector.load %arg14[%c12_504, %c0_505] : memref<42x64xf32, #tpu.memory_space<vmem>>, vector<2x64xf32>
    %cst_506 = arith.constant dense<0.000000e+00> : vector<2x64xf32>
    %903 = tpu.matmul %897, %702, %cst_506 {dimension_numbers = #tpu.dot_dimension_numbers<[1], [0], [0], [1], [0, 0, 1, 1], [], []>} : vector<2x64xf32>, vector<64x64xf32>, vector<2x64xf32> -> vector<2x64xf32>
    %904 = arith.addf %902, %903 : vector<2x64xf32>
    %905 = arith.negf %904 : vector<2x64xf32>
    %906 = math.exp %905 : vector<2x64xf32>
    %cst_507 = arith.constant 1.000000e+00 : f32
    %907 = vector.broadcast %cst_507 : f32 to vector<2x64xf32>
    %908 = arith.addf %907, %906 : vector<2x64xf32>
    %909 = arith.divf %907, %908 : vector<2x64xf32>
    %c12_508 = arith.constant 12 : index
    %c0_509 = arith.constant 0 : index
    %910 = vector.load %arg15[%c12_508, %c0_509] : memref<42x64xf32, #tpu.memory_space<vmem>>, vector<2x64xf32>
    %cst_510 = arith.constant dense<0.000000e+00> : vector<2x64xf32>
    %911 = tpu.matmul %897, %704, %cst_510 {dimension_numbers = #tpu.dot_dimension_numbers<[1], [0], [0], [1], [0, 0, 1, 1], [], []>} : vector<2x64xf32>, vector<64x64xf32>, vector<2x64xf32> -> vector<2x64xf32>
    %912 = arith.addf %910, %911 : vector<2x64xf32>
    %913 = arith.negf %912 : vector<2x64xf32>
    %914 = math.exp %913 : vector<2x64xf32>
    %cst_511 = arith.constant 1.000000e+00 : f32
    %915 = vector.broadcast %cst_511 : f32 to vector<2x64xf32>
    %916 = arith.addf %915, %914 : vector<2x64xf32>
    %917 = arith.divf %915, %916 : vector<2x64xf32>
    %c12_512 = arith.constant 12 : index
    %c0_513 = arith.constant 0 : index
    %918 = vector.load %arg16[%c12_512, %c0_513] : memref<42x64xf32, #tpu.memory_space<vmem>>, vector<2x64xf32>
    %cst_514 = arith.constant dense<0.000000e+00> : vector<2x64xf32>
    %919 = tpu.matmul %897, %706, %cst_514 {dimension_numbers = #tpu.dot_dimension_numbers<[1], [0], [0], [1], [0, 0, 1, 1], [], []>} : vector<2x64xf32>, vector<64x64xf32>, vector<2x64xf32> -> vector<2x64xf32>
    %920 = vector.broadcast %707 : vector<1x64xf32> to vector<2x64xf32>
    %921 = arith.addf %919, %920 : vector<2x64xf32>
    %922 = arith.mulf %909, %921 : vector<2x64xf32>
    %923 = arith.addf %918, %922 : vector<2x64xf32>
    %924 = math.tanh %923 : vector<2x64xf32>
    %cst_515 = arith.constant 1.000000e+00 : f32
    %925 = vector.broadcast %cst_515 : f32 to vector<2x64xf32>
    %926 = arith.subf %925, %917 : vector<2x64xf32>
    %927 = arith.mulf %926, %924 : vector<2x64xf32>
    %928 = arith.mulf %917, %897 : vector<2x64xf32>
    %929 = arith.addf %927, %928 : vector<2x64xf32>
    %c6_516 = arith.constant 6 : index
    %c0_517 = arith.constant 0 : index
    %c0_518 = arith.constant 0 : index
    %930 = vector.load %arg10[%c6_516, %c0_517, %c0_518] : memref<21x64x2xf32, #tpu.memory_space<vmem>>, vector<1x64x2xf32>
    %931 = vector.shape_cast %930 : vector<1x64x2xf32> to vector<64x2xf32>
    %cst_519 = arith.constant dense<0.000000e+00> : vector<2x2xf32>
    %932 = tpu.matmul %929, %931, %cst_519 {dimension_numbers = #tpu.dot_dimension_numbers<[1], [0], [0], [1], [0, 0, 1, 1], [], []>} : vector<2x64xf32>, vector<64x2xf32>, vector<2x2xf32> -> vector<2x2xf32>
    %933 = arith.addf %901, %932 : vector<2x2xf32>
    %c14_520 = arith.constant 14 : index
    %c0_521 = arith.constant 0 : index
    %934 = vector.load %arg14[%c14_520, %c0_521] : memref<42x64xf32, #tpu.memory_space<vmem>>, vector<2x64xf32>
    %cst_522 = arith.constant dense<0.000000e+00> : vector<2x64xf32>
    %935 = tpu.matmul %929, %702, %cst_522 {dimension_numbers = #tpu.dot_dimension_numbers<[1], [0], [0], [1], [0, 0, 1, 1], [], []>} : vector<2x64xf32>, vector<64x64xf32>, vector<2x64xf32> -> vector<2x64xf32>
    %936 = arith.addf %934, %935 : vector<2x64xf32>
    %937 = arith.negf %936 : vector<2x64xf32>
    %938 = math.exp %937 : vector<2x64xf32>
    %cst_523 = arith.constant 1.000000e+00 : f32
    %939 = vector.broadcast %cst_523 : f32 to vector<2x64xf32>
    %940 = arith.addf %939, %938 : vector<2x64xf32>
    %941 = arith.divf %939, %940 : vector<2x64xf32>
    %c14_524 = arith.constant 14 : index
    %c0_525 = arith.constant 0 : index
    %942 = vector.load %arg15[%c14_524, %c0_525] : memref<42x64xf32, #tpu.memory_space<vmem>>, vector<2x64xf32>
    %cst_526 = arith.constant dense<0.000000e+00> : vector<2x64xf32>
    %943 = tpu.matmul %929, %704, %cst_526 {dimension_numbers = #tpu.dot_dimension_numbers<[1], [0], [0], [1], [0, 0, 1, 1], [], []>} : vector<2x64xf32>, vector<64x64xf32>, vector<2x64xf32> -> vector<2x64xf32>
    %944 = arith.addf %942, %943 : vector<2x64xf32>
    %945 = arith.negf %944 : vector<2x64xf32>
    %946 = math.exp %945 : vector<2x64xf32>
    %cst_527 = arith.constant 1.000000e+00 : f32
    %947 = vector.broadcast %cst_527 : f32 to vector<2x64xf32>
    %948 = arith.addf %947, %946 : vector<2x64xf32>
    %949 = arith.divf %947, %948 : vector<2x64xf32>
    %c14_528 = arith.constant 14 : index
    %c0_529 = arith.constant 0 : index
    %950 = vector.load %arg16[%c14_528, %c0_529] : memref<42x64xf32, #tpu.memory_space<vmem>>, vector<2x64xf32>
    %cst_530 = arith.constant dense<0.000000e+00> : vector<2x64xf32>
    %951 = tpu.matmul %929, %706, %cst_530 {dimension_numbers = #tpu.dot_dimension_numbers<[1], [0], [0], [1], [0, 0, 1, 1], [], []>} : vector<2x64xf32>, vector<64x64xf32>, vector<2x64xf32> -> vector<2x64xf32>
    %952 = vector.broadcast %707 : vector<1x64xf32> to vector<2x64xf32>
    %953 = arith.addf %951, %952 : vector<2x64xf32>
    %954 = arith.mulf %941, %953 : vector<2x64xf32>
    %955 = arith.addf %950, %954 : vector<2x64xf32>
    %956 = math.tanh %955 : vector<2x64xf32>
    %cst_531 = arith.constant 1.000000e+00 : f32
    %957 = vector.broadcast %cst_531 : f32 to vector<2x64xf32>
    %958 = arith.subf %957, %949 : vector<2x64xf32>
    %959 = arith.mulf %958, %956 : vector<2x64xf32>
    %960 = arith.mulf %949, %929 : vector<2x64xf32>
    %961 = arith.addf %959, %960 : vector<2x64xf32>
    %c7 = arith.constant 7 : index
    %c0_532 = arith.constant 0 : index
    %c0_533 = arith.constant 0 : index
    %962 = vector.load %arg10[%c7, %c0_532, %c0_533] : memref<21x64x2xf32, #tpu.memory_space<vmem>>, vector<1x64x2xf32>
    %963 = vector.shape_cast %962 : vector<1x64x2xf32> to vector<64x2xf32>
    %cst_534 = arith.constant dense<0.000000e+00> : vector<2x2xf32>
    %964 = tpu.matmul %961, %963, %cst_534 {dimension_numbers = #tpu.dot_dimension_numbers<[1], [0], [0], [1], [0, 0, 1, 1], [], []>} : vector<2x64xf32>, vector<64x2xf32>, vector<2x2xf32> -> vector<2x2xf32>
    %965 = arith.addf %933, %964 : vector<2x2xf32>
    %c16_535 = arith.constant 16 : index
    %c0_536 = arith.constant 0 : index
    %966 = vector.load %arg14[%c16_535, %c0_536] : memref<42x64xf32, #tpu.memory_space<vmem>>, vector<2x64xf32>
    %cst_537 = arith.constant dense<0.000000e+00> : vector<2x64xf32>
    %967 = tpu.matmul %961, %702, %cst_537 {dimension_numbers = #tpu.dot_dimension_numbers<[1], [0], [0], [1], [0, 0, 1, 1], [], []>} : vector<2x64xf32>, vector<64x64xf32>, vector<2x64xf32> -> vector<2x64xf32>
    %968 = arith.addf %966, %967 : vector<2x64xf32>
    %969 = arith.negf %968 : vector<2x64xf32>
    %970 = math.exp %969 : vector<2x64xf32>
    %cst_538 = arith.constant 1.000000e+00 : f32
    %971 = vector.broadcast %cst_538 : f32 to vector<2x64xf32>
    %972 = arith.addf %971, %970 : vector<2x64xf32>
    %973 = arith.divf %971, %972 : vector<2x64xf32>
    %c16_539 = arith.constant 16 : index
    %c0_540 = arith.constant 0 : index
    %974 = vector.load %arg15[%c16_539, %c0_540] : memref<42x64xf32, #tpu.memory_space<vmem>>, vector<2x64xf32>
    %cst_541 = arith.constant dense<0.000000e+00> : vector<2x64xf32>
    %975 = tpu.matmul %961, %704, %cst_541 {dimension_numbers = #tpu.dot_dimension_numbers<[1], [0], [0], [1], [0, 0, 1, 1], [], []>} : vector<2x64xf32>, vector<64x64xf32>, vector<2x64xf32> -> vector<2x64xf32>
    %976 = arith.addf %974, %975 : vector<2x64xf32>
    %977 = arith.negf %976 : vector<2x64xf32>
    %978 = math.exp %977 : vector<2x64xf32>
    %cst_542 = arith.constant 1.000000e+00 : f32
    %979 = vector.broadcast %cst_542 : f32 to vector<2x64xf32>
    %980 = arith.addf %979, %978 : vector<2x64xf32>
    %981 = arith.divf %979, %980 : vector<2x64xf32>
    %c16_543 = arith.constant 16 : index
    %c0_544 = arith.constant 0 : index
    %982 = vector.load %arg16[%c16_543, %c0_544] : memref<42x64xf32, #tpu.memory_space<vmem>>, vector<2x64xf32>
    %cst_545 = arith.constant dense<0.000000e+00> : vector<2x64xf32>
    %983 = tpu.matmul %961, %706, %cst_545 {dimension_numbers = #tpu.dot_dimension_numbers<[1], [0], [0], [1], [0, 0, 1, 1], [], []>} : vector<2x64xf32>, vector<64x64xf32>, vector<2x64xf32> -> vector<2x64xf32>
    %984 = vector.broadcast %707 : vector<1x64xf32> to vector<2x64xf32>
    %985 = arith.addf %983, %984 : vector<2x64xf32>
    %986 = arith.mulf %973, %985 : vector<2x64xf32>
    %987 = arith.addf %982, %986 : vector<2x64xf32>
    %988 = math.tanh %987 : vector<2x64xf32>
    %cst_546 = arith.constant 1.000000e+00 : f32
    %989 = vector.broadcast %cst_546 : f32 to vector<2x64xf32>
    %990 = arith.subf %989, %981 : vector<2x64xf32>
    %991 = arith.mulf %990, %988 : vector<2x64xf32>
    %992 = arith.mulf %981, %961 : vector<2x64xf32>
    %993 = arith.addf %991, %992 : vector<2x64xf32>
    %c8_547 = arith.constant 8 : index
    %c0_548 = arith.constant 0 : index
    %c0_549 = arith.constant 0 : index
    %994 = vector.load %arg10[%c8_547, %c0_548, %c0_549] : memref<21x64x2xf32, #tpu.memory_space<vmem>>, vector<1x64x2xf32>
    %995 = vector.shape_cast %994 : vector<1x64x2xf32> to vector<64x2xf32>
    %cst_550 = arith.constant dense<0.000000e+00> : vector<2x2xf32>
    %996 = tpu.matmul %993, %995, %cst_550 {dimension_numbers = #tpu.dot_dimension_numbers<[1], [0], [0], [1], [0, 0, 1, 1], [], []>} : vector<2x64xf32>, vector<64x2xf32>, vector<2x2xf32> -> vector<2x2xf32>
    %997 = arith.addf %965, %996 : vector<2x2xf32>
    %c18_551 = arith.constant 18 : index
    %c0_552 = arith.constant 0 : index
    %998 = vector.load %arg14[%c18_551, %c0_552] : memref<42x64xf32, #tpu.memory_space<vmem>>, vector<2x64xf32>
    %cst_553 = arith.constant dense<0.000000e+00> : vector<2x64xf32>
    %999 = tpu.matmul %993, %702, %cst_553 {dimension_numbers = #tpu.dot_dimension_numbers<[1], [0], [0], [1], [0, 0, 1, 1], [], []>} : vector<2x64xf32>, vector<64x64xf32>, vector<2x64xf32> -> vector<2x64xf32>
    %1000 = arith.addf %998, %999 : vector<2x64xf32>
    %1001 = arith.negf %1000 : vector<2x64xf32>
    %1002 = math.exp %1001 : vector<2x64xf32>
    %cst_554 = arith.constant 1.000000e+00 : f32
    %1003 = vector.broadcast %cst_554 : f32 to vector<2x64xf32>
    %1004 = arith.addf %1003, %1002 : vector<2x64xf32>
    %1005 = arith.divf %1003, %1004 : vector<2x64xf32>
    %c18_555 = arith.constant 18 : index
    %c0_556 = arith.constant 0 : index
    %1006 = vector.load %arg15[%c18_555, %c0_556] : memref<42x64xf32, #tpu.memory_space<vmem>>, vector<2x64xf32>
    %cst_557 = arith.constant dense<0.000000e+00> : vector<2x64xf32>
    %1007 = tpu.matmul %993, %704, %cst_557 {dimension_numbers = #tpu.dot_dimension_numbers<[1], [0], [0], [1], [0, 0, 1, 1], [], []>} : vector<2x64xf32>, vector<64x64xf32>, vector<2x64xf32> -> vector<2x64xf32>
    %1008 = arith.addf %1006, %1007 : vector<2x64xf32>
    %1009 = arith.negf %1008 : vector<2x64xf32>
    %1010 = math.exp %1009 : vector<2x64xf32>
    %cst_558 = arith.constant 1.000000e+00 : f32
    %1011 = vector.broadcast %cst_558 : f32 to vector<2x64xf32>
    %1012 = arith.addf %1011, %1010 : vector<2x64xf32>
    %1013 = arith.divf %1011, %1012 : vector<2x64xf32>
    %c18_559 = arith.constant 18 : index
    %c0_560 = arith.constant 0 : index
    %1014 = vector.load %arg16[%c18_559, %c0_560] : memref<42x64xf32, #tpu.memory_space<vmem>>, vector<2x64xf32>
    %cst_561 = arith.constant dense<0.000000e+00> : vector<2x64xf32>
    %1015 = tpu.matmul %993, %706, %cst_561 {dimension_numbers = #tpu.dot_dimension_numbers<[1], [0], [0], [1], [0, 0, 1, 1], [], []>} : vector<2x64xf32>, vector<64x64xf32>, vector<2x64xf32> -> vector<2x64xf32>
    %1016 = vector.broadcast %707 : vector<1x64xf32> to vector<2x64xf32>
    %1017 = arith.addf %1015, %1016 : vector<2x64xf32>
    %1018 = arith.mulf %1005, %1017 : vector<2x64xf32>
    %1019 = arith.addf %1014, %1018 : vector<2x64xf32>
    %1020 = math.tanh %1019 : vector<2x64xf32>
    %cst_562 = arith.constant 1.000000e+00 : f32
    %1021 = vector.broadcast %cst_562 : f32 to vector<2x64xf32>
    %1022 = arith.subf %1021, %1013 : vector<2x64xf32>
    %1023 = arith.mulf %1022, %1020 : vector<2x64xf32>
    %1024 = arith.mulf %1013, %993 : vector<2x64xf32>
    %1025 = arith.addf %1023, %1024 : vector<2x64xf32>
    %c9 = arith.constant 9 : index
    %c0_563 = arith.constant 0 : index
    %c0_564 = arith.constant 0 : index
    %1026 = vector.load %arg10[%c9, %c0_563, %c0_564] : memref<21x64x2xf32, #tpu.memory_space<vmem>>, vector<1x64x2xf32>
    %1027 = vector.shape_cast %1026 : vector<1x64x2xf32> to vector<64x2xf32>
    %cst_565 = arith.constant dense<0.000000e+00> : vector<2x2xf32>
    %1028 = tpu.matmul %1025, %1027, %cst_565 {dimension_numbers = #tpu.dot_dimension_numbers<[1], [0], [0], [1], [0, 0, 1, 1], [], []>} : vector<2x64xf32>, vector<64x2xf32>, vector<2x2xf32> -> vector<2x2xf32>
    %1029 = arith.addf %997, %1028 : vector<2x2xf32>
    %c20_566 = arith.constant 20 : index
    %c0_567 = arith.constant 0 : index
    %1030 = vector.load %arg14[%c20_566, %c0_567] : memref<42x64xf32, #tpu.memory_space<vmem>>, vector<2x64xf32>
    %cst_568 = arith.constant dense<0.000000e+00> : vector<2x64xf32>
    %1031 = tpu.matmul %1025, %702, %cst_568 {dimension_numbers = #tpu.dot_dimension_numbers<[1], [0], [0], [1], [0, 0, 1, 1], [], []>} : vector<2x64xf32>, vector<64x64xf32>, vector<2x64xf32> -> vector<2x64xf32>
    %1032 = arith.addf %1030, %1031 : vector<2x64xf32>
    %1033 = arith.negf %1032 : vector<2x64xf32>
    %1034 = math.exp %1033 : vector<2x64xf32>
    %cst_569 = arith.constant 1.000000e+00 : f32
    %1035 = vector.broadcast %cst_569 : f32 to vector<2x64xf32>
    %1036 = arith.addf %1035, %1034 : vector<2x64xf32>
    %1037 = arith.divf %1035, %1036 : vector<2x64xf32>
    %c20_570 = arith.constant 20 : index
    %c0_571 = arith.constant 0 : index
    %1038 = vector.load %arg15[%c20_570, %c0_571] : memref<42x64xf32, #tpu.memory_space<vmem>>, vector<2x64xf32>
    %cst_572 = arith.constant dense<0.000000e+00> : vector<2x64xf32>
    %1039 = tpu.matmul %1025, %704, %cst_572 {dimension_numbers = #tpu.dot_dimension_numbers<[1], [0], [0], [1], [0, 0, 1, 1], [], []>} : vector<2x64xf32>, vector<64x64xf32>, vector<2x64xf32> -> vector<2x64xf32>
    %1040 = arith.addf %1038, %1039 : vector<2x64xf32>
    %1041 = arith.negf %1040 : vector<2x64xf32>
    %1042 = math.exp %1041 : vector<2x64xf32>
    %cst_573 = arith.constant 1.000000e+00 : f32
    %1043 = vector.broadcast %cst_573 : f32 to vector<2x64xf32>
    %1044 = arith.addf %1043, %1042 : vector<2x64xf32>
    %1045 = arith.divf %1043, %1044 : vector<2x64xf32>
    %c20_574 = arith.constant 20 : index
    %c0_575 = arith.constant 0 : index
    %1046 = vector.load %arg16[%c20_574, %c0_575] : memref<42x64xf32, #tpu.memory_space<vmem>>, vector<2x64xf32>
    %cst_576 = arith.constant dense<0.000000e+00> : vector<2x64xf32>
    %1047 = tpu.matmul %1025, %706, %cst_576 {dimension_numbers = #tpu.dot_dimension_numbers<[1], [0], [0], [1], [0, 0, 1, 1], [], []>} : vector<2x64xf32>, vector<64x64xf32>, vector<2x64xf32> -> vector<2x64xf32>
    %1048 = vector.broadcast %707 : vector<1x64xf32> to vector<2x64xf32>
    %1049 = arith.addf %1047, %1048 : vector<2x64xf32>
    %1050 = arith.mulf %1037, %1049 : vector<2x64xf32>
    %1051 = arith.addf %1046, %1050 : vector<2x64xf32>
    %1052 = math.tanh %1051 : vector<2x64xf32>
    %cst_577 = arith.constant 1.000000e+00 : f32
    %1053 = vector.broadcast %cst_577 : f32 to vector<2x64xf32>
    %1054 = arith.subf %1053, %1045 : vector<2x64xf32>
    %1055 = arith.mulf %1054, %1052 : vector<2x64xf32>
    %1056 = arith.mulf %1045, %1025 : vector<2x64xf32>
    %1057 = arith.addf %1055, %1056 : vector<2x64xf32>
    %c10_578 = arith.constant 10 : index
    %c0_579 = arith.constant 0 : index
    %c0_580 = arith.constant 0 : index
    %1058 = vector.load %arg10[%c10_578, %c0_579, %c0_580] : memref<21x64x2xf32, #tpu.memory_space<vmem>>, vector<1x64x2xf32>
    %1059 = vector.shape_cast %1058 : vector<1x64x2xf32> to vector<64x2xf32>
    %cst_581 = arith.constant dense<0.000000e+00> : vector<2x2xf32>
    %1060 = tpu.matmul %1057, %1059, %cst_581 {dimension_numbers = #tpu.dot_dimension_numbers<[1], [0], [0], [1], [0, 0, 1, 1], [], []>} : vector<2x64xf32>, vector<64x2xf32>, vector<2x2xf32> -> vector<2x2xf32>
    %1061 = arith.addf %1029, %1060 : vector<2x2xf32>
    %c22_582 = arith.constant 22 : index
    %c0_583 = arith.constant 0 : index
    %1062 = vector.load %arg14[%c22_582, %c0_583] : memref<42x64xf32, #tpu.memory_space<vmem>>, vector<2x64xf32>
    %cst_584 = arith.constant dense<0.000000e+00> : vector<2x64xf32>
    %1063 = tpu.matmul %1057, %702, %cst_584 {dimension_numbers = #tpu.dot_dimension_numbers<[1], [0], [0], [1], [0, 0, 1, 1], [], []>} : vector<2x64xf32>, vector<64x64xf32>, vector<2x64xf32> -> vector<2x64xf32>
    %1064 = arith.addf %1062, %1063 : vector<2x64xf32>
    %1065 = arith.negf %1064 : vector<2x64xf32>
    %1066 = math.exp %1065 : vector<2x64xf32>
    %cst_585 = arith.constant 1.000000e+00 : f32
    %1067 = vector.broadcast %cst_585 : f32 to vector<2x64xf32>
    %1068 = arith.addf %1067, %1066 : vector<2x64xf32>
    %1069 = arith.divf %1067, %1068 : vector<2x64xf32>
    %c22_586 = arith.constant 22 : index
    %c0_587 = arith.constant 0 : index
    %1070 = vector.load %arg15[%c22_586, %c0_587] : memref<42x64xf32, #tpu.memory_space<vmem>>, vector<2x64xf32>
    %cst_588 = arith.constant dense<0.000000e+00> : vector<2x64xf32>
    %1071 = tpu.matmul %1057, %704, %cst_588 {dimension_numbers = #tpu.dot_dimension_numbers<[1], [0], [0], [1], [0, 0, 1, 1], [], []>} : vector<2x64xf32>, vector<64x64xf32>, vector<2x64xf32> -> vector<2x64xf32>
    %1072 = arith.addf %1070, %1071 : vector<2x64xf32>
    %1073 = arith.negf %1072 : vector<2x64xf32>
    %1074 = math.exp %1073 : vector<2x64xf32>
    %cst_589 = arith.constant 1.000000e+00 : f32
    %1075 = vector.broadcast %cst_589 : f32 to vector<2x64xf32>
    %1076 = arith.addf %1075, %1074 : vector<2x64xf32>
    %1077 = arith.divf %1075, %1076 : vector<2x64xf32>
    %c22_590 = arith.constant 22 : index
    %c0_591 = arith.constant 0 : index
    %1078 = vector.load %arg16[%c22_590, %c0_591] : memref<42x64xf32, #tpu.memory_space<vmem>>, vector<2x64xf32>
    %cst_592 = arith.constant dense<0.000000e+00> : vector<2x64xf32>
    %1079 = tpu.matmul %1057, %706, %cst_592 {dimension_numbers = #tpu.dot_dimension_numbers<[1], [0], [0], [1], [0, 0, 1, 1], [], []>} : vector<2x64xf32>, vector<64x64xf32>, vector<2x64xf32> -> vector<2x64xf32>
    %1080 = vector.broadcast %707 : vector<1x64xf32> to vector<2x64xf32>
    %1081 = arith.addf %1079, %1080 : vector<2x64xf32>
    %1082 = arith.mulf %1069, %1081 : vector<2x64xf32>
    %1083 = arith.addf %1078, %1082 : vector<2x64xf32>
    %1084 = math.tanh %1083 : vector<2x64xf32>
    %cst_593 = arith.constant 1.000000e+00 : f32
    %1085 = vector.broadcast %cst_593 : f32 to vector<2x64xf32>
    %1086 = arith.subf %1085, %1077 : vector<2x64xf32>
    %1087 = arith.mulf %1086, %1084 : vector<2x64xf32>
    %1088 = arith.mulf %1077, %1057 : vector<2x64xf32>
    %1089 = arith.addf %1087, %1088 : vector<2x64xf32>
    %c11 = arith.constant 11 : index
    %c0_594 = arith.constant 0 : index
    %c0_595 = arith.constant 0 : index
    %1090 = vector.load %arg10[%c11, %c0_594, %c0_595] : memref<21x64x2xf32, #tpu.memory_space<vmem>>, vector<1x64x2xf32>
    %1091 = vector.shape_cast %1090 : vector<1x64x2xf32> to vector<64x2xf32>
    %cst_596 = arith.constant dense<0.000000e+00> : vector<2x2xf32>
    %1092 = tpu.matmul %1089, %1091, %cst_596 {dimension_numbers = #tpu.dot_dimension_numbers<[1], [0], [0], [1], [0, 0, 1, 1], [], []>} : vector<2x64xf32>, vector<64x2xf32>, vector<2x2xf32> -> vector<2x2xf32>
    %1093 = arith.addf %1061, %1092 : vector<2x2xf32>
    %c24_597 = arith.constant 24 : index
    %c0_598 = arith.constant 0 : index
    %1094 = vector.load %arg14[%c24_597, %c0_598] : memref<42x64xf32, #tpu.memory_space<vmem>>, vector<2x64xf32>
    %cst_599 = arith.constant dense<0.000000e+00> : vector<2x64xf32>
    %1095 = tpu.matmul %1089, %702, %cst_599 {dimension_numbers = #tpu.dot_dimension_numbers<[1], [0], [0], [1], [0, 0, 1, 1], [], []>} : vector<2x64xf32>, vector<64x64xf32>, vector<2x64xf32> -> vector<2x64xf32>
    %1096 = arith.addf %1094, %1095 : vector<2x64xf32>
    %1097 = arith.negf %1096 : vector<2x64xf32>
    %1098 = math.exp %1097 : vector<2x64xf32>
    %cst_600 = arith.constant 1.000000e+00 : f32
    %1099 = vector.broadcast %cst_600 : f32 to vector<2x64xf32>
    %1100 = arith.addf %1099, %1098 : vector<2x64xf32>
    %1101 = arith.divf %1099, %1100 : vector<2x64xf32>
    %c24_601 = arith.constant 24 : index
    %c0_602 = arith.constant 0 : index
    %1102 = vector.load %arg15[%c24_601, %c0_602] : memref<42x64xf32, #tpu.memory_space<vmem>>, vector<2x64xf32>
    %cst_603 = arith.constant dense<0.000000e+00> : vector<2x64xf32>
    %1103 = tpu.matmul %1089, %704, %cst_603 {dimension_numbers = #tpu.dot_dimension_numbers<[1], [0], [0], [1], [0, 0, 1, 1], [], []>} : vector<2x64xf32>, vector<64x64xf32>, vector<2x64xf32> -> vector<2x64xf32>
    %1104 = arith.addf %1102, %1103 : vector<2x64xf32>
    %1105 = arith.negf %1104 : vector<2x64xf32>
    %1106 = math.exp %1105 : vector<2x64xf32>
    %cst_604 = arith.constant 1.000000e+00 : f32
    %1107 = vector.broadcast %cst_604 : f32 to vector<2x64xf32>
    %1108 = arith.addf %1107, %1106 : vector<2x64xf32>
    %1109 = arith.divf %1107, %1108 : vector<2x64xf32>
    %c24_605 = arith.constant 24 : index
    %c0_606 = arith.constant 0 : index
    %1110 = vector.load %arg16[%c24_605, %c0_606] : memref<42x64xf32, #tpu.memory_space<vmem>>, vector<2x64xf32>
    %cst_607 = arith.constant dense<0.000000e+00> : vector<2x64xf32>
    %1111 = tpu.matmul %1089, %706, %cst_607 {dimension_numbers = #tpu.dot_dimension_numbers<[1], [0], [0], [1], [0, 0, 1, 1], [], []>} : vector<2x64xf32>, vector<64x64xf32>, vector<2x64xf32> -> vector<2x64xf32>
    %1112 = vector.broadcast %707 : vector<1x64xf32> to vector<2x64xf32>
    %1113 = arith.addf %1111, %1112 : vector<2x64xf32>
    %1114 = arith.mulf %1101, %1113 : vector<2x64xf32>
    %1115 = arith.addf %1110, %1114 : vector<2x64xf32>
    %1116 = math.tanh %1115 : vector<2x64xf32>
    %cst_608 = arith.constant 1.000000e+00 : f32
    %1117 = vector.broadcast %cst_608 : f32 to vector<2x64xf32>
    %1118 = arith.subf %1117, %1109 : vector<2x64xf32>
    %1119 = arith.mulf %1118, %1116 : vector<2x64xf32>
    %1120 = arith.mulf %1109, %1089 : vector<2x64xf32>
    %1121 = arith.addf %1119, %1120 : vector<2x64xf32>
    %c12_609 = arith.constant 12 : index
    %c0_610 = arith.constant 0 : index
    %c0_611 = arith.constant 0 : index
    %1122 = vector.load %arg10[%c12_609, %c0_610, %c0_611] : memref<21x64x2xf32, #tpu.memory_space<vmem>>, vector<1x64x2xf32>
    %1123 = vector.shape_cast %1122 : vector<1x64x2xf32> to vector<64x2xf32>
    %cst_612 = arith.constant dense<0.000000e+00> : vector<2x2xf32>
    %1124 = tpu.matmul %1121, %1123, %cst_612 {dimension_numbers = #tpu.dot_dimension_numbers<[1], [0], [0], [1], [0, 0, 1, 1], [], []>} : vector<2x64xf32>, vector<64x2xf32>, vector<2x2xf32> -> vector<2x2xf32>
    %1125 = arith.addf %1093, %1124 : vector<2x2xf32>
    %c26_613 = arith.constant 26 : index
    %c0_614 = arith.constant 0 : index
    %1126 = vector.load %arg14[%c26_613, %c0_614] : memref<42x64xf32, #tpu.memory_space<vmem>>, vector<2x64xf32>
    %cst_615 = arith.constant dense<0.000000e+00> : vector<2x64xf32>
    %1127 = tpu.matmul %1121, %702, %cst_615 {dimension_numbers = #tpu.dot_dimension_numbers<[1], [0], [0], [1], [0, 0, 1, 1], [], []>} : vector<2x64xf32>, vector<64x64xf32>, vector<2x64xf32> -> vector<2x64xf32>
    %1128 = arith.addf %1126, %1127 : vector<2x64xf32>
    %1129 = arith.negf %1128 : vector<2x64xf32>
    %1130 = math.exp %1129 : vector<2x64xf32>
    %cst_616 = arith.constant 1.000000e+00 : f32
    %1131 = vector.broadcast %cst_616 : f32 to vector<2x64xf32>
    %1132 = arith.addf %1131, %1130 : vector<2x64xf32>
    %1133 = arith.divf %1131, %1132 : vector<2x64xf32>
    %c26_617 = arith.constant 26 : index
    %c0_618 = arith.constant 0 : index
    %1134 = vector.load %arg15[%c26_617, %c0_618] : memref<42x64xf32, #tpu.memory_space<vmem>>, vector<2x64xf32>
    %cst_619 = arith.constant dense<0.000000e+00> : vector<2x64xf32>
    %1135 = tpu.matmul %1121, %704, %cst_619 {dimension_numbers = #tpu.dot_dimension_numbers<[1], [0], [0], [1], [0, 0, 1, 1], [], []>} : vector<2x64xf32>, vector<64x64xf32>, vector<2x64xf32> -> vector<2x64xf32>
    %1136 = arith.addf %1134, %1135 : vector<2x64xf32>
    %1137 = arith.negf %1136 : vector<2x64xf32>
    %1138 = math.exp %1137 : vector<2x64xf32>
    %cst_620 = arith.constant 1.000000e+00 : f32
    %1139 = vector.broadcast %cst_620 : f32 to vector<2x64xf32>
    %1140 = arith.addf %1139, %1138 : vector<2x64xf32>
    %1141 = arith.divf %1139, %1140 : vector<2x64xf32>
    %c26_621 = arith.constant 26 : index
    %c0_622 = arith.constant 0 : index
    %1142 = vector.load %arg16[%c26_621, %c0_622] : memref<42x64xf32, #tpu.memory_space<vmem>>, vector<2x64xf32>
    %cst_623 = arith.constant dense<0.000000e+00> : vector<2x64xf32>
    %1143 = tpu.matmul %1121, %706, %cst_623 {dimension_numbers = #tpu.dot_dimension_numbers<[1], [0], [0], [1], [0, 0, 1, 1], [], []>} : vector<2x64xf32>, vector<64x64xf32>, vector<2x64xf32> -> vector<2x64xf32>
    %1144 = vector.broadcast %707 : vector<1x64xf32> to vector<2x64xf32>
    %1145 = arith.addf %1143, %1144 : vector<2x64xf32>
    %1146 = arith.mulf %1133, %1145 : vector<2x64xf32>
    %1147 = arith.addf %1142, %1146 : vector<2x64xf32>
    %1148 = math.tanh %1147 : vector<2x64xf32>
    %cst_624 = arith.constant 1.000000e+00 : f32
    %1149 = vector.broadcast %cst_624 : f32 to vector<2x64xf32>
    %1150 = arith.subf %1149, %1141 : vector<2x64xf32>
    %1151 = arith.mulf %1150, %1148 : vector<2x64xf32>
    %1152 = arith.mulf %1141, %1121 : vector<2x64xf32>
    %1153 = arith.addf %1151, %1152 : vector<2x64xf32>
    %c13 = arith.constant 13 : index
    %c0_625 = arith.constant 0 : index
    %c0_626 = arith.constant 0 : index
    %1154 = vector.load %arg10[%c13, %c0_625, %c0_626] : memref<21x64x2xf32, #tpu.memory_space<vmem>>, vector<1x64x2xf32>
    %1155 = vector.shape_cast %1154 : vector<1x64x2xf32> to vector<64x2xf32>
    %cst_627 = arith.constant dense<0.000000e+00> : vector<2x2xf32>
    %1156 = tpu.matmul %1153, %1155, %cst_627 {dimension_numbers = #tpu.dot_dimension_numbers<[1], [0], [0], [1], [0, 0, 1, 1], [], []>} : vector<2x64xf32>, vector<64x2xf32>, vector<2x2xf32> -> vector<2x2xf32>
    %1157 = arith.addf %1125, %1156 : vector<2x2xf32>
    %c28_628 = arith.constant 28 : index
    %c0_629 = arith.constant 0 : index
    %1158 = vector.load %arg14[%c28_628, %c0_629] : memref<42x64xf32, #tpu.memory_space<vmem>>, vector<2x64xf32>
    %cst_630 = arith.constant dense<0.000000e+00> : vector<2x64xf32>
    %1159 = tpu.matmul %1153, %702, %cst_630 {dimension_numbers = #tpu.dot_dimension_numbers<[1], [0], [0], [1], [0, 0, 1, 1], [], []>} : vector<2x64xf32>, vector<64x64xf32>, vector<2x64xf32> -> vector<2x64xf32>
    %1160 = arith.addf %1158, %1159 : vector<2x64xf32>
    %1161 = arith.negf %1160 : vector<2x64xf32>
    %1162 = math.exp %1161 : vector<2x64xf32>
    %cst_631 = arith.constant 1.000000e+00 : f32
    %1163 = vector.broadcast %cst_631 : f32 to vector<2x64xf32>
    %1164 = arith.addf %1163, %1162 : vector<2x64xf32>
    %1165 = arith.divf %1163, %1164 : vector<2x64xf32>
    %c28_632 = arith.constant 28 : index
    %c0_633 = arith.constant 0 : index
    %1166 = vector.load %arg15[%c28_632, %c0_633] : memref<42x64xf32, #tpu.memory_space<vmem>>, vector<2x64xf32>
    %cst_634 = arith.constant dense<0.000000e+00> : vector<2x64xf32>
    %1167 = tpu.matmul %1153, %704, %cst_634 {dimension_numbers = #tpu.dot_dimension_numbers<[1], [0], [0], [1], [0, 0, 1, 1], [], []>} : vector<2x64xf32>, vector<64x64xf32>, vector<2x64xf32> -> vector<2x64xf32>
    %1168 = arith.addf %1166, %1167 : vector<2x64xf32>
    %1169 = arith.negf %1168 : vector<2x64xf32>
    %1170 = math.exp %1169 : vector<2x64xf32>
    %cst_635 = arith.constant 1.000000e+00 : f32
    %1171 = vector.broadcast %cst_635 : f32 to vector<2x64xf32>
    %1172 = arith.addf %1171, %1170 : vector<2x64xf32>
    %1173 = arith.divf %1171, %1172 : vector<2x64xf32>
    %c28_636 = arith.constant 28 : index
    %c0_637 = arith.constant 0 : index
    %1174 = vector.load %arg16[%c28_636, %c0_637] : memref<42x64xf32, #tpu.memory_space<vmem>>, vector<2x64xf32>
    %cst_638 = arith.constant dense<0.000000e+00> : vector<2x64xf32>
    %1175 = tpu.matmul %1153, %706, %cst_638 {dimension_numbers = #tpu.dot_dimension_numbers<[1], [0], [0], [1], [0, 0, 1, 1], [], []>} : vector<2x64xf32>, vector<64x64xf32>, vector<2x64xf32> -> vector<2x64xf32>
    %1176 = vector.broadcast %707 : vector<1x64xf32> to vector<2x64xf32>
    %1177 = arith.addf %1175, %1176 : vector<2x64xf32>
    %1178 = arith.mulf %1165, %1177 : vector<2x64xf32>
    %1179 = arith.addf %1174, %1178 : vector<2x64xf32>
    %1180 = math.tanh %1179 : vector<2x64xf32>
    %cst_639 = arith.constant 1.000000e+00 : f32
    %1181 = vector.broadcast %cst_639 : f32 to vector<2x64xf32>
    %1182 = arith.subf %1181, %1173 : vector<2x64xf32>
    %1183 = arith.mulf %1182, %1180 : vector<2x64xf32>
    %1184 = arith.mulf %1173, %1153 : vector<2x64xf32>
    %1185 = arith.addf %1183, %1184 : vector<2x64xf32>
    %c14_640 = arith.constant 14 : index
    %c0_641 = arith.constant 0 : index
    %c0_642 = arith.constant 0 : index
    %1186 = vector.load %arg10[%c14_640, %c0_641, %c0_642] : memref<21x64x2xf32, #tpu.memory_space<vmem>>, vector<1x64x2xf32>
    %1187 = vector.shape_cast %1186 : vector<1x64x2xf32> to vector<64x2xf32>
    %cst_643 = arith.constant dense<0.000000e+00> : vector<2x2xf32>
    %1188 = tpu.matmul %1185, %1187, %cst_643 {dimension_numbers = #tpu.dot_dimension_numbers<[1], [0], [0], [1], [0, 0, 1, 1], [], []>} : vector<2x64xf32>, vector<64x2xf32>, vector<2x2xf32> -> vector<2x2xf32>
    %1189 = arith.addf %1157, %1188 : vector<2x2xf32>
    %c30_644 = arith.constant 30 : index
    %c0_645 = arith.constant 0 : index
    %1190 = vector.load %arg14[%c30_644, %c0_645] : memref<42x64xf32, #tpu.memory_space<vmem>>, vector<2x64xf32>
    %cst_646 = arith.constant dense<0.000000e+00> : vector<2x64xf32>
    %1191 = tpu.matmul %1185, %702, %cst_646 {dimension_numbers = #tpu.dot_dimension_numbers<[1], [0], [0], [1], [0, 0, 1, 1], [], []>} : vector<2x64xf32>, vector<64x64xf32>, vector<2x64xf32> -> vector<2x64xf32>
    %1192 = arith.addf %1190, %1191 : vector<2x64xf32>
    %1193 = arith.negf %1192 : vector<2x64xf32>
    %1194 = math.exp %1193 : vector<2x64xf32>
    %cst_647 = arith.constant 1.000000e+00 : f32
    %1195 = vector.broadcast %cst_647 : f32 to vector<2x64xf32>
    %1196 = arith.addf %1195, %1194 : vector<2x64xf32>
    %1197 = arith.divf %1195, %1196 : vector<2x64xf32>
    %c30_648 = arith.constant 30 : index
    %c0_649 = arith.constant 0 : index
    %1198 = vector.load %arg15[%c30_648, %c0_649] : memref<42x64xf32, #tpu.memory_space<vmem>>, vector<2x64xf32>
    %cst_650 = arith.constant dense<0.000000e+00> : vector<2x64xf32>
    %1199 = tpu.matmul %1185, %704, %cst_650 {dimension_numbers = #tpu.dot_dimension_numbers<[1], [0], [0], [1], [0, 0, 1, 1], [], []>} : vector<2x64xf32>, vector<64x64xf32>, vector<2x64xf32> -> vector<2x64xf32>
    %1200 = arith.addf %1198, %1199 : vector<2x64xf32>
    %1201 = arith.negf %1200 : vector<2x64xf32>
    %1202 = math.exp %1201 : vector<2x64xf32>
    %cst_651 = arith.constant 1.000000e+00 : f32
    %1203 = vector.broadcast %cst_651 : f32 to vector<2x64xf32>
    %1204 = arith.addf %1203, %1202 : vector<2x64xf32>
    %1205 = arith.divf %1203, %1204 : vector<2x64xf32>
    %c30_652 = arith.constant 30 : index
    %c0_653 = arith.constant 0 : index
    %1206 = vector.load %arg16[%c30_652, %c0_653] : memref<42x64xf32, #tpu.memory_space<vmem>>, vector<2x64xf32>
    %cst_654 = arith.constant dense<0.000000e+00> : vector<2x64xf32>
    %1207 = tpu.matmul %1185, %706, %cst_654 {dimension_numbers = #tpu.dot_dimension_numbers<[1], [0], [0], [1], [0, 0, 1, 1], [], []>} : vector<2x64xf32>, vector<64x64xf32>, vector<2x64xf32> -> vector<2x64xf32>
    %1208 = vector.broadcast %707 : vector<1x64xf32> to vector<2x64xf32>
    %1209 = arith.addf %1207, %1208 : vector<2x64xf32>
    %1210 = arith.mulf %1197, %1209 : vector<2x64xf32>
    %1211 = arith.addf %1206, %1210 : vector<2x64xf32>
    %1212 = math.tanh %1211 : vector<2x64xf32>
    %cst_655 = arith.constant 1.000000e+00 : f32
    %1213 = vector.broadcast %cst_655 : f32 to vector<2x64xf32>
    %1214 = arith.subf %1213, %1205 : vector<2x64xf32>
    %1215 = arith.mulf %1214, %1212 : vector<2x64xf32>
    %1216 = arith.mulf %1205, %1185 : vector<2x64xf32>
    %1217 = arith.addf %1215, %1216 : vector<2x64xf32>
    %c15 = arith.constant 15 : index
    %c0_656 = arith.constant 0 : index
    %c0_657 = arith.constant 0 : index
    %1218 = vector.load %arg10[%c15, %c0_656, %c0_657] : memref<21x64x2xf32, #tpu.memory_space<vmem>>, vector<1x64x2xf32>
    %1219 = vector.shape_cast %1218 : vector<1x64x2xf32> to vector<64x2xf32>
    %cst_658 = arith.constant dense<0.000000e+00> : vector<2x2xf32>
    %1220 = tpu.matmul %1217, %1219, %cst_658 {dimension_numbers = #tpu.dot_dimension_numbers<[1], [0], [0], [1], [0, 0, 1, 1], [], []>} : vector<2x64xf32>, vector<64x2xf32>, vector<2x2xf32> -> vector<2x2xf32>
    %1221 = arith.addf %1189, %1220 : vector<2x2xf32>
    %c32_659 = arith.constant 32 : index
    %c0_660 = arith.constant 0 : index
    %1222 = vector.load %arg14[%c32_659, %c0_660] : memref<42x64xf32, #tpu.memory_space<vmem>>, vector<2x64xf32>
    %cst_661 = arith.constant dense<0.000000e+00> : vector<2x64xf32>
    %1223 = tpu.matmul %1217, %702, %cst_661 {dimension_numbers = #tpu.dot_dimension_numbers<[1], [0], [0], [1], [0, 0, 1, 1], [], []>} : vector<2x64xf32>, vector<64x64xf32>, vector<2x64xf32> -> vector<2x64xf32>
    %1224 = arith.addf %1222, %1223 : vector<2x64xf32>
    %1225 = arith.negf %1224 : vector<2x64xf32>
    %1226 = math.exp %1225 : vector<2x64xf32>
    %cst_662 = arith.constant 1.000000e+00 : f32
    %1227 = vector.broadcast %cst_662 : f32 to vector<2x64xf32>
    %1228 = arith.addf %1227, %1226 : vector<2x64xf32>
    %1229 = arith.divf %1227, %1228 : vector<2x64xf32>
    %c32_663 = arith.constant 32 : index
    %c0_664 = arith.constant 0 : index
    %1230 = vector.load %arg15[%c32_663, %c0_664] : memref<42x64xf32, #tpu.memory_space<vmem>>, vector<2x64xf32>
    %cst_665 = arith.constant dense<0.000000e+00> : vector<2x64xf32>
    %1231 = tpu.matmul %1217, %704, %cst_665 {dimension_numbers = #tpu.dot_dimension_numbers<[1], [0], [0], [1], [0, 0, 1, 1], [], []>} : vector<2x64xf32>, vector<64x64xf32>, vector<2x64xf32> -> vector<2x64xf32>
    %1232 = arith.addf %1230, %1231 : vector<2x64xf32>
    %1233 = arith.negf %1232 : vector<2x64xf32>
    %1234 = math.exp %1233 : vector<2x64xf32>
    %cst_666 = arith.constant 1.000000e+00 : f32
    %1235 = vector.broadcast %cst_666 : f32 to vector<2x64xf32>
    %1236 = arith.addf %1235, %1234 : vector<2x64xf32>
    %1237 = arith.divf %1235, %1236 : vector<2x64xf32>
    %c32_667 = arith.constant 32 : index
    %c0_668 = arith.constant 0 : index
    %1238 = vector.load %arg16[%c32_667, %c0_668] : memref<42x64xf32, #tpu.memory_space<vmem>>, vector<2x64xf32>
    %cst_669 = arith.constant dense<0.000000e+00> : vector<2x64xf32>
    %1239 = tpu.matmul %1217, %706, %cst_669 {dimension_numbers = #tpu.dot_dimension_numbers<[1], [0], [0], [1], [0, 0, 1, 1], [], []>} : vector<2x64xf32>, vector<64x64xf32>, vector<2x64xf32> -> vector<2x64xf32>
    %1240 = vector.broadcast %707 : vector<1x64xf32> to vector<2x64xf32>
    %1241 = arith.addf %1239, %1240 : vector<2x64xf32>
    %1242 = arith.mulf %1229, %1241 : vector<2x64xf32>
    %1243 = arith.addf %1238, %1242 : vector<2x64xf32>
    %1244 = math.tanh %1243 : vector<2x64xf32>
    %cst_670 = arith.constant 1.000000e+00 : f32
    %1245 = vector.broadcast %cst_670 : f32 to vector<2x64xf32>
    %1246 = arith.subf %1245, %1237 : vector<2x64xf32>
    %1247 = arith.mulf %1246, %1244 : vector<2x64xf32>
    %1248 = arith.mulf %1237, %1217 : vector<2x64xf32>
    %1249 = arith.addf %1247, %1248 : vector<2x64xf32>
    %c16_671 = arith.constant 16 : index
    %c0_672 = arith.constant 0 : index
    %c0_673 = arith.constant 0 : index
    %1250 = vector.load %arg10[%c16_671, %c0_672, %c0_673] : memref<21x64x2xf32, #tpu.memory_space<vmem>>, vector<1x64x2xf32>
    %1251 = vector.shape_cast %1250 : vector<1x64x2xf32> to vector<64x2xf32>
    %cst_674 = arith.constant dense<0.000000e+00> : vector<2x2xf32>
    %1252 = tpu.matmul %1249, %1251, %cst_674 {dimension_numbers = #tpu.dot_dimension_numbers<[1], [0], [0], [1], [0, 0, 1, 1], [], []>} : vector<2x64xf32>, vector<64x2xf32>, vector<2x2xf32> -> vector<2x2xf32>
    %1253 = arith.addf %1221, %1252 : vector<2x2xf32>
    %c34_675 = arith.constant 34 : index
    %c0_676 = arith.constant 0 : index
    %1254 = vector.load %arg14[%c34_675, %c0_676] : memref<42x64xf32, #tpu.memory_space<vmem>>, vector<2x64xf32>
    %cst_677 = arith.constant dense<0.000000e+00> : vector<2x64xf32>
    %1255 = tpu.matmul %1249, %702, %cst_677 {dimension_numbers = #tpu.dot_dimension_numbers<[1], [0], [0], [1], [0, 0, 1, 1], [], []>} : vector<2x64xf32>, vector<64x64xf32>, vector<2x64xf32> -> vector<2x64xf32>
    %1256 = arith.addf %1254, %1255 : vector<2x64xf32>
    %1257 = arith.negf %1256 : vector<2x64xf32>
    %1258 = math.exp %1257 : vector<2x64xf32>
    %cst_678 = arith.constant 1.000000e+00 : f32
    %1259 = vector.broadcast %cst_678 : f32 to vector<2x64xf32>
    %1260 = arith.addf %1259, %1258 : vector<2x64xf32>
    %1261 = arith.divf %1259, %1260 : vector<2x64xf32>
    %c34_679 = arith.constant 34 : index
    %c0_680 = arith.constant 0 : index
    %1262 = vector.load %arg15[%c34_679, %c0_680] : memref<42x64xf32, #tpu.memory_space<vmem>>, vector<2x64xf32>
    %cst_681 = arith.constant dense<0.000000e+00> : vector<2x64xf32>
    %1263 = tpu.matmul %1249, %704, %cst_681 {dimension_numbers = #tpu.dot_dimension_numbers<[1], [0], [0], [1], [0, 0, 1, 1], [], []>} : vector<2x64xf32>, vector<64x64xf32>, vector<2x64xf32> -> vector<2x64xf32>
    %1264 = arith.addf %1262, %1263 : vector<2x64xf32>
    %1265 = arith.negf %1264 : vector<2x64xf32>
    %1266 = math.exp %1265 : vector<2x64xf32>
    %cst_682 = arith.constant 1.000000e+00 : f32
    %1267 = vector.broadcast %cst_682 : f32 to vector<2x64xf32>
    %1268 = arith.addf %1267, %1266 : vector<2x64xf32>
    %1269 = arith.divf %1267, %1268 : vector<2x64xf32>
    %c34_683 = arith.constant 34 : index
    %c0_684 = arith.constant 0 : index
    %1270 = vector.load %arg16[%c34_683, %c0_684] : memref<42x64xf32, #tpu.memory_space<vmem>>, vector<2x64xf32>
    %cst_685 = arith.constant dense<0.000000e+00> : vector<2x64xf32>
    %1271 = tpu.matmul %1249, %706, %cst_685 {dimension_numbers = #tpu.dot_dimension_numbers<[1], [0], [0], [1], [0, 0, 1, 1], [], []>} : vector<2x64xf32>, vector<64x64xf32>, vector<2x64xf32> -> vector<2x64xf32>
    %1272 = vector.broadcast %707 : vector<1x64xf32> to vector<2x64xf32>
    %1273 = arith.addf %1271, %1272 : vector<2x64xf32>
    %1274 = arith.mulf %1261, %1273 : vector<2x64xf32>
    %1275 = arith.addf %1270, %1274 : vector<2x64xf32>
    %1276 = math.tanh %1275 : vector<2x64xf32>
    %cst_686 = arith.constant 1.000000e+00 : f32
    %1277 = vector.broadcast %cst_686 : f32 to vector<2x64xf32>
    %1278 = arith.subf %1277, %1269 : vector<2x64xf32>
    %1279 = arith.mulf %1278, %1276 : vector<2x64xf32>
    %1280 = arith.mulf %1269, %1249 : vector<2x64xf32>
    %1281 = arith.addf %1279, %1280 : vector<2x64xf32>
    %c17 = arith.constant 17 : index
    %c0_687 = arith.constant 0 : index
    %c0_688 = arith.constant 0 : index
    %1282 = vector.load %arg10[%c17, %c0_687, %c0_688] : memref<21x64x2xf32, #tpu.memory_space<vmem>>, vector<1x64x2xf32>
    %1283 = vector.shape_cast %1282 : vector<1x64x2xf32> to vector<64x2xf32>
    %cst_689 = arith.constant dense<0.000000e+00> : vector<2x2xf32>
    %1284 = tpu.matmul %1281, %1283, %cst_689 {dimension_numbers = #tpu.dot_dimension_numbers<[1], [0], [0], [1], [0, 0, 1, 1], [], []>} : vector<2x64xf32>, vector<64x2xf32>, vector<2x2xf32> -> vector<2x2xf32>
    %1285 = arith.addf %1253, %1284 : vector<2x2xf32>
    %c36_690 = arith.constant 36 : index
    %c0_691 = arith.constant 0 : index
    %1286 = vector.load %arg14[%c36_690, %c0_691] : memref<42x64xf32, #tpu.memory_space<vmem>>, vector<2x64xf32>
    %cst_692 = arith.constant dense<0.000000e+00> : vector<2x64xf32>
    %1287 = tpu.matmul %1281, %702, %cst_692 {dimension_numbers = #tpu.dot_dimension_numbers<[1], [0], [0], [1], [0, 0, 1, 1], [], []>} : vector<2x64xf32>, vector<64x64xf32>, vector<2x64xf32> -> vector<2x64xf32>
    %1288 = arith.addf %1286, %1287 : vector<2x64xf32>
    %1289 = arith.negf %1288 : vector<2x64xf32>
    %1290 = math.exp %1289 : vector<2x64xf32>
    %cst_693 = arith.constant 1.000000e+00 : f32
    %1291 = vector.broadcast %cst_693 : f32 to vector<2x64xf32>
    %1292 = arith.addf %1291, %1290 : vector<2x64xf32>
    %1293 = arith.divf %1291, %1292 : vector<2x64xf32>
    %c36_694 = arith.constant 36 : index
    %c0_695 = arith.constant 0 : index
    %1294 = vector.load %arg15[%c36_694, %c0_695] : memref<42x64xf32, #tpu.memory_space<vmem>>, vector<2x64xf32>
    %cst_696 = arith.constant dense<0.000000e+00> : vector<2x64xf32>
    %1295 = tpu.matmul %1281, %704, %cst_696 {dimension_numbers = #tpu.dot_dimension_numbers<[1], [0], [0], [1], [0, 0, 1, 1], [], []>} : vector<2x64xf32>, vector<64x64xf32>, vector<2x64xf32> -> vector<2x64xf32>
    %1296 = arith.addf %1294, %1295 : vector<2x64xf32>
    %1297 = arith.negf %1296 : vector<2x64xf32>
    %1298 = math.exp %1297 : vector<2x64xf32>
    %cst_697 = arith.constant 1.000000e+00 : f32
    %1299 = vector.broadcast %cst_697 : f32 to vector<2x64xf32>
    %1300 = arith.addf %1299, %1298 : vector<2x64xf32>
    %1301 = arith.divf %1299, %1300 : vector<2x64xf32>
    %c36_698 = arith.constant 36 : index
    %c0_699 = arith.constant 0 : index
    %1302 = vector.load %arg16[%c36_698, %c0_699] : memref<42x64xf32, #tpu.memory_space<vmem>>, vector<2x64xf32>
    %cst_700 = arith.constant dense<0.000000e+00> : vector<2x64xf32>
    %1303 = tpu.matmul %1281, %706, %cst_700 {dimension_numbers = #tpu.dot_dimension_numbers<[1], [0], [0], [1], [0, 0, 1, 1], [], []>} : vector<2x64xf32>, vector<64x64xf32>, vector<2x64xf32> -> vector<2x64xf32>
    %1304 = vector.broadcast %707 : vector<1x64xf32> to vector<2x64xf32>
    %1305 = arith.addf %1303, %1304 : vector<2x64xf32>
    %1306 = arith.mulf %1293, %1305 : vector<2x64xf32>
    %1307 = arith.addf %1302, %1306 : vector<2x64xf32>
    %1308 = math.tanh %1307 : vector<2x64xf32>
    %cst_701 = arith.constant 1.000000e+00 : f32
    %1309 = vector.broadcast %cst_701 : f32 to vector<2x64xf32>
    %1310 = arith.subf %1309, %1301 : vector<2x64xf32>
    %1311 = arith.mulf %1310, %1308 : vector<2x64xf32>
    %1312 = arith.mulf %1301, %1281 : vector<2x64xf32>
    %1313 = arith.addf %1311, %1312 : vector<2x64xf32>
    %c18_702 = arith.constant 18 : index
    %c0_703 = arith.constant 0 : index
    %c0_704 = arith.constant 0 : index
    %1314 = vector.load %arg10[%c18_702, %c0_703, %c0_704] : memref<21x64x2xf32, #tpu.memory_space<vmem>>, vector<1x64x2xf32>
    %1315 = vector.shape_cast %1314 : vector<1x64x2xf32> to vector<64x2xf32>
    %cst_705 = arith.constant dense<0.000000e+00> : vector<2x2xf32>
    %1316 = tpu.matmul %1313, %1315, %cst_705 {dimension_numbers = #tpu.dot_dimension_numbers<[1], [0], [0], [1], [0, 0, 1, 1], [], []>} : vector<2x64xf32>, vector<64x2xf32>, vector<2x2xf32> -> vector<2x2xf32>
    %1317 = arith.addf %1285, %1316 : vector<2x2xf32>
    %c38_706 = arith.constant 38 : index
    %c0_707 = arith.constant 0 : index
    %1318 = vector.load %arg14[%c38_706, %c0_707] : memref<42x64xf32, #tpu.memory_space<vmem>>, vector<2x64xf32>
    %cst_708 = arith.constant dense<0.000000e+00> : vector<2x64xf32>
    %1319 = tpu.matmul %1313, %702, %cst_708 {dimension_numbers = #tpu.dot_dimension_numbers<[1], [0], [0], [1], [0, 0, 1, 1], [], []>} : vector<2x64xf32>, vector<64x64xf32>, vector<2x64xf32> -> vector<2x64xf32>
    %1320 = arith.addf %1318, %1319 : vector<2x64xf32>
    %1321 = arith.negf %1320 : vector<2x64xf32>
    %1322 = math.exp %1321 : vector<2x64xf32>
    %cst_709 = arith.constant 1.000000e+00 : f32
    %1323 = vector.broadcast %cst_709 : f32 to vector<2x64xf32>
    %1324 = arith.addf %1323, %1322 : vector<2x64xf32>
    %1325 = arith.divf %1323, %1324 : vector<2x64xf32>
    %c38_710 = arith.constant 38 : index
    %c0_711 = arith.constant 0 : index
    %1326 = vector.load %arg15[%c38_710, %c0_711] : memref<42x64xf32, #tpu.memory_space<vmem>>, vector<2x64xf32>
    %cst_712 = arith.constant dense<0.000000e+00> : vector<2x64xf32>
    %1327 = tpu.matmul %1313, %704, %cst_712 {dimension_numbers = #tpu.dot_dimension_numbers<[1], [0], [0], [1], [0, 0, 1, 1], [], []>} : vector<2x64xf32>, vector<64x64xf32>, vector<2x64xf32> -> vector<2x64xf32>
    %1328 = arith.addf %1326, %1327 : vector<2x64xf32>
    %1329 = arith.negf %1328 : vector<2x64xf32>
    %1330 = math.exp %1329 : vector<2x64xf32>
    %cst_713 = arith.constant 1.000000e+00 : f32
    %1331 = vector.broadcast %cst_713 : f32 to vector<2x64xf32>
    %1332 = arith.addf %1331, %1330 : vector<2x64xf32>
    %1333 = arith.divf %1331, %1332 : vector<2x64xf32>
    %c38_714 = arith.constant 38 : index
    %c0_715 = arith.constant 0 : index
    %1334 = vector.load %arg16[%c38_714, %c0_715] : memref<42x64xf32, #tpu.memory_space<vmem>>, vector<2x64xf32>
    %cst_716 = arith.constant dense<0.000000e+00> : vector<2x64xf32>
    %1335 = tpu.matmul %1313, %706, %cst_716 {dimension_numbers = #tpu.dot_dimension_numbers<[1], [0], [0], [1], [0, 0, 1, 1], [], []>} : vector<2x64xf32>, vector<64x64xf32>, vector<2x64xf32> -> vector<2x64xf32>
    %1336 = vector.broadcast %707 : vector<1x64xf32> to vector<2x64xf32>
    %1337 = arith.addf %1335, %1336 : vector<2x64xf32>
    %1338 = arith.mulf %1325, %1337 : vector<2x64xf32>
    %1339 = arith.addf %1334, %1338 : vector<2x64xf32>
    %1340 = math.tanh %1339 : vector<2x64xf32>
    %cst_717 = arith.constant 1.000000e+00 : f32
    %1341 = vector.broadcast %cst_717 : f32 to vector<2x64xf32>
    %1342 = arith.subf %1341, %1333 : vector<2x64xf32>
    %1343 = arith.mulf %1342, %1340 : vector<2x64xf32>
    %1344 = arith.mulf %1333, %1313 : vector<2x64xf32>
    %1345 = arith.addf %1343, %1344 : vector<2x64xf32>
    %c19 = arith.constant 19 : index
    %c0_718 = arith.constant 0 : index
    %c0_719 = arith.constant 0 : index
    %1346 = vector.load %arg10[%c19, %c0_718, %c0_719] : memref<21x64x2xf32, #tpu.memory_space<vmem>>, vector<1x64x2xf32>
    %1347 = vector.shape_cast %1346 : vector<1x64x2xf32> to vector<64x2xf32>
    %cst_720 = arith.constant dense<0.000000e+00> : vector<2x2xf32>
    %1348 = tpu.matmul %1345, %1347, %cst_720 {dimension_numbers = #tpu.dot_dimension_numbers<[1], [0], [0], [1], [0, 0, 1, 1], [], []>} : vector<2x64xf32>, vector<64x2xf32>, vector<2x2xf32> -> vector<2x2xf32>
    %1349 = arith.addf %1317, %1348 : vector<2x2xf32>
    %c40_721 = arith.constant 40 : index
    %c0_722 = arith.constant 0 : index
    %1350 = vector.load %arg14[%c40_721, %c0_722] : memref<42x64xf32, #tpu.memory_space<vmem>>, vector<2x64xf32>
    %cst_723 = arith.constant dense<0.000000e+00> : vector<2x64xf32>
    %1351 = tpu.matmul %1345, %702, %cst_723 {dimension_numbers = #tpu.dot_dimension_numbers<[1], [0], [0], [1], [0, 0, 1, 1], [], []>} : vector<2x64xf32>, vector<64x64xf32>, vector<2x64xf32> -> vector<2x64xf32>
    %1352 = arith.addf %1350, %1351 : vector<2x64xf32>
    %1353 = arith.negf %1352 : vector<2x64xf32>
    %1354 = math.exp %1353 : vector<2x64xf32>
    %cst_724 = arith.constant 1.000000e+00 : f32
    %1355 = vector.broadcast %cst_724 : f32 to vector<2x64xf32>
    %1356 = arith.addf %1355, %1354 : vector<2x64xf32>
    %1357 = arith.divf %1355, %1356 : vector<2x64xf32>
    %c40_725 = arith.constant 40 : index
    %c0_726 = arith.constant 0 : index
    %1358 = vector.load %arg15[%c40_725, %c0_726] : memref<42x64xf32, #tpu.memory_space<vmem>>, vector<2x64xf32>
    %cst_727 = arith.constant dense<0.000000e+00> : vector<2x64xf32>
    %1359 = tpu.matmul %1345, %704, %cst_727 {dimension_numbers = #tpu.dot_dimension_numbers<[1], [0], [0], [1], [0, 0, 1, 1], [], []>} : vector<2x64xf32>, vector<64x64xf32>, vector<2x64xf32> -> vector<2x64xf32>
    %1360 = arith.addf %1358, %1359 : vector<2x64xf32>
    %1361 = arith.negf %1360 : vector<2x64xf32>
    %1362 = math.exp %1361 : vector<2x64xf32>
    %cst_728 = arith.constant 1.000000e+00 : f32
    %1363 = vector.broadcast %cst_728 : f32 to vector<2x64xf32>
    %1364 = arith.addf %1363, %1362 : vector<2x64xf32>
    %1365 = arith.divf %1363, %1364 : vector<2x64xf32>
    %c40_729 = arith.constant 40 : index
    %c0_730 = arith.constant 0 : index
    %1366 = vector.load %arg16[%c40_729, %c0_730] : memref<42x64xf32, #tpu.memory_space<vmem>>, vector<2x64xf32>
    %cst_731 = arith.constant dense<0.000000e+00> : vector<2x64xf32>
    %1367 = tpu.matmul %1345, %706, %cst_731 {dimension_numbers = #tpu.dot_dimension_numbers<[1], [0], [0], [1], [0, 0, 1, 1], [], []>} : vector<2x64xf32>, vector<64x64xf32>, vector<2x64xf32> -> vector<2x64xf32>
    %1368 = vector.broadcast %707 : vector<1x64xf32> to vector<2x64xf32>
    %1369 = arith.addf %1367, %1368 : vector<2x64xf32>
    %1370 = arith.mulf %1357, %1369 : vector<2x64xf32>
    %1371 = arith.addf %1366, %1370 : vector<2x64xf32>
    %1372 = math.tanh %1371 : vector<2x64xf32>
    %cst_732 = arith.constant 1.000000e+00 : f32
    %1373 = vector.broadcast %cst_732 : f32 to vector<2x64xf32>
    %1374 = arith.subf %1373, %1365 : vector<2x64xf32>
    %1375 = arith.mulf %1374, %1372 : vector<2x64xf32>
    %1376 = arith.mulf %1365, %1345 : vector<2x64xf32>
    %1377 = arith.addf %1375, %1376 : vector<2x64xf32>
    %c20_733 = arith.constant 20 : index
    %c0_734 = arith.constant 0 : index
    %c0_735 = arith.constant 0 : index
    %1378 = vector.load %arg10[%c20_733, %c0_734, %c0_735] : memref<21x64x2xf32, #tpu.memory_space<vmem>>, vector<1x64x2xf32>
    %1379 = vector.shape_cast %1378 : vector<1x64x2xf32> to vector<64x2xf32>
    %cst_736 = arith.constant dense<0.000000e+00> : vector<2x2xf32>
    %1380 = tpu.matmul %1377, %1379, %cst_736 {dimension_numbers = #tpu.dot_dimension_numbers<[1], [0], [0], [1], [0, 0, 1, 1], [], []>} : vector<2x64xf32>, vector<64x2xf32>, vector<2x2xf32> -> vector<2x2xf32>
    %1381 = arith.addf %1349, %1380 : vector<2x2xf32>
    %c0_737 = arith.constant 0 : index
    %c0_738 = arith.constant 0 : index
    %1382 = vector.load %arg11[%c0_737, %c0_738] : memref<1x2xf32, #tpu.memory_space<vmem>>, vector<1x2xf32>
    %1383 = vector.broadcast %1382 : vector<1x2xf32> to vector<2x2xf32>
    %1384 = arith.addf %1381, %1383 : vector<2x2xf32>
    %c0_739 = arith.constant 0 : index
    %c0_740 = arith.constant 0 : index
    %1385 = vector.load %arg12[%c0_739, %c0_740] : memref<2x2xf32, #tpu.memory_space<vmem>>, vector<2x2xf32>
    tpu.vector_store %arg12[%c0_739, %c0_740], %1384 {strides = array<i32>} : memref<2x2xf32, #tpu.memory_space<vmem>>, vector<2x2xf32>,
    %cst_741 = arith.constant dense<0xFF800000> : vector<2xf32>
    %1386 = vector.multi_reduction <maximumf>, %1384, %cst_741 [1] : vector<2x2xf32> to vector<2xf32>
    %1387 = vector.shape_cast %1386 : vector<2xf32> to vector<2x1xf32>
    %1388 = vector.broadcast %1387 : vector<2x1xf32> to vector<2x2xf32>
    %1389 = arith.subf %1384, %1388 : vector<2x2xf32>
    %1390 = math.exp %1389 : vector<2x2xf32>
    %cst_742 = arith.constant dense<0.000000e+00> : vector<2xf32>
    %1391 = vector.multi_reduction <add>, %1390, %cst_742 [1] : vector<2x2xf32> to vector<2xf32>
    %1392 = vector.shape_cast %1391 : vector<2xf32> to vector<2x1xf32>
    %1393 = vector.broadcast %1392 : vector<2x1xf32> to vector<2x2xf32>
    %1394 = arith.divf %1390, %1393 : vector<2x2xf32>
    %c0_743 = arith.constant 0 : index
    %c0_744 = arith.constant 0 : index
    %1395 = vector.load %arg13[%c0_743, %c0_744] : memref<2x2xf32, #tpu.memory_space<vmem>>, vector<2x2xf32>
    tpu.vector_store %arg13[%c0_743, %c0_744], %1394 {strides = array<i32>} : memref<2x2xf32, #tpu.memory_space<vmem>>, vector<2x2xf32>,
    return
  }
}

</mosaic_0001>

<bundles_post_ra>
// kernel: bigru_forward.1
= control target key start
LH: loop header
LB: loop body
LE: loop exit
PB: predicated region body
PF: predicated region fallthrough
CT: control target
= control target key end

     0   :  { %19 = vsyncpa [#allocation8], 0  ;;  %vm78_vm0 = vcmask 1043456   ;;  %vm59_vm1 = vcmask 31744   ;;  %v20216_v11 = vmov 0.0|0.0   ;;  %s23236_s0 = inlined_call_operand.vmem [shape: f32[42,4], index: 0, kind: input, shape index: {}]   ;;  %s23237_s1 = inlined_call_operand.vmem [shape: f32[3,4,64], index: 1, kind: input, shape index: {}]   ;;  %s23238_s2 = inlined_call_operand.vmem [shape: f32[3,64,64], index: 2, kind: input, shape index: {}]   ;;  %s23239_s3 = inlined_call_operand.vmem [shape: f32[3,1,64], index: 3, kind: input, shape index: {}]   ;;  %s23240_s4 = inlined_call_operand.vmem [shape: f32[1,64], index: 4, kind: input, shape index: {}]   ;;  %s23241_s5 = inlined_call_operand.vmem [shape: f32[3,64,64], index: 5, kind: input, shape index: {}]   ;;  %s23242_s6 = inlined_call_operand.vmem [shape: f32[3,64,64], index: 6, kind: input, shape index: {}]   ;;  %s23243_s7 = inlined_call_operand.vmem [shape: f32[3,64,64], index: 7, kind: input, shape index: {}]   ;;  %s23244_s8 = inlined_call_operand.vmem [shape: f32[3,1,64], index: 8, kind: input, shape index: {}]   ;;  %s23245_s9 = inlined_call_operand.vmem [shape: f32[1,64], index: 9, kind: input, shape index: {}]   ;;  %s23246_s10 = inlined_call_operand.vmem [shape: f32[21,64,2], index: 10, kind: input, shape index: {}]   ;;  %s23247_s11 = inlined_call_operand.vmem [shape: f32[1,2], index: 11, kind: input, shape index: {}]   ;;  %s23248_s12 = inlined_call_operand.hbm [shape: f32[2,2], index: 12, kind: output, shape index: {0}]   ;;  %s23249_s13 = inlined_call_operand.hbm [shape: f32[2,2], index: 13, kind: output, shape index: {1}]  }
   0x1   :  { %v51_v0 = vld [vmem:[%s23237_s1] sm:$0xf]  ;;  %v12939_v1 = vld [vmem:[%s23237_s1 + $0x4] sm:$0xf]  ;;  %v46_v3 = vld [vmem:[%s23236_s0 + $0x8] sm:$0xff] }
   0x2   :  { %v45_v2 = vld [vmem:[%s23236_s0] sm:$0xff]  ;;  %14880 = vmatprep.subr.msk.mxu0 %vm78_vm0, %v51_v0  ;;  %14891 = vmatprep.subr.msk.mxu1 %vm78_vm0, %v12939_v1  ;;  %v12949_v5 = vld [vmem:[%s23237_s1 + $0x8] sm:$0xf]  ;;  %v415_v8 = vld [vmem:[%s23238_s2 + $0x10] sm:$0xff] }
   0x3   :  { %v413_v4 = vld [vmem:[%s23238_s2] sm:$0xff]  ;;  %14881 = vmatpush3.msk.msra.mxu0 %vm78_vm0, %v51_v0  ;;  %14882 = vmatprep.mubr.msk.f32.mxu0 %vm59_vm1, %v45_v2  ;;  %v414_v6 = vld [vmem:[%s23238_s2 + $0x8] sm:$0xff]  ;;  %v416_v9 = vld [vmem:[%s23238_s2 + $0x18] sm:$0xff] }
   0x4   :  { %14892 = vmatpush3.msk.msra.mxu1 %vm78_vm0, %v12939_v1  ;;  %14893 = vmatprep.mubr.msk.f32.mxu1 %vm59_vm1, %v45_v2  ;;  %v20318_v7 = vpack.c.bf16 %v414_v6, %v413_v4  ;;  %v47_v10 = vld [vmem:[%s23236_s0 + $0x10] sm:$0xff]  ;;  %v48_v12 = vld [vmem:[%s23236_s0 + $0x18] sm:$0xff]  ;;  %v20338_v13 = vpack.c.bf16 %v416_v9, %v415_v8  ;;  %v49_v14 = vld [vmem:[%s23236_s0 + $0x20] sm:$0xff] }
   0x5   :  { %14883 = vmatmul.mubr.msk.f32.vlgmr.msra.gmra.mrb[0].mxu0 %vm59_vm1, %v46_v3  ;;  %14894 = vmatmul.mubr.msk.f32.vlgmr.msra.gmra.mrb[0].mxu1 %vm59_vm1, %v46_v3  ;;  %v417_v15 = vld [vmem:[%s23238_s2 + $0x20] sm:$0xff]  ;;  %v418_v16 = vld [vmem:[%s23238_s2 + $0x28] sm:$0xff]  ;;  %v419_v21 = vld [vmem:[%s23238_s2 + $0x30] sm:$0xff] }
   0x6   :  { %17856 = vmatprep.subr.bf16.mxu1 %v20216_v11  ;;  %14902 = vmatprep.subr.msk.mxu0 %vm78_vm0, %v12949_v5  ;;  %v50_v17 = vld [vmem:[%s23236_s0 + $0x28] sm:$0x3]  ;;  %v20359_v18 = vpack.c.bf16 %v418_v16, %v417_v15  ;;  %v12959_v19 = vld [vmem:[%s23238_s2 + $0x40] sm:$0xff]  ;;  %v420_v22 = vld [vmem:[%s23238_s2 + $0x38] sm:$0xff] }
   0x7   :  { %17858 = vmatpush3.bf16.msra.mxu1 %v20318_v7  ;;  %14903 = vmatpush3.msk.msra.mxu0 %vm78_vm0, %v12949_v5  ;;  %v12960_v20 = vld [vmem:[%s23238_s2 + $0x48] sm:$0xff] }
   0x8   :  { %14885 = vmatprep.mubr.msk.f32.mxu0 %vm59_vm1, %v47_v10  ;;  %17859 = vmatprep.subr.bf16.mxu1 %v20216_v11 }
   0x9   :  { %14886 = vmatmul.mubr.msk.f32.gmra.mrb[2].mxu0 %vm59_vm1, %v48_v12  ;;  %14896 = vmatprep.mubr.msk.f32.mxu1 %vm59_vm1, %v47_v10 }
   0xa   :  { %14888 = vmatprep.mubr.msk.f32.mxu0 %vm59_vm1, %v49_v14  ;;  %14897 = vmatmul.mubr.msk.f32.gmra.mrb[2].mxu1 %vm59_vm1, %v48_v12 }
   0xb   :  { %17861 = vmatpush3.bf16.msra.mxu1 %v20338_v13  ;;  %14899 = vmatprep.mubr.msk.f32.mxu1 %vm59_vm1, %v49_v14 }
   0xc   :  { %17862 = vmatprep.subr.bf16.mxu1 %v20216_v11  ;;  %17868 = vmatprep.subr.bf16.mxu0 %v20216_v11 }
   0xd   :  { %20 = vsyncpa [#allocation10], 0  ;;  %14889 = vmatmul.mubr.msk.f32.gmra.mrb[4].mxu0 %vm59_vm1, %v50_v17  ;;  %v20379_v23 = vpack.c.bf16 %v12960_v20, %v12959_v19  ;;  %v20382_v24 = vpack.c.bf16 %v420_v22, %v419_v21  ;;  %vm20217_vm2 = vmmov 0   ;;  %v20218_v25 = vmov 0.0   ;;  %v12961_v26 = vld [vmem:[%s23238_s2 + $0x50] sm:$0xff]  ;;  %v12962_v27 = vld [vmem:[%s23238_s2 + $0x58] sm:$0xff] }
   0xe   :  { %14900 = vmatmul.mubr.msk.f32.gmra.mrb[4].mxu1 %vm59_vm1, %v50_v17  ;;  %14904 = vmatprep.mubr.msk.f32.mxu0 %vm59_vm1, %v45_v2  ;;  %v12967_v28 = vld [vmem:[%s23238_s2 + $0x80] sm:$0xff]  ;;  %v12968_v29 = vld [vmem:[%s23238_s2 + $0x88] sm:$0xff]  ;;  %v20401_v30 = vpack.c.bf16 %v12962_v27, %v12961_v26  ;;  %v12969_v34 = vld [vmem:[%s23238_s2 + $0x90] sm:$0xff]  ;;  %vm177_vm3 = vcmask 523264   ;;  %vm183_vm4 = vcmask 517120   ;;  %vm12889_vm5 = vcmask 9216  }
   0xf   :  { %17864 = vmatpush3.bf16.msra.mxu1 %v20359_v18  ;;  %14929 = vmatprep.mubr.msk.f32.mxu1 %vm20217_vm2, %v20218_v25  ;;  %v12963_v31 = vld [vmem:[%s23238_s2 + $0x60] sm:$0xff]  ;;  %v12964_v32 = vld [vmem:[%s23238_s2 + $0x68] sm:$0xff]  ;;  %v20413_v33 = vpack.c.bf16 %v12968_v29, %v12967_v28  ;;  %v12970_v35 = vld [vmem:[%s23238_s2 + $0x98] sm:$0xff] }
  0x10   :  { %17865 = vmatprep.subr.bf16.mxu1 %v20216_v11  ;;  %v20424_v36 = vpack.c.bf16 %v12964_v32, %v12963_v31  ;;  %v12965_v37 = vld [vmem:[%s23238_s2 + $0x70] sm:$0xff]  ;;  %v12966_v38 = vld [vmem:[%s23238_s2 + $0x78] sm:$0xff]  ;;  %v20435_v39 = vpack.c.bf16 %v12970_v35, %v12969_v34  ;;  %v12971_v40 = vld [vmem:[%s23238_s2 + $0xa0] sm:$0xff] }
  0x11   :  { %14905 = vmatmul.mubr.msk.f32.vlgmr.msra.gmra.mrb[6].mxu0 %vm59_vm1, %v46_v3  ;;  %v12972_v41 = vld [vmem:[%s23238_s2 + $0xa8] sm:$0xff]  ;;  %v20448_v42 = vpack.c.bf16 %v12966_v38, %v12965_v37  ;;  %v12973_v44 = vld [vmem:[%s23238_s2 + $0xb0] sm:$0xff]  ;;  %v12974_v45 = vld [vmem:[%s23238_s2 + $0xb8] sm:$0xff] }
  0x12   :  { %17870 = vmatpush3.bf16.msra.mxu0 %v20379_v23  ;;  %14907 = vmatprep.mubr.msk.f32.mxu0 %vm59_vm1, %v47_v10  ;;  %v20454_v43 = vpack.c.bf16 %v12972_v41, %v12971_v40  ;;  %v20466_v46 = vpack.c.bf16 %v12974_v45, %v12973_v44  ;;  %v12941_v47 = vld [vmem:[%s23239_s3 + $0x1] ss:$0 sm:$0xff]  ;;  %v12931_v48 = vld [vmem:[%s23239_s3] ss:$0 sm:$0xff]  ;;  %v12951_v9 = vld [vmem:[%s23239_s3 + $0x2] ss:$0 sm:$0xff] }
  0x13   :  { %17867 = vmatpush3.bf16.msra.mxu1 %v20382_v24  ;;  %17871 = vmatprep.subr.bf16.mxu0 %v20216_v11  ;;  %s20219_s3 = smov [#allocation7]  }
  0x14   :  { %17880 = vmatprep.subr.bf16.mxu1 %v20216_v11  ;;  %s12909_s23 = sshll.u32 %s20219_s3, 4  ;;  %s12910_s23 = int_to_ptr.vmem [resolvable:$true] %s12909_s23 }
  0x15   :  { %14908 = vmatmul.mubr.msk.f32.gmra.mrb[8].mxu0 %vm59_vm1, %v48_v12  ;;  %p20173_p1 = scmp.lt.s32.totalorder %s12910_s23, %s12910_s23 }
  0x16   :  { %14930 = vmatmul.mubr.f32.vlgmr.msra.gmra.mrb[6].mxu1 %v20218_v25  ;;  %17873 = vmatpush3.bf16.msra.mxu0 %v20401_v30 }
  0x17   :  { %17874 = vmatprep.subr.bf16.mxu0 %v20216_v11  ;;  %14910 = vmatprep.mubr.msk.f32.mxu0 %vm59_vm1, %v49_v14 }
  0x18   :  { %17882 = vmatpush3.bf16.msra.mxu1 %v20413_v33  ;;  %14967 = vmatprep.mubr.msk.f32.mxu1 %vm20217_vm2, %v20218_v25 }
  0x19   :  { %14911 = vmatmul.mubr.msk.f32.gmra.mrb[10].mxu0 %vm59_vm1, %v50_v17  ;;  %17883 = vmatprep.subr.bf16.mxu1 %v20216_v11 }
  0x1a   :  { %17876 = vmatpush3.bf16.msra.mxu0 %v20424_v36  ;;  %14948 = vmatprep.mubr.msk.f32.mxu0 %vm20217_vm2, %v20218_v25 }
  0x1b   :  { %17877 = vmatprep.subr.bf16.mxu0 %v20216_v11 }
  0x1c   :  { %17885 = vmatpush3.bf16.msra.mxu1 %v20435_v39 }
  0x1d   :  { %17886 = vmatprep.subr.bf16.mxu1 %v20216_v11 }
  0x1e   :  { %17879 = vmatpush3.bf16.msra.mxu0 %v20448_v42 }
  0x1f   :  { %17892 = vmatprep.subr.bf16.mxu0 %v20216_v11 }
  0x20   :  { %17888 = vmatpush3.bf16.msra.mxu1 %v20454_v43 }
  0x21   :  { %14949 = vmatmul.mubr.f32.vlgmr.msra.gmra.mrb[12].mxu0 %v20218_v25  ;;  %17889 = vmatprep.subr.bf16.mxu1 %v20216_v11 }
  0x22   :  { %17894 = vmatpush3.bf16.msra.mxu0 %v20318_v7  ;;  %14986 = vmatprep.mubr.msk.f32.mxu0 %vm20217_vm2, %v20218_v25 }
  0x23   :  { %17895 = vmatprep.subr.bf16.mxu0 %v20216_v11 }
  0x24   :  { %17891 = vmatpush3.bf16.msra.mxu1 %v20466_v46 }
  0x25   :  { %17904 = vmatprep.subr.bf16.mxu1 %v20216_v11 }
  0x26   :  { %17897 = vmatpush3.bf16.msra.mxu0 %v20338_v13 }
  0x27   :  { %14968 = vmatmul.mubr.f32.vlgmr.msra.gmra.mrb[8].mxu1 %v20218_v25  ;;  %17898 = vmatprep.subr.bf16.mxu0 %v20216_v11 }
  0x28   :  { %17906 = vmatpush3.bf16.msra.mxu1 %v20379_v23  ;;  %15005 = vmatprep.mubr.msk.f32.mxu1 %vm20217_vm2, %v20218_v25 }
  0x29   :  { %17907 = vmatprep.subr.bf16.mxu1 %v20216_v11 }
  0x2a   :  { %17900 = vmatpush3.bf16.msra.mxu0 %v20359_v18 }
  0x2b   :  { %17901 = vmatprep.subr.bf16.mxu0 %v20216_v11 }
  0x2c   :  { %17909 = vmatpush3.bf16.msra.mxu1 %v20401_v30 }
  0x2d   :  { %17910 = vmatprep.subr.bf16.mxu1 %v20216_v11 }
  0x2e   :  { %17903 = vmatpush3.bf16.msra.mxu0 %v20382_v24 }
  0x2f   :  { %17916 = vmatprep.subr.bf16.mxu0 %v20216_v11 }
  0x30   :  { %17912 = vmatpush3.bf16.msra.mxu1 %v20424_v36 }
  0x31   :  { %17913 = vmatprep.subr.bf16.mxu1 %v20216_v11 }
  0x34   :  { %17915 = vmatpush3.bf16.msra.mxu1 %v20448_v42 }
  0x35   :  { %17928 = vmatprep.subr.bf16.mxu1 %v20216_v11 }
  0xd8   :  { %v14895_v49 = vpop.f32.mrb[0].mxu1  ;;  %v14884_v50 = vpop.f32.mrb[0].mxu0 }
  0xd9   :  { %v270_v51 = vadd.f32 %v14895_v49, %v12941_v47  ;;  %v154_v52 = vadd.f32 %v14884_v50, %v12931_v48  ;;  %v264_v53 = vpop.f32.mrb[1].mxu1  ;;  %v148_v54 = vpop.f32.mrb[1].mxu0  ;;  %v20523_v50 = vld [vmem:[%s23240_s4] ss:$0 sm:$0xff] }
  0xda   :  { %v265_v55 = vadd.f32 %v12941_v47, %v264_v53  ;;  %v149_v56 = vadd.f32 %v12931_v48, %v148_v54 }
  0xdb   :  { %294 = vst.msk [vmem:[#allocation3 + $0x8] sm:$0xff] %vm177_vm3, %v270_v51  ;;  %179 = vst.msk [vmem:[#allocation2 + $0x8] sm:$0xff] %vm177_vm3, %v154_v52 }
  0xdc   :  { %293 = vst.msk [vmem:[#allocation3] sm:$0xff] %vm177_vm3, %v265_v55  ;;  %178 = vst.msk [vmem:[#allocation2] sm:$0xff] %vm177_vm3, %v149_v56  ;;  %v14887_v57 = vpop.f32.mrb[2].mxu0 }
  0xdd   :  { %v164_v58 = vadd.f32 %v14887_v57, %v12931_v48  ;;  %v158_v59 = vpop.f32.mrb[3].mxu0  ;;  %v14898_v60 = vpop.f32.mrb[2].mxu1 }
  0xde   :  { %v159_v61 = vadd.f32 %v12931_v48, %v158_v59  ;;  %v280_v62 = vadd.f32 %v14898_v60, %v12941_v47  ;;  %v274_v63 = vpop.f32.mrb[3].mxu1 }
  0xdf   :  { %181 = vst.msk [vmem:[#allocation2 + $0x18] sm:$0xff] %vm177_vm3, %v164_v58  ;;  %v275_v0 = vadd.f32 %v12941_v47, %v274_v63 }
  0xe0   :  { %180 = vst.msk [vmem:[#allocation2 + $0x10] sm:$0xff] %vm177_vm3, %v159_v61  ;;  %296 = vst.msk [vmem:[#allocation3 + $0x18] sm:$0xff] %vm177_vm3, %v280_v62  ;;  %v14890_v1 = vpop.f32.mrb[4].mxu0 }
  0xe1   :  { %295 = vst.msk [vmem:[#allocation3 + $0x10] sm:$0xff] %vm177_vm3, %v275_v0  ;;  %v174_v2 = vadd.f32 %v14890_v1, %v12931_v48  ;;  %v168_v3 = vpop.f32.mrb[5].mxu0  ;;  %v14901_v4 = vpop.f32.mrb[4].mxu1 }
  0xe2   :  { %v169_v5 = vadd.f32 %v12931_v48, %v168_v3  ;;  %v290_v6 = vadd.f32 %v14901_v4, %v12941_v47  ;;  %v284_v8 = vpop.f32.mrb[5].mxu1 }
  0xe3   :  { %184 = vst.msk [vmem:[#allocation2 + $0x28] sm:$0x3] %vm183_vm4, %v174_v2  ;;  %v285_v10 = vadd.f32 %v12941_v47, %v284_v8  ;;  %v440_v19 = vld [vmem:[#allocation2] sm:$0x3]  ;;  %v521_v37 = vld [vmem:[#allocation3] sm:$0x3] }
  0xe4   :  { %182 = vst.msk [vmem:[#allocation2 + $0x20] sm:$0xff] %vm177_vm3, %v169_v5  ;;  %v14906_v12 = vpop.f32.mrb[6].mxu0  ;;  %v685_v0 = vld [vmem:[#allocation2 + $0x2] sm:$0x3]  ;;  %v766_v8 = vld [vmem:[#allocation3 + $0x2] sm:$0x3] }
  0xe5   :  { %298 = vst.msk [vmem:[#allocation3 + $0x28] sm:$0x3] %vm183_vm4, %v290_v6  ;;  %v384_v14 = vadd.f32 %v14906_v12, %v12951_v9  ;;  %v378_v15 = vpop.f32.mrb[7].mxu0 }
  0xe6   :  { %297 = vst.msk [vmem:[#allocation3 + $0x20] sm:$0xff] %vm177_vm3, %v285_v10  ;;  %v379_v16 = vadd.f32 %v12951_v9, %v378_v15 }
  0xe7   :  { %408 = vst.msk [vmem:[#allocation4 + $0x8] sm:$0xff] %vm177_vm3, %v384_v14 }
  0xe8   :  { %407 = vst.msk [vmem:[#allocation4] sm:$0xff] %vm177_vm3, %v379_v16  ;;  %v14909_v17 = vpop.f32.mrb[8].mxu0 }
  0xe9   :  { %v510_v20 = vpop.f32.mrb[6].mxu1  ;;  %v394_v21 = vadd.f32 %v14909_v17, %v12951_v9  ;;  %v388_v22 = vpop.f32.mrb[9].mxu0 }
  0xea   :  { %v514_v26 = vadd.f32 %v510_v20, %v440_v19  ;;  %v14931_v27 = vpop.f32.mrb[7].mxu1  ;;  %v389_v28 = vadd.f32 %v12951_v9, %v388_v22 }
  0xeb   :  { %410 = vst.msk [vmem:[#allocation4 + $0x18] sm:$0xff] %vm177_vm3, %v394_v21 }
  0xec   :  { %v12975_v29 = vmul.f32 -1.442695, %v514_v26  ;;  %409 = vst.msk [vmem:[#allocation4 + $0x10] sm:$0xff] %vm177_vm3, %v389_v28  ;;  %v14912_v31 = vpop.f32.mrb[10].mxu0 }
  0xed   :  { %v404_v32 = vadd.f32 %v14912_v31, %v12951_v9  ;;  %v398_v34 = vpop.f32.mrb[11].mxu0 }
  0xee   :  { %19739 = vpow2.f32 %v12975_v29  ;;  %v399_v35 = vadd.f32 %v12951_v9, %v398_v34 }
  0xef   :  { %412 = vst.msk [vmem:[#allocation4 + $0x28] sm:$0x3] %vm183_vm4, %v404_v32  ;;  %v599_v56 = vld [vmem:[#allocation4] sm:$0x3]  ;;  %v844_v26 = vld [vmem:[#allocation4 + $0x2] sm:$0x3] }
  0xf0   :  { %411 = vst.msk [vmem:[#allocation4 + $0x20] sm:$0xff] %vm177_vm3, %v399_v35 }
  0xf4   :  { %v588_v38 = vpop.f32.mrb[12].mxu0 }
  0xf5   :  { %v592_v40 = vadd.f32 %v588_v38, %v521_v37  ;;  %v14950_v41 = vpop.f32.mrb[13].mxu0  ;;  %v924_v37 = vld [vmem:[#allocation2 + $0x4] sm:$0x3] }
  0xf7   :  { %v12976_v44 = vmul.f32 -1.442695, %v592_v40 }
  0xf8   :  { %v19740_v45 = vpop.eup %19739 }
  0xf9   :  { %v518_v47 = vadd.f32 1.0, %v19740_v45  ;;  %19741 = vpow2.f32 %v12976_v44 }
  0xfa   :  { %v672_v48 = vpop.f32.mrb[8].mxu1 }
  0xfb   :  { %19743 = vrcp.f32 %v518_v47  ;;  %v14969_v49 = vpop.f32.mrb[9].mxu1  ;;  %v673_v51 = vadd.f32 %v20523_v50, %v672_v48  ;;  %v1005_v48 = vld [vmem:[#allocation3 + $0x4] sm:$0x3] }
 0x103   :  { %v19742_v52 = vpop.eup %19741 }
 0x104   :  { %v596_v53 = vadd.f32 1.0, %v19742_v52 }
 0x105   :  { %v19744_v54 = vpop.eup %19743 }
 0x106   :  { %19745 = vrcp.f32 %v596_v53  ;;  %v676_v55 = vmul.f32 %v19744_v54, %v673_v51 }
 0x108   :  { %v677_v57 = vadd.f32 %v676_v55, %v599_v56 }
 0x10a   :  { %19747 = vtanh.f32 %v677_v57 }
 0x110   :  { %v19746_v58 = vpop.eup %19745 }
 0x111   :  { %v679_v59 = vsub.f32 1.0, %v19746_v58  ;;  %v681_v61 = vmul.f32 0.0, %v19746_v58 }
 0x114   :  { %v19748_v60 = vpop.eup %19747 }
 0x115   :  { %v680_v62 = vmul.f32 %v19748_v60, %v679_v59 }
 0x117   :  { %v682_v63 = vadd.f32 %v681_v61, %v680_v62  ;;  %v1083_v61 = vld [vmem:[#allocation4 + $0x4] sm:$0x3] }
 0x119   :  { %14987 = vmatmul.mubr.msk.f32.vlgmr.msra.gmra.mrb[14].mxu0 %vm177_vm3, %v682_v63  ;;  %683 = vst.msk [vmem:[#allocation5] sm:$0x3] %vm183_vm4, %v682_v63  ;;  %684 = vst.msk [vmem:[#allocation6 + $0x28] sm:$0x3] %vm183_vm4, %v682_v63  ;;  %15006 = vmatmul.mubr.msk.f32.vlgmr.msra.gmra.mrb[10].mxu1 %vm177_vm3, %v682_v63 }
 0x11a   :  { %17918 = vmatpush3.bf16.msra.mxu0 %v20413_v33  ;;  %15024 = vmatprep.mubr.msk.f32.mxu0 %vm20217_vm2, %v20218_v25 }
 0x11b   :  { %17919 = vmatprep.subr.bf16.mxu0 %v20216_v11  ;;  %17930 = vmatpush3.bf16.msra.mxu1 %v20318_v7 }
 0x11c   :  { %17931 = vmatprep.subr.bf16.mxu1 %v20216_v11  ;;  %15043 = vmatprep.mubr.msk.f32.mxu1 %vm20217_vm2, %v20218_v25 }
 0x11e   :  { %17921 = vmatpush3.bf16.msra.mxu0 %v20435_v39 }
 0x11f   :  { %17922 = vmatprep.subr.bf16.mxu0 %v20216_v11  ;;  %17933 = vmatpush3.bf16.msra.mxu1 %v20338_v13 }
 0x120   :  { %17934 = vmatprep.subr.bf16.mxu1 %v20216_v11 }
 0x122   :  { %17924 = vmatpush3.bf16.msra.mxu0 %v20454_v43 }
 0x123   :  { %17925 = vmatprep.subr.bf16.mxu0 %v20216_v11  ;;  %17936 = vmatpush3.bf16.msra.mxu1 %v20359_v18 }
 0x124   :  { %17937 = vmatprep.subr.bf16.mxu1 %v20216_v11 }
 0x126   :  { %17927 = vmatpush3.bf16.msra.mxu0 %v20466_v46 }
 0x127   :  { %17940 = vmatprep.subr.bf16.mxu0 %v20216_v11  ;;  %17939 = vmatpush3.bf16.msra.mxu1 %v20382_v24 }
 0x128   :  { %17952 = vmatprep.subr.bf16.mxu1 %v20216_v11 }
 0x129   :  { %15025 = vmatmul.mubr.msk.f32.vlgmr.msra.gmra.mrb[16].mxu0 %vm177_vm3, %v682_v63 }
 0x12a   :  { %17942 = vmatpush3.bf16.msra.mxu0 %v20379_v23  ;;  %15062 = vmatprep.mubr.msk.f32.mxu0 %vm20217_vm2, %v20218_v25 }
 0x12b   :  { %17943 = vmatprep.subr.bf16.mxu0 %v20216_v11 }
 0x12e   :  { %17945 = vmatpush3.bf16.msra.mxu0 %v20401_v30 }
 0x12f   :  { %17946 = vmatprep.subr.bf16.mxu0 %v20216_v11 }
 0x132   :  { %17948 = vmatpush3.bf16.msra.mxu0 %v20424_v36 }
 0x133   :  { %17949 = vmatprep.subr.bf16.mxu0 %v20216_v11 }
 0x136   :  { %17951 = vmatpush3.bf16.msra.mxu0 %v20448_v42 }
 0x137   :  { %17964 = vmatprep.subr.bf16.mxu0 %v20216_v11 }
 0x1ec   :  { %v755_v1 = vpop.f32.mrb[14].mxu0  ;;  %v833_v2 = vpop.f32.mrb[10].mxu1 }
 0x1ed   :  { %v759_v3 = vadd.f32 %v755_v1, %v685_v0  ;;  %v14988_v4 = vpop.f32.mrb[15].mxu0  ;;  %v15007_v5 = vpop.f32.mrb[11].mxu1  ;;  %v837_v9 = vadd.f32 %v833_v2, %v766_v8 }
 0x1ee   :  { %v1163_v5 = vld [vmem:[#allocation2 + $0x6] sm:$0x3] }
 0x1ef   :  { %v12979_v6 = vmul.f32 -1.442695, %v759_v3  ;;  %v12981_v10 = vmul.f32 -1.442695, %v837_v9 }
 0x1f1   :  { %19749 = vpow2.f32 %v12979_v6 }
 0x1f2   :  { %19751 = vpow2.f32 %v12981_v10 }
 0x1fb   :  { %v19750_v12 = vpop.eup %19749 }
 0x1fc   :  { %v763_v14 = vadd.f32 1.0, %v19750_v12  ;;  %v911_v15 = vpop.f32.mrb[16].mxu0  ;;  %v19752_v17 = vpop.eup %19751 }
 0x1fd   :  { %v15026_v16 = vpop.f32.mrb[17].mxu0  ;;  %v841_v19 = vadd.f32 1.0, %v19752_v17  ;;  %v912_v20 = vadd.f32 %v20523_v50, %v911_v15  ;;  %v1244_v15 = vld [vmem:[#allocation3 + $0x6] sm:$0x3] }
 0x1fe   :  { %19753 = vrcp.f32 %v763_v14 }
 0x1ff   :  { %19755 = vrcp.f32 %v841_v19 }
 0x208   :  { %v19754_v21 = vpop.eup %19753 }
 0x209   :  { %v915_v22 = vmul.f32 %v19754_v21, %v912_v20  ;;  %v19756_v28 = vpop.eup %19755 }
 0x20a   :  { %v918_v29 = vsub.f32 1.0, %v19756_v28  ;;  %v920_v32 = vmul.f32 %v19756_v28, %v682_v63 }
 0x20b   :  { %v916_v27 = vadd.f32 %v915_v22, %v844_v26 }
 0x20d   :  { %19757 = vtanh.f32 %v916_v27 }
 0x217   :  { %v19758_v31 = vpop.eup %19757 }
 0x218   :  { %v919_v34 = vmul.f32 %v19758_v31, %v918_v29 }
 0x21a   :  { %v921_v35 = vadd.f32 %v920_v32, %v919_v34  ;;  %v1322_v32 = vld [vmem:[#allocation4 + $0x6] sm:$0x3] }
 0x21c   :  { %15044 = vmatmul.mubr.msk.f32.vlgmr.msra.gmra.mrb[12].mxu1 %vm177_vm3, %v921_v35  ;;  %922 = vst.msk [vmem:[#allocation5 + $0x2] sm:$0x3] %vm183_vm4, %v921_v35  ;;  %923 = vst.msk [vmem:[#allocation6 + $0x26] sm:$0x3] %vm183_vm4, %v921_v35  ;;  %15063 = vmatmul.mubr.msk.f32.vlgmr.msra.gmra.mrb[18].mxu0 %vm177_vm3, %v921_v35 }
 0x21d   :  { %17954 = vmatpush3.bf16.msra.mxu1 %v20413_v33  ;;  %15081 = vmatprep.mubr.msk.f32.mxu1 %vm20217_vm2, %v20218_v25 }
 0x21e   :  { %17955 = vmatprep.subr.bf16.mxu1 %v20216_v11  ;;  %17966 = vmatpush3.bf16.msra.mxu0 %v20318_v7 }
 0x21f   :  { %17967 = vmatprep.subr.bf16.mxu0 %v20216_v11  ;;  %15100 = vmatprep.mubr.msk.f32.mxu0 %vm20217_vm2, %v20218_v25 }
 0x221   :  { %17957 = vmatpush3.bf16.msra.mxu1 %v20435_v39 }
 0x222   :  { %17958 = vmatprep.subr.bf16.mxu1 %v20216_v11  ;;  %17969 = vmatpush3.bf16.msra.mxu0 %v20338_v13 }
 0x223   :  { %17970 = vmatprep.subr.bf16.mxu0 %v20216_v11 }
 0x225   :  { %17960 = vmatpush3.bf16.msra.mxu1 %v20454_v43 }
 0x226   :  { %17961 = vmatprep.subr.bf16.mxu1 %v20216_v11  ;;  %17972 = vmatpush3.bf16.msra.mxu0 %v20359_v18 }
 0x227   :  { %17973 = vmatprep.subr.bf16.mxu0 %v20216_v11 }
 0x229   :  { %17963 = vmatpush3.bf16.msra.mxu1 %v20466_v46 }
 0x22a   :  { %17976 = vmatprep.subr.bf16.mxu1 %v20216_v11  ;;  %17975 = vmatpush3.bf16.msra.mxu0 %v20382_v24 }
 0x22b   :  { %17988 = vmatprep.subr.bf16.mxu0 %v20216_v11 }
 0x22c   :  { %15082 = vmatmul.mubr.msk.f32.vlgmr.msra.gmra.mrb[14].mxu1 %vm177_vm3, %v921_v35 }
 0x22d   :  { %17978 = vmatpush3.bf16.msra.mxu1 %v20379_v23  ;;  %15119 = vmatprep.mubr.msk.f32.mxu1 %vm20217_vm2, %v20218_v25 }
 0x22e   :  { %17979 = vmatprep.subr.bf16.mxu1 %v20216_v11 }
 0x231   :  { %17981 = vmatpush3.bf16.msra.mxu1 %v20401_v30 }
 0x232   :  { %17982 = vmatprep.subr.bf16.mxu1 %v20216_v11 }
 0x235   :  { %17984 = vmatpush3.bf16.msra.mxu1 %v20424_v36 }
 0x236   :  { %17985 = vmatprep.subr.bf16.mxu1 %v20216_v11 }
 0x239   :  { %17987 = vmatpush3.bf16.msra.mxu1 %v20448_v42 }
 0x23a   :  { %18000 = vmatprep.subr.bf16.mxu1 %v20216_v11 }
 0x2ef   :  { %v994_v38 = vpop.f32.mrb[12].mxu1  ;;  %v1072_v40 = vpop.f32.mrb[18].mxu0 }
 0x2f0   :  { %v998_v41 = vadd.f32 %v994_v38, %v924_v37  ;;  %v15045_v44 = vpop.f32.mrb[13].mxu1  ;;  %v15064_v45 = vpop.f32.mrb[19].mxu0  ;;  %v1076_v49 = vadd.f32 %v1072_v40, %v1005_v48 }
 0x2f1   :  { %v1402_v45 = vld [vmem:[#allocation2 + $0x8] sm:$0x3] }
 0x2f2   :  { %v12984_v47 = vmul.f32 -1.442695, %v998_v41  ;;  %v12986_v51 = vmul.f32 -1.442695, %v1076_v49 }
 0x2f4   :  { %19759 = vpow2.f32 %v12984_v47 }
 0x2f5   :  { %19761 = vpow2.f32 %v12986_v51 }
 0x2fe   :  { %v19760_v52 = vpop.eup %19759 }
 0x2ff   :  { %v1002_v53 = vadd.f32 1.0, %v19760_v52  ;;  %v1150_v54 = vpop.f32.mrb[14].mxu1  ;;  %v19762_v56 = vpop.eup %19761 }
 0x300   :  { %v15083_v55 = vpop.f32.mrb[15].mxu1  ;;  %v1080_v57 = vadd.f32 1.0, %v19762_v56  ;;  %v1151_v58 = vadd.f32 %v20523_v50, %v1150_v54  ;;  %v1483_v54 = vld [vmem:[#allocation3 + $0x8] sm:$0x3] }
 0x301   :  { %19763 = vrcp.f32 %v1002_v53 }
 0x302   :  { %19765 = vrcp.f32 %v1080_v57 }
 0x30b   :  { %v19764_v59 = vpop.eup %19763 }
 0x30c   :  { %v1154_v60 = vmul.f32 %v19764_v59, %v1151_v58  ;;  %v19766_v63 = vpop.eup %19765 }
 0x30d   :  { %v1157_v0 = vsub.f32 1.0, %v19766_v63  ;;  %v1159_v2 = vmul.f32 %v19766_v63, %v921_v35 }
 0x30e   :  { %v1155_v62 = vadd.f32 %v1154_v60, %v1083_v61 }
 0x310   :  { %19767 = vtanh.f32 %v1155_v62 }
 0x31a   :  { %v19768_v1 = vpop.eup %19767 }
 0x31b   :  { %v1158_v3 = vmul.f32 %v19768_v1, %v1157_v0 }
 0x31d   :  { %v1160_v4 = vadd.f32 %v1159_v2, %v1158_v3  ;;  %v1561_v2 = vld [vmem:[#allocation4 + $0x8] sm:$0x3] }
 0x31f   :  { %15101 = vmatmul.mubr.msk.f32.vlgmr.msra.gmra.mrb[20].mxu0 %vm177_vm3, %v1160_v4  ;;  %1161 = vst.msk [vmem:[#allocation5 + $0x4] sm:$0x3] %vm183_vm4, %v1160_v4  ;;  %1162 = vst.msk [vmem:[#allocation6 + $0x24] sm:$0x3] %vm183_vm4, %v1160_v4  ;;  %15120 = vmatmul.mubr.msk.f32.vlgmr.msra.gmra.mrb[16].mxu1 %vm177_vm3, %v1160_v4 }
 0x320   :  { %17990 = vmatpush3.bf16.msra.mxu0 %v20413_v33  ;;  %15138 = vmatprep.mubr.msk.f32.mxu0 %vm20217_vm2, %v20218_v25 }
 0x321   :  { %17991 = vmatprep.subr.bf16.mxu0 %v20216_v11  ;;  %18002 = vmatpush3.bf16.msra.mxu1 %v20318_v7 }
 0x322   :  { %18003 = vmatprep.subr.bf16.mxu1 %v20216_v11  ;;  %15157 = vmatprep.mubr.msk.f32.mxu1 %vm20217_vm2, %v20218_v25 }
 0x324   :  { %17993 = vmatpush3.bf16.msra.mxu0 %v20435_v39 }
 0x325   :  { %17994 = vmatprep.subr.bf16.mxu0 %v20216_v11  ;;  %18005 = vmatpush3.bf16.msra.mxu1 %v20338_v13 }
 0x326   :  { %18006 = vmatprep.subr.bf16.mxu1 %v20216_v11 }
 0x328   :  { %17996 = vmatpush3.bf16.msra.mxu0 %v20454_v43 }
 0x329   :  { %17997 = vmatprep.subr.bf16.mxu0 %v20216_v11  ;;  %18008 = vmatpush3.bf16.msra.mxu1 %v20359_v18 }
 0x32a   :  { %18009 = vmatprep.subr.bf16.mxu1 %v20216_v11 }
 0x32c   :  { %17999 = vmatpush3.bf16.msra.mxu0 %v20466_v46 }
 0x32d   :  { %18012 = vmatprep.subr.bf16.mxu0 %v20216_v11  ;;  %18011 = vmatpush3.bf16.msra.mxu1 %v20382_v24 }
 0x32e   :  { %18024 = vmatprep.subr.bf16.mxu1 %v20216_v11 }
 0x32f   :  { %15139 = vmatmul.mubr.msk.f32.vlgmr.msra.gmra.mrb[22].mxu0 %vm177_vm3, %v1160_v4 }
 0x330   :  { %18014 = vmatpush3.bf16.msra.mxu0 %v20379_v23  ;;  %15176 = vmatprep.mubr.msk.f32.mxu0 %vm20217_vm2, %v20218_v25 }
 0x331   :  { %18015 = vmatprep.subr.bf16.mxu0 %v20216_v11 }
 0x334   :  { %18017 = vmatpush3.bf16.msra.mxu0 %v20401_v30 }
 0x335   :  { %18018 = vmatprep.subr.bf16.mxu0 %v20216_v11 }
 0x338   :  { %18020 = vmatpush3.bf16.msra.mxu0 %v20424_v36 }
 0x339   :  { %18021 = vmatprep.subr.bf16.mxu0 %v20216_v11 }
 0x33c   :  { %18023 = vmatpush3.bf16.msra.mxu0 %v20448_v42 }
 0x33d   :  { %18036 = vmatprep.subr.bf16.mxu0 %v20216_v11 }
 0x3f2   :  { %v1233_v6 = vpop.f32.mrb[20].mxu0  ;;  %v1311_v8 = vpop.f32.mrb[16].mxu1 }
 0x3f3   :  { %v1237_v9 = vadd.f32 %v1233_v6, %v1163_v5  ;;  %v15102_v10 = vpop.f32.mrb[21].mxu0  ;;  %v15121_v12 = vpop.f32.mrb[17].mxu1  ;;  %v1315_v16 = vadd.f32 %v1311_v8, %v1244_v15 }
 0x3f4   :  { %v1641_v12 = vld [vmem:[#allocation2 + $0xa] sm:$0x3] }
 0x3f5   :  { %v12989_v14 = vmul.f32 -1.442695, %v1237_v9  ;;  %v12991_v17 = vmul.f32 -1.442695, %v1315_v16 }
 0x3f7   :  { %19769 = vpow2.f32 %v12989_v14 }
 0x3f8   :  { %19771 = vpow2.f32 %v12991_v17 }
 0x401   :  { %v19770_v19 = vpop.eup %19769 }
 0x402   :  { %v1241_v20 = vadd.f32 1.0, %v19770_v19  ;;  %v1389_v21 = vpop.f32.mrb[22].mxu0  ;;  %v19772_v26 = vpop.eup %19771 }
 0x403   :  { %v15140_v22 = vpop.f32.mrb[23].mxu0  ;;  %v1319_v27 = vadd.f32 1.0, %v19772_v26  ;;  %v1390_v28 = vadd.f32 %v20523_v50, %v1389_v21  ;;  %v1722_v21 = vld [vmem:[#allocation3 + $0xa] sm:$0x3] }
 0x404   :  { %19773 = vrcp.f32 %v1241_v20 }
 0x405   :  { %19775 = vrcp.f32 %v1319_v27 }
 0x40e   :  { %v19774_v29 = vpop.eup %19773 }
 0x40f   :  { %v1393_v31 = vmul.f32 %v19774_v29, %v1390_v28  ;;  %v19776_v35 = vpop.eup %19775 }
 0x410   :  { %v1396_v37 = vsub.f32 1.0, %v19776_v35  ;;  %v1398_v40 = vmul.f32 %v19776_v35, %v1160_v4 }
 0x411   :  { %v1394_v34 = vadd.f32 %v1393_v31, %v1322_v32 }
 0x413   :  { %19777 = vtanh.f32 %v1394_v34 }
 0x41d   :  { %v19778_v38 = vpop.eup %19777 }
 0x41e   :  { %v1397_v41 = vmul.f32 %v19778_v38, %v1396_v37 }
 0x420   :  { %v1399_v44 = vadd.f32 %v1398_v40, %v1397_v41  ;;  %v1800_v40 = vld [vmem:[#allocation4 + $0xa] sm:$0x3] }
 0x422   :  { %15158 = vmatmul.mubr.msk.f32.vlgmr.msra.gmra.mrb[18].mxu1 %vm177_vm3, %v1399_v44  ;;  %1400 = vst.msk [vmem:[#allocation5 + $0x6] sm:$0x3] %vm183_vm4, %v1399_v44  ;;  %1401 = vst.msk [vmem:[#allocation6 + $0x22] sm:$0x3] %vm183_vm4, %v1399_v44  ;;  %15177 = vmatmul.mubr.msk.f32.vlgmr.msra.gmra.mrb[24].mxu0 %vm177_vm3, %v1399_v44 }
 0x423   :  { %18026 = vmatpush3.bf16.msra.mxu1 %v20413_v33  ;;  %15195 = vmatprep.mubr.msk.f32.mxu1 %vm20217_vm2, %v20218_v25 }
 0x424   :  { %18027 = vmatprep.subr.bf16.mxu1 %v20216_v11  ;;  %18038 = vmatpush3.bf16.msra.mxu0 %v20318_v7 }
 0x425   :  { %18039 = vmatprep.subr.bf16.mxu0 %v20216_v11  ;;  %15214 = vmatprep.mubr.msk.f32.mxu0 %vm20217_vm2, %v20218_v25 }
 0x427   :  { %18029 = vmatpush3.bf16.msra.mxu1 %v20435_v39 }
 0x428   :  { %18030 = vmatprep.subr.bf16.mxu1 %v20216_v11  ;;  %18041 = vmatpush3.bf16.msra.mxu0 %v20338_v13 }
 0x429   :  { %18042 = vmatprep.subr.bf16.mxu0 %v20216_v11 }
 0x42b   :  { %18032 = vmatpush3.bf16.msra.mxu1 %v20454_v43 }
 0x42c   :  { %18033 = vmatprep.subr.bf16.mxu1 %v20216_v11  ;;  %18044 = vmatpush3.bf16.msra.mxu0 %v20359_v18 }
 0x42d   :  { %18045 = vmatprep.subr.bf16.mxu0 %v20216_v11 }
 0x42f   :  { %18035 = vmatpush3.bf16.msra.mxu1 %v20466_v46 }
 0x430   :  { %18048 = vmatprep.subr.bf16.mxu1 %v20216_v11  ;;  %18047 = vmatpush3.bf16.msra.mxu0 %v20382_v24 }
 0x431   :  { %18060 = vmatprep.subr.bf16.mxu0 %v20216_v11 }
 0x432   :  { %15196 = vmatmul.mubr.msk.f32.vlgmr.msra.gmra.mrb[20].mxu1 %vm177_vm3, %v1399_v44 }
 0x433   :  { %18050 = vmatpush3.bf16.msra.mxu1 %v20379_v23  ;;  %15233 = vmatprep.mubr.msk.f32.mxu1 %vm20217_vm2, %v20218_v25 }
 0x434   :  { %18051 = vmatprep.subr.bf16.mxu1 %v20216_v11 }
 0x437   :  { %18053 = vmatpush3.bf16.msra.mxu1 %v20401_v30 }
 0x438   :  { %18054 = vmatprep.subr.bf16.mxu1 %v20216_v11 }
 0x43b   :  { %18056 = vmatpush3.bf16.msra.mxu1 %v20424_v36 }
 0x43c   :  { %18057 = vmatprep.subr.bf16.mxu1 %v20216_v11 }
 0x43f   :  { %18059 = vmatpush3.bf16.msra.mxu1 %v20448_v42 }
 0x440   :  { %18072 = vmatprep.subr.bf16.mxu1 %v20216_v11 }
 0x4f5   :  { %v1472_v47 = vpop.f32.mrb[18].mxu1  ;;  %v1550_v48 = vpop.f32.mrb[24].mxu0 }
 0x4f6   :  { %v1476_v49 = vadd.f32 %v1472_v47, %v1402_v45  ;;  %v15159_v51 = vpop.f32.mrb[19].mxu1  ;;  %v15178_v52 = vpop.f32.mrb[25].mxu0  ;;  %v1554_v55 = vadd.f32 %v1550_v48, %v1483_v54 }
 0x4f7   :  { %v1880_v52 = vld [vmem:[#allocation2 + $0xc] sm:$0x3] }
 0x4f8   :  { %v12994_v53 = vmul.f32 -1.442695, %v1476_v49  ;;  %v12996_v56 = vmul.f32 -1.442695, %v1554_v55 }
 0x4fa   :  { %19779 = vpow2.f32 %v12994_v53 }
 0x4fb   :  { %19781 = vpow2.f32 %v12996_v56 }
 0x504   :  { %v19780_v57 = vpop.eup %19779 }
 0x505   :  { %v1480_v58 = vadd.f32 1.0, %v19780_v57  ;;  %v1628_v59 = vpop.f32.mrb[20].mxu1  ;;  %v19782_v61 = vpop.eup %19781 }
 0x506   :  { %v15197_v60 = vpop.f32.mrb[21].mxu1  ;;  %v1558_v62 = vadd.f32 1.0, %v19782_v61  ;;  %v1629_v63 = vadd.f32 %v20523_v50, %v1628_v59  ;;  %v1961_v59 = vld [vmem:[#allocation3 + $0xc] sm:$0x3] }
 0x507   :  { %19783 = vrcp.f32 %v1480_v58 }
 0x508   :  { %19785 = vrcp.f32 %v1558_v62 }
 0x511   :  { %v19784_v0 = vpop.eup %19783 }
 0x512   :  { %v1632_v1 = vmul.f32 %v19784_v0, %v1629_v63  ;;  %v19786_v4 = vpop.eup %19785 }
 0x513   :  { %v1635_v5 = vsub.f32 1.0, %v19786_v4  ;;  %v1637_v8 = vmul.f32 %v19786_v4, %v1399_v44 }
 0x514   :  { %v1633_v3 = vadd.f32 %v1632_v1, %v1561_v2 }
 0x516   :  { %19787 = vtanh.f32 %v1633_v3 }
 0x520   :  { %v19788_v6 = vpop.eup %19787 }
 0x521   :  { %v1636_v9 = vmul.f32 %v19788_v6, %v1635_v5 }
 0x523   :  { %v1638_v10 = vadd.f32 %v1637_v8, %v1636_v9  ;;  %v2039_v8 = vld [vmem:[#allocation4 + $0xc] sm:$0x3] }
 0x525   :  { %1639 = vst.msk [vmem:[#allocation5 + $0x8] sm:$0x3] %vm183_vm4, %v1638_v10  ;;  %15215 = vmatmul.mubr.msk.f32.vlgmr.msra.gmra.mrb[26].mxu0 %vm177_vm3, %v1638_v10  ;;  %1640 = vst.msk [vmem:[#allocation6 + $0x20] sm:$0x3] %vm183_vm4, %v1638_v10  ;;  %15234 = vmatmul.mubr.msk.f32.vlgmr.msra.gmra.mrb[22].mxu1 %vm177_vm3, %v1638_v10 }
 0x526   :  { %18062 = vmatpush3.bf16.msra.mxu0 %v20413_v33  ;;  %15252 = vmatprep.mubr.msk.f32.mxu0 %vm20217_vm2, %v20218_v25 }
 0x527   :  { %18063 = vmatprep.subr.bf16.mxu0 %v20216_v11  ;;  %18074 = vmatpush3.bf16.msra.mxu1 %v20318_v7 }
 0x528   :  { %18075 = vmatprep.subr.bf16.mxu1 %v20216_v11  ;;  %15271 = vmatprep.mubr.msk.f32.mxu1 %vm20217_vm2, %v20218_v25 }
 0x52a   :  { %18065 = vmatpush3.bf16.msra.mxu0 %v20435_v39 }
 0x52b   :  { %18066 = vmatprep.subr.bf16.mxu0 %v20216_v11  ;;  %18077 = vmatpush3.bf16.msra.mxu1 %v20338_v13 }
 0x52c   :  { %18078 = vmatprep.subr.bf16.mxu1 %v20216_v11 }
 0x52e   :  { %18068 = vmatpush3.bf16.msra.mxu0 %v20454_v43 }
 0x52f   :  { %18069 = vmatprep.subr.bf16.mxu0 %v20216_v11  ;;  %18080 = vmatpush3.bf16.msra.mxu1 %v20359_v18 }
 0x530   :  { %18081 = vmatprep.subr.bf16.mxu1 %v20216_v11 }
 0x532   :  { %18071 = vmatpush3.bf16.msra.mxu0 %v20466_v46 }
 0x533   :  { %18084 = vmatprep.subr.bf16.mxu0 %v20216_v11  ;;  %18083 = vmatpush3.bf16.msra.mxu1 %v20382_v24 }
 0x534   :  { %18096 = vmatprep.subr.bf16.mxu1 %v20216_v11 }
 0x535   :  { %15253 = vmatmul.mubr.msk.f32.vlgmr.msra.gmra.mrb[28].mxu0 %vm177_vm3, %v1638_v10 }
 0x536   :  { %18086 = vmatpush3.bf16.msra.mxu0 %v20379_v23  ;;  %15290 = vmatprep.mubr.msk.f32.mxu0 %vm20217_vm2, %v20218_v25 }
 0x537   :  { %18087 = vmatprep.subr.bf16.mxu0 %v20216_v11 }
 0x53a   :  { %18089 = vmatpush3.bf16.msra.mxu0 %v20401_v30 }
 0x53b   :  { %18090 = vmatprep.subr.bf16.mxu0 %v20216_v11 }
 0x53e   :  { %18092 = vmatpush3.bf16.msra.mxu0 %v20424_v36 }
 0x53f   :  { %18093 = vmatprep.subr.bf16.mxu0 %v20216_v11 }
 0x542   :  { %18095 = vmatpush3.bf16.msra.mxu0 %v20448_v42 }
 0x543   :  { %18108 = vmatprep.subr.bf16.mxu0 %v20216_v11 }
 0x5f8   :  { %v1711_v14 = vpop.f32.mrb[26].mxu0  ;;  %v1789_v15 = vpop.f32.mrb[22].mxu1 }
 0x5f9   :  { %v1715_v16 = vadd.f32 %v1711_v14, %v1641_v12  ;;  %v15216_v17 = vpop.f32.mrb[27].mxu0  ;;  %v15235_v19 = vpop.f32.mrb[23].mxu1  ;;  %v1793_v22 = vadd.f32 %v1789_v15, %v1722_v21 }
 0x5fa   :  { %v2119_v19 = vld [vmem:[#allocation2 + $0xe] sm:$0x3] }
 0x5fb   :  { %v12999_v20 = vmul.f32 -1.442695, %v1715_v16  ;;  %v13001_v26 = vmul.f32 -1.442695, %v1793_v22 }
 0x5fd   :  { %19789 = vpow2.f32 %v12999_v20 }
 0x5fe   :  { %19791 = vpow2.f32 %v13001_v26 }
 0x607   :  { %v19790_v27 = vpop.eup %19789 }
 0x608   :  { %v1719_v28 = vadd.f32 1.0, %v19790_v27  ;;  %v1867_v29 = vpop.f32.mrb[28].mxu0  ;;  %v19792_v32 = vpop.eup %19791 }
 0x609   :  { %v15254_v31 = vpop.f32.mrb[29].mxu0  ;;  %v1797_v34 = vadd.f32 1.0, %v19792_v32  ;;  %v1868_v35 = vadd.f32 %v20523_v50, %v1867_v29  ;;  %v2200_v29 = vld [vmem:[#allocation3 + $0xe] sm:$0x3] }
 0x60a   :  { %19793 = vrcp.f32 %v1719_v28 }
 0x60b   :  { %19795 = vrcp.f32 %v1797_v34 }
 0x614   :  { %v19794_v37 = vpop.eup %19793 }
 0x615   :  { %v1871_v38 = vmul.f32 %v19794_v37, %v1868_v35  ;;  %v19796_v44 = vpop.eup %19795 }
 0x616   :  { %v1874_v45 = vsub.f32 1.0, %v19796_v44  ;;  %v1876_v48 = vmul.f32 %v19796_v44, %v1638_v10 }
 0x617   :  { %v1872_v41 = vadd.f32 %v1871_v38, %v1800_v40 }
 0x619   :  { %19797 = vtanh.f32 %v1872_v41 }
 0x623   :  { %v19798_v47 = vpop.eup %19797 }
 0x624   :  { %v1875_v49 = vmul.f32 %v19798_v47, %v1874_v45 }
 0x626   :  { %v1877_v51 = vadd.f32 %v1876_v48, %v1875_v49  ;;  %v2278_v48 = vld [vmem:[#allocation4 + $0xe] sm:$0x3] }
 0x628   :  { %1878 = vst.msk [vmem:[#allocation5 + $0xa] sm:$0x3] %vm183_vm4, %v1877_v51  ;;  %15272 = vmatmul.mubr.msk.f32.vlgmr.msra.gmra.mrb[24].mxu1 %vm177_vm3, %v1877_v51  ;;  %1879 = vst.msk [vmem:[#allocation6 + $0x1e] sm:$0x3] %vm183_vm4, %v1877_v51  ;;  %15291 = vmatmul.mubr.msk.f32.vlgmr.msra.gmra.mrb[30].mxu0 %vm177_vm3, %v1877_v51 }
 0x629   :  { %18098 = vmatpush3.bf16.msra.mxu1 %v20413_v33  ;;  %15309 = vmatprep.mubr.msk.f32.mxu1 %vm20217_vm2, %v20218_v25 }
 0x62a   :  { %18099 = vmatprep.subr.bf16.mxu1 %v20216_v11  ;;  %18110 = vmatpush3.bf16.msra.mxu0 %v20318_v7 }
 0x62b   :  { %18111 = vmatprep.subr.bf16.mxu0 %v20216_v11  ;;  %15328 = vmatprep.mubr.msk.f32.mxu0 %vm20217_vm2, %v20218_v25 }
 0x62d   :  { %18101 = vmatpush3.bf16.msra.mxu1 %v20435_v39 }
 0x62e   :  { %18102 = vmatprep.subr.bf16.mxu1 %v20216_v11  ;;  %18113 = vmatpush3.bf16.msra.mxu0 %v20338_v13 }
 0x62f   :  { %18114 = vmatprep.subr.bf16.mxu0 %v20216_v11 }
 0x631   :  { %18104 = vmatpush3.bf16.msra.mxu1 %v20454_v43 }
 0x632   :  { %18105 = vmatprep.subr.bf16.mxu1 %v20216_v11  ;;  %18116 = vmatpush3.bf16.msra.mxu0 %v20359_v18 }
 0x633   :  { %18117 = vmatprep.subr.bf16.mxu0 %v20216_v11 }
 0x635   :  { %18107 = vmatpush3.bf16.msra.mxu1 %v20466_v46 }
 0x636   :  { %18120 = vmatprep.subr.bf16.mxu1 %v20216_v11  ;;  %18119 = vmatpush3.bf16.msra.mxu0 %v20382_v24 }
 0x637   :  { %18132 = vmatprep.subr.bf16.mxu0 %v20216_v11 }
 0x638   :  { %15310 = vmatmul.mubr.msk.f32.vlgmr.msra.gmra.mrb[26].mxu1 %vm177_vm3, %v1877_v51 }
 0x639   :  { %18122 = vmatpush3.bf16.msra.mxu1 %v20379_v23  ;;  %15347 = vmatprep.mubr.msk.f32.mxu1 %vm20217_vm2, %v20218_v25 }
 0x63a   :  { %18123 = vmatprep.subr.bf16.mxu1 %v20216_v11 }
 0x63d   :  { %18125 = vmatpush3.bf16.msra.mxu1 %v20401_v30 }
 0x63e   :  { %18126 = vmatprep.subr.bf16.mxu1 %v20216_v11 }
 0x641   :  { %18128 = vmatpush3.bf16.msra.mxu1 %v20424_v36 }
 0x642   :  { %18129 = vmatprep.subr.bf16.mxu1 %v20216_v11 }
 0x645   :  { %18131 = vmatpush3.bf16.msra.mxu1 %v20448_v42 }
 0x646   :  { %18144 = vmatprep.subr.bf16.mxu1 %v20216_v11 }
 0x6fb   :  { %v1950_v53 = vpop.f32.mrb[24].mxu1  ;;  %v2028_v54 = vpop.f32.mrb[30].mxu0 }
 0x6fc   :  { %v1954_v55 = vadd.f32 %v1950_v53, %v1880_v52  ;;  %v15273_v56 = vpop.f32.mrb[25].mxu1  ;;  %v15292_v57 = vpop.f32.mrb[31].mxu0  ;;  %v2032_v60 = vadd.f32 %v2028_v54, %v1961_v59 }
 0x6fe   :  { %v13004_v58 = vmul.f32 -1.442695, %v1954_v55  ;;  %v13006_v61 = vmul.f32 -1.442695, %v2032_v60 }
 0x700   :  { %19799 = vpow2.f32 %v13004_v58 }
 0x701   :  { %19801 = vpow2.f32 %v13006_v61 }
 0x70a   :  { %v19800_v62 = vpop.eup %19799 }
 0x70b   :  { %v1958_v63 = vadd.f32 1.0, %v19800_v62  ;;  %v2106_v0 = vpop.f32.mrb[26].mxu1  ;;  %v19802_v2 = vpop.eup %19801 }
 0x70c   :  { %v15311_v1 = vpop.f32.mrb[27].mxu1  ;;  %v2036_v3 = vadd.f32 1.0, %v19802_v2  ;;  %v2107_v4 = vadd.f32 %v20523_v50, %v2106_v0 }
 0x70d   :  { %19803 = vrcp.f32 %v1958_v63  ;;  %v2439_v63 = vld [vmem:[#allocation3 + $0x10] sm:$0x3] }
 0x70e   :  { %19805 = vrcp.f32 %v2036_v3 }
 0x717   :  { %v19804_v5 = vpop.eup %19803 }
 0x718   :  { %v2110_v6 = vmul.f32 %v19804_v5, %v2107_v4  ;;  %v19806_v10 = vpop.eup %19805 }
 0x719   :  { %v2113_v12 = vsub.f32 1.0, %v19806_v10  ;;  %v2115_v15 = vmul.f32 %v19806_v10, %v1877_v51 }
 0x71a   :  { %v2111_v9 = vadd.f32 %v2110_v6, %v2039_v8 }
 0x71c   :  { %19807 = vtanh.f32 %v2111_v9  ;;  %v20823_v9 = vld [vmem:[%s23240_s4] ss:$0 sm:$0xff] }
 0x726   :  { %v19808_v14 = vpop.eup %19807 }
 0x727   :  { %v2114_v16 = vmul.f32 %v19808_v14, %v2113_v12 }
 0x729   :  { %v2116_v17 = vadd.f32 %v2115_v15, %v2114_v16  ;;  %v2517_v15 = vld [vmem:[#allocation4 + $0x10] sm:$0x3] }
 0x72b   :  { %2117 = vst.msk [vmem:[#allocation5 + $0xc] sm:$0x3] %vm183_vm4, %v2116_v17  ;;  %15329 = vmatmul.mubr.msk.f32.vlgmr.msra.gmra.mrb[32].mxu0 %vm177_vm3, %v2116_v17  ;;  %2118 = vst.msk [vmem:[#allocation6 + $0x1c] sm:$0x3] %vm183_vm4, %v2116_v17  ;;  %15348 = vmatmul.mubr.msk.f32.vlgmr.msra.gmra.mrb[28].mxu1 %vm177_vm3, %v2116_v17 }
 0x72c   :  { %18134 = vmatpush3.bf16.msra.mxu0 %v20413_v33  ;;  %15366 = vmatprep.mubr.msk.f32.mxu0 %vm20217_vm2, %v20218_v25 }
 0x72d   :  { %18135 = vmatprep.subr.bf16.mxu0 %v20216_v11  ;;  %18146 = vmatpush3.bf16.msra.mxu1 %v20318_v7 }
 0x72e   :  { %18147 = vmatprep.subr.bf16.mxu1 %v20216_v11  ;;  %15385 = vmatprep.mubr.msk.f32.mxu1 %vm20217_vm2, %v20218_v25 }
 0x730   :  { %18137 = vmatpush3.bf16.msra.mxu0 %v20435_v39 }
 0x731   :  { %18138 = vmatprep.subr.bf16.mxu0 %v20216_v11  ;;  %18149 = vmatpush3.bf16.msra.mxu1 %v20338_v13 }
 0x732   :  { %18150 = vmatprep.subr.bf16.mxu1 %v20216_v11 }
 0x734   :  { %18140 = vmatpush3.bf16.msra.mxu0 %v20454_v43 }
 0x735   :  { %18141 = vmatprep.subr.bf16.mxu0 %v20216_v11  ;;  %18152 = vmatpush3.bf16.msra.mxu1 %v20359_v18 }
 0x736   :  { %18153 = vmatprep.subr.bf16.mxu1 %v20216_v11 }
 0x738   :  { %18143 = vmatpush3.bf16.msra.mxu0 %v20466_v46 }
 0x739   :  { %18156 = vmatprep.subr.bf16.mxu0 %v20216_v11  ;;  %18155 = vmatpush3.bf16.msra.mxu1 %v20382_v24 }
 0x73a   :  { %18168 = vmatprep.subr.bf16.mxu1 %v20216_v11 }
 0x73b   :  { %15367 = vmatmul.mubr.msk.f32.vlgmr.msra.gmra.mrb[34].mxu0 %vm177_vm3, %v2116_v17 }
 0x73c   :  { %18158 = vmatpush3.bf16.msra.mxu0 %v20379_v23  ;;  %15404 = vmatprep.mubr.msk.f32.mxu0 %vm20217_vm2, %v20218_v25 }
 0x73d   :  { %18159 = vmatprep.subr.bf16.mxu0 %v20216_v11 }
 0x740   :  { %18161 = vmatpush3.bf16.msra.mxu0 %v20401_v30 }
 0x741   :  { %18162 = vmatprep.subr.bf16.mxu0 %v20216_v11 }
 0x744   :  { %18164 = vmatpush3.bf16.msra.mxu0 %v20424_v36 }
 0x745   :  { %18165 = vmatprep.subr.bf16.mxu0 %v20216_v11 }
 0x748   :  { %18167 = vmatpush3.bf16.msra.mxu0 %v20448_v42 }
 0x749   :  { %18180 = vmatprep.subr.bf16.mxu0 %v20216_v11 }
 0x7fe   :  { %v2189_v20 = vpop.f32.mrb[32].mxu0  ;;  %v2267_v21 = vpop.f32.mrb[28].mxu1 }
 0x7ff   :  { %v2193_v22 = vadd.f32 %v2189_v20, %v2119_v19  ;;  %v15330_v26 = vpop.f32.mrb[33].mxu0  ;;  %v15349_v27 = vpop.f32.mrb[29].mxu1  ;;  %v2271_v31 = vadd.f32 %v2267_v21, %v2200_v29 }
 0x800   :  { %v2597_v27 = vld [vmem:[#allocation2 + $0x12] sm:$0x3] }
 0x801   :  { %v13009_v28 = vmul.f32 -1.442695, %v2193_v22  ;;  %v13011_v32 = vmul.f32 -1.442695, %v2271_v31 }
 0x803   :  { %19809 = vpow2.f32 %v13009_v28 }
 0x804   :  { %19811 = vpow2.f32 %v13011_v32 }
 0x80d   :  { %v19810_v34 = vpop.eup %19809 }
 0x80e   :  { %v2197_v35 = vadd.f32 1.0, %v19810_v34  ;;  %v2345_v37 = vpop.f32.mrb[34].mxu0  ;;  %v19812_v40 = vpop.eup %19811 }
 0x80f   :  { %v15368_v38 = vpop.f32.mrb[35].mxu0  ;;  %v2275_v41 = vadd.f32 1.0, %v19812_v40  ;;  %v2346_v44 = vadd.f32 %v20523_v50, %v2345_v37  ;;  %v2358_v50 = vld [vmem:[#allocation2 + $0x10] sm:$0x3]  ;;  %v2678_v37 = vld [vmem:[#allocation3 + $0x12] sm:$0x3] }
 0x810   :  { %19813 = vrcp.f32 %v2197_v35 }
 0x811   :  { %19815 = vrcp.f32 %v2275_v41 }
 0x81a   :  { %v19814_v45 = vpop.eup %19813 }
 0x81b   :  { %v2349_v47 = vmul.f32 %v19814_v45, %v2346_v44  ;;  %v19816_v51 = vpop.eup %19815 }
 0x81c   :  { %v2352_v52 = vsub.f32 1.0, %v19816_v51  ;;  %v2354_v54 = vmul.f32 %v19816_v51, %v2116_v17 }
 0x81d   :  { %v2350_v49 = vadd.f32 %v2349_v47, %v2278_v48 }
 0x81f   :  { %19817 = vtanh.f32 %v2350_v49 }
 0x829   :  { %v19818_v53 = vpop.eup %19817 }
 0x82a   :  { %v2353_v55 = vmul.f32 %v19818_v53, %v2352_v52 }
 0x82c   :  { %v20778_v56 = vadd.f32 %v2354_v54, %v2353_v55  ;;  %v2756_v54 = vld [vmem:[#allocation4 + $0x12] sm:$0x3] }
 0x82e   :  { %2356 = vst.msk [vmem:[#allocation5 + $0xe] sm:$0x3] %vm183_vm4, %v20778_v56  ;;  %15386 = vmatmul.mubr.msk.f32.vlgmr.msra.gmra.mrb[30].mxu1 %vm177_vm3, %v20778_v56  ;;  %2357 = vst.msk [vmem:[#allocation6 + $0x1a] sm:$0x3] %vm183_vm4, %v20778_v56  ;;  %15405 = vmatmul.mubr.msk.f32.vlgmr.msra.gmra.mrb[36].mxu0 %vm177_vm3, %v20778_v56 }
 0x82f   :  { %18170 = vmatpush3.bf16.msra.mxu1 %v20413_v33  ;;  %15423 = vmatprep.mubr.msk.f32.mxu1 %vm20217_vm2, %v20218_v25 }
 0x830   :  { %18171 = vmatprep.subr.bf16.mxu1 %v20216_v11  ;;  %18182 = vmatpush3.bf16.msra.mxu0 %v20318_v7 }
 0x831   :  { %18183 = vmatprep.subr.bf16.mxu0 %v20216_v11  ;;  %15442 = vmatprep.mubr.msk.f32.mxu0 %vm20217_vm2, %v20218_v25 }
 0x833   :  { %18173 = vmatpush3.bf16.msra.mxu1 %v20435_v39 }
 0x834   :  { %18174 = vmatprep.subr.bf16.mxu1 %v20216_v11  ;;  %18185 = vmatpush3.bf16.msra.mxu0 %v20338_v13 }
 0x835   :  { %18186 = vmatprep.subr.bf16.mxu0 %v20216_v11 }
 0x837   :  { %18176 = vmatpush3.bf16.msra.mxu1 %v20454_v43 }
 0x838   :  { %18177 = vmatprep.subr.bf16.mxu1 %v20216_v11  ;;  %18188 = vmatpush3.bf16.msra.mxu0 %v20359_v18 }
 0x839   :  { %18189 = vmatprep.subr.bf16.mxu0 %v20216_v11 }
 0x83b   :  { %18179 = vmatpush3.bf16.msra.mxu1 %v20466_v46 }
 0x83c   :  { %18192 = vmatprep.subr.bf16.mxu1 %v20216_v11  ;;  %18191 = vmatpush3.bf16.msra.mxu0 %v20382_v24 }
 0x83d   :  { %18204 = vmatprep.subr.bf16.mxu0 %v20216_v11 }
 0x83e   :  { %15424 = vmatmul.mubr.msk.f32.vlgmr.msra.gmra.mrb[32].mxu1 %vm177_vm3, %v20778_v56 }
 0x83f   :  { %18194 = vmatpush3.bf16.msra.mxu1 %v20379_v23  ;;  %15461 = vmatprep.mubr.msk.f32.mxu1 %vm20217_vm2, %v20218_v25 }
 0x840   :  { %18195 = vmatprep.subr.bf16.mxu1 %v20216_v11 }
 0x843   :  { %18197 = vmatpush3.bf16.msra.mxu1 %v20401_v30 }
 0x844   :  { %18198 = vmatprep.subr.bf16.mxu1 %v20216_v11 }
 0x847   :  { %18200 = vmatpush3.bf16.msra.mxu1 %v20424_v36 }
 0x848   :  { %18201 = vmatprep.subr.bf16.mxu1 %v20216_v11 }
 0x84b   :  { %18203 = vmatpush3.bf16.msra.mxu1 %v20448_v42 }
 0x84c   :  { %18216 = vmatprep.subr.bf16.mxu1 %v20216_v11 }
 0x901   :  { %v2428_v57 = vpop.f32.mrb[30].mxu1  ;;  %v2506_v58 = vpop.f32.mrb[36].mxu0 }
 0x902   :  { %v2432_v59 = vadd.f32 %v2428_v57, %v2358_v50  ;;  %v15387_v60 = vpop.f32.mrb[31].mxu1  ;;  %v15406_v61 = vpop.f32.mrb[37].mxu0  ;;  %v2510_v0 = vadd.f32 %v2506_v58, %v2439_v63 }
 0x903   :  { %v2836_v61 = vld [vmem:[#allocation2 + $0x14] sm:$0x3] }
 0x904   :  { %v13014_v62 = vmul.f32 -1.442695, %v2432_v59  ;;  %v13016_v1 = vmul.f32 -1.442695, %v2510_v0 }
 0x906   :  { %19819 = vpow2.f32 %v13014_v62 }
 0x907   :  { %19821 = vpow2.f32 %v13016_v1 }
 0x910   :  { %v19820_v2 = vpop.eup %19819 }
 0x911   :  { %v2436_v3 = vadd.f32 1.0, %v19820_v2  ;;  %v2584_v4 = vpop.f32.mrb[32].mxu1  ;;  %v19822_v6 = vpop.eup %19821 }
 0x912   :  { %v15425_v5 = vpop.f32.mrb[33].mxu1  ;;  %v2514_v8 = vadd.f32 1.0, %v19822_v6  ;;  %v2585_v10 = vadd.f32 %v20823_v9, %v2584_v4  ;;  %v2917_v4 = vld [vmem:[#allocation3 + $0x14] sm:$0x3] }
 0x913   :  { %19823 = vrcp.f32 %v2436_v3 }
 0x914   :  { %19825 = vrcp.f32 %v2514_v8 }
 0x91d   :  { %v19824_v12 = vpop.eup %19823 }
 0x91e   :  { %v2588_v14 = vmul.f32 %v19824_v12, %v2585_v10  ;;  %v19826_v17 = vpop.eup %19825 }
 0x91f   :  { %v2591_v19 = vsub.f32 1.0, %v19826_v17  ;;  %v2593_v21 = vmul.f32 %v19826_v17, %v20778_v56 }
 0x920   :  { %v2589_v16 = vadd.f32 %v2588_v14, %v2517_v15 }
 0x922   :  { %19827 = vtanh.f32 %v2589_v16 }
 0x92c   :  { %v19828_v20 = vpop.eup %19827 }
 0x92d   :  { %v2592_v22 = vmul.f32 %v19828_v20, %v2591_v19 }
 0x92f   :  { %v2594_v26 = vadd.f32 %v2593_v21, %v2592_v22  ;;  %v2995_v21 = vld [vmem:[#allocation4 + $0x14] sm:$0x3] }
 0x931   :  { %15443 = vmatmul.mubr.msk.f32.vlgmr.msra.gmra.mrb[38].mxu0 %vm177_vm3, %v2594_v26  ;;  %2595 = vst.msk [vmem:[#allocation5 + $0x10] sm:$0x3] %vm183_vm4, %v2594_v26  ;;  %2596 = vst.msk [vmem:[#allocation6 + $0x18] sm:$0x3] %vm183_vm4, %v2594_v26  ;;  %15462 = vmatmul.mubr.msk.f32.vlgmr.msra.gmra.mrb[34].mxu1 %vm177_vm3, %v2594_v26 }
 0x932   :  { %18206 = vmatpush3.bf16.msra.mxu0 %v20413_v33  ;;  %15480 = vmatprep.mubr.msk.f32.mxu0 %vm20217_vm2, %v20218_v25 }
 0x933   :  { %18207 = vmatprep.subr.bf16.mxu0 %v20216_v11  ;;  %18218 = vmatpush3.bf16.msra.mxu1 %v20318_v7 }
 0x934   :  { %18219 = vmatprep.subr.bf16.mxu1 %v20216_v11  ;;  %15499 = vmatprep.mubr.msk.f32.mxu1 %vm20217_vm2, %v20218_v25 }
 0x936   :  { %18209 = vmatpush3.bf16.msra.mxu0 %v20435_v39 }
 0x937   :  { %18210 = vmatprep.subr.bf16.mxu0 %v20216_v11  ;;  %18221 = vmatpush3.bf16.msra.mxu1 %v20338_v13 }
 0x938   :  { %18222 = vmatprep.subr.bf16.mxu1 %v20216_v11 }
 0x93a   :  { %18212 = vmatpush3.bf16.msra.mxu0 %v20454_v43 }
 0x93b   :  { %18213 = vmatprep.subr.bf16.mxu0 %v20216_v11  ;;  %18224 = vmatpush3.bf16.msra.mxu1 %v20359_v18 }
 0x93c   :  { %18225 = vmatprep.subr.bf16.mxu1 %v20216_v11 }
 0x93e   :  { %18215 = vmatpush3.bf16.msra.mxu0 %v20466_v46 }
 0x93f   :  { %18228 = vmatprep.subr.bf16.mxu0 %v20216_v11  ;;  %18227 = vmatpush3.bf16.msra.mxu1 %v20382_v24 }
 0x940   :  { %18240 = vmatprep.subr.bf16.mxu1 %v20216_v11 }
 0x941   :  { %15481 = vmatmul.mubr.msk.f32.vlgmr.msra.gmra.mrb[40].mxu0 %vm177_vm3, %v2594_v26 }
 0x942   :  { %18230 = vmatpush3.bf16.msra.mxu0 %v20379_v23  ;;  %15518 = vmatprep.mubr.msk.f32.mxu0 %vm20217_vm2, %v20218_v25 }
 0x943   :  { %18231 = vmatprep.subr.bf16.mxu0 %v20216_v11 }
 0x946   :  { %18233 = vmatpush3.bf16.msra.mxu0 %v20401_v30 }
 0x947   :  { %18234 = vmatprep.subr.bf16.mxu0 %v20216_v11 }
 0x94a   :  { %18236 = vmatpush3.bf16.msra.mxu0 %v20424_v36 }
 0x94b   :  { %18237 = vmatprep.subr.bf16.mxu0 %v20216_v11 }
 0x94e   :  { %18239 = vmatpush3.bf16.msra.mxu0 %v20448_v42 }
 0x94f   :  { %18252 = vmatprep.subr.bf16.mxu0 %v20216_v11 }
 0xa04   :  { %v2667_v28 = vpop.f32.mrb[38].mxu0  ;;  %v2745_v29 = vpop.f32.mrb[34].mxu1 }
 0xa05   :  { %v2671_v31 = vadd.f32 %v2667_v28, %v2597_v27  ;;  %v15444_v32 = vpop.f32.mrb[39].mxu0  ;;  %v15463_v34 = vpop.f32.mrb[35].mxu1  ;;  %v2749_v38 = vadd.f32 %v2745_v29, %v2678_v37 }
 0xa06   :  { %v3075_v34 = vld [vmem:[#allocation2 + $0x16] sm:$0x3] }
 0xa07   :  { %v13019_v35 = vmul.f32 -1.442695, %v2671_v31  ;;  %v13021_v40 = vmul.f32 -1.442695, %v2749_v38 }
 0xa09   :  { %19829 = vpow2.f32 %v13019_v35 }
 0xa0a   :  { %19831 = vpow2.f32 %v13021_v40 }
 0xa13   :  { %v19830_v41 = vpop.eup %19829 }
 0xa14   :  { %v2675_v44 = vadd.f32 1.0, %v19830_v41  ;;  %v2823_v45 = vpop.f32.mrb[40].mxu0  ;;  %v19832_v48 = vpop.eup %19831 }
 0xa15   :  { %v15482_v47 = vpop.f32.mrb[41].mxu0  ;;  %v2753_v49 = vadd.f32 1.0, %v19832_v48  ;;  %v2824_v51 = vadd.f32 %v20823_v9, %v2823_v45  ;;  %v3156_v45 = vld [vmem:[#allocation3 + $0x16] sm:$0x3] }
 0xa16   :  { %19833 = vrcp.f32 %v2675_v44 }
 0xa17   :  { %19835 = vrcp.f32 %v2753_v49 }
 0xa20   :  { %v19834_v52 = vpop.eup %19833 }
 0xa21   :  { %v2827_v53 = vmul.f32 %v19834_v52, %v2824_v51  ;;  %v19836_v56 = vpop.eup %19835 }
 0xa22   :  { %v2830_v50 = vsub.f32 1.0, %v19836_v56  ;;  %v2832_v58 = vmul.f32 %v19836_v56, %v2594_v26 }
 0xa23   :  { %v2828_v55 = vadd.f32 %v2827_v53, %v2756_v54 }
 0xa25   :  { %19837 = vtanh.f32 %v2828_v55 }
 0xa2f   :  { %v19838_v57 = vpop.eup %19837 }
 0xa30   :  { %v2831_v59 = vmul.f32 %v19838_v57, %v2830_v50 }
 0xa32   :  { %v2833_v60 = vadd.f32 %v2832_v58, %v2831_v59  ;;  %v3234_v58 = vld [vmem:[#allocation4 + $0x16] sm:$0x3] }
 0xa34   :  { %15500 = vmatmul.mubr.msk.f32.vlgmr.msra.gmra.mrb[36].mxu1 %vm177_vm3, %v2833_v60  ;;  %2834 = vst.msk [vmem:[#allocation5 + $0x12] sm:$0x3] %vm183_vm4, %v2833_v60  ;;  %2835 = vst.msk [vmem:[#allocation6 + $0x16] sm:$0x3] %vm183_vm4, %v2833_v60  ;;  %15519 = vmatmul.mubr.msk.f32.vlgmr.msra.gmra.mrb[42].mxu0 %vm177_vm3, %v2833_v60 }
 0xa35   :  { %18242 = vmatpush3.bf16.msra.mxu1 %v20413_v33  ;;  %15537 = vmatprep.mubr.msk.f32.mxu1 %vm20217_vm2, %v20218_v25 }
 0xa36   :  { %18243 = vmatprep.subr.bf16.mxu1 %v20216_v11  ;;  %18254 = vmatpush3.bf16.msra.mxu0 %v20318_v7 }
 0xa37   :  { %18255 = vmatprep.subr.bf16.mxu0 %v20216_v11  ;;  %15556 = vmatprep.mubr.msk.f32.mxu0 %vm20217_vm2, %v20218_v25 }
 0xa39   :  { %18245 = vmatpush3.bf16.msra.mxu1 %v20435_v39 }
 0xa3a   :  { %18246 = vmatprep.subr.bf16.mxu1 %v20216_v11  ;;  %18257 = vmatpush3.bf16.msra.mxu0 %v20338_v13 }
 0xa3b   :  { %18258 = vmatprep.subr.bf16.mxu0 %v20216_v11 }
 0xa3d   :  { %18248 = vmatpush3.bf16.msra.mxu1 %v20454_v43 }
 0xa3e   :  { %18249 = vmatprep.subr.bf16.mxu1 %v20216_v11  ;;  %18260 = vmatpush3.bf16.msra.mxu0 %v20359_v18 }
 0xa3f   :  { %18261 = vmatprep.subr.bf16.mxu0 %v20216_v11 }
 0xa41   :  { %18251 = vmatpush3.bf16.msra.mxu1 %v20466_v46 }
 0xa42   :  { %18264 = vmatprep.subr.bf16.mxu1 %v20216_v11  ;;  %18263 = vmatpush3.bf16.msra.mxu0 %v20382_v24 }
 0xa43   :  { %18276 = vmatprep.subr.bf16.mxu0 %v20216_v11 }
 0xa44   :  { %15538 = vmatmul.mubr.msk.f32.vlgmr.msra.gmra.mrb[38].mxu1 %vm177_vm3, %v2833_v60 }
 0xa45   :  { %18266 = vmatpush3.bf16.msra.mxu1 %v20379_v23  ;;  %15575 = vmatprep.mubr.msk.f32.mxu1 %vm20217_vm2, %v20218_v25 }
 0xa46   :  { %18267 = vmatprep.subr.bf16.mxu1 %v20216_v11 }
 0xa49   :  { %18269 = vmatpush3.bf16.msra.mxu1 %v20401_v30 }
 0xa4a   :  { %18270 = vmatprep.subr.bf16.mxu1 %v20216_v11 }
 0xa4d   :  { %18272 = vmatpush3.bf16.msra.mxu1 %v20424_v36 }
 0xa4e   :  { %18273 = vmatprep.subr.bf16.mxu1 %v20216_v11 }
 0xa51   :  { %18275 = vmatpush3.bf16.msra.mxu1 %v20448_v42 }
 0xa52   :  { %18288 = vmatprep.subr.bf16.mxu1 %v20216_v11 }
 0xb07   :  { %v2906_v62 = vpop.f32.mrb[36].mxu1  ;;  %v2984_v63 = vpop.f32.mrb[42].mxu0 }
 0xb08   :  { %v2910_v0 = vadd.f32 %v2906_v62, %v2836_v61  ;;  %v15501_v1 = vpop.f32.mrb[37].mxu1  ;;  %v15520_v2 = vpop.f32.mrb[43].mxu0  ;;  %v2988_v5 = vadd.f32 %v2984_v63, %v2917_v4 }
 0xb09   :  { %v3314_v2 = vld [vmem:[#allocation2 + $0x18] sm:$0x3] }
 0xb0a   :  { %v13024_v3 = vmul.f32 -1.442695, %v2910_v0  ;;  %v13026_v6 = vmul.f32 -1.442695, %v2988_v5 }
 0xb0c   :  { %19839 = vpow2.f32 %v13024_v3 }
 0xb0d   :  { %19841 = vpow2.f32 %v13026_v6 }
 0xb16   :  { %v19840_v8 = vpop.eup %19839 }
 0xb17   :  { %v2914_v10 = vadd.f32 1.0, %v19840_v8  ;;  %v3062_v12 = vpop.f32.mrb[38].mxu1  ;;  %v19842_v15 = vpop.eup %19841 }
 0xb18   :  { %v15539_v14 = vpop.f32.mrb[39].mxu1  ;;  %v2992_v16 = vadd.f32 1.0, %v19842_v15  ;;  %v3063_v17 = vadd.f32 %v20823_v9, %v3062_v12  ;;  %v3395_v12 = vld [vmem:[#allocation3 + $0x18] sm:$0x3] }
 0xb19   :  { %19843 = vrcp.f32 %v2914_v10 }
 0xb1a   :  { %19845 = vrcp.f32 %v2992_v16 }
 0xb23   :  { %v19844_v19 = vpop.eup %19843 }
 0xb24   :  { %v3066_v20 = vmul.f32 %v19844_v19, %v3063_v17  ;;  %v19846_v26 = vpop.eup %19845 }
 0xb25   :  { %v3069_v27 = vsub.f32 1.0, %v19846_v26  ;;  %v3071_v29 = vmul.f32 %v19846_v26, %v2833_v60 }
 0xb26   :  { %v3067_v22 = vadd.f32 %v3066_v20, %v2995_v21 }
 0xb28   :  { %19847 = vtanh.f32 %v3067_v22 }
 0xb32   :  { %v19848_v28 = vpop.eup %19847 }
 0xb33   :  { %v3070_v31 = vmul.f32 %v19848_v28, %v3069_v27 }
 0xb35   :  { %v3072_v32 = vadd.f32 %v3071_v29, %v3070_v31  ;;  %v3473_v29 = vld [vmem:[#allocation4 + $0x18] sm:$0x3] }
 0xb37   :  { %15557 = vmatmul.mubr.msk.f32.vlgmr.msra.gmra.mrb[44].mxu0 %vm177_vm3, %v3072_v32  ;;  %3073 = vst.msk [vmem:[#allocation5 + $0x14] sm:$0x3] %vm183_vm4, %v3072_v32  ;;  %3074 = vst.msk [vmem:[#allocation6 + $0x14] sm:$0x3] %vm183_vm4, %v3072_v32  ;;  %15576 = vmatmul.mubr.msk.f32.vlgmr.msra.gmra.mrb[40].mxu1 %vm177_vm3, %v3072_v32 }
 0xb38   :  { %18278 = vmatpush3.bf16.msra.mxu0 %v20413_v33  ;;  %15594 = vmatprep.mubr.msk.f32.mxu0 %vm20217_vm2, %v20218_v25 }
 0xb39   :  { %18279 = vmatprep.subr.bf16.mxu0 %v20216_v11  ;;  %18290 = vmatpush3.bf16.msra.mxu1 %v20318_v7 }
 0xb3a   :  { %18291 = vmatprep.subr.bf16.mxu1 %v20216_v11  ;;  %15613 = vmatprep.mubr.msk.f32.mxu1 %vm20217_vm2, %v20218_v25 }
 0xb3c   :  { %18281 = vmatpush3.bf16.msra.mxu0 %v20435_v39 }
 0xb3d   :  { %18282 = vmatprep.subr.bf16.mxu0 %v20216_v11  ;;  %18293 = vmatpush3.bf16.msra.mxu1 %v20338_v13 }
 0xb3e   :  { %18294 = vmatprep.subr.bf16.mxu1 %v20216_v11 }
 0xb40   :  { %18284 = vmatpush3.bf16.msra.mxu0 %v20454_v43 }
 0xb41   :  { %18285 = vmatprep.subr.bf16.mxu0 %v20216_v11  ;;  %18296 = vmatpush3.bf16.msra.mxu1 %v20359_v18 }
 0xb42   :  { %18297 = vmatprep.subr.bf16.mxu1 %v20216_v11 }
 0xb44   :  { %18287 = vmatpush3.bf16.msra.mxu0 %v20466_v46 }
 0xb45   :  { %18300 = vmatprep.subr.bf16.mxu0 %v20216_v11  ;;  %18299 = vmatpush3.bf16.msra.mxu1 %v20382_v24 }
 0xb46   :  { %18312 = vmatprep.subr.bf16.mxu1 %v20216_v11 }
 0xb47   :  { %15595 = vmatmul.mubr.msk.f32.vlgmr.msra.gmra.mrb[46].mxu0 %vm177_vm3, %v3072_v32 }
 0xb48   :  { %18302 = vmatpush3.bf16.msra.mxu0 %v20379_v23  ;;  %15632 = vmatprep.mubr.msk.f32.mxu0 %vm20217_vm2, %v20218_v25 }
 0xb49   :  { %18303 = vmatprep.subr.bf16.mxu0 %v20216_v11 }
 0xb4c   :  { %18305 = vmatpush3.bf16.msra.mxu0 %v20401_v30 }
 0xb4d   :  { %18306 = vmatprep.subr.bf16.mxu0 %v20216_v11 }
 0xb50   :  { %18308 = vmatpush3.bf16.msra.mxu0 %v20424_v36 }
 0xb51   :  { %18309 = vmatprep.subr.bf16.mxu0 %v20216_v11 }
 0xb54   :  { %18311 = vmatpush3.bf16.msra.mxu0 %v20448_v42 }
 0xb55   :  { %18324 = vmatprep.subr.bf16.mxu0 %v20216_v11 }
 0xc0a   :  { %v3145_v35 = vpop.f32.mrb[44].mxu0  ;;  %v3223_v37 = vpop.f32.mrb[40].mxu1 }
 0xc0b   :  { %v3149_v38 = vadd.f32 %v3145_v35, %v3075_v34  ;;  %v15558_v40 = vpop.f32.mrb[45].mxu0  ;;  %v15577_v41 = vpop.f32.mrb[41].mxu1  ;;  %v3227_v47 = vadd.f32 %v3223_v37, %v3156_v45 }
 0xc0c   :  { %v3553_v41 = vld [vmem:[#allocation2 + $0x1a] sm:$0x3] }
 0xc0d   :  { %v13029_v44 = vmul.f32 -1.442695, %v3149_v38  ;;  %v13031_v48 = vmul.f32 -1.442695, %v3227_v47 }
 0xc0f   :  { %19849 = vpow2.f32 %v13029_v44 }
 0xc10   :  { %19851 = vpow2.f32 %v13031_v48 }
 0xc19   :  { %v19850_v49 = vpop.eup %19849 }
 0xc1a   :  { %v3153_v51 = vadd.f32 1.0, %v19850_v49  ;;  %v3301_v52 = vpop.f32.mrb[46].mxu0  ;;  %v19852_v54 = vpop.eup %19851 }
 0xc1b   :  { %v15596_v53 = vpop.f32.mrb[47].mxu0  ;;  %v3231_v55 = vadd.f32 1.0, %v19852_v54  ;;  %v3302_v56 = vadd.f32 %v20823_v9, %v3301_v52  ;;  %v3634_v52 = vld [vmem:[#allocation3 + $0x1a] sm:$0x3] }
 0xc1c   :  { %19853 = vrcp.f32 %v3153_v51 }
 0xc1d   :  { %19855 = vrcp.f32 %v3231_v55 }
 0xc26   :  { %v19854_v50 = vpop.eup %19853 }
 0xc27   :  { %v3305_v57 = vmul.f32 %v19854_v50, %v3302_v56  ;;  %v19856_v60 = vpop.eup %19855 }
 0xc28   :  { %v3308_v61 = vsub.f32 1.0, %v19856_v60  ;;  %v3310_v63 = vmul.f32 %v19856_v60, %v3072_v32 }
 0xc29   :  { %v3306_v59 = vadd.f32 %v3305_v57, %v3234_v58 }
 0xc2b   :  { %19857 = vtanh.f32 %v3306_v59 }
 0xc35   :  { %v19858_v62 = vpop.eup %19857 }
 0xc36   :  { %v3309_v0 = vmul.f32 %v19858_v62, %v3308_v61 }
 0xc38   :  { %v3311_v1 = vadd.f32 %v3310_v63, %v3309_v0  ;;  %v3712_v63 = vld [vmem:[#allocation4 + $0x1a] sm:$0x3] }
 0xc3a   :  { %15614 = vmatmul.mubr.msk.f32.vlgmr.msra.gmra.mrb[42].mxu1 %vm177_vm3, %v3311_v1  ;;  %3312 = vst.msk [vmem:[#allocation5 + $0x16] sm:$0x3] %vm183_vm4, %v3311_v1  ;;  %3313 = vst.msk [vmem:[#allocation6 + $0x12] sm:$0x3] %vm183_vm4, %v3311_v1  ;;  %15633 = vmatmul.mubr.msk.f32.vlgmr.msra.gmra.mrb[48].mxu0 %vm177_vm3, %v3311_v1 }
 0xc3b   :  { %18314 = vmatpush3.bf16.msra.mxu1 %v20413_v33  ;;  %15651 = vmatprep.mubr.msk.f32.mxu1 %vm20217_vm2, %v20218_v25 }
 0xc3c   :  { %18315 = vmatprep.subr.bf16.mxu1 %v20216_v11  ;;  %18326 = vmatpush3.bf16.msra.mxu0 %v20318_v7 }
 0xc3d   :  { %18327 = vmatprep.subr.bf16.mxu0 %v20216_v11  ;;  %15670 = vmatprep.mubr.msk.f32.mxu0 %vm20217_vm2, %v20218_v25 }
 0xc3f   :  { %18317 = vmatpush3.bf16.msra.mxu1 %v20435_v39 }
 0xc40   :  { %18318 = vmatprep.subr.bf16.mxu1 %v20216_v11  ;;  %18329 = vmatpush3.bf16.msra.mxu0 %v20338_v13 }
 0xc41   :  { %18330 = vmatprep.subr.bf16.mxu0 %v20216_v11 }
 0xc43   :  { %18320 = vmatpush3.bf16.msra.mxu1 %v20454_v43 }
 0xc44   :  { %18321 = vmatprep.subr.bf16.mxu1 %v20216_v11  ;;  %18332 = vmatpush3.bf16.msra.mxu0 %v20359_v18 }
 0xc45   :  { %18333 = vmatprep.subr.bf16.mxu0 %v20216_v11 }
 0xc47   :  { %18323 = vmatpush3.bf16.msra.mxu1 %v20466_v46 }
 0xc48   :  { %18336 = vmatprep.subr.bf16.mxu1 %v20216_v11  ;;  %18335 = vmatpush3.bf16.msra.mxu0 %v20382_v24 }
 0xc49   :  { %18348 = vmatprep.subr.bf16.mxu0 %v20216_v11 }
 0xc4a   :  { %15652 = vmatmul.mubr.msk.f32.vlgmr.msra.gmra.mrb[44].mxu1 %vm177_vm3, %v3311_v1 }
 0xc4b   :  { %18338 = vmatpush3.bf16.msra.mxu1 %v20379_v23  ;;  %15689 = vmatprep.mubr.msk.f32.mxu1 %vm20217_vm2, %v20218_v25 }
 0xc4c   :  { %18339 = vmatprep.subr.bf16.mxu1 %v20216_v11 }
 0xc4f   :  { %18341 = vmatpush3.bf16.msra.mxu1 %v20401_v30 }
 0xc50   :  { %18342 = vmatprep.subr.bf16.mxu1 %v20216_v11 }
 0xc53   :  { %18344 = vmatpush3.bf16.msra.mxu1 %v20424_v36 }
 0xc54   :  { %18345 = vmatprep.subr.bf16.mxu1 %v20216_v11 }
 0xc57   :  { %18347 = vmatpush3.bf16.msra.mxu1 %v20448_v42 }
 0xc58   :  { %18360 = vmatprep.subr.bf16.mxu1 %v20216_v11 }
 0xd0d   :  { %v3384_v3 = vpop.f32.mrb[42].mxu1  ;;  %v3462_v4 = vpop.f32.mrb[48].mxu0 }
 0xd0e   :  { %v3388_v5 = vadd.f32 %v3384_v3, %v3314_v2  ;;  %v15615_v6 = vpop.f32.mrb[43].mxu1  ;;  %v15634_v8 = vpop.f32.mrb[49].mxu0  ;;  %v3466_v14 = vadd.f32 %v3462_v4, %v3395_v12 }
 0xd0f   :  { %v3792_v8 = vld [vmem:[#allocation2 + $0x1c] sm:$0x3] }
 0xd10   :  { %v13034_v10 = vmul.f32 -1.442695, %v3388_v5  ;;  %v13036_v15 = vmul.f32 -1.442695, %v3466_v14 }
 0xd12   :  { %19859 = vpow2.f32 %v13034_v10 }
 0xd13   :  { %19861 = vpow2.f32 %v13036_v15 }
 0xd1c   :  { %v19860_v16 = vpop.eup %19859 }
 0xd1d   :  { %v3392_v17 = vadd.f32 1.0, %v19860_v16  ;;  %v3540_v19 = vpop.f32.mrb[44].mxu1  ;;  %v19862_v21 = vpop.eup %19861 }
 0xd1e   :  { %v15653_v20 = vpop.f32.mrb[45].mxu1  ;;  %v3470_v22 = vadd.f32 1.0, %v19862_v21  ;;  %v3541_v26 = vadd.f32 %v20823_v9, %v3540_v19  ;;  %v3873_v19 = vld [vmem:[#allocation3 + $0x1c] sm:$0x3] }
 0xd1f   :  { %19863 = vrcp.f32 %v3392_v17 }
 0xd20   :  { %19865 = vrcp.f32 %v3470_v22 }
 0xd29   :  { %v19864_v27 = vpop.eup %19863 }
 0xd2a   :  { %v3544_v28 = vmul.f32 %v19864_v27, %v3541_v26  ;;  %v19866_v32 = vpop.eup %19865 }
 0xd2b   :  { %v3547_v34 = vsub.f32 1.0, %v19866_v32  ;;  %v3549_v37 = vmul.f32 %v19866_v32, %v3311_v1 }
 0xd2c   :  { %v3545_v31 = vadd.f32 %v3544_v28, %v3473_v29 }
 0xd2e   :  { %19867 = vtanh.f32 %v3545_v31 }
 0xd38   :  { %v19868_v35 = vpop.eup %19867 }
 0xd39   :  { %v3548_v38 = vmul.f32 %v19868_v35, %v3547_v34 }
 0xd3b   :  { %v3550_v40 = vadd.f32 %v3549_v37, %v3548_v38  ;;  %v3951_v37 = vld [vmem:[#allocation4 + $0x1c] sm:$0x3] }
 0xd3d   :  { %15671 = vmatmul.mubr.msk.f32.vlgmr.msra.gmra.mrb[50].mxu0 %vm177_vm3, %v3550_v40  ;;  %3551 = vst.msk [vmem:[#allocation5 + $0x18] sm:$0x3] %vm183_vm4, %v3550_v40  ;;  %3552 = vst.msk [vmem:[#allocation6 + $0x10] sm:$0x3] %vm183_vm4, %v3550_v40  ;;  %15690 = vmatmul.mubr.msk.f32.vlgmr.msra.gmra.mrb[46].mxu1 %vm177_vm3, %v3550_v40 }
 0xd3e   :  { %18350 = vmatpush3.bf16.msra.mxu0 %v20413_v33  ;;  %15708 = vmatprep.mubr.msk.f32.mxu0 %vm20217_vm2, %v20218_v25 }
 0xd3f   :  { %18351 = vmatprep.subr.bf16.mxu0 %v20216_v11  ;;  %18362 = vmatpush3.bf16.msra.mxu1 %v20318_v7 }
 0xd40   :  { %18363 = vmatprep.subr.bf16.mxu1 %v20216_v11  ;;  %15727 = vmatprep.mubr.msk.f32.mxu1 %vm20217_vm2, %v20218_v25 }
 0xd42   :  { %18353 = vmatpush3.bf16.msra.mxu0 %v20435_v39 }
 0xd43   :  { %18354 = vmatprep.subr.bf16.mxu0 %v20216_v11  ;;  %18365 = vmatpush3.bf16.msra.mxu1 %v20338_v13 }
 0xd44   :  { %18366 = vmatprep.subr.bf16.mxu1 %v20216_v11 }
 0xd46   :  { %18356 = vmatpush3.bf16.msra.mxu0 %v20454_v43 }
 0xd47   :  { %18357 = vmatprep.subr.bf16.mxu0 %v20216_v11  ;;  %18368 = vmatpush3.bf16.msra.mxu1 %v20359_v18 }
 0xd48   :  { %18369 = vmatprep.subr.bf16.mxu1 %v20216_v11 }
 0xd4a   :  { %18359 = vmatpush3.bf16.msra.mxu0 %v20466_v46 }
 0xd4b   :  { %18372 = vmatprep.subr.bf16.mxu0 %v20216_v11  ;;  %18371 = vmatpush3.bf16.msra.mxu1 %v20382_v24 }
 0xd4c   :  { %18384 = vmatprep.subr.bf16.mxu1 %v20216_v11 }
 0xd4d   :  { %15709 = vmatmul.mubr.msk.f32.vlgmr.msra.gmra.mrb[52].mxu0 %vm177_vm3, %v3550_v40 }
 0xd4e   :  { %18374 = vmatpush3.bf16.msra.mxu0 %v20379_v23  ;;  %15746 = vmatprep.mubr.msk.f32.mxu0 %vm20217_vm2, %v20218_v25 }
 0xd4f   :  { %18375 = vmatprep.subr.bf16.mxu0 %v20216_v11 }
 0xd52   :  { %18377 = vmatpush3.bf16.msra.mxu0 %v20401_v30 }
 0xd53   :  { %18378 = vmatprep.subr.bf16.mxu0 %v20216_v11 }
 0xd56   :  { %18380 = vmatpush3.bf16.msra.mxu0 %v20424_v36 }
 0xd57   :  { %18381 = vmatprep.subr.bf16.mxu0 %v20216_v11 }
 0xd5a   :  { %18383 = vmatpush3.bf16.msra.mxu0 %v20448_v42 }
 0xd5b   :  { %18396 = vmatprep.subr.bf16.mxu0 %v20216_v11 }
 0xe10   :  { %v3623_v44 = vpop.f32.mrb[50].mxu0  ;;  %v3701_v45 = vpop.f32.mrb[46].mxu1 }
 0xe11   :  { %v3627_v47 = vadd.f32 %v3623_v44, %v3553_v41  ;;  %v15672_v48 = vpop.f32.mrb[51].mxu0  ;;  %v15691_v49 = vpop.f32.mrb[47].mxu1  ;;  %v3705_v53 = vadd.f32 %v3701_v45, %v3634_v52 }
 0xe12   :  { %v4031_v49 = vld [vmem:[#allocation2 + $0x1e] sm:$0x3] }
 0xe13   :  { %v13039_v51 = vmul.f32 -1.442695, %v3627_v47  ;;  %v13041_v54 = vmul.f32 -1.442695, %v3705_v53 }
 0xe15   :  { %19869 = vpow2.f32 %v13039_v51 }
 0xe16   :  { %19871 = vpow2.f32 %v13041_v54 }
 0xe1f   :  { %v19870_v55 = vpop.eup %19869 }
 0xe20   :  { %v3631_v56 = vadd.f32 1.0, %v19870_v55  ;;  %v3779_v50 = vpop.f32.mrb[52].mxu0  ;;  %v19872_v58 = vpop.eup %19871 }
 0xe21   :  { %v15710_v57 = vpop.f32.mrb[53].mxu0  ;;  %v3709_v59 = vadd.f32 1.0, %v19872_v58  ;;  %v3780_v60 = vadd.f32 %v20823_v9, %v3779_v50  ;;  %v4112_v50 = vld [vmem:[#allocation3 + $0x1e] sm:$0x3] }
 0xe22   :  { %19873 = vrcp.f32 %v3631_v56 }
 0xe23   :  { %19875 = vrcp.f32 %v3709_v59 }
 0xe2c   :  { %v19874_v61 = vpop.eup %19873 }
 0xe2d   :  { %v3783_v62 = vmul.f32 %v19874_v61, %v3780_v60  ;;  %v19876_v1 = vpop.eup %19875 }
 0xe2e   :  { %v3786_v2 = vsub.f32 1.0, %v19876_v1  ;;  %v3788_v4 = vmul.f32 %v19876_v1, %v3550_v40 }
 0xe2f   :  { %v3784_v0 = vadd.f32 %v3783_v62, %v3712_v63 }
 0xe31   :  { %19877 = vtanh.f32 %v3784_v0 }
 0xe3b   :  { %v19878_v3 = vpop.eup %19877 }
 0xe3c   :  { %v3787_v5 = vmul.f32 %v19878_v3, %v3786_v2 }
 0xe3e   :  { %v3789_v6 = vadd.f32 %v3788_v4, %v3787_v5  ;;  %v4190_v4 = vld [vmem:[#allocation4 + $0x1e] sm:$0x3] }
 0xe40   :  { %3791 = vst.msk [vmem:[#allocation6 + $0xe] sm:$0x3] %vm183_vm4, %v3789_v6  ;;  %15728 = vmatmul.mubr.msk.f32.vlgmr.msra.gmra.mrb[48].mxu1 %vm177_vm3, %v3789_v6  ;;  %3790 = vst.msk [vmem:[#allocation5 + $0x1a] sm:$0x3] %vm183_vm4, %v3789_v6  ;;  %15747 = vmatmul.mubr.msk.f32.vlgmr.msra.gmra.mrb[54].mxu0 %vm177_vm3, %v3789_v6 }
 0xe41   :  { %18386 = vmatpush3.bf16.msra.mxu1 %v20413_v33  ;;  %15765 = vmatprep.mubr.msk.f32.mxu1 %vm20217_vm2, %v20218_v25 }
 0xe42   :  { %18387 = vmatprep.subr.bf16.mxu1 %v20216_v11  ;;  %18398 = vmatpush3.bf16.msra.mxu0 %v20318_v7 }
 0xe43   :  { %18399 = vmatprep.subr.bf16.mxu0 %v20216_v11  ;;  %15784 = vmatprep.mubr.msk.f32.mxu0 %vm20217_vm2, %v20218_v25 }
 0xe45   :  { %18389 = vmatpush3.bf16.msra.mxu1 %v20435_v39 }
 0xe46   :  { %18390 = vmatprep.subr.bf16.mxu1 %v20216_v11  ;;  %18401 = vmatpush3.bf16.msra.mxu0 %v20338_v13 }
 0xe47   :  { %18402 = vmatprep.subr.bf16.mxu0 %v20216_v11 }
 0xe49   :  { %18392 = vmatpush3.bf16.msra.mxu1 %v20454_v43 }
 0xe4a   :  { %18393 = vmatprep.subr.bf16.mxu1 %v20216_v11  ;;  %18404 = vmatpush3.bf16.msra.mxu0 %v20359_v18 }
 0xe4b   :  { %18405 = vmatprep.subr.bf16.mxu0 %v20216_v11 }
 0xe4d   :  { %18395 = vmatpush3.bf16.msra.mxu1 %v20466_v46 }
 0xe4e   :  { %18408 = vmatprep.subr.bf16.mxu1 %v20216_v11  ;;  %18407 = vmatpush3.bf16.msra.mxu0 %v20382_v24 }
 0xe4f   :  { %18420 = vmatprep.subr.bf16.mxu0 %v20216_v11 }
 0xe50   :  { %15766 = vmatmul.mubr.msk.f32.vlgmr.msra.gmra.mrb[50].mxu1 %vm177_vm3, %v3789_v6 }
 0xe51   :  { %18410 = vmatpush3.bf16.msra.mxu1 %v20379_v23  ;;  %15803 = vmatprep.mubr.msk.f32.mxu1 %vm20217_vm2, %v20218_v25 }
 0xe52   :  { %18411 = vmatprep.subr.bf16.mxu1 %v20216_v11 }
 0xe55   :  { %18413 = vmatpush3.bf16.msra.mxu1 %v20401_v30 }
 0xe56   :  { %18414 = vmatprep.subr.bf16.mxu1 %v20216_v11 }
 0xe59   :  { %18416 = vmatpush3.bf16.msra.mxu1 %v20424_v36 }
 0xe5a   :  { %18417 = vmatprep.subr.bf16.mxu1 %v20216_v11 }
 0xe5d   :  { %18419 = vmatpush3.bf16.msra.mxu1 %v20448_v42 }
 0xe5e   :  { %18432 = vmatprep.subr.bf16.mxu1 %v20216_v11 }
 0xf13   :  { %v3862_v10 = vpop.f32.mrb[48].mxu1  ;;  %v3940_v12 = vpop.f32.mrb[54].mxu0 }
 0xf14   :  { %v3866_v14 = vadd.f32 %v3862_v10, %v3792_v8  ;;  %v15729_v15 = vpop.f32.mrb[49].mxu1  ;;  %v15748_v16 = vpop.f32.mrb[55].mxu0  ;;  %v3944_v20 = vadd.f32 %v3940_v12, %v3873_v19 }
 0xf16   :  { %v13044_v17 = vmul.f32 -1.442695, %v3866_v14  ;;  %v13046_v21 = vmul.f32 -1.442695, %v3944_v20 }
 0xf18   :  { %19879 = vpow2.f32 %v13044_v17 }
 0xf19   :  { %19881 = vpow2.f32 %v13046_v21 }
 0xf22   :  { %v19880_v22 = vpop.eup %19879 }
 0xf23   :  { %v3870_v26 = vadd.f32 1.0, %v19880_v22  ;;  %v4018_v27 = vpop.f32.mrb[50].mxu1  ;;  %v19882_v29 = vpop.eup %19881 }
 0xf24   :  { %v15767_v28 = vpop.f32.mrb[51].mxu1  ;;  %v3948_v31 = vadd.f32 1.0, %v19882_v29  ;;  %v4019_v32 = vadd.f32 %v20823_v9, %v4018_v27 }
 0xf25   :  { %19883 = vrcp.f32 %v3870_v26  ;;  %v4351_v26 = vld [vmem:[#allocation3 + $0x20] sm:$0x3] }
 0xf26   :  { %19885 = vrcp.f32 %v3948_v31 }
 0xf2f   :  { %v19884_v34 = vpop.eup %19883 }
 0xf30   :  { %v4022_v35 = vmul.f32 %v19884_v34, %v4019_v32  ;;  %v19886_v40 = vpop.eup %19885 }
 0xf31   :  { %v4025_v41 = vsub.f32 1.0, %v19886_v40  ;;  %v4027_v45 = vmul.f32 %v19886_v40, %v3789_v6 }
 0xf32   :  { %v4023_v38 = vadd.f32 %v4022_v35, %v3951_v37 }
 0xf34   :  { %19887 = vtanh.f32 %v4023_v38  ;;  %v21124_v38 = vld [vmem:[%s23240_s4] ss:$0 sm:$0xff] }
 0xf3e   :  { %v19888_v44 = vpop.eup %19887 }
 0xf3f   :  { %v4026_v47 = vmul.f32 %v19888_v44, %v4025_v41 }
 0xf41   :  { %v4028_v48 = vadd.f32 %v4027_v45, %v4026_v47  ;;  %v4429_v45 = vld [vmem:[#allocation4 + $0x20] sm:$0x3] }
 0xf43   :  { %4030 = vst.msk [vmem:[#allocation6 + $0xc] sm:$0x3] %vm183_vm4, %v4028_v48  ;;  %15785 = vmatmul.mubr.msk.f32.vlgmr.msra.gmra.mrb[56].mxu0 %vm177_vm3, %v4028_v48  ;;  %4029 = vst.msk [vmem:[#allocation5 + $0x1c] sm:$0x3] %vm183_vm4, %v4028_v48  ;;  %15804 = vmatmul.mubr.msk.f32.vlgmr.msra.gmra.mrb[52].mxu1 %vm177_vm3, %v4028_v48 }
 0xf44   :  { %18422 = vmatpush3.bf16.msra.mxu0 %v20413_v33  ;;  %15822 = vmatprep.mubr.msk.f32.mxu0 %vm20217_vm2, %v20218_v25 }
 0xf45   :  { %18423 = vmatprep.subr.bf16.mxu0 %v20216_v11  ;;  %18434 = vmatpush3.bf16.msra.mxu1 %v20318_v7 }
 0xf46   :  { %18435 = vmatprep.subr.bf16.mxu1 %v20216_v11  ;;  %15841 = vmatprep.mubr.msk.f32.mxu1 %vm20217_vm2, %v20218_v25 }
 0xf48   :  { %18425 = vmatpush3.bf16.msra.mxu0 %v20435_v39 }
 0xf49   :  { %18426 = vmatprep.subr.bf16.mxu0 %v20216_v11  ;;  %18437 = vmatpush3.bf16.msra.mxu1 %v20338_v13 }
 0xf4a   :  { %18438 = vmatprep.subr.bf16.mxu1 %v20216_v11 }
 0xf4c   :  { %18428 = vmatpush3.bf16.msra.mxu0 %v20454_v43 }
 0xf4d   :  { %18429 = vmatprep.subr.bf16.mxu0 %v20216_v11  ;;  %18440 = vmatpush3.bf16.msra.mxu1 %v20359_v18 }
 0xf4e   :  { %18441 = vmatprep.subr.bf16.mxu1 %v20216_v11 }
 0xf50   :  { %18431 = vmatpush3.bf16.msra.mxu0 %v20466_v46 }
 0xf51   :  { %18444 = vmatprep.subr.bf16.mxu0 %v20216_v11  ;;  %18443 = vmatpush3.bf16.msra.mxu1 %v20382_v24 }
 0xf52   :  { %18456 = vmatprep.subr.bf16.mxu1 %v20216_v11 }
 0xf53   :  { %15823 = vmatmul.mubr.msk.f32.vlgmr.msra.gmra.mrb[58].mxu0 %vm177_vm3, %v4028_v48 }
 0xf54   :  { %18446 = vmatpush3.bf16.msra.mxu0 %v20379_v23  ;;  %15860 = vmatprep.mubr.msk.f32.mxu0 %vm20217_vm2, %v20218_v25 }
 0xf55   :  { %18447 = vmatprep.subr.bf16.mxu0 %v20216_v11 }
 0xf58   :  { %18449 = vmatpush3.bf16.msra.mxu0 %v20401_v30 }
 0xf59   :  { %18450 = vmatprep.subr.bf16.mxu0 %v20216_v11 }
 0xf5c   :  { %18452 = vmatpush3.bf16.msra.mxu0 %v20424_v36 }
 0xf5d   :  { %18453 = vmatprep.subr.bf16.mxu0 %v20216_v11 }
 0xf60   :  { %18455 = vmatpush3.bf16.msra.mxu0 %v20448_v42 }
 0xf61   :  { %18468 = vmatprep.subr.bf16.mxu0 %v20216_v11 }
0x1016   :  { %v4101_v51 = vpop.f32.mrb[56].mxu0  ;;  %v4179_v52 = vpop.f32.mrb[52].mxu1 }
0x1017   :  { %v4105_v53 = vadd.f32 %v4101_v51, %v4031_v49  ;;  %v15786_v54 = vpop.f32.mrb[57].mxu0  ;;  %v15805_v55 = vpop.f32.mrb[53].mxu1  ;;  %v4183_v57 = vadd.f32 %v4179_v52, %v4112_v50 }
0x1018   :  { %v4509_v55 = vld [vmem:[#allocation2 + $0x22] sm:$0x3] }
0x1019   :  { %v13049_v56 = vmul.f32 -1.442695, %v4105_v53  ;;  %v13051_v58 = vmul.f32 -1.442695, %v4183_v57 }
0x101b   :  { %19889 = vpow2.f32 %v13049_v56 }
0x101c   :  { %19891 = vpow2.f32 %v13051_v58 }
0x1025   :  { %v19890_v59 = vpop.eup %19889 }
0x1026   :  { %v4109_v60 = vadd.f32 1.0, %v19890_v59  ;;  %v4257_v61 = vpop.f32.mrb[58].mxu0  ;;  %v19892_v63 = vpop.eup %19891 }
0x1027   :  { %v15824_v62 = vpop.f32.mrb[59].mxu0  ;;  %v4187_v0 = vadd.f32 1.0, %v19892_v63  ;;  %v4258_v1 = vadd.f32 %v20823_v9, %v4257_v61  ;;  %v4270_v9 = vld [vmem:[#allocation2 + $0x20] sm:$0x3]  ;;  %v4590_v61 = vld [vmem:[#allocation3 + $0x22] sm:$0x3] }
0x1028   :  { %19893 = vrcp.f32 %v4109_v60 }
0x1029   :  { %19895 = vrcp.f32 %v4187_v0 }
0x1032   :  { %v19894_v2 = vpop.eup %19893 }
0x1033   :  { %v4261_v3 = vmul.f32 %v19894_v2, %v4258_v1  ;;  %v19896_v6 = vpop.eup %19895 }
0x1034   :  { %v4264_v8 = vsub.f32 1.0, %v19896_v6  ;;  %v4266_v12 = vmul.f32 %v19896_v6, %v4028_v48 }
0x1035   :  { %v4262_v5 = vadd.f32 %v4261_v3, %v4190_v4 }
0x1037   :  { %19897 = vtanh.f32 %v4262_v5 }
0x1041   :  { %v19898_v10 = vpop.eup %19897 }
0x1042   :  { %v4265_v14 = vmul.f32 %v19898_v10, %v4264_v8 }
0x1044   :  { %v21079_v15 = vadd.f32 %v4266_v12, %v4265_v14  ;;  %v4668_v12 = vld [vmem:[#allocation4 + $0x22] sm:$0x3] }
0x1046   :  { %4269 = vst.msk [vmem:[#allocation6 + $0xa] sm:$0x3] %vm183_vm4, %v21079_v15  ;;  %15842 = vmatmul.mubr.msk.f32.vlgmr.msra.gmra.mrb[54].mxu1 %vm177_vm3, %v21079_v15  ;;  %4268 = vst.msk [vmem:[#allocation5 + $0x1e] sm:$0x3] %vm183_vm4, %v21079_v15  ;;  %15861 = vmatmul.mubr.msk.f32.vlgmr.msra.gmra.mrb[60].mxu0 %vm177_vm3, %v21079_v15 }
0x1047   :  { %18458 = vmatpush3.bf16.msra.mxu1 %v20413_v33  ;;  %15879 = vmatprep.mubr.msk.f32.mxu1 %vm20217_vm2, %v20218_v25 }
0x1048   :  { %18459 = vmatprep.subr.bf16.mxu1 %v20216_v11  ;;  %18470 = vmatpush3.bf16.msra.mxu0 %v20318_v7 }
0x1049   :  { %18471 = vmatprep.subr.bf16.mxu0 %v20216_v11  ;;  %15898 = vmatprep.mubr.msk.f32.mxu0 %vm20217_vm2, %v20218_v25 }
0x104b   :  { %18461 = vmatpush3.bf16.msra.mxu1 %v20435_v39 }
0x104c   :  { %18462 = vmatprep.subr.bf16.mxu1 %v20216_v11  ;;  %18473 = vmatpush3.bf16.msra.mxu0 %v20338_v13 }
0x104d   :  { %18474 = vmatprep.subr.bf16.mxu0 %v20216_v11 }
0x104f   :  { %18464 = vmatpush3.bf16.msra.mxu1 %v20454_v43 }
0x1050   :  { %18465 = vmatprep.subr.bf16.mxu1 %v20216_v11  ;;  %18476 = vmatpush3.bf16.msra.mxu0 %v20359_v18 }
0x1051   :  { %18477 = vmatprep.subr.bf16.mxu0 %v20216_v11 }
0x1053   :  { %18467 = vmatpush3.bf16.msra.mxu1 %v20466_v46 }
0x1054   :  { %18480 = vmatprep.subr.bf16.mxu1 %v20216_v11  ;;  %18479 = vmatpush3.bf16.msra.mxu0 %v20382_v24 }
0x1055   :  { %18492 = vmatprep.subr.bf16.mxu0 %v20216_v11 }
0x1056   :  { %15880 = vmatmul.mubr.msk.f32.vlgmr.msra.gmra.mrb[56].mxu1 %vm177_vm3, %v21079_v15 }
0x1057   :  { %18482 = vmatpush3.bf16.msra.mxu1 %v20379_v23  ;;  %15917 = vmatprep.mubr.msk.f32.mxu1 %vm20217_vm2, %v20218_v25 }
0x1058   :  { %18483 = vmatprep.subr.bf16.mxu1 %v20216_v11 }
0x105b   :  { %18485 = vmatpush3.bf16.msra.mxu1 %v20401_v30 }
0x105c   :  { %18486 = vmatprep.subr.bf16.mxu1 %v20216_v11 }
0x105f   :  { %18488 = vmatpush3.bf16.msra.mxu1 %v20424_v36 }
0x1060   :  { %18489 = vmatprep.subr.bf16.mxu1 %v20216_v11 }
0x1063   :  { %18491 = vmatpush3.bf16.msra.mxu1 %v20448_v42 }
0x1064   :  { %18504 = vmatprep.subr.bf16.mxu1 %v20216_v11 }
0x1119   :  { %v4340_v16 = vpop.f32.mrb[54].mxu1  ;;  %v4418_v17 = vpop.f32.mrb[60].mxu0 }
0x111a   :  { %v4344_v19 = vadd.f32 %v4340_v16, %v4270_v9  ;;  %v15843_v20 = vpop.f32.mrb[55].mxu1  ;;  %v15862_v21 = vpop.f32.mrb[61].mxu0  ;;  %v4422_v27 = vadd.f32 %v4418_v17, %v4351_v26 }
0x111b   :  { %v4748_v21 = vld [vmem:[#allocation2 + $0x24] sm:$0x3] }
0x111c   :  { %v13054_v22 = vmul.f32 -1.442695, %v4344_v19  ;;  %v13056_v28 = vmul.f32 -1.442695, %v4422_v27 }
0x111e   :  { %19899 = vpow2.f32 %v13054_v22 }
0x111f   :  { %19901 = vpow2.f32 %v13056_v28 }
0x1128   :  { %v19900_v29 = vpop.eup %19899 }
0x1129   :  { %v4348_v31 = vadd.f32 1.0, %v19900_v29  ;;  %v4496_v32 = vpop.f32.mrb[56].mxu1  ;;  %v19902_v35 = vpop.eup %19901 }
0x112a   :  { %v15881_v34 = vpop.f32.mrb[57].mxu1  ;;  %v4426_v37 = vadd.f32 1.0, %v19902_v35  ;;  %v4497_v40 = vadd.f32 %v21124_v38, %v4496_v32  ;;  %v4829_v32 = vld [vmem:[#allocation3 + $0x24] sm:$0x3] }
0x112b   :  { %19903 = vrcp.f32 %v4348_v31 }
0x112c   :  { %19905 = vrcp.f32 %v4426_v37 }
0x1135   :  { %v19904_v41 = vpop.eup %19903 }
0x1136   :  { %v4500_v44 = vmul.f32 %v19904_v41, %v4497_v40  ;;  %v19906_v48 = vpop.eup %19905 }
0x1137   :  { %v4503_v49 = vsub.f32 1.0, %v19906_v48  ;;  %v4505_v52 = vmul.f32 %v19906_v48, %v21079_v15 }
0x1138   :  { %v4501_v47 = vadd.f32 %v4500_v44, %v4429_v45 }
0x113a   :  { %19907 = vtanh.f32 %v4501_v47 }
0x1144   :  { %v19908_v51 = vpop.eup %19907 }
0x1145   :  { %v4504_v53 = vmul.f32 %v19908_v51, %v4503_v49 }
0x1147   :  { %v4506_v54 = vadd.f32 %v4505_v52, %v4504_v53  ;;  %v4907_v52 = vld [vmem:[#allocation4 + $0x24] sm:$0x3] }
0x1149   :  { %4508 = vst.msk [vmem:[#allocation6 + $0x8] sm:$0x3] %vm183_vm4, %v4506_v54  ;;  %15899 = vmatmul.mubr.msk.f32.vlgmr.msra.gmra.mrb[62].mxu0 %vm177_vm3, %v4506_v54  ;;  %4507 = vst.msk [vmem:[#allocation5 + $0x20] sm:$0x3] %vm183_vm4, %v4506_v54  ;;  %15918 = vmatmul.mubr.msk.f32.vlgmr.msra.gmra.mrb[58].mxu1 %vm177_vm3, %v4506_v54 }
0x114a   :  { %18494 = vmatpush3.bf16.msra.mxu0 %v20413_v33  ;;  %15936 = vmatprep.mubr.msk.f32.mxu0 %vm20217_vm2, %v20218_v25 }
0x114b   :  { %18495 = vmatprep.subr.bf16.mxu0 %v20216_v11  ;;  %18506 = vmatpush3.bf16.msra.mxu1 %v20318_v7 }
0x114c   :  { %18507 = vmatprep.subr.bf16.mxu1 %v20216_v11  ;;  %15955 = vmatprep.mubr.msk.f32.mxu1 %vm20217_vm2, %v20218_v25 }
0x114e   :  { %18497 = vmatpush3.bf16.msra.mxu0 %v20435_v39 }
0x114f   :  { %18498 = vmatprep.subr.bf16.mxu0 %v20216_v11  ;;  %18509 = vmatpush3.bf16.msra.mxu1 %v20338_v13 }
0x1150   :  { %18510 = vmatprep.subr.bf16.mxu1 %v20216_v11 }
0x1152   :  { %18500 = vmatpush3.bf16.msra.mxu0 %v20454_v43 }
0x1153   :  { %18501 = vmatprep.subr.bf16.mxu0 %v20216_v11  ;;  %18512 = vmatpush3.bf16.msra.mxu1 %v20359_v18 }
0x1154   :  { %18513 = vmatprep.subr.bf16.mxu1 %v20216_v11 }
0x1156   :  { %18503 = vmatpush3.bf16.msra.mxu0 %v20466_v46 }
0x1157   :  { %18516 = vmatprep.subr.bf16.mxu0 %v20216_v11  ;;  %18515 = vmatpush3.bf16.msra.mxu1 %v20382_v24 }
0x1158   :  { %18528 = vmatprep.subr.bf16.mxu1 %v20216_v11 }
0x1159   :  { %15937 = vmatmul.mubr.msk.f32.vlgmr.msra.gmra.mrb[64].mxu0 %vm177_vm3, %v4506_v54 }
0x115a   :  { %18518 = vmatpush3.bf16.msra.mxu0 %v20379_v23  ;;  %15974 = vmatprep.mubr.msk.f32.mxu0 %vm20217_vm2, %v20218_v25 }
0x115b   :  { %18519 = vmatprep.subr.bf16.mxu0 %v20216_v11 }
0x115e   :  { %18521 = vmatpush3.bf16.msra.mxu0 %v20401_v30 }
0x115f   :  { %18522 = vmatprep.subr.bf16.mxu0 %v20216_v11 }
0x1162   :  { %18524 = vmatpush3.bf16.msra.mxu0 %v20424_v36 }
0x1163   :  { %18525 = vmatprep.subr.bf16.mxu0 %v20216_v11 }
0x1166   :  { %18527 = vmatpush3.bf16.msra.mxu0 %v20448_v42 }
0x1167   :  { %18540 = vmatprep.subr.bf16.mxu0 %v20216_v11 }
0x121c   :  { %v4579_v56 = vpop.f32.mrb[62].mxu0  ;;  %v4657_v50 = vpop.f32.mrb[58].mxu1 }
0x121d   :  { %v4583_v57 = vadd.f32 %v4579_v56, %v4509_v55  ;;  %v15900_v58 = vpop.f32.mrb[63].mxu0  ;;  %v15919_v59 = vpop.f32.mrb[59].mxu1  ;;  %v4661_v62 = vadd.f32 %v4657_v50, %v4590_v61  ;;  %v5068_v61 = vld [vmem:[#allocation3 + $0x26] sm:$0x3] }
0x121f   :  { %v13059_v60 = vmul.f32 -1.442695, %v4583_v57  ;;  %v13061_v63 = vmul.f32 -1.442695, %v4661_v62 }
0x1221   :  { %19909 = vpow2.f32 %v13059_v60 }
0x1222   :  { %19911 = vpow2.f32 %v13061_v63 }
0x122b   :  { %v19910_v0 = vpop.eup %19909 }
0x122c   :  { %v4587_v1 = vadd.f32 1.0, %v19910_v0  ;;  %v4735_v2 = vpop.f32.mrb[64].mxu0  ;;  %v19912_v4 = vpop.eup %19911 }
0x122d   :  { %v15938_v3 = vpop.f32.mrb[65].mxu0  ;;  %v4665_v5 = vadd.f32 1.0, %v19912_v4  ;;  %v4736_v6 = vadd.f32 %v21124_v38, %v4735_v2 }
0x122e   :  { %19913 = vrcp.f32 %v4587_v1 }
0x122f   :  { %19915 = vrcp.f32 %v4665_v5 }
0x1238   :  { %v19914_v8 = vpop.eup %19913 }
0x1239   :  { %v4739_v10 = vmul.f32 %v19914_v8, %v4736_v6  ;;  %v19916_v15 = vpop.eup %19915  ;;  %v5146_v6 = vld [vmem:[#allocation4 + $0x26] sm:$0x3] }
0x123a   :  { %v4742_v9 = vsub.f32 1.0, %v19916_v15  ;;  %v4744_v17 = vmul.f32 %v19916_v15, %v4506_v54 }
0x123b   :  { %v4740_v14 = vadd.f32 %v4739_v10, %v4668_v12 }
0x123d   :  { %19917 = vtanh.f32 %v4740_v14 }
0x1247   :  { %v19918_v16 = vpop.eup %19917 }
0x1248   :  { %v4743_v19 = vmul.f32 %v19918_v16, %v4742_v9 }
0x124a   :  { %v4745_v20 = vadd.f32 %v4744_v17, %v4743_v19  ;;  %v5486_v17 = vld [vmem:[%s23242_s6 + $0x8] sm:$0xff]  ;;  %v5487_v19 = vld [vmem:[%s23242_s6 + $0x10] sm:$0xff] }
0x124c   :  { %15956 = vmatmul.mubr.msk.f32.vlgmr.msra.gmra.mrb[60].mxu1 %vm177_vm3, %v4745_v20  ;;  %4746 = vst.msk [vmem:[#allocation5 + $0x22] sm:$0x3] %vm183_vm4, %v4745_v20  ;;  %4747 = vst.msk [vmem:[#allocation6 + $0x6] sm:$0x3] %vm183_vm4, %v4745_v20  ;;  %15975 = vmatmul.mubr.msk.f32.vlgmr.msra.gmra.mrb[66].mxu0 %vm177_vm3, %v4745_v20 }
0x124d   :  { %18530 = vmatpush3.bf16.msra.mxu1 %v20413_v33  ;;  %15993 = vmatprep.mubr.msk.f32.mxu1 %vm20217_vm2, %v20218_v25 }
0x124e   :  { %18531 = vmatprep.subr.bf16.mxu1 %v20216_v11  ;;  %18542 = vmatpush3.bf16.msra.mxu0 %v20318_v7 }
0x124f   :  { %18543 = vmatprep.subr.bf16.mxu0 %v20216_v11  ;;  %16012 = vmatprep.mubr.msk.f32.mxu0 %vm20217_vm2, %v20218_v25 }
0x1251   :  { %18533 = vmatpush3.bf16.msra.mxu1 %v20435_v39 }
0x1252   :  { %18534 = vmatprep.subr.bf16.mxu1 %v20216_v11  ;;  %18545 = vmatpush3.bf16.msra.mxu0 %v20338_v13 }
0x1253   :  { %18546 = vmatprep.subr.bf16.mxu0 %v20216_v11 }
0x1255   :  { %18536 = vmatpush3.bf16.msra.mxu1 %v20454_v43 }
0x1256   :  { %18537 = vmatprep.subr.bf16.mxu1 %v20216_v11  ;;  %18548 = vmatpush3.bf16.msra.mxu0 %v20359_v18 }
0x1257   :  { %18549 = vmatprep.subr.bf16.mxu0 %v20216_v11 }
0x1259   :  { %18539 = vmatpush3.bf16.msra.mxu1 %v20466_v46 }
0x125a   :  { %18552 = vmatprep.subr.bf16.mxu1 %v20216_v11  ;;  %18551 = vmatpush3.bf16.msra.mxu0 %v20382_v24 }
0x125b   :  { %18564 = vmatprep.subr.bf16.mxu0 %v20216_v11 }
0x125c   :  { %15994 = vmatmul.mubr.msk.f32.vlgmr.msra.gmra.mrb[62].mxu1 %vm177_vm3, %v4745_v20 }
0x125d   :  { %18554 = vmatpush3.bf16.msra.mxu1 %v20379_v23  ;;  %16031 = vmatprep.mubr.msk.f32.mxu1 %vm20217_vm2, %v20218_v25 }
0x125e   :  { %18555 = vmatprep.subr.bf16.mxu1 %v20216_v11 }
0x1261   :  { %18557 = vmatpush3.bf16.msra.mxu1 %v20401_v30 }
0x1262   :  { %18558 = vmatprep.subr.bf16.mxu1 %v20216_v11 }
0x1265   :  { %18560 = vmatpush3.bf16.msra.mxu1 %v20424_v36 }
0x1266   :  { %18561 = vmatprep.subr.bf16.mxu1 %v20216_v11 }
0x1269   :  { %18563 = vmatpush3.bf16.msra.mxu1 %v20448_v42 }
0x126a   :  { %18576 = vmatprep.subr.bf16.mxu1 %v20216_v11 }
0x131f   :  { %v4818_v22 = vpop.f32.mrb[60].mxu1  ;;  %v4896_v26 = vpop.f32.mrb[66].mxu0 }
0x1320   :  { %v4822_v27 = vadd.f32 %v4818_v22, %v4748_v21  ;;  %v15957_v28 = vpop.f32.mrb[61].mxu1  ;;  %v15976_v29 = vpop.f32.mrb[67].mxu0  ;;  %v4900_v34 = vadd.f32 %v4896_v26, %v4829_v32  ;;  %v13101_v26 = vld [vmem:[%s23242_s6 + $0x50] sm:$0xff]  ;;  %v13103_v32 = vld [vmem:[%s23242_s6 + $0x60] sm:$0xff] }
0x1321   :  { %v5489_v28 = vld [vmem:[%s23242_s6 + $0x20] sm:$0xff] }
0x1322   :  { %v13064_v31 = vmul.f32 -1.442695, %v4822_v27  ;;  %v13066_v35 = vmul.f32 -1.442695, %v4900_v34  ;;  %v13102_v27 = vld [vmem:[%s23242_s6 + $0x58] sm:$0xff]  ;;  %v13104_v34 = vld [vmem:[%s23242_s6 + $0x68] sm:$0xff] }
0x1323   :  { %v18648_v29 = vpack.c.bf16 %v13102_v27, %v13101_v26 }
0x1324   :  { %19919 = vpow2.f32 %v13064_v31  ;;  %v5490_v31 = vld [vmem:[%s23242_s6 + $0x28] sm:$0xff] }
0x1325   :  { %19921 = vpow2.f32 %v13066_v35  ;;  %v18620_v35 = vpack.c.bf16 %v5490_v31, %v5489_v28  ;;  %v5483_v28 = vld [vmem:[%s23241_s5 + $0x30] sm:$0xff] }
0x1326   :  { %v13097_v31 = vld [vmem:[%s23241_s5 + $0x70] sm:$0xff] }
0x132e   :  { %v19920_v37 = vpop.eup %19919 }
0x132f   :  { %v4826_v40 = vadd.f32 1.0, %v19920_v37  ;;  %v4974_v41 = vpop.f32.mrb[62].mxu1  ;;  %v19922_v45 = vpop.eup %19921  ;;  %v18652_v37 = vpack.c.bf16 %v13104_v34, %v13103_v32  ;;  %v13098_v32 = vld [vmem:[%s23241_s5 + $0x78] sm:$0xff]  ;;  %v21380_v34 = vld [vmem:[#allocation6 + $0x20] sm:$0xff] }
0x1330   :  { %v15995_v44 = vpop.f32.mrb[63].mxu1  ;;  %v4904_v47 = vadd.f32 1.0, %v19922_v45  ;;  %v4975_v48 = vadd.f32 %v21124_v38, %v4974_v41  ;;  %v5492_v41 = vld [vmem:[%s23242_s6 + $0x38] sm:$0xff] }
0x1331   :  { %19923 = vrcp.f32 %v4826_v40  ;;  %v5491_v40 = vld [vmem:[%s23242_s6 + $0x30] sm:$0xff]  ;;  %v13106_v45 = vld [vmem:[%s23242_s6 + $0x78] sm:$0xff] }
0x1332   :  { %19925 = vrcp.f32 %v4904_v47  ;;  %v13105_v44 = vld [vmem:[%s23242_s6 + $0x70] sm:$0xff]  ;;  %v18624_v47 = vpack.c.bf16 %v5492_v41, %v5491_v40  ;;  %v18672_v40 = vpack.c.bf16 %v13098_v32, %v13097_v31  ;;  %v13129_v41 = vld [vmem:[%s23242_s6 + $0x80] sm:$0xff] }
0x1333   :  { %v13161_v32 = vld [vmem:[%s23243_s7 + $0x90] sm:$0xff] }
0x133b   :  { %v19924_v49 = vpop.eup %19923 }
0x133c   :  { %v4978_v51 = vmul.f32 %v19924_v49, %v4975_v48  ;;  %v19926_v54 = vpop.eup %19925  ;;  %v18656_v48 = vpack.c.bf16 %v13106_v45, %v13105_v44  ;;  %v5477_v49 = vld [vmem:[%s23241_s5] sm:$0xff]  ;;  %v13130_v44 = vld [vmem:[%s23242_s6 + $0x88] sm:$0xff]  ;;  %v21398_v45 = vld [vmem:[#allocation5] sm:$0xff] }
0x133d   :  { %v4981_v55 = vsub.f32 1.0, %v19926_v54  ;;  %v4983_v50 = vmul.f32 %v19926_v54, %v4745_v20  ;;  %v5488_v20 = vld [vmem:[%s23242_s6 + $0x18] sm:$0xff] }
0x133e   :  { %v4979_v53 = vadd.f32 %v4978_v51, %v4907_v52  ;;  %v18616_v22 = vpack.c.bf16 %v5488_v20, %v5487_v19  ;;  %v5478_v51 = vld [vmem:[%s23241_s5 + $0x8] sm:$0xff]  ;;  %v13091_v52 = vld [vmem:[%s23241_s5 + $0x40] sm:$0xff] }
0x133f   :  { %v18628_v54 = vpack.c.bf16 %v5478_v51, %v5477_v49  ;;  %v13095_v19 = vld [vmem:[%s23241_s5 + $0x60] sm:$0xff]  ;;  %v13096_v20 = vld [vmem:[%s23241_s5 + $0x68] sm:$0xff]  ;;  %v13131_v51 = vld [vmem:[%s23242_s6 + $0x90] sm:$0xff] }
0x1340   :  { %19927 = vtanh.f32 %v4979_v53  ;;  %v13092_v53 = vld [vmem:[%s23241_s5 + $0x48] sm:$0xff]  ;;  %v18668_v27 = vpack.c.bf16 %v13096_v20, %v13095_v19  ;;  %v13128_v19 = vld [vmem:[%s23241_s5 + $0xb8] sm:$0xff] }
0x1341   :  { %v6195_v49 = vld [vmem:[%s23243_s7 + $0x8] sm:$0xff] }
0x134a   :  { %v19928_v56 = vpop.eup %19927 }
0x134b   :  { %v4982_v57 = vmul.f32 %v19928_v56, %v4981_v55  ;;  %v18660_v55 = vpack.c.bf16 %v13092_v53, %v13091_v52  ;;  %v5226_v56 = vld [vmem:[#allocation2 + $0x28] sm:$0x3]  ;;  %v13132_v52 = vld [vmem:[%s23242_s6 + $0x98] sm:$0xff] }
0x134d   :  { %v4984_v58 = vadd.f32 %v4983_v50, %v4982_v57 }
0x134f   :  { %16013 = vmatmul.mubr.msk.f32.vlgmr.msra.gmra.mrb[68].mxu0 %vm177_vm3, %v4984_v58  ;;  %4985 = vst.msk [vmem:[#allocation5 + $0x24] sm:$0x3] %vm183_vm4, %v4984_v58  ;;  %4986 = vst.msk [vmem:[#allocation6 + $0x4] sm:$0x3] %vm183_vm4, %v4984_v58  ;;  %16032 = vmatmul.mubr.msk.f32.vlgmr.msra.gmra.mrb[64].mxu1 %vm177_vm3, %v4984_v58 }
0x1350   :  { %18566 = vmatpush3.bf16.msra.mxu0 %v20413_v33  ;;  %16050 = vmatprep.mubr.msk.f32.mxu0 %vm20217_vm2, %v20218_v25 }
0x1351   :  { %18567 = vmatprep.subr.bf16.mxu0 %v20216_v11  ;;  %18578 = vmatpush3.bf16.msra.mxu1 %v20318_v7  ;;  %v4987_v7 = vld [vmem:[#allocation2 + $0x26] sm:$0x3] }
0x1352   :  { %18579 = vmatprep.subr.bf16.mxu1 %v20216_v11  ;;  %16069 = vmatprep.mubr.msk.f32.mxu1 %vm20217_vm2, %v20218_v25 }
0x1354   :  { %18569 = vmatpush3.bf16.msra.mxu0 %v20435_v39 }
0x1355   :  { %18570 = vmatprep.subr.bf16.mxu0 %v20216_v11  ;;  %18581 = vmatpush3.bf16.msra.mxu1 %v20338_v13 }
0x1356   :  { %18582 = vmatprep.subr.bf16.mxu1 %v20216_v11 }
0x1358   :  { %18572 = vmatpush3.bf16.msra.mxu0 %v20454_v43 }
0x1359   :  { %18573 = vmatprep.subr.bf16.mxu0 %v20216_v11  ;;  %18584 = vmatpush3.bf16.msra.mxu1 %v20359_v18 }
0x135a   :  { %18585 = vmatprep.subr.bf16.mxu1 %v20216_v11 }
0x135c   :  { %18575 = vmatpush3.bf16.msra.mxu0 %v20466_v46 }
0x135d   :  { %18588 = vmatprep.subr.bf16.mxu0 %v20216_v11  ;;  %18587 = vmatpush3.bf16.msra.mxu1 %v20382_v24 }
0x135e   :  { %18600 = vmatprep.subr.bf16.mxu1 %v20216_v11 }
0x135f   :  { %16051 = vmatmul.mubr.msk.f32.vlgmr.msra.gmra.mrb[70].mxu0 %vm177_vm3, %v4984_v58 }
0x1360   :  { %18590 = vmatpush3.bf16.msra.mxu0 %v20379_v23  ;;  %16088 = vmatprep.mubr.msk.f32.mxu0 %vm20217_vm2, %v20218_v25 }
0x1361   :  { %18591 = vmatprep.subr.bf16.mxu0 %v20216_v11 }
0x1364   :  { %18593 = vmatpush3.bf16.msra.mxu0 %v20401_v30 }
0x1365   :  { %18594 = vmatprep.subr.bf16.mxu0 %v20216_v11 }
0x1368   :  { %18596 = vmatpush3.bf16.msra.mxu0 %v20424_v36 }
0x1369   :  { %18597 = vmatprep.subr.bf16.mxu0 %v20216_v11 }
0x136c   :  { %18599 = vmatpush3.bf16.msra.mxu0 %v20448_v42 }
0x1422   :  { %v5057_v13 = vpop.f32.mrb[68].mxu0  ;;  %v5135_v18 = vpop.f32.mrb[64].mxu1 }
0x1423   :  { %v5061_v24 = vadd.f32 %v5057_v13, %v4987_v7  ;;  %v16014_v23 = vpop.f32.mrb[69].mxu0  ;;  %v16033_v59 = vpop.f32.mrb[65].mxu1  ;;  %v5139_v62 = vadd.f32 %v5135_v18, %v5068_v61 }
0x1425   :  { %v13069_v60 = vmul.f32 -1.442695, %v5061_v24  ;;  %v13071_v63 = vmul.f32 -1.442695, %v5139_v62  ;;  %v5307_v24 = vld [vmem:[#allocation3 + $0x28] sm:$0x3] }
0x1427   :  { %19929 = vpow2.f32 %v13069_v60 }
0x1428   :  { %19931 = vpow2.f32 %v13071_v63 }
0x1431   :  { %v19930_v30 = vpop.eup %19929 }
0x1432   :  { %v5065_v0 = vadd.f32 1.0, %v19930_v30  ;;  %v5213_v1 = vpop.f32.mrb[70].mxu0  ;;  %v19932_v2 = vpop.eup %19931 }
0x1433   :  { %v16052_v36 = vpop.f32.mrb[71].mxu0  ;;  %v5143_v3 = vadd.f32 1.0, %v19932_v2  ;;  %v5214_v42 = vadd.f32 %v21124_v38, %v5213_v1 }
0x1434   :  { %19933 = vrcp.f32 %v5065_v0 }
0x1435   :  { %19935 = vrcp.f32 %v5143_v3  ;;  %v5385_v3 = vld [vmem:[#allocation4 + $0x28] sm:$0x3] }
0x143e   :  { %v19934_v4 = vpop.eup %19933 }
0x143f   :  { %v5217_v5 = vmul.f32 %v19934_v4, %v5214_v42  ;;  %v19936_v10 = vpop.eup %19935 }
0x1440   :  { %v5220_v12 = vsub.f32 1.0, %v19936_v10  ;;  %v5222_v15 = vmul.f32 %v19936_v10, %v4984_v58 }
0x1441   :  { %v5218_v8 = vadd.f32 %v5217_v5, %v5146_v6 }
0x1443   :  { %19937 = vtanh.f32 %v5218_v8 }
0x144d   :  { %v19938_v14 = vpop.eup %19937 }
0x144e   :  { %v5221_v9 = vmul.f32 %v19938_v14, %v5220_v12  ;;  %v5480_v14 = vld [vmem:[%s23241_s5 + $0x18] sm:$0xff] }
0x1450   :  { %v21235_v16 = vadd.f32 %v5222_v15, %v5221_v9  ;;  %v13093_v15 = vld [vmem:[%s23241_s5 + $0x50] sm:$0xff]  ;;  %v13094_v9 = vld [vmem:[%s23241_s5 + $0x58] sm:$0xff] }
0x1452   :  { %16070 = vmatmul.mubr.msk.f32.vlgmr.msra.gmra.mrb[66].mxu1 %vm177_vm3, %v21235_v16  ;;  %5224 = vst.msk [vmem:[#allocation5 + $0x26] sm:$0x3] %vm183_vm4, %v21235_v16  ;;  %5225 = vst.msk [vmem:[#allocation6 + $0x2] sm:$0x3] %vm183_vm4, %v21235_v16  ;;  %16089 = vmatmul.mubr.msk.f32.vlgmr.msra.gmra.mrb[72].mxu0 %vm177_vm3, %v21235_v16 }
0x1453   :  { %18602 = vmatpush3.bf16.msra.mxu1 %v20413_v33  ;;  %16107 = vmatprep.mubr.msk.f32.mxu1 %vm20217_vm2, %v20218_v25  ;;  %v5485_v33 = vld [vmem:[%s23242_s6] sm:$0xff] }
0x1454   :  { %18603 = vmatprep.subr.bf16.mxu1 %v20216_v11 }
0x1457   :  { %18605 = vmatpush3.bf16.msra.mxu1 %v20435_v39  ;;  %v13099_v39 = vld [vmem:[%s23242_s6 + $0x40] sm:$0xff] }
0x1458   :  { %18606 = vmatprep.subr.bf16.mxu1 %v20216_v11 }
0x145b   :  { %18608 = vmatpush3.bf16.msra.mxu1 %v20454_v43  ;;  %v18612_v43 = vpack.c.bf16 %v5486_v17, %v5485_v33  ;;  %v21338_v33 = vld [vmem:[#allocation6 + $0x8] sm:$0xff] }
0x145c   :  { %18609 = vmatprep.subr.bf16.mxu1 %v20216_v11 }
0x145d   :  { %18613 = vmatprep.subr.bf16.mxu0 %v18612_v43 }
0x145e   :  { %18615 = vmatpush3.bf16.msra.mxu0 %v18612_v43  ;;  %v5481_v43 = vld [vmem:[%s23241_s5 + $0x20] sm:$0xff] }
0x145f   :  { %18611 = vmatpush3.bf16.msra.mxu1 %v20466_v46  ;;  %v13100_v46 = vld [vmem:[%s23242_s6 + $0x48] sm:$0xff]  ;;  %18617 = vmatprep.subr.bf16.mxu0 %v18616_v22 }
0x1460   :  { %v18644_v21 = vpack.c.bf16 %v13100_v46, %v13099_v39  ;;  %v18664_v39 = vpack.c.bf16 %v13094_v9, %v13093_v15  ;;  %v5482_v46 = vld [vmem:[%s23241_s5 + $0x28] sm:$0xff]  ;;  %v13154_v15 = vld [vmem:[%s23243_s7 + $0x58] sm:$0xff]  ;;  %v13125_v9 = vld [vmem:[%s23241_s5 + $0xa0] sm:$0xff] }
0x1461   :  { %v18636_v26 = vpack.c.bf16 %v5482_v46, %v5481_v43  ;;  %v13155_v43 = vld [vmem:[%s23243_s7 + $0x60] sm:$0xff]  ;;  %v13127_v46 = vld [vmem:[%s23241_s5 + $0xb0] sm:$0xff] }
0x1462   :  { %16108 = vmatmul.mubr.msk.f32.vlgmr.msra.gmra.mrb[68].mxu1 %vm177_vm3, %v21235_v16  ;;  %18645 = vmatprep.subr.bf16.mxu1 %v18644_v21 }
0x1463   :  { %18647 = vmatpush3.bf16.msra.mxu1 %v18644_v21  ;;  %18619 = vmatpush3.bf16.msra.mxu0 %v18616_v22  ;;  %v21356_v21 = vld [vmem:[#allocation6 + $0x10] sm:$0xff]  ;;  %v21362_v22 = vld [vmem:[#allocation6 + $0x18] sm:$0xff] }
0x1464   :  { %18649 = vmatprep.subr.bf16.mxu1 %v18648_v29  ;;  %18621 = vmatprep.subr.bf16.mxu0 %v18620_v35 }
0x1467   :  { %18651 = vmatpush3.bf16.msra.mxu1 %v18648_v29  ;;  %18623 = vmatpush3.bf16.msra.mxu0 %v18620_v35  ;;  %v5484_v29 = vld [vmem:[%s23241_s5 + $0x38] sm:$0xff]  ;;  %v21386_v35 = vld [vmem:[#allocation6 + $0x28] sm:$0x3] }
0x1468   :  { %18653 = vmatprep.subr.bf16.mxu1 %v18652_v37  ;;  %18625 = vmatprep.subr.bf16.mxu0 %v18624_v47 }
0x146b   :  { %18655 = vmatpush3.bf16.msra.mxu1 %v18652_v37  ;;  %18627 = vmatpush3.bf16.msra.mxu0 %v18624_v47  ;;  %v18640_v37 = vpack.c.bf16 %v5484_v29, %v5483_v28  ;;  %v18676_v47 = vpack.c.bf16 %v13130_v44, %v13129_v41  ;;  %v13159_v28 = vld [vmem:[%s23243_s7 + $0x80] sm:$0xff]  ;;  %v13160_v29 = vld [vmem:[%s23243_s7 + $0x88] sm:$0xff]  ;;  %v13165_v44 = vld [vmem:[%s23243_s7 + $0xb0] sm:$0xff] }
0x146c   :  { %18657 = vmatprep.subr.bf16.mxu1 %v18656_v48  ;;  %18629 = vmatprep.subr.bf16.mxu0 %v18628_v54  ;;  %v21582_v31 = vpack.c.bf16 %v13160_v29, %v13159_v28 }
0x146f   :  { %18659 = vmatpush3.bf16.msra.mxu1 %v18656_v48  ;;  %v6194_v48 = vld [vmem:[%s23243_s7] sm:$0xff] }
0x1470   :  { %18661 = vmatprep.subr.bf16.mxu1 %v18660_v55  ;;  %v21417_v53 = vpack.c.bf16 %v6195_v49, %v6194_v48  ;;  %v13090_v48 = vld [vmem:[%s23244_s8] ss:$0 sm:$0xff]  ;;  %v13120_v49 = vld [vmem:[%s23244_s8 + $0x1] ss:$0 sm:$0xff] }
0x1525   :  { %v5296_v50 = vpop.f32.mrb[66].mxu1  ;;  %v5374_v57 = vpop.f32.mrb[72].mxu0 }
0x1526   :  { %v5300_v58 = vadd.f32 %v5296_v50, %v5226_v56  ;;  %v16071_v7 = vpop.f32.mrb[67].mxu1  ;;  %v16090_v13 = vpop.f32.mrb[73].mxu0  ;;  %v5378_v23 = vadd.f32 %v5374_v57, %v5307_v24  ;;  %v6196_v56 = vld [vmem:[%s23243_s7 + $0x10] sm:$0xff]  ;;  %v6197_v50 = vld [vmem:[%s23243_s7 + $0x18] sm:$0xff]  ;;  %v21431_v57 = vld [vmem:[#allocation5 + $0x10] sm:$0xff] }
0x1527   :  { %v13134_v7 = vld [vmem:[%s23242_s6 + $0xa8] sm:$0xff]  ;;  %v21444_v13 = vpack.c.bf16 %v6197_v50, %v6196_v56 }
0x1528   :  { %v13074_v18 = vmul.f32 -1.442695, %v5300_v58  ;;  %v13076_v59 = vmul.f32 -1.442695, %v5378_v23  ;;  %v13133_v58 = vld [vmem:[%s23242_s6 + $0xa0] sm:$0xff] }
0x1529   :  { %v18684_v24 = vpack.c.bf16 %v13134_v7, %v13133_v58  ;;  %v6198_v23 = vld [vmem:[%s23243_s7 + $0x20] sm:$0xff] }
0x152a   :  { %19939 = vpow2.f32 %v13074_v18  ;;  %v21446_v18 = vld [vmem:[#allocation5 + $0x18] sm:$0xff] }
0x152b   :  { %19941 = vpow2.f32 %v13076_v59  ;;  %v6199_v59 = vld [vmem:[%s23243_s7 + $0x28] sm:$0xff] }
0x1534   :  { %v19940_v60 = vpop.eup %19939 }
0x1535   :  { %v5304_v61 = vadd.f32 1.0, %v19940_v60  ;;  %v5452_v62 = vpop.f32.mrb[68].mxu1  ;;  %v19942_v30 = vpop.eup %19941  ;;  %v21459_v60 = vld [vmem:[#allocation5 + $0x20] sm:$0xff] }
0x1536   :  { %v16109_v63 = vpop.f32.mrb[69].mxu1  ;;  %v5382_v0 = vadd.f32 1.0, %v19942_v30  ;;  %v5453_v1 = vadd.f32 %v21124_v38, %v5452_v62  ;;  %v5479_v38 = vld [vmem:[%s23241_s5 + $0x10] sm:$0xff]  ;;  %v13136_v62 = vld [vmem:[%s23242_s6 + $0xb8] sm:$0xff] }
0x1537   :  { %19943 = vrcp.f32 %v5304_v61  ;;  %v18632_v17 = vpack.c.bf16 %v5480_v14, %v5479_v38  ;;  %v13135_v61 = vld [vmem:[%s23242_s6 + $0xb0] sm:$0xff]  ;;  %v21472_v63 = vpack.c.bf16 %v6199_v59, %v6198_v23 }
0x1538   :  { %19945 = vrcp.f32 %v5382_v0  ;;  %v18688_v0 = vpack.c.bf16 %v13136_v62, %v13135_v61  ;;  %v13153_v14 = vld [vmem:[%s23243_s7 + $0x50] sm:$0xff] }
0x1541   :  { %v19944_v36 = vpop.eup %19943 }
0x1542   :  { %v5456_v2 = vmul.f32 %v19944_v36, %v5453_v1  ;;  %v19946_v4 = vpop.eup %19945  ;;  %v6200_v1 = vld [vmem:[%s23243_s7 + $0x30] sm:$0xff]  ;;  %v6201_v36 = vld [vmem:[%s23243_s7 + $0x38] sm:$0xff] }
0x1543   :  { %v5459_v5 = vsub.f32 1.0, %v19946_v4  ;;  %v5461_v8 = vmul.f32 %v19946_v4, %v21235_v16 }
0x1544   :  { %v5457_v42 = vadd.f32 %v5456_v2, %v5385_v3  ;;  %v13121_v2 = vld [vmem:[%s23241_s5 + $0x80] sm:$0xff]  ;;  %v13122_v3 = vld [vmem:[%s23241_s5 + $0x88] sm:$0xff] }
0x1545   :  { %v18692_v4 = vpack.c.bf16 %v13122_v3, %v13121_v2 }
0x1546   :  { %19947 = vtanh.f32 %v5457_v42  ;;  %v21498_v42 = vpack.c.bf16 %v6201_v36, %v6200_v1 }
0x1550   :  { %v19948_v6 = vpop.eup %19947 }
0x1551   :  { %v5460_v10 = vmul.f32 %v19948_v6, %v5459_v5  ;;  %v13151_v5 = vld [vmem:[%s23243_s7 + $0x40] sm:$0xff]  ;;  %v13152_v6 = vld [vmem:[%s23243_s7 + $0x48] sm:$0xff] }
0x1553   :  { %v5462_v12 = vadd.f32 %v5461_v8, %v5460_v10  ;;  %v13123_v8 = vld [vmem:[%s23241_s5 + $0x90] sm:$0xff]  ;;  %v13124_v10 = vld [vmem:[%s23241_s5 + $0x98] sm:$0xff] }
0x1554   :  { %v18696_v38 = vpack.c.bf16 %v13124_v10, %v13123_v8 }
0x1555   :  { %5463 = vst.msk [vmem:[#allocation5 + $0x28] sm:$0x3] %vm183_vm4, %v5462_v12  ;;  %5464 = vst.msk [vmem:[#allocation6] sm:$0x3] %vm183_vm4, %v5462_v12  ;;  %v21515_v12 = vpack.c.bf16 %v13152_v6, %v13151_v5 }
0x155c   :  { %v21332_v16 = vld [vmem:[#allocation6] sm:$0xff]  ;;  %v21474_v30 = vld [vmem:[#allocation5 + $0x28] sm:$0x3] }
0x155d   :  { %16126 = vmatprep.mubr.msk.f32.mxu0 %vm177_vm3, %v21332_v16  ;;  %16176 = vmatprep.mubr.msk.f32.mxu1 %vm177_vm3, %v21332_v16 }
0x155e   :  { %16127 = vmatmul.mubr.msk.f32.vlgmr.msra.gmra.mrb[74].mxu0 %vm177_vm3, %v21338_v33  ;;  %16177 = vmatmul.mubr.msk.f32.vlgmr.msra.gmra.mrb[70].mxu1 %vm177_vm3, %v21338_v33 }
0x155f   :  { %18631 = vmatpush3.bf16.msra.mxu0 %v18628_v54  ;;  %18663 = vmatpush3.bf16.msra.mxu1 %v18660_v55  ;;  %v21419_v54 = vld [vmem:[#allocation5 + $0x8] sm:$0xff]  ;;  %v18680_v55 = vpack.c.bf16 %v13132_v52, %v13131_v51 }
0x1560   :  { %16129 = vmatprep.mubr.msk.f32.mxu0 %vm177_vm3, %v21356_v21  ;;  %16179 = vmatprep.mubr.msk.f32.mxu1 %vm177_vm3, %v21356_v21 }
0x1561   :  { %18633 = vmatprep.subr.bf16.mxu0 %v18632_v17  ;;  %18665 = vmatprep.subr.bf16.mxu1 %v18664_v39 }
0x1562   :  { %16130 = vmatmul.mubr.msk.f32.gmra.mrb[76].mxu0 %vm177_vm3, %v21362_v22  ;;  %16180 = vmatmul.mubr.msk.f32.gmra.mrb[72].mxu1 %vm177_vm3, %v21362_v22 }
0x1563   :  { %18635 = vmatpush3.bf16.msra.mxu0 %v18632_v17  ;;  %18667 = vmatpush3.bf16.msra.mxu1 %v18664_v39  ;;  %v21535_v17 = vpack.c.bf16 %v13154_v15, %v13153_v14  ;;  %v13150_v15 = vld [vmem:[%s23244_s8 + $0x2] ss:$0 sm:$0xff] }
0x1564   :  { %16132 = vmatprep.mubr.msk.f32.mxu0 %vm177_vm3, %v21380_v34  ;;  %16182 = vmatprep.mubr.msk.f32.mxu1 %vm177_vm3, %v21380_v34 }
0x1565   :  { %18637 = vmatprep.subr.bf16.mxu0 %v18636_v26  ;;  %18669 = vmatprep.subr.bf16.mxu1 %v18668_v27 }
0x1566   :  { %16133 = vmatmul.mubr.msk.f32.gmra.mrb[78].mxu0 %vm177_vm3, %v21386_v35  ;;  %16183 = vmatmul.mubr.msk.f32.gmra.mrb[74].mxu1 %vm177_vm3, %v21386_v35 }
0x1567   :  { %18639 = vmatpush3.bf16.msra.mxu0 %v18636_v26  ;;  %18671 = vmatpush3.bf16.msra.mxu1 %v18668_v27  ;;  %v13157_v26 = vld [vmem:[%s23243_s7 + $0x70] sm:$0xff] }
0x1568   :  { %16151 = vmatprep.mubr.msk.f32.mxu0 %vm177_vm3, %v21398_v45  ;;  %16201 = vmatprep.mubr.msk.f32.mxu1 %vm177_vm3, %v21398_v45 }
0x1569   :  { %18641 = vmatprep.subr.bf16.mxu0 %v18640_v37  ;;  %18673 = vmatprep.subr.bf16.mxu1 %v18672_v40 }
0x156b   :  { %18643 = vmatpush3.bf16.msra.mxu0 %v18640_v37  ;;  %18675 = vmatpush3.bf16.msra.mxu1 %v18672_v40  ;;  %v13163_v37 = vld [vmem:[%s23243_s7 + $0xa0] sm:$0xff]  ;;  %v13164_v40 = vld [vmem:[%s23243_s7 + $0xa8] sm:$0xff] }
0x156c   :  { %18677 = vmatprep.subr.bf16.mxu0 %v18676_v47  ;;  %18708 = vmatprep.subr.bf16.mxu1 %v20216_v11  ;;  %v21615_v41 = vpack.c.bf16 %v13164_v40, %v13163_v37 }
0x156e   :  { %16152 = vmatmul.mubr.msk.f32.vlgmr.msra.gmra.mrb[74].mxu0 %vm177_vm3, %v21419_v54  ;;  %16202 = vmatmul.mubr.msk.f32.vlgmr.msra.gmra.mrb[70].mxu1 %vm177_vm3, %v21419_v54 }
0x156f   :  { %16154 = vmatprep.mubr.msk.f32.mxu0 %vm177_vm3, %v21431_v57  ;;  %16204 = vmatprep.mubr.msk.f32.mxu1 %vm177_vm3, %v21431_v57 }
0x1570   :  { %18679 = vmatpush3.bf16.msra.mxu0 %v18676_v47  ;;  %18710 = vmatpush3.bf16.msra.mxu1 %v21417_v53 }
0x1571   :  { %18681 = vmatprep.subr.bf16.mxu0 %v18680_v55  ;;  %18711 = vmatprep.subr.bf16.mxu1 %v20216_v11 }
0x1572   :  { %16155 = vmatmul.mubr.msk.f32.gmra.mrb[76].mxu0 %vm177_vm3, %v21446_v18  ;;  %16205 = vmatmul.mubr.msk.f32.gmra.mrb[72].mxu1 %vm177_vm3, %v21446_v18 }
0x1573   :  { %16157 = vmatprep.mubr.msk.f32.mxu0 %vm177_vm3, %v21459_v60  ;;  %16207 = vmatprep.mubr.msk.f32.mxu1 %vm177_vm3, %v21459_v60 }
0x1574   :  { %18683 = vmatpush3.bf16.msra.mxu0 %v18680_v55  ;;  %18713 = vmatpush3.bf16.msra.mxu1 %v21444_v13 }
0x1575   :  { %18685 = vmatprep.subr.bf16.mxu0 %v18684_v24  ;;  %18714 = vmatprep.subr.bf16.mxu1 %v20216_v11 }
0x1576   :  { %16158 = vmatmul.mubr.msk.f32.gmra.mrb[78].mxu0 %vm177_vm3, %v21474_v30  ;;  %16208 = vmatmul.mubr.msk.f32.gmra.mrb[74].mxu1 %vm177_vm3, %v21474_v30 }
0x1577   :  { %16226 = vmatprep.mubr.msk.f32.mxu0 %vm177_vm3, %v21332_v16  ;;  %16276 = vmatprep.mubr.msk.f32.mxu1 %vm20217_vm2, %v20218_v25  ;;  %v13126_v16 = vld [vmem:[%s23241_s5 + $0xa8] sm:$0xff] }
0x1578   :  { %18687 = vmatpush3.bf16.msra.mxu0 %v18684_v24  ;;  %18716 = vmatpush3.bf16.msra.mxu1 %v21472_v63  ;;  %v18700_v39 = vpack.c.bf16 %v13126_v16, %v13125_v9 }
0x1579   :  { %18689 = vmatprep.subr.bf16.mxu0 %v18688_v0  ;;  %18717 = vmatprep.subr.bf16.mxu1 %v20216_v11 }
0x157c   :  { %18691 = vmatpush3.bf16.msra.mxu0 %v18688_v0  ;;  %18719 = vmatpush3.bf16.msra.mxu1 %v21498_v42 }
0x157d   :  { %18693 = vmatprep.subr.bf16.mxu0 %v18692_v4  ;;  %18720 = vmatprep.subr.bf16.mxu1 %v20216_v11 }
0x157f   :  { %16227 = vmatmul.mubr.msk.f32.vlgmr.msra.gmra.mrb[80].mxu0 %vm177_vm3, %v21338_v33  ;;  %16277 = vmatmul.mubr.f32.vlgmr.msra.gmra.mrb[76].mxu1 %v20218_v25  ;;  %v13156_v33 = vld [vmem:[%s23243_s7 + $0x68] sm:$0xff] }
0x1580   :  { %16229 = vmatprep.mubr.msk.f32.mxu0 %vm177_vm3, %v21356_v21  ;;  %18695 = vmatpush3.bf16.msra.mxu0 %v18692_v4  ;;  %v21557_v20 = vpack.c.bf16 %v13156_v33, %v13155_v43  ;;  %v18704_v21 = vpack.c.bf16 %v13128_v19, %v13127_v46 }
0x1581   :  { %18722 = vmatpush3.bf16.msra.mxu1 %v21515_v12  ;;  %18697 = vmatprep.subr.bf16.mxu0 %v18696_v38 }
0x1582   :  { %18723 = vmatprep.subr.bf16.mxu1 %v20216_v11  ;;  %16295 = vmatprep.mubr.msk.f32.mxu1 %vm20217_vm2, %v20218_v25 }
0x1583   :  { %16230 = vmatmul.mubr.msk.f32.gmra.mrb[82].mxu0 %vm177_vm3, %v21362_v22  ;;  %v13158_v22 = vld [vmem:[%s23243_s7 + $0x78] sm:$0xff] }
0x1584   :  { %16232 = vmatprep.mubr.msk.f32.mxu0 %vm177_vm3, %v21380_v34  ;;  %18699 = vmatpush3.bf16.msra.mxu0 %v18696_v38  ;;  %v21571_v27 = vpack.c.bf16 %v13158_v22, %v13157_v26  ;;  %v13162_v34 = vld [vmem:[%s23243_s7 + $0x98] sm:$0xff] }
0x1585   :  { %18725 = vmatpush3.bf16.msra.mxu1 %v21535_v17  ;;  %18701 = vmatprep.subr.bf16.mxu0 %v18700_v39 }
0x1586   :  { %18726 = vmatprep.subr.bf16.mxu1 %v20216_v11 }
0x1587   :  { %16233 = vmatmul.mubr.msk.f32.gmra.mrb[84].mxu0 %vm177_vm3, %v21386_v35  ;;  %v21597_v35 = vpack.c.bf16 %v13162_v34, %v13161_v32 }
0x1588   :  { %18703 = vmatpush3.bf16.msra.mxu0 %v18700_v39  ;;  %16251 = vmatprep.mubr.msk.f32.mxu0 %vm177_vm3, %v21398_v45  ;;  %v13166_v45 = vld [vmem:[%s23243_s7 + $0xb8] sm:$0xff] }
0x1589   :  { %18728 = vmatpush3.bf16.msra.mxu1 %v21557_v20  ;;  %18705 = vmatprep.subr.bf16.mxu0 %v18704_v21  ;;  %v21631_v47 = vpack.c.bf16 %v13166_v45, %v13165_v44 }
0x158a   :  { %18729 = vmatprep.subr.bf16.mxu1 %v20216_v11 }
0x158c   :  { %18707 = vmatpush3.bf16.msra.mxu0 %v18704_v21 }
0x158d   :  { %18731 = vmatpush3.bf16.msra.mxu1 %v21571_v27  ;;  %18732 = vmatprep.subr.bf16.mxu0 %v20216_v11 }
0x158e   :  { %18744 = vmatprep.subr.bf16.mxu1 %v20216_v11 }
0x158f   :  { %16252 = vmatmul.mubr.msk.f32.vlgmr.msra.gmra.mrb[80].mxu0 %vm177_vm3, %v21419_v54 }
0x1590   :  { %16296 = vmatmul.mubr.f32.vlgmr.msra.gmra.mrb[78].mxu1 %v20218_v25  ;;  %16254 = vmatprep.mubr.msk.f32.mxu0 %vm177_vm3, %v21431_v57 }
0x1591   :  { %18734 = vmatpush3.bf16.msra.mxu0 %v21582_v31  ;;  %18746 = vmatpush3.bf16.msra.mxu1 %v21417_v53 }
0x1592   :  { %18735 = vmatprep.subr.bf16.mxu0 %v20216_v11  ;;  %18747 = vmatprep.subr.bf16.mxu1 %v20216_v11 }
0x1593   :  { %16255 = vmatmul.mubr.msk.f32.gmra.mrb[82].mxu0 %vm177_vm3, %v21446_v18  ;;  %16333 = vmatprep.mubr.msk.f32.mxu1 %vm20217_vm2, %v20218_v25 }
0x1594   :  { %16257 = vmatprep.mubr.msk.f32.mxu0 %vm177_vm3, %v21459_v60 }
0x1595   :  { %18737 = vmatpush3.bf16.msra.mxu0 %v21597_v35  ;;  %18749 = vmatpush3.bf16.msra.mxu1 %v21444_v13 }
0x1596   :  { %18738 = vmatprep.subr.bf16.mxu0 %v20216_v11  ;;  %18750 = vmatprep.subr.bf16.mxu1 %v20216_v11 }
0x1597   :  { %16258 = vmatmul.mubr.msk.f32.gmra.mrb[84].mxu0 %vm177_vm3, %v21474_v30 }
0x1598   :  { %16314 = vmatprep.mubr.msk.f32.mxu0 %vm20217_vm2, %v20218_v25 }
0x1599   :  { %18740 = vmatpush3.bf16.msra.mxu0 %v21615_v41  ;;  %18752 = vmatpush3.bf16.msra.mxu1 %v21472_v63 }
0x159a   :  { %18741 = vmatprep.subr.bf16.mxu0 %v20216_v11  ;;  %18753 = vmatprep.subr.bf16.mxu1 %v20216_v11 }
0x159d   :  { %18743 = vmatpush3.bf16.msra.mxu0 %v21631_v47  ;;  %18755 = vmatpush3.bf16.msra.mxu1 %v21498_v42 }
0x159e   :  { %18756 = vmatprep.subr.bf16.mxu0 %v20216_v11  ;;  %18768 = vmatprep.subr.bf16.mxu1 %v20216_v11 }
0x15a0   :  { %16315 = vmatmul.mubr.f32.vlgmr.msra.gmra.mrb[86].mxu0 %v20218_v25 }
0x15a1   :  { %18758 = vmatpush3.bf16.msra.mxu0 %v21515_v12  ;;  %16352 = vmatprep.mubr.msk.f32.mxu0 %vm20217_vm2, %v20218_v25 }
0x15a2   :  { %18759 = vmatprep.subr.bf16.mxu0 %v20216_v11 }
0x15a5   :  { %18761 = vmatpush3.bf16.msra.mxu0 %v21535_v17 }
0x15a6   :  { %18762 = vmatprep.subr.bf16.mxu0 %v20216_v11 }
0x15a9   :  { %18764 = vmatpush3.bf16.msra.mxu0 %v21557_v20 }
0x15aa   :  { %18765 = vmatprep.subr.bf16.mxu0 %v20216_v11 }
0x15ad   :  { %18767 = vmatpush3.bf16.msra.mxu0 %v21571_v27 }
0x15ae   :  { %18780 = vmatprep.subr.bf16.mxu0 %v20216_v11 }
0x1641   :  { %v16153_v51 = vpop.f32.mrb[74].mxu0  ;;  %v16203_v52 = vpop.f32.mrb[70].mxu1 }
0x1642   :  { %v5727_v54 = vadd.f32 %v16153_v51, %v13090_v48  ;;  %v5955_v55 = vadd.f32 %v16203_v52, %v13120_v49  ;;  %v5690_v56 = vpop.f32.mrb[75].mxu0  ;;  %v5917_v50 = vpop.f32.mrb[71].mxu1 }
0x1643   :  { %v5726_v57 = vadd.f32 %v13090_v48, %v5690_v56  ;;  %v5954_v58 = vadd.f32 %v13120_v49, %v5917_v50 }
0x1644   :  { %5733 = vst.msk [vmem:[#allocation2 + $0x8] sm:$0xff] %vm177_vm3, %v5727_v54  ;;  %5961 = vst.msk [vmem:[#allocation3 + $0x8] sm:$0xff] %vm177_vm3, %v5955_v55 }
0x1645   :  { %5732 = vst.msk [vmem:[#allocation2] sm:$0xff] %vm177_vm3, %v5726_v57  ;;  %5960 = vst.msk [vmem:[#allocation3] sm:$0xff] %vm177_vm3, %v5954_v58  ;;  %v16156_v7 = vpop.f32.mrb[76].mxu0  ;;  %v16206_v18 = vpop.f32.mrb[72].mxu1 }
0x1646   :  { %v5729_v24 = vadd.f32 %v16156_v7, %v13090_v48  ;;  %v5957_v23 = vadd.f32 %v16206_v18, %v13120_v49  ;;  %v5700_v59 = vpop.f32.mrb[77].mxu0  ;;  %v5927_v60 = vpop.f32.mrb[73].mxu1 }
0x1647   :  { %v5728_v61 = vadd.f32 %v13090_v48, %v5700_v59  ;;  %v5956_v62 = vadd.f32 %v13120_v49, %v5927_v60 }
0x1648   :  { %5735 = vst.msk [vmem:[#allocation2 + $0x18] sm:$0xff] %vm177_vm3, %v5729_v24  ;;  %5963 = vst.msk [vmem:[#allocation3 + $0x18] sm:$0xff] %vm177_vm3, %v5957_v23 }
0x1649   :  { %5734 = vst.msk [vmem:[#allocation2 + $0x10] sm:$0xff] %vm177_vm3, %v5728_v61  ;;  %5962 = vst.msk [vmem:[#allocation3 + $0x10] sm:$0xff] %vm177_vm3, %v5956_v62  ;;  %v16159_v30 = vpop.f32.mrb[78].mxu0  ;;  %v16209_v0 = vpop.f32.mrb[74].mxu1  ;;  %v6461_v62 = vld [vmem:[%s23246_s10] sm:$0xff] }
0x164a   :  { %v5731_v1 = vadd.f32 %v16159_v30, %v13090_v48  ;;  %v5959_v36 = vadd.f32 %v16209_v0, %v13120_v49  ;;  %v5710_v2 = vpop.f32.mrb[79].mxu0  ;;  %v5937_v3 = vpop.f32.mrb[75].mxu1  ;;  %v6462_v30 = vld [vmem:[%s23246_s10 + $0x8] sm:$0xff] }
0x164b   :  { %v5730_v4 = vadd.f32 %v13090_v48, %v5710_v2  ;;  %v5958_v5 = vadd.f32 %v13120_v49, %v5937_v3  ;;  %v21681_v49 = vld [vmem:[%s23245_s9] ss:$0 sm:$0xff]  ;;  %v18793_v0 = vpack.c.bf16 %v6462_v30, %v6461_v62 }
0x164c   :  { %5737 = vst.msk [vmem:[#allocation2 + $0x28] sm:$0x3] %vm183_vm4, %v5731_v1  ;;  %5965 = vst.msk [vmem:[#allocation3 + $0x28] sm:$0x3] %vm183_vm4, %v5959_v36  ;;  %v6221_v6 = vld [vmem:[#allocation2] sm:$0x3] }
0x164d   :  { %5736 = vst.msk [vmem:[#allocation2 + $0x20] sm:$0xff] %vm177_vm3, %v5730_v4  ;;  %5964 = vst.msk [vmem:[#allocation3 + $0x20] sm:$0xff] %vm177_vm3, %v5958_v5  ;;  %v6299_v39 = vld [vmem:[#allocation3] sm:$0x3]  ;;  %v6464_v36 = vld [vmem:[%s23246_s10 + $0x18] sm:$0xff] }
0x164e   :  { %v6463_v1 = vld [vmem:[%s23246_s10 + $0x10] sm:$0xff]  ;;  %v6465_v3 = vld [vmem:[%s23246_s10 + $0x20] sm:$0xff]  ;;  %v6466_v4 = vld [vmem:[%s23246_s10 + $0x28] sm:$0xff] }
0x164f   :  { %v18796_v2 = vpack.c.bf16 %v6464_v36, %v6463_v1  ;;  %v18799_v5 = vpack.c.bf16 %v6466_v4, %v6465_v3  ;;  %v13192_v3 = vld [vmem:[%s23246_s10 + $0x90] sm:$0xff] }
0x1652   :  { %v6288_v8 = vpop.f32.mrb[76].mxu1 }
0x1653   :  { %v6292_v10 = vadd.f32 %v6288_v8, %v6221_v6  ;;  %v16278_v38 = vpop.f32.mrb[77].mxu1  ;;  %v6467_v6 = vld [vmem:[%s23246_s10 + $0x30] sm:$0xff]  ;;  %v6468_v8 = vld [vmem:[%s23246_s10 + $0x38] sm:$0xff] }
0x1654   :  { %v13175_v38 = vld [vmem:[%s23246_s10 + $0x40] sm:$0xff] }
0x1655   :  { %v13167_v14 = vmul.f32 -1.442695, %v6292_v10  ;;  %v18802_v10 = vpack.c.bf16 %v6468_v8, %v6467_v6  ;;  %v13194_v8 = vld [vmem:[%s23246_s10 + $0xa0] sm:$0xff] }
0x1657   :  { %19949 = vpow2.f32 %v13167_v14  ;;  %v13176_v14 = vld [vmem:[%s23246_s10 + $0x48] sm:$0xff] }
0x1661   :  { %v19950_v46 = vpop.eup %19949 }
0x1662   :  { %v16253_v9 = vpop.f32.mrb[80].mxu0  ;;  %v6296_v29 = vadd.f32 1.0, %v19950_v46 }
0x1663   :  { %v6183_v16 = vadd.f32 %v16253_v9, %v13150_v15  ;;  %v6366_v43 = vpop.f32.mrb[78].mxu1  ;;  %v6145_v33 = vpop.f32.mrb[81].mxu0  ;;  %v18781_v9 = vpack.c.bf16 %v13176_v14, %v13175_v38  ;;  %v13196_v14 = vld [vmem:[%s23246_s10 + $0xb0] sm:$0xff] }
0x1664   :  { %v6370_v19 = vadd.f32 %v6366_v43, %v6299_v39  ;;  %v6182_v21 = vadd.f32 %v13150_v15, %v6145_v33  ;;  %v16297_v26 = vpop.f32.mrb[79].mxu1  ;;  %v13179_v43 = vld [vmem:[%s23246_s10 + $0x60] sm:$0xff]  ;;  %v13180_v33 = vld [vmem:[%s23246_s10 + $0x68] sm:$0xff] }
0x1665   :  { %6189 = vst.msk [vmem:[#allocation4 + $0x8] sm:$0xff] %vm177_vm3, %v6183_v16  ;;  %v13178_v16 = vld [vmem:[%s23246_s10 + $0x58] sm:$0xff]  ;;  %v18787_v46 = vpack.c.bf16 %v13180_v33, %v13179_v43 }
0x1666   :  { %v13168_v22 = vmul.f32 -1.442695, %v6370_v19  ;;  %6188 = vst.msk [vmem:[#allocation4] sm:$0xff] %vm177_vm3, %v6182_v21  ;;  %v16256_v28 = vpop.f32.mrb[82].mxu0  ;;  %v13181_v19 = vld [vmem:[%s23246_s10 + $0x70] sm:$0xff]  ;;  %v13182_v21 = vld [vmem:[%s23246_s10 + $0x78] sm:$0xff] }
0x1667   :  { %v6185_v32 = vadd.f32 %v16256_v28, %v13150_v15  ;;  %v6155_v34 = vpop.f32.mrb[83].mxu0  ;;  %v18790_v26 = vpack.c.bf16 %v13182_v21, %v13181_v19  ;;  %v6858_v19 = vld [vmem:[#allocation2 + $0x4] sm:$0x3] }
0x1668   :  { %19951 = vpow2.f32 %v13168_v22  ;;  %v6184_v37 = vadd.f32 %v13150_v15, %v6155_v34  ;;  %v6469_v22 = vld [vmem:[#allocation2 + $0x2] sm:$0x3] }
0x1669   :  { %6191 = vst.msk [vmem:[#allocation4 + $0x18] sm:$0xff] %vm177_vm3, %v6185_v32  ;;  %19953 = vrcp.f32 %v6296_v29 }
0x166a   :  { %6190 = vst.msk [vmem:[#allocation4 + $0x10] sm:$0xff] %vm177_vm3, %v6184_v37  ;;  %v16259_v40 = vpop.f32.mrb[84].mxu0 }
0x166b   :  { %v6187_v44 = vadd.f32 %v16259_v40, %v13150_v15  ;;  %v6165_v45 = vpop.f32.mrb[85].mxu0 }
0x166c   :  { %v6186_v48 = vadd.f32 %v13150_v15, %v6165_v45  ;;  %v13177_v15 = vld [vmem:[%s23246_s10 + $0x50] sm:$0xff] }
0x166d   :  { %6193 = vst.msk [vmem:[#allocation4 + $0x28] sm:$0x3] %vm183_vm4, %v6187_v44  ;;  %v6377_v58 = vld [vmem:[#allocation4] sm:$0x3]  ;;  %v18784_v39 = vpack.c.bf16 %v13178_v16, %v13177_v15  ;;  %v6550_v44 = vld [vmem:[#allocation3 + $0x2] sm:$0x3] }
0x166e   :  { %6192 = vst.msk [vmem:[#allocation4 + $0x20] sm:$0xff] %vm177_vm3, %v6186_v48  ;;  %v13197_v15 = vld [vmem:[%s23246_s10 + $0xb8] sm:$0xff] }
0x1672   :  { %v19952_v51 = vpop.eup %19951 }
0x1673   :  { %v6374_v52 = vadd.f32 1.0, %v19952_v51  ;;  %v6450_v54 = vpop.f32.mrb[86].mxu0  ;;  %v19954_v50 = vpop.eup %19953 }
0x1674   :  { %v6451_v55 = vadd.f32 %v21681_v49, %v6450_v54  ;;  %v16316_v56 = vpop.f32.mrb[87].mxu0 }
0x1675   :  { %19955 = vrcp.f32 %v6374_v52 }
0x1676   :  { %v6454_v57 = vmul.f32 %v19954_v50, %v6451_v55 }
0x1678   :  { %v6455_v7 = vadd.f32 %v6454_v57, %v6377_v58 }
0x167a   :  { %19957 = vtanh.f32 %v6455_v7 }
0x167f   :  { %v19956_v18 = vpop.eup %19955 }
0x1680   :  { %v6457_v24 = vsub.f32 1.0, %v19956_v18  ;;  %v6459_v60 = vmul.f32 0.0, %v19956_v18  ;;  %v6628_v18 = vld [vmem:[#allocation4 + $0x2] sm:$0x3] }
0x1684   :  { %v19958_v23 = vpop.eup %19957 }
0x1685   :  { %v6458_v59 = vmul.f32 %v19958_v23, %v6457_v24 }
0x1687   :  { %v21684_v61 = vadd.f32 %v6459_v60, %v6458_v59 }
0x1689   :  { %16334 = vmatmul.mubr.msk.f32.vlgmr.msra.gmra.mrb[80].mxu1 %vm177_vm3, %v21684_v61  ;;  %16353 = vmatmul.mubr.msk.f32.vlgmr.msra.gmra.mrb[88].mxu0 %vm177_vm3, %v21684_v61 }
0x168a   :  { %18770 = vmatpush3.bf16.msra.mxu1 %v21582_v31  ;;  %16371 = vmatprep.mubr.msk.f32.mxu1 %vm20217_vm2, %v20218_v25 }
0x168b   :  { %18771 = vmatprep.subr.bf16.mxu1 %v20216_v11  ;;  %16390 = vmatprep.mubr.msk.f32.mxu0 %vm20217_vm2, %v20218_v25 }
0x168c   :  { %18782 = vmatpush3.bf16.msra.mxu0 %v18781_v9  ;;  %v18850_v9 = vpack.c.bf16 %v13197_v15, %v13196_v14 }
0x168d   :  { %18783 = vmatprep.subr.bf16.mxu0 %v20216_v11 }
0x168e   :  { %18773 = vmatpush3.bf16.msra.mxu1 %v21597_v35 }
0x168f   :  { %18774 = vmatprep.subr.bf16.mxu1 %v20216_v11 }
0x1690   :  { %18785 = vmatpush3.bf16.msra.mxu0 %v18784_v39 }
0x1691   :  { %18786 = vmatprep.subr.bf16.mxu0 %v20216_v11 }
0x1692   :  { %18776 = vmatpush3.bf16.msra.mxu1 %v21615_v41 }
0x1693   :  { %18777 = vmatprep.subr.bf16.mxu1 %v20216_v11 }
0x1694   :  { %18788 = vmatpush3.bf16.msra.mxu0 %v18787_v46 }
0x1695   :  { %18789 = vmatprep.subr.bf16.mxu0 %v20216_v11 }
0x1696   :  { %18779 = vmatpush3.bf16.msra.mxu1 %v21631_v47 }
0x1697   :  { %18792 = vmatprep.subr.bf16.mxu1 %v20216_v11 }
0x1698   :  { %18791 = vmatpush3.bf16.msra.mxu0 %v18790_v26 }
0x1699   :  { %16372 = vmatmul.mubr.msk.f32.vlgmr.msra.gmra.mrb[82].mxu1 %vm177_vm3, %v21684_v61  ;;  %18804 = vmatprep.subr.bf16.mxu0 %v20216_v11 }
0x169a   :  { %18794 = vmatpush3.bf16.msra.mxu1 %v18793_v0  ;;  %16409 = vmatprep.mubr.msk.f32.mxu1 %vm20217_vm2, %v20218_v25 }
0x169b   :  { %18795 = vmatprep.subr.bf16.mxu1 %v20216_v11 }
0x169e   :  { %18797 = vmatpush3.bf16.msra.mxu1 %v18796_v2  ;;  %v13191_v2 = vld [vmem:[%s23246_s10 + $0x88] sm:$0xff] }
0x169f   :  { %18798 = vmatprep.subr.bf16.mxu1 %v20216_v11 }
0x16a2   :  { %18800 = vmatpush3.bf16.msra.mxu1 %v18799_v5  ;;  %v13193_v5 = vld [vmem:[%s23246_s10 + $0x98] sm:$0xff] }
0x16a3   :  { %18801 = vmatprep.subr.bf16.mxu1 %v20216_v11  ;;  %v18844_v6 = vpack.c.bf16 %v13193_v5, %v13192_v3  ;;  %v13210_v3 = vld [vmem:[%s23246_s10 + $0xf0] sm:$0xff] }
0x16a6   :  { %18803 = vmatpush3.bf16.msra.mxu1 %v18802_v10  ;;  %v13195_v10 = vld [vmem:[%s23246_s10 + $0xa8] sm:$0xff] }
0x16a7   :  { %18816 = vmatprep.subr.bf16.mxu1 %v20216_v11  ;;  %v18847_v38 = vpack.c.bf16 %v13195_v10, %v13194_v8  ;;  %v7175_v8 = vld [vmem:[#allocation2 + $0x6] sm:$0x3] }
0x16a9   :  { %16410 = vmatmul.mubr.msk.f32.vlgmr.msra.gmra.mrb[84].mxu1 %vm177_vm3, %v21684_v61 }
0x16aa   :  { %18818 = vmatpush3.bf16.msra.mxu1 %v21515_v12  ;;  %16447 = vmatprep.mubr.msk.f32.mxu1 %vm20217_vm2, %v20218_v25 }
0x16ab   :  { %18819 = vmatprep.subr.bf16.mxu1 %v20216_v11 }
0x16ae   :  { %18821 = vmatpush3.bf16.msra.mxu1 %v21535_v17 }
0x16af   :  { %18822 = vmatprep.subr.bf16.mxu1 %v20216_v11 }
0x16b2   :  { %18824 = vmatpush3.bf16.msra.mxu1 %v21557_v20 }
0x16b3   :  { %18825 = vmatprep.subr.bf16.mxu1 %v20216_v11 }
0x16b6   :  { %18827 = vmatpush3.bf16.msra.mxu1 %v21571_v27 }
0x16b7   :  { %18840 = vmatprep.subr.bf16.mxu1 %v20216_v11 }
0x175c   :  { %v6539_v28 = vpop.f32.mrb[80].mxu1  ;;  %v6617_v29 = vpop.f32.mrb[88].mxu0 }
0x175d   :  { %v6543_v32 = vadd.f32 %v6539_v28, %v6469_v22  ;;  %v16335_v34 = vpop.f32.mrb[81].mxu1  ;;  %v16354_v37 = vpop.f32.mrb[89].mxu0  ;;  %v6621_v45 = vadd.f32 %v6617_v29, %v6550_v44  ;;  %v6936_v28 = vld [vmem:[#allocation3 + $0x4] sm:$0x3] }
0x175f   :  { %v13171_v40 = vmul.f32 -1.442695, %v6543_v32  ;;  %v13173_v48 = vmul.f32 -1.442695, %v6621_v45 }
0x1761   :  { %19959 = vpow2.f32 %v13171_v40 }
0x1762   :  { %19961 = vpow2.f32 %v13173_v48 }
0x176b   :  { %v19960_v51 = vpop.eup %19959 }
0x176c   :  { %v6547_v52 = vadd.f32 1.0, %v19960_v51  ;;  %v6695_v54 = vpop.f32.mrb[82].mxu1  ;;  %v19962_v56 = vpop.eup %19961 }
0x176d   :  { %v16373_v55 = vpop.f32.mrb[83].mxu1  ;;  %v6625_v50 = vadd.f32 1.0, %v19962_v56  ;;  %v6696_v57 = vadd.f32 %v21681_v49, %v6695_v54  ;;  %v7014_v56 = vld [vmem:[#allocation4 + $0x4] sm:$0x3] }
0x176e   :  { %19963 = vrcp.f32 %v6547_v52 }
0x176f   :  { %19965 = vrcp.f32 %v6625_v50 }
0x1778   :  { %v19964_v58 = vpop.eup %19963 }
0x1779   :  { %v6699_v7 = vmul.f32 %v19964_v58, %v6696_v57  ;;  %v19966_v60 = vpop.eup %19965 }
0x177a   :  { %v6702_v62 = vsub.f32 1.0, %v19966_v60  ;;  %v6704_v1 = vmul.f32 %v19966_v60, %v21684_v61  ;;  %v13190_v61 = vld [vmem:[%s23246_s10 + $0x80] sm:$0xff]  ;;  %v13205_v60 = vld [vmem:[%s23246_s10 + $0xc8] sm:$0xff] }
0x177b   :  { %v6700_v24 = vadd.f32 %v6699_v7, %v6628_v18  ;;  %v18841_v4 = vpack.c.bf16 %v13191_v2, %v13190_v61  ;;  %v13209_v61 = vld [vmem:[%s23246_s10 + $0xe8] sm:$0xff] }
0x177c   :  { %v21775_v23 = vpop.f32.mrb[84].mxu1 }
0x177d   :  { %19967 = vtanh.f32 %v6700_v24  ;;  %v16411_v59 = vpop.f32.mrb[85].mxu1 }
0x177e   :  { %v13204_v59 = vld [vmem:[%s23246_s10 + $0xc0] sm:$0xff] }
0x1787   :  { %v19968_v30 = vpop.eup %19967 }
0x1788   :  { %v6703_v0 = vmul.f32 %v19968_v30, %v6702_v62  ;;  %v18889_v62 = vpack.c.bf16 %v13205_v60, %v13204_v59  ;;  %v13206_v30 = vld [vmem:[%s23246_s10 + $0xd0] sm:$0xff]  ;;  %v13223_v59 = vld [vmem:[%s23246_s10 + $0x128] sm:$0xff] }
0x178a   :  { %v21778_v36 = vadd.f32 %v6704_v1, %v6703_v0  ;;  %v13207_v0 = vld [vmem:[%s23246_s10 + $0xd8] sm:$0xff] }
0x178b   :  { %v18892_v1 = vpack.c.bf16 %v13207_v0, %v13206_v30  ;;  %v13225_v30 = vld [vmem:[%s23246_s10 + $0x138] sm:$0xff] }
0x178c   :  { %16391 = vmatmul.mubr.msk.f32.vlgmr.msra.gmra.mrb[90].mxu0 %vm177_vm3, %v21778_v36  ;;  %16448 = vmatmul.mubr.msk.f32.vlgmr.msra.gmra.mrb[86].mxu1 %vm177_vm3, %v21778_v36 }
0x178d   :  { %18806 = vmatpush3.bf16.msra.mxu0 %v21417_v53  ;;  %16428 = vmatprep.mubr.msk.f32.mxu0 %vm20217_vm2, %v20218_v25 }
0x178e   :  { %18807 = vmatprep.subr.bf16.mxu0 %v20216_v11  ;;  %16485 = vmatprep.mubr.msk.f32.mxu1 %vm20217_vm2, %v20218_v25 }
0x178f   :  { %18842 = vmatpush3.bf16.msra.mxu1 %v18841_v4  ;;  %v13211_v4 = vld [vmem:[%s23246_s10 + $0xf8] sm:$0xff] }
0x1790   :  { %18843 = vmatprep.subr.bf16.mxu1 %v20216_v11  ;;  %v18898_v5 = vpack.c.bf16 %v13211_v4, %v13210_v3 }
0x1791   :  { %18809 = vmatpush3.bf16.msra.mxu0 %v21444_v13 }
0x1792   :  { %18810 = vmatprep.subr.bf16.mxu0 %v20216_v11 }
0x1793   :  { %18845 = vmatpush3.bf16.msra.mxu1 %v18844_v6 }
0x1794   :  { %18846 = vmatprep.subr.bf16.mxu1 %v20216_v11 }
0x1795   :  { %18812 = vmatpush3.bf16.msra.mxu0 %v21472_v63 }
0x1796   :  { %18813 = vmatprep.subr.bf16.mxu0 %v20216_v11 }
0x1797   :  { %18848 = vmatpush3.bf16.msra.mxu1 %v18847_v38 }
0x1798   :  { %18849 = vmatprep.subr.bf16.mxu1 %v20216_v11 }
0x1799   :  { %18815 = vmatpush3.bf16.msra.mxu0 %v21498_v42 }
0x179a   :  { %18828 = vmatprep.subr.bf16.mxu0 %v20216_v11 }
0x179b   :  { %18851 = vmatpush3.bf16.msra.mxu1 %v18850_v9 }
0x179c   :  { %16429 = vmatmul.mubr.msk.f32.vlgmr.msra.gmra.mrb[92].mxu0 %vm177_vm3, %v21778_v36  ;;  %18864 = vmatprep.subr.bf16.mxu1 %v20216_v11 }
0x179d   :  { %18830 = vmatpush3.bf16.msra.mxu0 %v21582_v31  ;;  %16466 = vmatprep.mubr.msk.f32.mxu0 %vm20217_vm2, %v20218_v25 }
0x179e   :  { %18831 = vmatprep.subr.bf16.mxu0 %v20216_v11 }
0x17a1   :  { %18833 = vmatpush3.bf16.msra.mxu0 %v21597_v35 }
0x17a2   :  { %18834 = vmatprep.subr.bf16.mxu0 %v20216_v11 }
0x17a5   :  { %18836 = vmatpush3.bf16.msra.mxu0 %v21615_v41 }
0x17a6   :  { %18837 = vmatprep.subr.bf16.mxu0 %v20216_v11 }
0x17a9   :  { %18839 = vmatpush3.bf16.msra.mxu0 %v21631_v47 }
0x17aa   :  { %18852 = vmatprep.subr.bf16.mxu0 %v20216_v11 }
0x17ac   :  { %16467 = vmatmul.mubr.msk.f32.vlgmr.msra.gmra.mrb[94].mxu0 %vm177_vm3, %v21778_v36 }
0x17ad   :  { %18854 = vmatpush3.bf16.msra.mxu0 %v21417_v53  ;;  %16504 = vmatprep.mubr.msk.f32.mxu0 %vm20217_vm2, %v20218_v25 }
0x17ae   :  { %18855 = vmatprep.subr.bf16.mxu0 %v20216_v11 }
0x17b1   :  { %18857 = vmatpush3.bf16.msra.mxu0 %v21444_v13 }
0x17b2   :  { %18858 = vmatprep.subr.bf16.mxu0 %v20216_v11 }
0x17b5   :  { %18860 = vmatpush3.bf16.msra.mxu0 %v21472_v63 }
0x17b6   :  { %18861 = vmatprep.subr.bf16.mxu0 %v20216_v11 }
0x17b9   :  { %18863 = vmatpush3.bf16.msra.mxu0 %v21498_v42 }
0x17ba   :  { %18876 = vmatprep.subr.bf16.mxu0 %v20216_v11 }
0x185f   :  { %v6784_v16 = vpop.f32.mrb[90].mxu0  ;;  %v7003_v39 = vpop.f32.mrb[86].mxu1 }
0x1860   :  { %v21849_v43 = vadd.f32 %v21775_v23, %v6784_v16  ;;  %v16392_v33 = vpop.f32.mrb[91].mxu0  ;;  %v16449_v46 = vpop.f32.mrb[87].mxu1  ;;  %v7007_v32 = vadd.f32 %v7003_v39, %v6936_v28 }
0x1861   :  { %v7253_v46 = vld [vmem:[#allocation3 + $0x6] sm:$0x3] }
0x1862   :  { %v13188_v34 = vmul.f32 -1.442695, %v7007_v32 }
0x186f   :  { %v6925_v21 = vpop.f32.mrb[92].mxu0 }
0x1870   :  { %v6929_v26 = vadd.f32 %v6925_v21, %v6858_v19  ;;  %v16430_v22 = vpop.f32.mrb[93].mxu0 }
0x1872   :  { %v13186_v29 = vmul.f32 -1.442695, %v6929_v26 }
0x1874   :  { %19969 = vpow2.f32 %v13186_v29 }
0x1875   :  { %19971 = vpow2.f32 %v13188_v34 }
0x187e   :  { %v19970_v37 = vpop.eup %19969 }
0x187f   :  { %v6933_v40 = vadd.f32 1.0, %v19970_v37  ;;  %v7081_v44 = vpop.f32.mrb[94].mxu0  ;;  %v19972_v48 = vpop.eup %19971 }
0x1880   :  { %v16468_v45 = vpop.f32.mrb[95].mxu0  ;;  %v7011_v51 = vadd.f32 1.0, %v19972_v48  ;;  %v7082_v52 = vadd.f32 %v21681_v49, %v7081_v44 }
0x1881   :  { %19973 = vrcp.f32 %v6933_v40  ;;  %v7331_v40 = vld [vmem:[#allocation4 + $0x6] sm:$0x3] }
0x1882   :  { %19975 = vrcp.f32 %v7011_v51 }
0x188b   :  { %v19974_v54 = vpop.eup %19973 }
0x188c   :  { %v7085_v55 = vmul.f32 %v19974_v54, %v7082_v52  ;;  %v19976_v57 = vpop.eup %19975 }
0x188d   :  { %v7088_v58 = vsub.f32 1.0, %v19976_v57  ;;  %v7090_v24 = vmul.f32 %v19976_v57, %v21778_v36  ;;  %v13208_v36 = vld [vmem:[%s23246_s10 + $0xe0] sm:$0xff]  ;;  %v13219_v57 = vld [vmem:[%s23246_s10 + $0x108] sm:$0xff] }
0x188e   :  { %v7086_v50 = vadd.f32 %v7085_v55, %v7014_v56  ;;  %v18895_v2 = vpack.c.bf16 %v13209_v61, %v13208_v36  ;;  %v7492_v36 = vld [vmem:[#allocation2 + $0x8] sm:$0x3] }
0x1890   :  { %19977 = vtanh.f32 %v7086_v50  ;;  %v13218_v50 = vld [vmem:[%s23246_s10 + $0x100] sm:$0xff] }
0x189a   :  { %v19978_v7 = vpop.eup %19977 }
0x189b   :  { %v7089_v18 = vmul.f32 %v19978_v7, %v7088_v58  ;;  %v18937_v58 = vpack.c.bf16 %v13219_v57, %v13218_v50  ;;  %v13220_v7 = vld [vmem:[%s23246_s10 + $0x110] sm:$0xff]  ;;  %v13237_v50 = vld [vmem:[%s23246_s10 + $0x168] sm:$0xff] }
0x189d   :  { %v21853_v23 = vadd.f32 %v7090_v24, %v7089_v18  ;;  %v13221_v18 = vld [vmem:[%s23246_s10 + $0x118] sm:$0xff] }
0x189e   :  { %v18940_v24 = vpack.c.bf16 %v13221_v18, %v13220_v7  ;;  %v13239_v7 = vld [vmem:[%s23246_s10 + $0x178] sm:$0xff] }
0x189f   :  { %16486 = vmatmul.mubr.msk.f32.vlgmr.msra.gmra.mrb[88].mxu1 %vm177_vm3, %v21853_v23  ;;  %16505 = vmatmul.mubr.msk.f32.vlgmr.msra.gmra.mrb[96].mxu0 %vm177_vm3, %v21853_v23 }
0x18a0   :  { %18866 = vmatpush3.bf16.msra.mxu1 %v21515_v12  ;;  %18878 = vmatpush3.bf16.msra.mxu0 %v21582_v31 }
0x18a1   :  { %18867 = vmatprep.subr.bf16.mxu1 %v20216_v11  ;;  %18879 = vmatprep.subr.bf16.mxu0 %v20216_v11 }
0x18a2   :  { %16523 = vmatprep.mubr.msk.f32.mxu1 %vm20217_vm2, %v20218_v25  ;;  %16542 = vmatprep.mubr.msk.f32.mxu0 %vm20217_vm2, %v20218_v25 }
0x18a4   :  { %18869 = vmatpush3.bf16.msra.mxu1 %v21535_v17  ;;  %18881 = vmatpush3.bf16.msra.mxu0 %v21597_v35 }
0x18a5   :  { %18870 = vmatprep.subr.bf16.mxu1 %v20216_v11  ;;  %18882 = vmatprep.subr.bf16.mxu0 %v20216_v11 }
0x18a8   :  { %18872 = vmatpush3.bf16.msra.mxu1 %v21557_v20  ;;  %18884 = vmatpush3.bf16.msra.mxu0 %v21615_v41 }
0x18a9   :  { %18873 = vmatprep.subr.bf16.mxu1 %v20216_v11  ;;  %18885 = vmatprep.subr.bf16.mxu0 %v20216_v11 }
0x18ac   :  { %18875 = vmatpush3.bf16.msra.mxu1 %v21571_v27  ;;  %18887 = vmatpush3.bf16.msra.mxu0 %v21631_v47 }
0x18ad   :  { %18888 = vmatprep.subr.bf16.mxu1 %v20216_v11  ;;  %18900 = vmatprep.subr.bf16.mxu0 %v20216_v11 }
0x18af   :  { %16524 = vmatmul.mubr.msk.f32.vlgmr.msra.gmra.mrb[90].mxu1 %vm177_vm3, %v21853_v23  ;;  %16543 = vmatmul.mubr.msk.f32.vlgmr.msra.gmra.mrb[98].mxu0 %vm177_vm3, %v21853_v23 }
0x18b0   :  { %18902 = vmatpush3.bf16.msra.mxu0 %v21417_v53  ;;  %16561 = vmatprep.mubr.msk.f32.mxu1 %vm20217_vm2, %v20218_v25 }
0x18b1   :  { %18903 = vmatprep.subr.bf16.mxu0 %v20216_v11  ;;  %16580 = vmatprep.mubr.msk.f32.mxu0 %vm20217_vm2, %v20218_v25 }
0x18b2   :  { %18890 = vmatpush3.bf16.msra.mxu1 %v18889_v62  ;;  %v13224_v62 = vld [vmem:[%s23246_s10 + $0x130] sm:$0xff] }
0x18b3   :  { %18891 = vmatprep.subr.bf16.mxu1 %v20216_v11  ;;  %v18946_v0 = vpack.c.bf16 %v13225_v30, %v13224_v62 }
0x18b4   :  { %18905 = vmatpush3.bf16.msra.mxu0 %v21444_v13 }
0x18b5   :  { %18906 = vmatprep.subr.bf16.mxu0 %v20216_v11 }
0x18b6   :  { %18893 = vmatpush3.bf16.msra.mxu1 %v18892_v1 }
0x18b7   :  { %18894 = vmatprep.subr.bf16.mxu1 %v20216_v11 }
0x18b8   :  { %18908 = vmatpush3.bf16.msra.mxu0 %v21472_v63 }
0x18b9   :  { %18909 = vmatprep.subr.bf16.mxu0 %v20216_v11 }
0x18ba   :  { %18896 = vmatpush3.bf16.msra.mxu1 %v18895_v2 }
0x18bb   :  { %18897 = vmatprep.subr.bf16.mxu1 %v20216_v11 }
0x18bc   :  { %18911 = vmatpush3.bf16.msra.mxu0 %v21498_v42 }
0x18bd   :  { %18924 = vmatprep.subr.bf16.mxu0 %v20216_v11 }
0x18be   :  { %18899 = vmatpush3.bf16.msra.mxu1 %v18898_v5 }
0x18bf   :  { %18912 = vmatprep.subr.bf16.mxu1 %v20216_v11 }
0x1972   :  { %v7170_v6 = vpop.f32.mrb[88].mxu1  ;;  %v7242_v10 = vpop.f32.mrb[96].mxu0 }
0x1973   :  { %v21924_v38 = vadd.f32 %v7170_v6, %v21849_v43  ;;  %v7246_v14 = vadd.f32 %v7242_v10, %v7175_v8  ;;  %v16487_v15 = vpop.f32.mrb[89].mxu1  ;;  %v16506_v9 = vpop.f32.mrb[97].mxu0 }
0x1975   :  { %v13200_v16 = vmul.f32 -1.442695, %v7246_v14  ;;  %v7570_v14 = vld [vmem:[#allocation3 + $0x8] sm:$0x3] }
0x1977   :  { %19979 = vpow2.f32 %v13200_v16 }
0x1981   :  { %v19980_v39 = vpop.eup %19979 }
0x1982   :  { %v7250_v33 = vadd.f32 1.0, %v19980_v39  ;;  %v7320_v19 = vpop.f32.mrb[90].mxu1  ;;  %v7398_v21 = vpop.f32.mrb[98].mxu0 }
0x1983   :  { %v7324_v26 = vadd.f32 %v7320_v19, %v7253_v46  ;;  %v16525_v22 = vpop.f32.mrb[91].mxu1  ;;  %v16544_v28 = vpop.f32.mrb[99].mxu0  ;;  %v7399_v32 = vadd.f32 %v21681_v49, %v7398_v21 }
0x1984   :  { %19981 = vrcp.f32 %v7250_v33  ;;  %v7648_v22 = vld [vmem:[#allocation4 + $0x8] sm:$0x3] }
0x1985   :  { %v13202_v29 = vmul.f32 -1.442695, %v7324_v26 }
0x1987   :  { %19983 = vpow2.f32 %v13202_v29 }
0x198e   :  { %v19982_v43 = vpop.eup %19981 }
0x198f   :  { %v7402_v34 = vmul.f32 %v19982_v43, %v7399_v32 }
0x1991   :  { %v19984_v37 = vpop.eup %19983  ;;  %v7403_v45 = vadd.f32 %v7402_v34, %v7331_v40 }
0x1992   :  { %v7328_v44 = vadd.f32 1.0, %v19984_v37 }
0x1994   :  { %19985 = vrcp.f32 %v7328_v44 }
0x1995   :  { %19987 = vtanh.f32 %v7403_v45  ;;  %v13232_v45 = vld [vmem:[%s23246_s10 + $0x140] sm:$0xff] }
0x199e   :  { %v19986_v48 = vpop.eup %19985 }
0x199f   :  { %v7405_v51 = vsub.f32 1.0, %v19986_v48  ;;  %v19988_v52 = vpop.eup %19987  ;;  %v7407_v55 = vmul.f32 %v19986_v48, %v21853_v23  ;;  %v13222_v23 = vld [vmem:[%s23246_s10 + $0x120] sm:$0xff]  ;;  %v13233_v48 = vld [vmem:[%s23246_s10 + $0x148] sm:$0xff] }
0x19a0   :  { %v18943_v60 = vpack.c.bf16 %v13223_v59, %v13222_v23  ;;  %v7809_v23 = vld [vmem:[#allocation2 + $0xa] sm:$0x3] }
0x19a1   :  { %v7406_v54 = vmul.f32 %v19988_v52, %v7405_v51  ;;  %v18985_v51 = vpack.c.bf16 %v13233_v48, %v13232_v45  ;;  %v13234_v52 = vld [vmem:[%s23246_s10 + $0x150] sm:$0xff] }
0x19a2   :  { %v13252_v45 = vld [vmem:[%s23246_s10 + $0x1b0] sm:$0xff] }
0x19a3   :  { %v21928_v56 = vadd.f32 %v7407_v55, %v7406_v54  ;;  %v13235_v54 = vld [vmem:[%s23246_s10 + $0x158] sm:$0xff] }
0x19a4   :  { %v18988_v55 = vpack.c.bf16 %v13235_v54, %v13234_v52 }
0x19a5   :  { %16562 = vmatmul.mubr.msk.f32.vlgmr.msra.gmra.mrb[92].mxu1 %vm177_vm3, %v21928_v56  ;;  %16581 = vmatmul.mubr.msk.f32.vlgmr.msra.gmra.mrb[100].mxu0 %vm177_vm3, %v21928_v56 }
0x19a6   :  { %18914 = vmatpush3.bf16.msra.mxu1 %v21515_v12  ;;  %18926 = vmatpush3.bf16.msra.mxu0 %v21582_v31 }
0x19a7   :  { %18915 = vmatprep.subr.bf16.mxu1 %v20216_v11  ;;  %18927 = vmatprep.subr.bf16.mxu0 %v20216_v11 }
0x19a8   :  { %16599 = vmatprep.mubr.msk.f32.mxu1 %vm20217_vm2, %v20218_v25  ;;  %16618 = vmatprep.mubr.msk.f32.mxu0 %vm20217_vm2, %v20218_v25 }
0x19aa   :  { %18917 = vmatpush3.bf16.msra.mxu1 %v21535_v17  ;;  %18929 = vmatpush3.bf16.msra.mxu0 %v21597_v35 }
0x19ab   :  { %18918 = vmatprep.subr.bf16.mxu1 %v20216_v11  ;;  %18930 = vmatprep.subr.bf16.mxu0 %v20216_v11 }
0x19ae   :  { %18920 = vmatpush3.bf16.msra.mxu1 %v21557_v20  ;;  %18932 = vmatpush3.bf16.msra.mxu0 %v21615_v41 }
0x19af   :  { %18921 = vmatprep.subr.bf16.mxu1 %v20216_v11  ;;  %18933 = vmatprep.subr.bf16.mxu0 %v20216_v11 }
0x19b2   :  { %18923 = vmatpush3.bf16.msra.mxu1 %v21571_v27  ;;  %18935 = vmatpush3.bf16.msra.mxu0 %v21631_v47 }
0x19b3   :  { %18936 = vmatprep.subr.bf16.mxu1 %v20216_v11  ;;  %18948 = vmatprep.subr.bf16.mxu0 %v20216_v11 }
0x19b5   :  { %16600 = vmatmul.mubr.msk.f32.vlgmr.msra.gmra.mrb[94].mxu1 %vm177_vm3, %v21928_v56  ;;  %16619 = vmatmul.mubr.msk.f32.vlgmr.msra.gmra.mrb[102].mxu0 %vm177_vm3, %v21928_v56 }
0x19b6   :  { %18950 = vmatpush3.bf16.msra.mxu0 %v21417_v53  ;;  %16637 = vmatprep.mubr.msk.f32.mxu1 %vm20217_vm2, %v20218_v25 }
0x19b7   :  { %18951 = vmatprep.subr.bf16.mxu0 %v20216_v11  ;;  %16656 = vmatprep.mubr.msk.f32.mxu0 %vm20217_vm2, %v20218_v25 }
0x19b8   :  { %18938 = vmatpush3.bf16.msra.mxu1 %v18937_v58  ;;  %v13238_v58 = vld [vmem:[%s23246_s10 + $0x170] sm:$0xff] }
0x19b9   :  { %18939 = vmatprep.subr.bf16.mxu1 %v20216_v11  ;;  %v18994_v18 = vpack.c.bf16 %v13239_v7, %v13238_v58 }
0x19ba   :  { %18953 = vmatpush3.bf16.msra.mxu0 %v21444_v13 }
0x19bb   :  { %18954 = vmatprep.subr.bf16.mxu0 %v20216_v11 }
0x19bc   :  { %18941 = vmatpush3.bf16.msra.mxu1 %v18940_v24 }
0x19bd   :  { %18942 = vmatprep.subr.bf16.mxu1 %v20216_v11 }
0x19be   :  { %18956 = vmatpush3.bf16.msra.mxu0 %v21472_v63 }
0x19bf   :  { %18957 = vmatprep.subr.bf16.mxu0 %v20216_v11 }
0x19c0   :  { %18944 = vmatpush3.bf16.msra.mxu1 %v18943_v60 }
0x19c1   :  { %18945 = vmatprep.subr.bf16.mxu1 %v20216_v11 }
0x19c2   :  { %18959 = vmatpush3.bf16.msra.mxu0 %v21498_v42 }
0x19c3   :  { %18972 = vmatprep.subr.bf16.mxu0 %v20216_v11 }
0x19c4   :  { %18947 = vmatpush3.bf16.msra.mxu1 %v18946_v0 }
0x19c5   :  { %18960 = vmatprep.subr.bf16.mxu1 %v20216_v11 }
0x1a78   :  { %v7487_v1 = vpop.f32.mrb[92].mxu1  ;;  %v7559_v61 = vpop.f32.mrb[100].mxu0 }
0x1a79   :  { %v21999_v2 = vadd.f32 %v7487_v1, %v21924_v38  ;;  %v7563_v3 = vadd.f32 %v7559_v61, %v7492_v36  ;;  %v16563_v4 = vpop.f32.mrb[93].mxu1  ;;  %v16582_v5 = vpop.f32.mrb[101].mxu0 }
0x1a7b   :  { %v13214_v6 = vmul.f32 -1.442695, %v7563_v3  ;;  %v7887_v3 = vld [vmem:[#allocation3 + $0xa] sm:$0x3] }
0x1a7d   :  { %19989 = vpow2.f32 %v13214_v6 }
0x1a87   :  { %v19990_v8 = vpop.eup %19989 }
0x1a88   :  { %v7567_v10 = vadd.f32 1.0, %v19990_v8  ;;  %v7637_v15 = vpop.f32.mrb[94].mxu1  ;;  %v7715_v9 = vpop.f32.mrb[102].mxu0 }
0x1a89   :  { %v7641_v16 = vadd.f32 %v7637_v15, %v7570_v14  ;;  %v16601_v39 = vpop.f32.mrb[95].mxu1  ;;  %v16620_v33 = vpop.f32.mrb[103].mxu0  ;;  %v7716_v19 = vadd.f32 %v21681_v49, %v7715_v9 }
0x1a8a   :  { %19991 = vrcp.f32 %v7567_v10  ;;  %v7965_v39 = vld [vmem:[#allocation4 + $0xa] sm:$0x3] }
0x1a8b   :  { %v13216_v46 = vmul.f32 -1.442695, %v7641_v16 }
0x1a8d   :  { %19993 = vpow2.f32 %v13216_v46 }
0x1a94   :  { %v19992_v38 = vpop.eup %19991 }
0x1a95   :  { %v7719_v21 = vmul.f32 %v19992_v38, %v7716_v19 }
0x1a97   :  { %v19994_v26 = vpop.eup %19993  ;;  %v7720_v29 = vadd.f32 %v7719_v21, %v7648_v22 }
0x1a98   :  { %v7645_v28 = vadd.f32 1.0, %v19994_v26 }
0x1a9a   :  { %19995 = vrcp.f32 %v7645_v28 }
0x1a9b   :  { %19997 = vtanh.f32 %v7720_v29  ;;  %v13247_v29 = vld [vmem:[%s23246_s10 + $0x188] sm:$0xff] }
0x1aa4   :  { %v19996_v32 = vpop.eup %19995 }
0x1aa5   :  { %v7722_v43 = vsub.f32 1.0, %v19996_v32  ;;  %v19998_v34 = vpop.eup %19997  ;;  %v7724_v40 = vmul.f32 %v19996_v32, %v21928_v56  ;;  %v13236_v56 = vld [vmem:[%s23246_s10 + $0x160] sm:$0xff] }
0x1aa6   :  { %v18991_v57 = vpack.c.bf16 %v13237_v50, %v13236_v56 }
0x1aa7   :  { %v7723_v37 = vmul.f32 %v19998_v34, %v7722_v43  ;;  %v13248_v43 = vld [vmem:[%s23246_s10 + $0x190] sm:$0xff]  ;;  %v13249_v34 = vld [vmem:[%s23246_s10 + $0x198] sm:$0xff] }
0x1aa9   :  { %v22003_v44 = vadd.f32 %v7724_v40, %v7723_v37  ;;  %v19036_v37 = vpack.c.bf16 %v13249_v34, %v13248_v43  ;;  %v13250_v40 = vld [vmem:[%s23246_s10 + $0x1a0] sm:$0xff]  ;;  %v13267_v43 = vld [vmem:[%s23246_s10 + $0x1f8] sm:$0xff] }
0x1aab   :  { %16638 = vmatmul.mubr.msk.f32.vlgmr.msra.gmra.mrb[96].mxu1 %vm177_vm3, %v22003_v44  ;;  %16657 = vmatmul.mubr.msk.f32.vlgmr.msra.gmra.mrb[104].mxu0 %vm177_vm3, %v22003_v44 }
0x1aac   :  { %18962 = vmatpush3.bf16.msra.mxu1 %v21515_v12  ;;  %18974 = vmatpush3.bf16.msra.mxu0 %v21582_v31 }
0x1aad   :  { %18963 = vmatprep.subr.bf16.mxu1 %v20216_v11  ;;  %18975 = vmatprep.subr.bf16.mxu0 %v20216_v11 }
0x1aae   :  { %16675 = vmatprep.mubr.msk.f32.mxu1 %vm20217_vm2, %v20218_v25  ;;  %16694 = vmatprep.mubr.msk.f32.mxu0 %vm20217_vm2, %v20218_v25 }
0x1ab0   :  { %18965 = vmatpush3.bf16.msra.mxu1 %v21535_v17  ;;  %18977 = vmatpush3.bf16.msra.mxu0 %v21597_v35 }
0x1ab1   :  { %18966 = vmatprep.subr.bf16.mxu1 %v20216_v11  ;;  %18978 = vmatprep.subr.bf16.mxu0 %v20216_v11 }
0x1ab4   :  { %18968 = vmatpush3.bf16.msra.mxu1 %v21557_v20  ;;  %18980 = vmatpush3.bf16.msra.mxu0 %v21615_v41 }
0x1ab5   :  { %18969 = vmatprep.subr.bf16.mxu1 %v20216_v11  ;;  %18981 = vmatprep.subr.bf16.mxu0 %v20216_v11 }
0x1ab8   :  { %18971 = vmatpush3.bf16.msra.mxu1 %v21571_v27  ;;  %18983 = vmatpush3.bf16.msra.mxu0 %v21631_v47 }
0x1ab9   :  { %18984 = vmatprep.subr.bf16.mxu1 %v20216_v11  ;;  %18996 = vmatprep.subr.bf16.mxu0 %v20216_v11 }
0x1abb   :  { %16676 = vmatmul.mubr.msk.f32.vlgmr.msra.gmra.mrb[98].mxu1 %vm177_vm3, %v22003_v44  ;;  %16695 = vmatmul.mubr.msk.f32.vlgmr.msra.gmra.mrb[106].mxu0 %vm177_vm3, %v22003_v44 }
0x1abc   :  { %18998 = vmatpush3.bf16.msra.mxu0 %v21417_v53  ;;  %16713 = vmatprep.mubr.msk.f32.mxu1 %vm20217_vm2, %v20218_v25 }
0x1abd   :  { %18999 = vmatprep.subr.bf16.mxu0 %v20216_v11  ;;  %16732 = vmatprep.mubr.msk.f32.mxu0 %vm20217_vm2, %v20218_v25 }
0x1abe   :  { %18986 = vmatpush3.bf16.msra.mxu1 %v18985_v51  ;;  %v13253_v51 = vld [vmem:[%s23246_s10 + $0x1b8] sm:$0xff] }
0x1abf   :  { %18987 = vmatprep.subr.bf16.mxu1 %v20216_v11  ;;  %v19042_v52 = vpack.c.bf16 %v13253_v51, %v13252_v45 }
0x1ac0   :  { %19001 = vmatpush3.bf16.msra.mxu0 %v21444_v13 }
0x1ac1   :  { %19002 = vmatprep.subr.bf16.mxu0 %v20216_v11 }
0x1ac2   :  { %18989 = vmatpush3.bf16.msra.mxu1 %v18988_v55  ;;  %v8126_v55 = vld [vmem:[#allocation2 + $0xc] sm:$0x3] }
0x1ac3   :  { %18990 = vmatprep.subr.bf16.mxu1 %v20216_v11 }
0x1ac4   :  { %19004 = vmatpush3.bf16.msra.mxu0 %v21472_v63 }
0x1ac5   :  { %19005 = vmatprep.subr.bf16.mxu0 %v20216_v11 }
0x1ac6   :  { %18992 = vmatpush3.bf16.msra.mxu1 %v18991_v57 }
0x1ac7   :  { %18993 = vmatprep.subr.bf16.mxu1 %v20216_v11 }
0x1ac8   :  { %19007 = vmatpush3.bf16.msra.mxu0 %v21498_v42 }
0x1ac9   :  { %19020 = vmatprep.subr.bf16.mxu0 %v20216_v11 }
0x1aca   :  { %18995 = vmatpush3.bf16.msra.mxu1 %v18994_v18 }
0x1acb   :  { %19008 = vmatprep.subr.bf16.mxu1 %v20216_v11 }
0x1b7e   :  { %v7804_v24 = vpop.f32.mrb[96].mxu1  ;;  %v7876_v59 = vpop.f32.mrb[104].mxu0 }
0x1b7f   :  { %v22074_v60 = vadd.f32 %v7804_v24, %v21999_v2  ;;  %v7880_v62 = vadd.f32 %v7876_v59, %v7809_v23  ;;  %v16639_v30 = vpop.f32.mrb[97].mxu1  ;;  %v16658_v0 = vpop.f32.mrb[105].mxu0  ;;  %v8204_v59 = vld [vmem:[#allocation3 + $0xc] sm:$0x3] }
0x1b81   :  { %v13228_v1 = vmul.f32 -1.442695, %v7880_v62 }
0x1b83   :  { %19999 = vpow2.f32 %v13228_v1 }
0x1b8d   :  { %v20000_v36 = vpop.eup %19999 }
0x1b8e   :  { %v7884_v61 = vadd.f32 1.0, %v20000_v36  ;;  %v7954_v4 = vpop.f32.mrb[98].mxu1  ;;  %v8032_v5 = vpop.f32.mrb[106].mxu0 }
0x1b8f   :  { %v7958_v6 = vadd.f32 %v7954_v4, %v7887_v3  ;;  %v16677_v8 = vpop.f32.mrb[99].mxu1  ;;  %v16696_v10 = vpop.f32.mrb[107].mxu0  ;;  %v8033_v15 = vadd.f32 %v21681_v49, %v8032_v5  ;;  %v13246_v49 = vld [vmem:[%s23246_s10 + $0x180] sm:$0xff] }
0x1b90   :  { %20001 = vrcp.f32 %v7884_v61  ;;  %v19033_v32 = vpack.c.bf16 %v13247_v29, %v13246_v49  ;;  %v8282_v8 = vld [vmem:[#allocation4 + $0xc] sm:$0x3] }
0x1b91   :  { %v13230_v14 = vmul.f32 -1.442695, %v7958_v6  ;;  %v13265_v49 = vld [vmem:[%s23246_s10 + $0x1e8] sm:$0xff] }
0x1b93   :  { %20003 = vpow2.f32 %v13230_v14 }
0x1b9a   :  { %v20002_v2 = vpop.eup %20001 }
0x1b9b   :  { %v8036_v9 = vmul.f32 %v20002_v2, %v8033_v15 }
0x1b9d   :  { %v20004_v16 = vpop.eup %20003  ;;  %v8037_v46 = vadd.f32 %v8036_v9, %v7965_v39 }
0x1b9e   :  { %v7962_v33 = vadd.f32 1.0, %v20004_v16 }
0x1ba0   :  { %20005 = vrcp.f32 %v7962_v33 }
0x1ba1   :  { %20007 = vtanh.f32 %v8037_v46  ;;  %v13260_v46 = vld [vmem:[%s23246_s10 + $0x1c0] sm:$0xff] }
0x1baa   :  { %v20006_v19 = vpop.eup %20005 }
0x1bab   :  { %v8039_v38 = vsub.f32 1.0, %v20006_v19  ;;  %v20008_v21 = vpop.eup %20007  ;;  %v8041_v22 = vmul.f32 %v20006_v19, %v22003_v44  ;;  %v13251_v44 = vld [vmem:[%s23246_s10 + $0x1a8] sm:$0xff] }
0x1bac   :  { %v19039_v48 = vpack.c.bf16 %v13251_v44, %v13250_v40  ;;  %v13261_v19 = vld [vmem:[%s23246_s10 + $0x1c8] sm:$0xff] }
0x1bad   :  { %v8040_v26 = vmul.f32 %v20008_v21, %v8039_v38  ;;  %v19081_v38 = vpack.c.bf16 %v13261_v19, %v13260_v46  ;;  %v13262_v21 = vld [vmem:[%s23246_s10 + $0x1d0] sm:$0xff]  ;;  %v8443_v40 = vld [vmem:[#allocation2 + $0xe] sm:$0x3] }
0x1bae   :  { %v13279_v46 = vld [vmem:[%s23246_s10 + $0x228] sm:$0xff] }
0x1baf   :  { %v22078_v28 = vadd.f32 %v8041_v22, %v8040_v26  ;;  %v13263_v26 = vld [vmem:[%s23246_s10 + $0x1d8] sm:$0xff] }
0x1bb0   :  { %v19084_v22 = vpack.c.bf16 %v13263_v26, %v13262_v21  ;;  %v13281_v21 = vld [vmem:[%s23246_s10 + $0x238] sm:$0xff] }
0x1bb1   :  { %16714 = vmatmul.mubr.msk.f32.vlgmr.msra.gmra.mrb[100].mxu1 %vm177_vm3, %v22078_v28  ;;  %16733 = vmatmul.mubr.msk.f32.vlgmr.msra.gmra.mrb[108].mxu0 %vm177_vm3, %v22078_v28 }
0x1bb2   :  { %19010 = vmatpush3.bf16.msra.mxu1 %v21515_v12  ;;  %19022 = vmatpush3.bf16.msra.mxu0 %v21582_v31 }
0x1bb3   :  { %19011 = vmatprep.subr.bf16.mxu1 %v20216_v11  ;;  %19023 = vmatprep.subr.bf16.mxu0 %v20216_v11 }
0x1bb4   :  { %16751 = vmatprep.mubr.msk.f32.mxu1 %vm20217_vm2, %v20218_v25  ;;  %16770 = vmatprep.mubr.msk.f32.mxu0 %vm20217_vm2, %v20218_v25 }
0x1bb6   :  { %19013 = vmatpush3.bf16.msra.mxu1 %v21535_v17  ;;  %19025 = vmatpush3.bf16.msra.mxu0 %v21597_v35 }
0x1bb7   :  { %19014 = vmatprep.subr.bf16.mxu1 %v20216_v11  ;;  %19026 = vmatprep.subr.bf16.mxu0 %v20216_v11 }
0x1bba   :  { %19016 = vmatpush3.bf16.msra.mxu1 %v21557_v20  ;;  %19028 = vmatpush3.bf16.msra.mxu0 %v21615_v41 }
0x1bbb   :  { %19017 = vmatprep.subr.bf16.mxu1 %v20216_v11  ;;  %19029 = vmatprep.subr.bf16.mxu0 %v20216_v11 }
0x1bbe   :  { %19019 = vmatpush3.bf16.msra.mxu1 %v21571_v27  ;;  %19031 = vmatpush3.bf16.msra.mxu0 %v21631_v47 }
0x1bbf   :  { %19032 = vmatprep.subr.bf16.mxu1 %v20216_v11  ;;  %19044 = vmatprep.subr.bf16.mxu0 %v20216_v11 }
0x1bc1   :  { %16752 = vmatmul.mubr.msk.f32.vlgmr.msra.gmra.mrb[102].mxu1 %vm177_vm3, %v22078_v28  ;;  %16771 = vmatmul.mubr.msk.f32.vlgmr.msra.gmra.mrb[110].mxu0 %vm177_vm3, %v22078_v28 }
0x1bc2   :  { %19046 = vmatpush3.bf16.msra.mxu0 %v21417_v53  ;;  %16789 = vmatprep.mubr.msk.f32.mxu1 %vm20217_vm2, %v20218_v25 }
0x1bc3   :  { %19047 = vmatprep.subr.bf16.mxu0 %v20216_v11  ;;  %16808 = vmatprep.mubr.msk.f32.mxu0 %vm20217_vm2, %v20218_v25 }
0x1bc4   :  { %19034 = vmatpush3.bf16.msra.mxu1 %v19033_v32  ;;  %v13266_v32 = vld [vmem:[%s23246_s10 + $0x1f0] sm:$0xff] }
0x1bc5   :  { %19035 = vmatprep.subr.bf16.mxu1 %v20216_v11  ;;  %v19090_v34 = vpack.c.bf16 %v13267_v43, %v13266_v32 }
0x1bc6   :  { %19049 = vmatpush3.bf16.msra.mxu0 %v21444_v13 }
0x1bc7   :  { %19050 = vmatprep.subr.bf16.mxu0 %v20216_v11 }
0x1bc8   :  { %19037 = vmatpush3.bf16.msra.mxu1 %v19036_v37 }
0x1bc9   :  { %19038 = vmatprep.subr.bf16.mxu1 %v20216_v11 }
0x1bca   :  { %19052 = vmatpush3.bf16.msra.mxu0 %v21472_v63 }
0x1bcb   :  { %19053 = vmatprep.subr.bf16.mxu0 %v20216_v11 }
0x1bcc   :  { %19040 = vmatpush3.bf16.msra.mxu1 %v19039_v48 }
0x1bcd   :  { %19041 = vmatprep.subr.bf16.mxu1 %v20216_v11 }
0x1bce   :  { %19055 = vmatpush3.bf16.msra.mxu0 %v21498_v42 }
0x1bcf   :  { %19068 = vmatprep.subr.bf16.mxu0 %v20216_v11 }
0x1bd0   :  { %19043 = vmatpush3.bf16.msra.mxu1 %v19042_v52 }
0x1bd1   :  { %19056 = vmatprep.subr.bf16.mxu1 %v20216_v11 }
0x1c84   :  { %v8121_v54 = vpop.f32.mrb[100].mxu1  ;;  %v8193_v56 = vpop.f32.mrb[108].mxu0 }
0x1c85   :  { %v22149_v50 = vadd.f32 %v8121_v54, %v22074_v60  ;;  %v8197_v57 = vadd.f32 %v8193_v56, %v8126_v55  ;;  %v16715_v58 = vpop.f32.mrb[101].mxu1  ;;  %v16734_v7 = vpop.f32.mrb[109].mxu0  ;;  %v22154_v60 = vld [vmem:[%s23245_s9] ss:$0 sm:$0xff] }
0x1c87   :  { %v13242_v18 = vmul.f32 -1.442695, %v8197_v57  ;;  %v8521_v57 = vld [vmem:[#allocation3 + $0xe] sm:$0x3] }
0x1c89   :  { %20009 = vpow2.f32 %v13242_v18 }
0x1c93   :  { %v20010_v24 = vpop.eup %20009 }
0x1c94   :  { %v8201_v23 = vadd.f32 1.0, %v20010_v24  ;;  %v8271_v62 = vpop.f32.mrb[102].mxu1  ;;  %v8349_v30 = vpop.f32.mrb[110].mxu0 }
0x1c95   :  { %v8275_v0 = vadd.f32 %v8271_v62, %v8204_v59  ;;  %v16753_v1 = vpop.f32.mrb[103].mxu1  ;;  %v16772_v36 = vpop.f32.mrb[111].mxu0  ;;  %v8350_v3 = vadd.f32 %v22154_v60, %v8349_v30 }
0x1c96   :  { %20011 = vrcp.f32 %v8201_v23  ;;  %v8599_v1 = vld [vmem:[#allocation4 + $0xe] sm:$0x3] }
0x1c97   :  { %v13244_v61 = vmul.f32 -1.442695, %v8275_v0 }
0x1c99   :  { %20013 = vpow2.f32 %v13244_v61 }
0x1ca0   :  { %v20012_v4 = vpop.eup %20011 }
0x1ca1   :  { %v8353_v5 = vmul.f32 %v20012_v4, %v8350_v3 }
0x1ca3   :  { %v20014_v6 = vpop.eup %20013  ;;  %v8354_v14 = vadd.f32 %v8353_v5, %v8282_v8 }
0x1ca4   :  { %v8279_v10 = vadd.f32 1.0, %v20014_v6 }
0x1ca6   :  { %20015 = vrcp.f32 %v8279_v10 }
0x1ca7   :  { %20017 = vtanh.f32 %v8354_v14  ;;  %v13274_v14 = vld [vmem:[%s23246_s10 + $0x200] sm:$0xff] }
0x1cb0   :  { %v20016_v15 = vpop.eup %20015 }
0x1cb1   :  { %v8356_v2 = vsub.f32 1.0, %v20016_v15  ;;  %v20018_v9 = vpop.eup %20017  ;;  %v8358_v39 = vmul.f32 %v20016_v15, %v22078_v28  ;;  %v13264_v28 = vld [vmem:[%s23246_s10 + $0x1e0] sm:$0xff]  ;;  %v13275_v15 = vld [vmem:[%s23246_s10 + $0x208] sm:$0xff] }
0x1cb2   :  { %v19087_v29 = vpack.c.bf16 %v13265_v49, %v13264_v28  ;;  %v8760_v28 = vld [vmem:[#allocation2 + $0x10] sm:$0x3] }
0x1cb3   :  { %v8357_v16 = vmul.f32 %v20018_v9, %v8356_v2  ;;  %v19129_v2 = vpack.c.bf16 %v13275_v15, %v13274_v14  ;;  %v13276_v9 = vld [vmem:[%s23246_s10 + $0x210] sm:$0xff]  ;;  %v13293_v14 = vld [vmem:[%s23246_s10 + $0x268] sm:$0xff] }
0x1cb5   :  { %v22158_v33 = vadd.f32 %v8358_v39, %v8357_v16  ;;  %v13277_v16 = vld [vmem:[%s23246_s10 + $0x218] sm:$0xff] }
0x1cb6   :  { %v19132_v39 = vpack.c.bf16 %v13277_v16, %v13276_v9  ;;  %v13295_v9 = vld [vmem:[%s23246_s10 + $0x278] sm:$0xff] }
0x1cb7   :  { %16790 = vmatmul.mubr.msk.f32.vlgmr.msra.gmra.mrb[104].mxu1 %vm177_vm3, %v22158_v33  ;;  %16809 = vmatmul.mubr.msk.f32.vlgmr.msra.gmra.mrb[112].mxu0 %vm177_vm3, %v22158_v33 }
0x1cb8   :  { %19058 = vmatpush3.bf16.msra.mxu1 %v21515_v12  ;;  %19070 = vmatpush3.bf16.msra.mxu0 %v21582_v31 }
0x1cb9   :  { %19059 = vmatprep.subr.bf16.mxu1 %v20216_v11  ;;  %19071 = vmatprep.subr.bf16.mxu0 %v20216_v11 }
0x1cba   :  { %16827 = vmatprep.mubr.msk.f32.mxu1 %vm20217_vm2, %v20218_v25  ;;  %16846 = vmatprep.mubr.msk.f32.mxu0 %vm20217_vm2, %v20218_v25 }
0x1cbc   :  { %19061 = vmatpush3.bf16.msra.mxu1 %v21535_v17  ;;  %19073 = vmatpush3.bf16.msra.mxu0 %v21597_v35 }
0x1cbd   :  { %19062 = vmatprep.subr.bf16.mxu1 %v20216_v11  ;;  %19074 = vmatprep.subr.bf16.mxu0 %v20216_v11 }
0x1cc0   :  { %19064 = vmatpush3.bf16.msra.mxu1 %v21557_v20  ;;  %19076 = vmatpush3.bf16.msra.mxu0 %v21615_v41 }
0x1cc1   :  { %19065 = vmatprep.subr.bf16.mxu1 %v20216_v11  ;;  %19077 = vmatprep.subr.bf16.mxu0 %v20216_v11 }
0x1cc4   :  { %19067 = vmatpush3.bf16.msra.mxu1 %v21571_v27  ;;  %19079 = vmatpush3.bf16.msra.mxu0 %v21631_v47 }
0x1cc5   :  { %19080 = vmatprep.subr.bf16.mxu1 %v20216_v11  ;;  %19092 = vmatprep.subr.bf16.mxu0 %v20216_v11 }
0x1cc7   :  { %16828 = vmatmul.mubr.msk.f32.vlgmr.msra.gmra.mrb[106].mxu1 %vm177_vm3, %v22158_v33  ;;  %16847 = vmatmul.mubr.msk.f32.vlgmr.msra.gmra.mrb[114].mxu0 %vm177_vm3, %v22158_v33 }
0x1cc8   :  { %19094 = vmatpush3.bf16.msra.mxu0 %v21417_v53  ;;  %16865 = vmatprep.mubr.msk.f32.mxu1 %vm20217_vm2, %v20218_v25 }
0x1cc9   :  { %19095 = vmatprep.subr.bf16.mxu0 %v20216_v11  ;;  %16884 = vmatprep.mubr.msk.f32.mxu0 %vm20217_vm2, %v20218_v25 }
0x1cca   :  { %19082 = vmatpush3.bf16.msra.mxu1 %v19081_v38  ;;  %v13280_v38 = vld [vmem:[%s23246_s10 + $0x230] sm:$0xff] }
0x1ccb   :  { %19083 = vmatprep.subr.bf16.mxu1 %v20216_v11  ;;  %v19138_v26 = vpack.c.bf16 %v13281_v21, %v13280_v38 }
0x1ccc   :  { %19097 = vmatpush3.bf16.msra.mxu0 %v21444_v13 }
0x1ccd   :  { %19098 = vmatprep.subr.bf16.mxu0 %v20216_v11 }
0x1cce   :  { %19085 = vmatpush3.bf16.msra.mxu1 %v19084_v22 }
0x1ccf   :  { %19086 = vmatprep.subr.bf16.mxu1 %v20216_v11 }
0x1cd0   :  { %19100 = vmatpush3.bf16.msra.mxu0 %v21472_v63 }
0x1cd1   :  { %19101 = vmatprep.subr.bf16.mxu0 %v20216_v11 }
0x1cd2   :  { %19088 = vmatpush3.bf16.msra.mxu1 %v19087_v29 }
0x1cd3   :  { %19089 = vmatprep.subr.bf16.mxu1 %v20216_v11 }
0x1cd4   :  { %19103 = vmatpush3.bf16.msra.mxu0 %v21498_v42 }
0x1cd5   :  { %19116 = vmatprep.subr.bf16.mxu0 %v20216_v11 }
0x1cd6   :  { %19091 = vmatpush3.bf16.msra.mxu1 %v19090_v34 }
0x1cd7   :  { %19104 = vmatprep.subr.bf16.mxu1 %v20216_v11 }
0x1d8a   :  { %v8438_v37 = vpop.f32.mrb[104].mxu1  ;;  %v8510_v44 = vpop.f32.mrb[112].mxu0 }
0x1d8b   :  { %v22229_v45 = vadd.f32 %v8438_v37, %v22149_v50  ;;  %v8514_v48 = vadd.f32 %v8510_v44, %v8443_v40  ;;  %v16791_v51 = vpop.f32.mrb[105].mxu1  ;;  %v16810_v52 = vpop.f32.mrb[113].mxu0 }
0x1d8d   :  { %v13256_v54 = vmul.f32 -1.442695, %v8514_v48  ;;  %v8838_v48 = vld [vmem:[#allocation3 + $0x10] sm:$0x3] }
0x1d8f   :  { %20019 = vpow2.f32 %v13256_v54 }
0x1d99   :  { %v20020_v55 = vpop.eup %20019 }
0x1d9a   :  { %v8518_v56 = vadd.f32 1.0, %v20020_v55  ;;  %v8588_v58 = vpop.f32.mrb[106].mxu1  ;;  %v8666_v7 = vpop.f32.mrb[114].mxu0 }
0x1d9b   :  { %v8592_v18 = vadd.f32 %v8588_v58, %v8521_v57  ;;  %v16829_v24 = vpop.f32.mrb[107].mxu1  ;;  %v16848_v23 = vpop.f32.mrb[115].mxu0  ;;  %v8667_v62 = vadd.f32 %v22154_v60, %v8666_v7 }
0x1d9c   :  { %20021 = vrcp.f32 %v8518_v56  ;;  %v8916_v24 = vld [vmem:[#allocation4 + $0x10] sm:$0x3] }
0x1d9d   :  { %v13258_v59 = vmul.f32 -1.442695, %v8592_v18 }
0x1d9f   :  { %20023 = vpow2.f32 %v13258_v59 }
0x1da6   :  { %v20022_v50 = vpop.eup %20021 }
0x1da7   :  { %v8670_v30 = vmul.f32 %v20022_v50, %v8667_v62 }
0x1da9   :  { %v20024_v0 = vpop.eup %20023  ;;  %v8671_v61 = vadd.f32 %v8670_v30, %v8599_v1 }
0x1daa   :  { %v8596_v36 = vadd.f32 1.0, %v20024_v0 }
0x1dac   :  { %20025 = vrcp.f32 %v8596_v36 }
0x1dad   :  { %20027 = vtanh.f32 %v8671_v61  ;;  %v13288_v61 = vld [vmem:[%s23246_s10 + $0x240] sm:$0xff] }
0x1db6   :  { %v20026_v3 = vpop.eup %20025 }
0x1db7   :  { %v8673_v4 = vsub.f32 1.0, %v20026_v3  ;;  %v20028_v5 = vpop.eup %20027  ;;  %v8675_v8 = vmul.f32 %v20026_v3, %v22158_v33  ;;  %v13278_v33 = vld [vmem:[%s23246_s10 + $0x220] sm:$0xff]  ;;  %v13289_v3 = vld [vmem:[%s23246_s10 + $0x248] sm:$0xff] }
0x1db8   :  { %v19135_v19 = vpack.c.bf16 %v13279_v46, %v13278_v33  ;;  %v9077_v33 = vld [vmem:[#allocation2 + $0x12] sm:$0x3] }
0x1db9   :  { %v8674_v6 = vmul.f32 %v20028_v5, %v8673_v4  ;;  %v19177_v4 = vpack.c.bf16 %v13289_v3, %v13288_v61  ;;  %v13290_v5 = vld [vmem:[%s23246_s10 + $0x250] sm:$0xff]  ;;  %v13307_v61 = vld [vmem:[%s23246_s10 + $0x2a8] sm:$0xff] }
0x1dbb   :  { %v22233_v10 = vadd.f32 %v8675_v8, %v8674_v6  ;;  %v13291_v6 = vld [vmem:[%s23246_s10 + $0x258] sm:$0xff] }
0x1dbc   :  { %v19180_v8 = vpack.c.bf16 %v13291_v6, %v13290_v5  ;;  %v13309_v5 = vld [vmem:[%s23246_s10 + $0x2b8] sm:$0xff] }
0x1dbd   :  { %16866 = vmatmul.mubr.msk.f32.vlgmr.msra.gmra.mrb[108].mxu1 %vm177_vm3, %v22233_v10  ;;  %16885 = vmatmul.mubr.msk.f32.vlgmr.msra.gmra.mrb[116].mxu0 %vm177_vm3, %v22233_v10 }
0x1dbe   :  { %19106 = vmatpush3.bf16.msra.mxu1 %v21515_v12  ;;  %19118 = vmatpush3.bf16.msra.mxu0 %v21582_v31 }
0x1dbf   :  { %19107 = vmatprep.subr.bf16.mxu1 %v20216_v11  ;;  %19119 = vmatprep.subr.bf16.mxu0 %v20216_v11 }
0x1dc0   :  { %16903 = vmatprep.mubr.msk.f32.mxu1 %vm20217_vm2, %v20218_v25  ;;  %16922 = vmatprep.mubr.msk.f32.mxu0 %vm20217_vm2, %v20218_v25 }
0x1dc2   :  { %19109 = vmatpush3.bf16.msra.mxu1 %v21535_v17  ;;  %19121 = vmatpush3.bf16.msra.mxu0 %v21597_v35 }
0x1dc3   :  { %19110 = vmatprep.subr.bf16.mxu1 %v20216_v11  ;;  %19122 = vmatprep.subr.bf16.mxu0 %v20216_v11 }
0x1dc6   :  { %19112 = vmatpush3.bf16.msra.mxu1 %v21557_v20  ;;  %19124 = vmatpush3.bf16.msra.mxu0 %v21615_v41 }
0x1dc7   :  { %19113 = vmatprep.subr.bf16.mxu1 %v20216_v11  ;;  %19125 = vmatprep.subr.bf16.mxu0 %v20216_v11 }
0x1dca   :  { %19115 = vmatpush3.bf16.msra.mxu1 %v21571_v27  ;;  %19127 = vmatpush3.bf16.msra.mxu0 %v21631_v47 }
0x1dcb   :  { %19128 = vmatprep.subr.bf16.mxu1 %v20216_v11  ;;  %19140 = vmatprep.subr.bf16.mxu0 %v20216_v11 }
0x1dcd   :  { %16904 = vmatmul.mubr.msk.f32.vlgmr.msra.gmra.mrb[110].mxu1 %vm177_vm3, %v22233_v10  ;;  %16923 = vmatmul.mubr.msk.f32.vlgmr.msra.gmra.mrb[118].mxu0 %vm177_vm3, %v22233_v10 }
0x1dce   :  { %19142 = vmatpush3.bf16.msra.mxu0 %v21417_v53  ;;  %16941 = vmatprep.mubr.msk.f32.mxu1 %vm20217_vm2, %v20218_v25 }
0x1dcf   :  { %19143 = vmatprep.subr.bf16.mxu0 %v20216_v11  ;;  %16960 = vmatprep.mubr.msk.f32.mxu0 %vm20217_vm2, %v20218_v25 }
0x1dd0   :  { %19130 = vmatpush3.bf16.msra.mxu1 %v19129_v2  ;;  %v13294_v2 = vld [vmem:[%s23246_s10 + $0x270] sm:$0xff] }
0x1dd1   :  { %19131 = vmatprep.subr.bf16.mxu1 %v20216_v11  ;;  %v19186_v16 = vpack.c.bf16 %v13295_v9, %v13294_v2 }
0x1dd2   :  { %19145 = vmatpush3.bf16.msra.mxu0 %v21444_v13 }
0x1dd3   :  { %19146 = vmatprep.subr.bf16.mxu0 %v20216_v11 }
0x1dd4   :  { %19133 = vmatpush3.bf16.msra.mxu1 %v19132_v39 }
0x1dd5   :  { %19134 = vmatprep.subr.bf16.mxu1 %v20216_v11 }
0x1dd6   :  { %19148 = vmatpush3.bf16.msra.mxu0 %v21472_v63 }
0x1dd7   :  { %19149 = vmatprep.subr.bf16.mxu0 %v20216_v11 }
0x1dd8   :  { %19136 = vmatpush3.bf16.msra.mxu1 %v19135_v19 }
0x1dd9   :  { %19137 = vmatprep.subr.bf16.mxu1 %v20216_v11 }
0x1dda   :  { %19151 = vmatpush3.bf16.msra.mxu0 %v21498_v42 }
0x1ddb   :  { %19164 = vmatprep.subr.bf16.mxu0 %v20216_v11 }
0x1ddc   :  { %19139 = vmatpush3.bf16.msra.mxu1 %v19138_v26 }
0x1ddd   :  { %19152 = vmatprep.subr.bf16.mxu1 %v20216_v11 }
0x1e90   :  { %v8755_v22 = vpop.f32.mrb[108].mxu1  ;;  %v8827_v49 = vpop.f32.mrb[116].mxu0 }
0x1e91   :  { %v22304_v29 = vadd.f32 %v8755_v22, %v22229_v45  ;;  %v8831_v32 = vadd.f32 %v8827_v49, %v8760_v28  ;;  %v16867_v43 = vpop.f32.mrb[109].mxu1  ;;  %v16886_v34 = vpop.f32.mrb[117].mxu0 }
0x1e93   :  { %v13270_v37 = vmul.f32 -1.442695, %v8831_v32  ;;  %v9155_v32 = vld [vmem:[#allocation3 + $0x12] sm:$0x3] }
0x1e95   :  { %20029 = vpow2.f32 %v13270_v37 }
0x1e9f   :  { %v20030_v40 = vpop.eup %20029 }
0x1ea0   :  { %v8835_v44 = vadd.f32 1.0, %v20030_v40  ;;  %v8905_v51 = vpop.f32.mrb[110].mxu1  ;;  %v8983_v52 = vpop.f32.mrb[118].mxu0 }
0x1ea1   :  { %v8909_v54 = vadd.f32 %v8905_v51, %v8838_v48  ;;  %v16905_v55 = vpop.f32.mrb[111].mxu1  ;;  %v16924_v56 = vpop.f32.mrb[119].mxu0  ;;  %v8984_v58 = vadd.f32 %v22154_v60, %v8983_v52 }
0x1ea2   :  { %20031 = vrcp.f32 %v8835_v44  ;;  %v9233_v55 = vld [vmem:[#allocation4 + $0x12] sm:$0x3] }
0x1ea3   :  { %v13272_v57 = vmul.f32 -1.442695, %v8909_v54 }
0x1ea5   :  { %20033 = vpow2.f32 %v13272_v57 }
0x1eac   :  { %v20032_v45 = vpop.eup %20031 }
0x1ead   :  { %v8987_v7 = vmul.f32 %v20032_v45, %v8984_v58 }
0x1eaf   :  { %v20034_v18 = vpop.eup %20033  ;;  %v8988_v59 = vadd.f32 %v8987_v7, %v8916_v24 }
0x1eb0   :  { %v8913_v23 = vadd.f32 1.0, %v20034_v18 }
0x1eb2   :  { %20035 = vrcp.f32 %v8913_v23 }
0x1eb3   :  { %20037 = vtanh.f32 %v8988_v59  ;;  %v13302_v59 = vld [vmem:[%s23246_s10 + $0x280] sm:$0xff] }
0x1ebc   :  { %v20036_v62 = vpop.eup %20035 }
0x1ebd   :  { %v8990_v50 = vsub.f32 1.0, %v20036_v62  ;;  %v20038_v30 = vpop.eup %20037  ;;  %v8992_v1 = vmul.f32 %v20036_v62, %v22233_v10  ;;  %v13292_v10 = vld [vmem:[%s23246_s10 + $0x260] sm:$0xff]  ;;  %v13303_v62 = vld [vmem:[%s23246_s10 + $0x288] sm:$0xff] }
0x1ebe   :  { %v19183_v15 = vpack.c.bf16 %v13293_v14, %v13292_v10  ;;  %v9394_v10 = vld [vmem:[#allocation2 + $0x14] sm:$0x3] }
0x1ebf   :  { %v8991_v0 = vmul.f32 %v20038_v30, %v8990_v50  ;;  %v19225_v50 = vpack.c.bf16 %v13303_v62, %v13302_v59  ;;  %v13304_v30 = vld [vmem:[%s23246_s10 + $0x290] sm:$0xff]  ;;  %v13321_v59 = vld [vmem:[%s23246_s10 + $0x2e8] sm:$0xff] }
0x1ec1   :  { %v22308_v36 = vadd.f32 %v8992_v1, %v8991_v0  ;;  %v13305_v0 = vld [vmem:[%s23246_s10 + $0x298] sm:$0xff] }
0x1ec2   :  { %v19228_v1 = vpack.c.bf16 %v13305_v0, %v13304_v30  ;;  %v13323_v30 = vld [vmem:[%s23246_s10 + $0x2f8] sm:$0xff] }
0x1ec3   :  { %16942 = vmatmul.mubr.msk.f32.vlgmr.msra.gmra.mrb[112].mxu1 %vm177_vm3, %v22308_v36  ;;  %16961 = vmatmul.mubr.msk.f32.vlgmr.msra.gmra.mrb[120].mxu0 %vm177_vm3, %v22308_v36 }
0x1ec4   :  { %19154 = vmatpush3.bf16.msra.mxu1 %v21515_v12  ;;  %19166 = vmatpush3.bf16.msra.mxu0 %v21582_v31 }
0x1ec5   :  { %19155 = vmatprep.subr.bf16.mxu1 %v20216_v11  ;;  %19167 = vmatprep.subr.bf16.mxu0 %v20216_v11 }
0x1ec6   :  { %16979 = vmatprep.mubr.msk.f32.mxu1 %vm20217_vm2, %v20218_v25  ;;  %16998 = vmatprep.mubr.msk.f32.mxu0 %vm20217_vm2, %v20218_v25 }
0x1ec8   :  { %19157 = vmatpush3.bf16.msra.mxu1 %v21535_v17  ;;  %19169 = vmatpush3.bf16.msra.mxu0 %v21597_v35 }
0x1ec9   :  { %19158 = vmatprep.subr.bf16.mxu1 %v20216_v11  ;;  %19170 = vmatprep.subr.bf16.mxu0 %v20216_v11 }
0x1ecc   :  { %19160 = vmatpush3.bf16.msra.mxu1 %v21557_v20  ;;  %19172 = vmatpush3.bf16.msra.mxu0 %v21615_v41 }
0x1ecd   :  { %19161 = vmatprep.subr.bf16.mxu1 %v20216_v11  ;;  %19173 = vmatprep.subr.bf16.mxu0 %v20216_v11 }
0x1ed0   :  { %19163 = vmatpush3.bf16.msra.mxu1 %v21571_v27  ;;  %19175 = vmatpush3.bf16.msra.mxu0 %v21631_v47 }
0x1ed1   :  { %19176 = vmatprep.subr.bf16.mxu1 %v20216_v11  ;;  %19188 = vmatprep.subr.bf16.mxu0 %v20216_v11 }
0x1ed3   :  { %16980 = vmatmul.mubr.msk.f32.vlgmr.msra.gmra.mrb[114].mxu1 %vm177_vm3, %v22308_v36  ;;  %16999 = vmatmul.mubr.msk.f32.vlgmr.msra.gmra.mrb[122].mxu0 %vm177_vm3, %v22308_v36 }
0x1ed4   :  { %19190 = vmatpush3.bf16.msra.mxu0 %v21417_v53  ;;  %17017 = vmatprep.mubr.msk.f32.mxu1 %vm20217_vm2, %v20218_v25 }
0x1ed5   :  { %19191 = vmatprep.subr.bf16.mxu0 %v20216_v11  ;;  %17036 = vmatprep.mubr.msk.f32.mxu0 %vm20217_vm2, %v20218_v25 }
0x1ed6   :  { %19178 = vmatpush3.bf16.msra.mxu1 %v19177_v4  ;;  %v13308_v4 = vld [vmem:[%s23246_s10 + $0x2b0] sm:$0xff] }
0x1ed7   :  { %19179 = vmatprep.subr.bf16.mxu1 %v20216_v11  ;;  %v19234_v6 = vpack.c.bf16 %v13309_v5, %v13308_v4 }
0x1ed8   :  { %19193 = vmatpush3.bf16.msra.mxu0 %v21444_v13 }
0x1ed9   :  { %19194 = vmatprep.subr.bf16.mxu0 %v20216_v11 }
0x1eda   :  { %19181 = vmatpush3.bf16.msra.mxu1 %v19180_v8 }
0x1edb   :  { %19182 = vmatprep.subr.bf16.mxu1 %v20216_v11 }
0x1edc   :  { %19196 = vmatpush3.bf16.msra.mxu0 %v21472_v63 }
0x1edd   :  { %19197 = vmatprep.subr.bf16.mxu0 %v20216_v11 }
0x1ede   :  { %19184 = vmatpush3.bf16.msra.mxu1 %v19183_v15 }
0x1edf   :  { %19185 = vmatprep.subr.bf16.mxu1 %v20216_v11 }
0x1ee0   :  { %19199 = vmatpush3.bf16.msra.mxu0 %v21498_v42 }
0x1ee1   :  { %19212 = vmatprep.subr.bf16.mxu0 %v20216_v11 }
0x1ee2   :  { %19187 = vmatpush3.bf16.msra.mxu1 %v19186_v16 }
0x1ee3   :  { %19200 = vmatprep.subr.bf16.mxu1 %v20216_v11 }
0x1f96   :  { %v9072_v39 = vpop.f32.mrb[112].mxu1  ;;  %v9144_v46 = vpop.f32.mrb[120].mxu0 }
0x1f97   :  { %v22379_v19 = vadd.f32 %v9072_v39, %v22304_v29  ;;  %v9148_v38 = vadd.f32 %v9144_v46, %v9077_v33  ;;  %v16943_v21 = vpop.f32.mrb[113].mxu1  ;;  %v16962_v26 = vpop.f32.mrb[121].mxu0 }
0x1f99   :  { %v13284_v22 = vmul.f32 -1.442695, %v9148_v38  ;;  %v9472_v38 = vld [vmem:[#allocation3 + $0x14] sm:$0x3] }
0x1f9b   :  { %20039 = vpow2.f32 %v13284_v22 }
0x1fa5   :  { %v20040_v28 = vpop.eup %20039 }
0x1fa6   :  { %v9152_v49 = vadd.f32 1.0, %v20040_v28  ;;  %v9222_v43 = vpop.f32.mrb[114].mxu1  ;;  %v9300_v34 = vpop.f32.mrb[122].mxu0 }
0x1fa7   :  { %v9226_v37 = vadd.f32 %v9222_v43, %v9155_v32  ;;  %v16981_v40 = vpop.f32.mrb[115].mxu1  ;;  %v17000_v44 = vpop.f32.mrb[123].mxu0  ;;  %v9301_v51 = vadd.f32 %v22154_v60, %v9300_v34 }
0x1fa8   :  { %20041 = vrcp.f32 %v9152_v49  ;;  %v9550_v40 = vld [vmem:[#allocation4 + $0x14] sm:$0x3] }
0x1fa9   :  { %v13286_v48 = vmul.f32 -1.442695, %v9226_v37 }
0x1fab   :  { %20043 = vpow2.f32 %v13286_v48 }
0x1fb2   :  { %v20042_v29 = vpop.eup %20041 }
0x1fb3   :  { %v9304_v52 = vmul.f32 %v20042_v29, %v9301_v51 }
0x1fb5   :  { %v20044_v54 = vpop.eup %20043  ;;  %v9305_v57 = vadd.f32 %v9304_v52, %v9233_v55 }
0x1fb6   :  { %v9230_v56 = vadd.f32 1.0, %v20044_v54 }
0x1fb8   :  { %20045 = vrcp.f32 %v9230_v56 }
0x1fb9   :  { %20047 = vtanh.f32 %v9305_v57  ;;  %v13316_v57 = vld [vmem:[%s23246_s10 + $0x2c0] sm:$0xff] }
0x1fc2   :  { %v20046_v58 = vpop.eup %20045 }
0x1fc3   :  { %v9307_v45 = vsub.f32 1.0, %v20046_v58  ;;  %v20048_v7 = vpop.eup %20047  ;;  %v9309_v24 = vmul.f32 %v20046_v58, %v22308_v36  ;;  %v13306_v36 = vld [vmem:[%s23246_s10 + $0x2a0] sm:$0xff]  ;;  %v13317_v58 = vld [vmem:[%s23246_s10 + $0x2c8] sm:$0xff] }
0x1fc4   :  { %v19231_v3 = vpack.c.bf16 %v13307_v61, %v13306_v36  ;;  %v9711_v36 = vld [vmem:[#allocation2 + $0x16] sm:$0x3] }
0x1fc5   :  { %v9308_v18 = vmul.f32 %v20048_v7, %v9307_v45  ;;  %v19273_v45 = vpack.c.bf16 %v13317_v58, %v13316_v57  ;;  %v13318_v7 = vld [vmem:[%s23246_s10 + $0x2d0] sm:$0xff] }
0x1fc6   :  { %v13336_v58 = vld [vmem:[%s23246_s10 + $0x330] sm:$0xff] }
0x1fc7   :  { %v22383_v23 = vadd.f32 %v9309_v24, %v9308_v18  ;;  %v13319_v18 = vld [vmem:[%s23246_s10 + $0x2d8] sm:$0xff] }
0x1fc8   :  { %v19276_v24 = vpack.c.bf16 %v13319_v18, %v13318_v7 }
0x1fc9   :  { %17018 = vmatmul.mubr.msk.f32.vlgmr.msra.gmra.mrb[116].mxu1 %vm177_vm3, %v22383_v23  ;;  %17037 = vmatmul.mubr.msk.f32.vlgmr.msra.gmra.mrb[124].mxu0 %vm177_vm3, %v22383_v23 }
0x1fca   :  { %19202 = vmatpush3.bf16.msra.mxu1 %v21515_v12  ;;  %19214 = vmatpush3.bf16.msra.mxu0 %v21582_v31 }
0x1fcb   :  { %19203 = vmatprep.subr.bf16.mxu1 %v20216_v11  ;;  %19215 = vmatprep.subr.bf16.mxu0 %v20216_v11 }
0x1fcc   :  { %17055 = vmatprep.mubr.msk.f32.mxu1 %vm20217_vm2, %v20218_v25  ;;  %17074 = vmatprep.mubr.msk.f32.mxu0 %vm20217_vm2, %v20218_v25 }
0x1fce   :  { %19205 = vmatpush3.bf16.msra.mxu1 %v21535_v17  ;;  %19217 = vmatpush3.bf16.msra.mxu0 %v21597_v35 }
0x1fcf   :  { %19206 = vmatprep.subr.bf16.mxu1 %v20216_v11  ;;  %19218 = vmatprep.subr.bf16.mxu0 %v20216_v11 }
0x1fd2   :  { %19208 = vmatpush3.bf16.msra.mxu1 %v21557_v20  ;;  %19220 = vmatpush3.bf16.msra.mxu0 %v21615_v41 }
0x1fd3   :  { %19209 = vmatprep.subr.bf16.mxu1 %v20216_v11  ;;  %19221 = vmatprep.subr.bf16.mxu0 %v20216_v11 }
0x1fd6   :  { %19211 = vmatpush3.bf16.msra.mxu1 %v21571_v27  ;;  %19223 = vmatpush3.bf16.msra.mxu0 %v21631_v47 }
0x1fd7   :  { %19224 = vmatprep.subr.bf16.mxu1 %v20216_v11  ;;  %19236 = vmatprep.subr.bf16.mxu0 %v20216_v11 }
0x1fd9   :  { %17056 = vmatmul.mubr.msk.f32.vlgmr.msra.gmra.mrb[118].mxu1 %vm177_vm3, %v22383_v23  ;;  %17075 = vmatmul.mubr.msk.f32.vlgmr.msra.gmra.mrb[126].mxu0 %vm177_vm3, %v22383_v23 }
0x1fda   :  { %19238 = vmatpush3.bf16.msra.mxu0 %v21417_v53  ;;  %17093 = vmatprep.mubr.msk.f32.mxu1 %vm20217_vm2, %v20218_v25 }
0x1fdb   :  { %19239 = vmatprep.subr.bf16.mxu0 %v20216_v11  ;;  %17112 = vmatprep.mubr.msk.f32.mxu0 %vm20217_vm2, %v20218_v25 }
0x1fdc   :  { %19226 = vmatpush3.bf16.msra.mxu1 %v19225_v50  ;;  %v13322_v50 = vld [vmem:[%s23246_s10 + $0x2f0] sm:$0xff] }
0x1fdd   :  { %19227 = vmatprep.subr.bf16.mxu1 %v20216_v11  ;;  %v19282_v0 = vpack.c.bf16 %v13323_v30, %v13322_v50 }
0x1fde   :  { %19241 = vmatpush3.bf16.msra.mxu0 %v21444_v13 }
0x1fdf   :  { %19242 = vmatprep.subr.bf16.mxu0 %v20216_v11 }
0x1fe0   :  { %19229 = vmatpush3.bf16.msra.mxu1 %v19228_v1 }
0x1fe1   :  { %19230 = vmatprep.subr.bf16.mxu1 %v20216_v11 }
0x1fe2   :  { %19244 = vmatpush3.bf16.msra.mxu0 %v21472_v63 }
0x1fe3   :  { %19245 = vmatprep.subr.bf16.mxu0 %v20216_v11 }
0x1fe4   :  { %19232 = vmatpush3.bf16.msra.mxu1 %v19231_v3 }
0x1fe5   :  { %19233 = vmatprep.subr.bf16.mxu1 %v20216_v11 }
0x1fe6   :  { %19247 = vmatpush3.bf16.msra.mxu0 %v21498_v42 }
0x1fe7   :  { %19260 = vmatprep.subr.bf16.mxu0 %v20216_v11 }
0x1fe8   :  { %19235 = vmatpush3.bf16.msra.mxu1 %v19234_v6 }
0x1fe9   :  { %19248 = vmatprep.subr.bf16.mxu1 %v20216_v11 }
0x209c   :  { %v9389_v8 = vpop.f32.mrb[116].mxu1  ;;  %v9461_v14 = vpop.f32.mrb[124].mxu0 }
0x209d   :  { %v22454_v15 = vadd.f32 %v9389_v8, %v22379_v19  ;;  %v9465_v2 = vadd.f32 %v9461_v14, %v9394_v10  ;;  %v17019_v9 = vpop.f32.mrb[117].mxu1  ;;  %v17038_v16 = vpop.f32.mrb[125].mxu0 }
0x209f   :  { %v13298_v39 = vmul.f32 -1.442695, %v9465_v2  ;;  %v9789_v2 = vld [vmem:[#allocation3 + $0x16] sm:$0x3] }
0x20a1   :  { %20049 = vpow2.f32 %v13298_v39 }
0x20ab   :  { %v20050_v33 = vpop.eup %20049 }
0x20ac   :  { %v9469_v46 = vadd.f32 1.0, %v20050_v33  ;;  %v9539_v21 = vpop.f32.mrb[118].mxu1  ;;  %v9617_v26 = vpop.f32.mrb[126].mxu0 }
0x20ad   :  { %v9543_v22 = vadd.f32 %v9539_v21, %v9472_v38  ;;  %v17057_v28 = vpop.f32.mrb[119].mxu1  ;;  %v17076_v49 = vpop.f32.mrb[127].mxu0  ;;  %v9618_v43 = vadd.f32 %v22154_v60, %v9617_v26 }
0x20ae   :  { %20051 = vrcp.f32 %v9469_v46  ;;  %v9867_v28 = vld [vmem:[#allocation4 + $0x16] sm:$0x3] }
0x20af   :  { %v13300_v32 = vmul.f32 -1.442695, %v9543_v22 }
0x20b1   :  { %20053 = vpow2.f32 %v13300_v32 }
0x20b8   :  { %v20052_v19 = vpop.eup %20051 }
0x20b9   :  { %v9621_v34 = vmul.f32 %v20052_v19, %v9618_v43 }
0x20bb   :  { %v20054_v37 = vpop.eup %20053  ;;  %v9622_v48 = vadd.f32 %v9621_v34, %v9550_v40 }
0x20bc   :  { %v9547_v44 = vadd.f32 1.0, %v20054_v37 }
0x20be   :  { %20055 = vrcp.f32 %v9547_v44 }
0x20bf   :  { %20057 = vtanh.f32 %v9622_v48  ;;  %v13331_v48 = vld [vmem:[%s23246_s10 + $0x308] sm:$0xff] }
0x20c8   :  { %v20056_v51 = vpop.eup %20055 }
0x20c9   :  { %v9624_v29 = vsub.f32 1.0, %v20056_v51  ;;  %v20058_v52 = vpop.eup %20057  ;;  %v9626_v55 = vmul.f32 %v20056_v51, %v22383_v23  ;;  %v13320_v23 = vld [vmem:[%s23246_s10 + $0x2e0] sm:$0xff] }
0x20ca   :  { %v19279_v62 = vpack.c.bf16 %v13321_v59, %v13320_v23 }
0x20cb   :  { %v9625_v54 = vmul.f32 %v20058_v52, %v9624_v29  ;;  %v13332_v29 = vld [vmem:[%s23246_s10 + $0x310] sm:$0xff]  ;;  %v13333_v52 = vld [vmem:[%s23246_s10 + $0x318] sm:$0xff] }
0x20cd   :  { %v22458_v56 = vadd.f32 %v9626_v55, %v9625_v54  ;;  %v19324_v54 = vpack.c.bf16 %v13333_v52, %v13332_v29  ;;  %v13334_v55 = vld [vmem:[%s23246_s10 + $0x320] sm:$0xff]  ;;  %v13351_v29 = vld [vmem:[%s23246_s10 + $0x378] sm:$0xff] }
0x20cf   :  { %17094 = vmatmul.mubr.msk.f32.vlgmr.msra.gmra.mrb[120].mxu1 %vm177_vm3, %v22458_v56  ;;  %17113 = vmatmul.mubr.msk.f32.vlgmr.msra.gmra.mrb[128].mxu0 %vm177_vm3, %v22458_v56 }
0x20d0   :  { %19250 = vmatpush3.bf16.msra.mxu1 %v21515_v12  ;;  %19262 = vmatpush3.bf16.msra.mxu0 %v21582_v31 }
0x20d1   :  { %19251 = vmatprep.subr.bf16.mxu1 %v20216_v11  ;;  %19263 = vmatprep.subr.bf16.mxu0 %v20216_v11 }
0x20d2   :  { %17131 = vmatprep.mubr.msk.f32.mxu1 %vm20217_vm2, %v20218_v25  ;;  %17150 = vmatprep.mubr.msk.f32.mxu0 %vm20217_vm2, %v20218_v25 }
0x20d4   :  { %19253 = vmatpush3.bf16.msra.mxu1 %v21535_v17  ;;  %19265 = vmatpush3.bf16.msra.mxu0 %v21597_v35 }
0x20d5   :  { %19254 = vmatprep.subr.bf16.mxu1 %v20216_v11  ;;  %19266 = vmatprep.subr.bf16.mxu0 %v20216_v11 }
0x20d8   :  { %19256 = vmatpush3.bf16.msra.mxu1 %v21557_v20  ;;  %19268 = vmatpush3.bf16.msra.mxu0 %v21615_v41 }
0x20d9   :  { %19257 = vmatprep.subr.bf16.mxu1 %v20216_v11  ;;  %19269 = vmatprep.subr.bf16.mxu0 %v20216_v11 }
0x20dc   :  { %19259 = vmatpush3.bf16.msra.mxu1 %v21571_v27  ;;  %19271 = vmatpush3.bf16.msra.mxu0 %v21631_v47 }
0x20dd   :  { %19272 = vmatprep.subr.bf16.mxu1 %v20216_v11  ;;  %19284 = vmatprep.subr.bf16.mxu0 %v20216_v11 }
0x20df   :  { %17132 = vmatmul.mubr.msk.f32.vlgmr.msra.gmra.mrb[122].mxu1 %vm177_vm3, %v22458_v56  ;;  %17151 = vmatmul.mubr.msk.f32.vlgmr.msra.gmra.mrb[130].mxu0 %vm177_vm3, %v22458_v56 }
0x20e0   :  { %19286 = vmatpush3.bf16.msra.mxu0 %v21417_v53  ;;  %17169 = vmatprep.mubr.msk.f32.mxu1 %vm20217_vm2, %v20218_v25 }
0x20e1   :  { %19287 = vmatprep.subr.bf16.mxu0 %v20216_v11  ;;  %17188 = vmatprep.mubr.msk.f32.mxu0 %vm20217_vm2, %v20218_v25 }
0x20e2   :  { %19274 = vmatpush3.bf16.msra.mxu1 %v19273_v45  ;;  %v13337_v45 = vld [vmem:[%s23246_s10 + $0x338] sm:$0xff] }
0x20e3   :  { %19275 = vmatprep.subr.bf16.mxu1 %v20216_v11  ;;  %v19330_v7 = vpack.c.bf16 %v13337_v45, %v13336_v58 }
0x20e4   :  { %19289 = vmatpush3.bf16.msra.mxu0 %v21444_v13 }
0x20e5   :  { %19290 = vmatprep.subr.bf16.mxu0 %v20216_v11 }
0x20e6   :  { %19277 = vmatpush3.bf16.msra.mxu1 %v19276_v24  ;;  %v10028_v24 = vld [vmem:[#allocation2 + $0x18] sm:$0x3] }
0x20e7   :  { %19278 = vmatprep.subr.bf16.mxu1 %v20216_v11 }
0x20e8   :  { %19292 = vmatpush3.bf16.msra.mxu0 %v21472_v63 }
0x20e9   :  { %19293 = vmatprep.subr.bf16.mxu0 %v20216_v11 }
0x20ea   :  { %19280 = vmatpush3.bf16.msra.mxu1 %v19279_v62 }
0x20eb   :  { %19281 = vmatprep.subr.bf16.mxu1 %v20216_v11 }
0x20ec   :  { %19295 = vmatpush3.bf16.msra.mxu0 %v21498_v42 }
0x20ed   :  { %19308 = vmatprep.subr.bf16.mxu0 %v20216_v11 }
0x20ee   :  { %19283 = vmatpush3.bf16.msra.mxu1 %v19282_v0 }
0x20ef   :  { %19296 = vmatprep.subr.bf16.mxu1 %v20216_v11 }
0x21a2   :  { %v9706_v1 = vpop.f32.mrb[120].mxu1  ;;  %v9778_v61 = vpop.f32.mrb[128].mxu0 }
0x21a3   :  { %v22529_v3 = vadd.f32 %v9706_v1, %v22454_v15  ;;  %v9782_v4 = vadd.f32 %v9778_v61, %v9711_v36  ;;  %v17095_v5 = vpop.f32.mrb[121].mxu1  ;;  %v17114_v6 = vpop.f32.mrb[129].mxu0  ;;  %v10106_v61 = vld [vmem:[#allocation3 + $0x18] sm:$0x3] }
0x21a5   :  { %v13312_v8 = vmul.f32 -1.442695, %v9782_v4 }
0x21a7   :  { %20059 = vpow2.f32 %v13312_v8 }
0x21b1   :  { %v20060_v10 = vpop.eup %20059 }
0x21b2   :  { %v9786_v14 = vadd.f32 1.0, %v20060_v10  ;;  %v9856_v9 = vpop.f32.mrb[122].mxu1  ;;  %v9934_v16 = vpop.f32.mrb[130].mxu0 }
0x21b3   :  { %v9860_v39 = vadd.f32 %v9856_v9, %v9789_v2  ;;  %v17133_v33 = vpop.f32.mrb[123].mxu1  ;;  %v17152_v46 = vpop.f32.mrb[131].mxu0  ;;  %v9935_v21 = vadd.f32 %v22154_v60, %v9934_v16  ;;  %v13330_v60 = vld [vmem:[%s23246_s10 + $0x300] sm:$0xff] }
0x21b4   :  { %20061 = vrcp.f32 %v9786_v14  ;;  %v19321_v51 = vpack.c.bf16 %v13331_v48, %v13330_v60  ;;  %v10184_v33 = vld [vmem:[#allocation4 + $0x18] sm:$0x3]  ;;  %v13349_v60 = vld [vmem:[%s23246_s10 + $0x368] sm:$0xff] }
0x21b5   :  { %v13314_v38 = vmul.f32 -1.442695, %v9860_v39 }
0x21b7   :  { %20063 = vpow2.f32 %v13314_v38 }
0x21be   :  { %v20062_v15 = vpop.eup %20061 }
0x21bf   :  { %v9938_v26 = vmul.f32 %v20062_v15, %v9935_v21 }
0x21c1   :  { %v20064_v22 = vpop.eup %20063  ;;  %v9939_v32 = vadd.f32 %v9938_v26, %v9867_v28 }
0x21c2   :  { %v9864_v49 = vadd.f32 1.0, %v20064_v22 }
0x21c4   :  { %20065 = vrcp.f32 %v9864_v49 }
0x21c5   :  { %20067 = vtanh.f32 %v9939_v32  ;;  %v13344_v32 = vld [vmem:[%s23246_s10 + $0x340] sm:$0xff] }
0x21ce   :  { %v20066_v43 = vpop.eup %20065 }
0x21cf   :  { %v9941_v19 = vsub.f32 1.0, %v20066_v43  ;;  %v20068_v34 = vpop.eup %20067  ;;  %v9943_v40 = vmul.f32 %v20066_v43, %v22458_v56  ;;  %v13335_v56 = vld [vmem:[%s23246_s10 + $0x328] sm:$0xff] }
0x21d0   :  { %v19327_v57 = vpack.c.bf16 %v13335_v56, %v13334_v55  ;;  %v13345_v43 = vld [vmem:[%s23246_s10 + $0x348] sm:$0xff]  ;;  %v10345_v55 = vld [vmem:[#allocation2 + $0x1a] sm:$0x3] }
0x21d1   :  { %v9942_v37 = vmul.f32 %v20068_v34, %v9941_v19  ;;  %v19369_v19 = vpack.c.bf16 %v13345_v43, %v13344_v32  ;;  %v13346_v34 = vld [vmem:[%s23246_s10 + $0x350] sm:$0xff]  ;;  %v13363_v32 = vld [vmem:[%s23246_s10 + $0x3a8] sm:$0xff] }
0x21d3   :  { %v22533_v44 = vadd.f32 %v9943_v40, %v9942_v37  ;;  %v13347_v37 = vld [vmem:[%s23246_s10 + $0x358] sm:$0xff] }
0x21d4   :  { %v19372_v40 = vpack.c.bf16 %v13347_v37, %v13346_v34  ;;  %v13365_v34 = vld [vmem:[%s23246_s10 + $0x3b8] sm:$0xff] }
0x21d5   :  { %17170 = vmatmul.mubr.msk.f32.vlgmr.msra.gmra.mrb[124].mxu1 %vm177_vm3, %v22533_v44  ;;  %17189 = vmatmul.mubr.msk.f32.vlgmr.msra.gmra.mrb[132].mxu0 %vm177_vm3, %v22533_v44 }
0x21d6   :  { %19298 = vmatpush3.bf16.msra.mxu1 %v21515_v12  ;;  %19310 = vmatpush3.bf16.msra.mxu0 %v21582_v31 }
0x21d7   :  { %19299 = vmatprep.subr.bf16.mxu1 %v20216_v11  ;;  %19311 = vmatprep.subr.bf16.mxu0 %v20216_v11 }
0x21d8   :  { %17207 = vmatprep.mubr.msk.f32.mxu1 %vm20217_vm2, %v20218_v25  ;;  %17226 = vmatprep.mubr.msk.f32.mxu0 %vm20217_vm2, %v20218_v25 }
0x21da   :  { %19301 = vmatpush3.bf16.msra.mxu1 %v21535_v17  ;;  %19313 = vmatpush3.bf16.msra.mxu0 %v21597_v35 }
0x21db   :  { %19302 = vmatprep.subr.bf16.mxu1 %v20216_v11  ;;  %19314 = vmatprep.subr.bf16.mxu0 %v20216_v11 }
0x21de   :  { %19304 = vmatpush3.bf16.msra.mxu1 %v21557_v20  ;;  %19316 = vmatpush3.bf16.msra.mxu0 %v21615_v41 }
0x21df   :  { %19305 = vmatprep.subr.bf16.mxu1 %v20216_v11  ;;  %19317 = vmatprep.subr.bf16.mxu0 %v20216_v11 }
0x21e2   :  { %19307 = vmatpush3.bf16.msra.mxu1 %v21571_v27  ;;  %19319 = vmatpush3.bf16.msra.mxu0 %v21631_v47 }
0x21e3   :  { %19320 = vmatprep.subr.bf16.mxu1 %v20216_v11  ;;  %19332 = vmatprep.subr.bf16.mxu0 %v20216_v11 }
0x21e5   :  { %17208 = vmatmul.mubr.msk.f32.vlgmr.msra.gmra.mrb[126].mxu1 %vm177_vm3, %v22533_v44  ;;  %17227 = vmatmul.mubr.msk.f32.vlgmr.msra.gmra.mrb[134].mxu0 %vm177_vm3, %v22533_v44 }
0x21e6   :  { %19334 = vmatpush3.bf16.msra.mxu0 %v21417_v53  ;;  %17245 = vmatprep.mubr.msk.f32.mxu1 %vm20217_vm2, %v20218_v25 }
0x21e7   :  { %19335 = vmatprep.subr.bf16.mxu0 %v20216_v11  ;;  %17264 = vmatprep.mubr.msk.f32.mxu0 %vm20217_vm2, %v20218_v25 }
0x21e8   :  { %19322 = vmatpush3.bf16.msra.mxu1 %v19321_v51  ;;  %v13350_v51 = vld [vmem:[%s23246_s10 + $0x370] sm:$0xff] }
0x21e9   :  { %19323 = vmatprep.subr.bf16.mxu1 %v20216_v11  ;;  %v19378_v52 = vpack.c.bf16 %v13351_v29, %v13350_v51 }
0x21ea   :  { %19337 = vmatpush3.bf16.msra.mxu0 %v21444_v13 }
0x21eb   :  { %19338 = vmatprep.subr.bf16.mxu0 %v20216_v11 }
0x21ec   :  { %19325 = vmatpush3.bf16.msra.mxu1 %v19324_v54 }
0x21ed   :  { %19326 = vmatprep.subr.bf16.mxu1 %v20216_v11 }
0x21ee   :  { %19340 = vmatpush3.bf16.msra.mxu0 %v21472_v63 }
0x21ef   :  { %19341 = vmatprep.subr.bf16.mxu0 %v20216_v11 }
0x21f0   :  { %19328 = vmatpush3.bf16.msra.mxu1 %v19327_v57 }
0x21f1   :  { %19329 = vmatprep.subr.bf16.mxu1 %v20216_v11 }
0x21f2   :  { %19343 = vmatpush3.bf16.msra.mxu0 %v21498_v42 }
0x21f3   :  { %19356 = vmatprep.subr.bf16.mxu0 %v20216_v11 }
0x21f4   :  { %19331 = vmatpush3.bf16.msra.mxu1 %v19330_v7 }
0x21f5   :  { %19344 = vmatprep.subr.bf16.mxu1 %v20216_v11 }
0x22a8   :  { %v10023_v18 = vpop.f32.mrb[124].mxu1  ;;  %v10095_v23 = vpop.f32.mrb[132].mxu0 }
0x22a9   :  { %v22604_v59 = vadd.f32 %v10023_v18, %v22529_v3  ;;  %v10099_v62 = vadd.f32 %v10095_v23, %v10028_v24  ;;  %v17171_v50 = vpop.f32.mrb[125].mxu1  ;;  %v17190_v30 = vpop.f32.mrb[133].mxu0  ;;  %v22609_v3 = vld [vmem:[%s23245_s9] ss:$0 sm:$0xff] }
0x22ab   :  { %v13326_v0 = vmul.f32 -1.442695, %v10099_v62  ;;  %v10423_v62 = vld [vmem:[#allocation3 + $0x1a] sm:$0x3] }
0x22ad   :  { %20069 = vpow2.f32 %v13326_v0 }
0x22b7   :  { %v20070_v1 = vpop.eup %20069 }
0x22b8   :  { %v10103_v36 = vadd.f32 1.0, %v20070_v1  ;;  %v10173_v4 = vpop.f32.mrb[126].mxu1  ;;  %v10251_v5 = vpop.f32.mrb[134].mxu0 }
0x22b9   :  { %v10177_v6 = vadd.f32 %v10173_v4, %v10106_v61  ;;  %v17209_v8 = vpop.f32.mrb[127].mxu1  ;;  %v17228_v10 = vpop.f32.mrb[135].mxu0  ;;  %v10252_v2 = vadd.f32 %v22609_v3, %v10251_v5 }
0x22ba   :  { %20071 = vrcp.f32 %v10103_v36  ;;  %v10501_v8 = vld [vmem:[#allocation4 + $0x1a] sm:$0x3] }
0x22bb   :  { %v13328_v14 = vmul.f32 -1.442695, %v10177_v6 }
0x22bd   :  { %20073 = vpow2.f32 %v13328_v14 }
0x22c4   :  { %v20072_v9 = vpop.eup %20071 }
0x22c5   :  { %v10255_v16 = vmul.f32 %v20072_v9, %v10252_v2 }
0x22c7   :  { %v20074_v39 = vpop.eup %20073  ;;  %v10256_v38 = vadd.f32 %v10255_v16, %v10184_v33 }
0x22c8   :  { %v10181_v46 = vadd.f32 1.0, %v20074_v39 }
0x22ca   :  { %20075 = vrcp.f32 %v10181_v46 }
0x22cb   :  { %20077 = vtanh.f32 %v10256_v38  ;;  %v13358_v38 = vld [vmem:[%s23246_s10 + $0x380] sm:$0xff] }
0x22d4   :  { %v20076_v21 = vpop.eup %20075 }
0x22d5   :  { %v10258_v15 = vsub.f32 1.0, %v20076_v21  ;;  %v20078_v26 = vpop.eup %20077  ;;  %v10260_v28 = vmul.f32 %v20076_v21, %v22533_v44  ;;  %v13348_v44 = vld [vmem:[%s23246_s10 + $0x360] sm:$0xff]  ;;  %v13359_v21 = vld [vmem:[%s23246_s10 + $0x388] sm:$0xff] }
0x22d6   :  { %v19375_v48 = vpack.c.bf16 %v13349_v60, %v13348_v44  ;;  %v10662_v44 = vld [vmem:[#allocation2 + $0x1c] sm:$0x3] }
0x22d7   :  { %v10259_v22 = vmul.f32 %v20078_v26, %v10258_v15  ;;  %v19417_v15 = vpack.c.bf16 %v13359_v21, %v13358_v38  ;;  %v13360_v26 = vld [vmem:[%s23246_s10 + $0x390] sm:$0xff]  ;;  %v13377_v38 = vld [vmem:[%s23246_s10 + $0x3e8] sm:$0xff] }
0x22d9   :  { %v22613_v49 = vadd.f32 %v10260_v28, %v10259_v22  ;;  %v13361_v22 = vld [vmem:[%s23246_s10 + $0x398] sm:$0xff] }
0x22da   :  { %v19420_v28 = vpack.c.bf16 %v13361_v22, %v13360_v26  ;;  %v13379_v26 = vld [vmem:[%s23246_s10 + $0x3f8] sm:$0xff] }
0x22db   :  { %17246 = vmatmul.mubr.msk.f32.vlgmr.msra.gmra.mrb[128].mxu1 %vm177_vm3, %v22613_v49  ;;  %17265 = vmatmul.mubr.msk.f32.vlgmr.msra.gmra.mrb[136].mxu0 %vm177_vm3, %v22613_v49 }
0x22dc   :  { %19346 = vmatpush3.bf16.msra.mxu1 %v21515_v12  ;;  %19358 = vmatpush3.bf16.msra.mxu0 %v21582_v31 }
0x22dd   :  { %19347 = vmatprep.subr.bf16.mxu1 %v20216_v11  ;;  %19359 = vmatprep.subr.bf16.mxu0 %v20216_v11 }
0x22de   :  { %17283 = vmatprep.mubr.msk.f32.mxu1 %vm20217_vm2, %v20218_v25  ;;  %17302 = vmatprep.mubr.msk.f32.mxu0 %vm20217_vm2, %v20218_v25 }
0x22e0   :  { %19349 = vmatpush3.bf16.msra.mxu1 %v21535_v17  ;;  %19361 = vmatpush3.bf16.msra.mxu0 %v21597_v35 }
0x22e1   :  { %19350 = vmatprep.subr.bf16.mxu1 %v20216_v11  ;;  %19362 = vmatprep.subr.bf16.mxu0 %v20216_v11 }
0x22e4   :  { %19352 = vmatpush3.bf16.msra.mxu1 %v21557_v20  ;;  %19364 = vmatpush3.bf16.msra.mxu0 %v21615_v41 }
0x22e5   :  { %19353 = vmatprep.subr.bf16.mxu1 %v20216_v11  ;;  %19365 = vmatprep.subr.bf16.mxu0 %v20216_v11 }
0x22e8   :  { %19355 = vmatpush3.bf16.msra.mxu1 %v21571_v27  ;;  %19367 = vmatpush3.bf16.msra.mxu0 %v21631_v47 }
0x22e9   :  { %19368 = vmatprep.subr.bf16.mxu1 %v20216_v11  ;;  %19380 = vmatprep.subr.bf16.mxu0 %v20216_v11 }
0x22eb   :  { %17284 = vmatmul.mubr.msk.f32.vlgmr.msra.gmra.mrb[130].mxu1 %vm177_vm3, %v22613_v49  ;;  %17303 = vmatmul.mubr.msk.f32.vlgmr.msra.gmra.mrb[138].mxu0 %vm177_vm3, %v22613_v49 }
0x22ec   :  { %19382 = vmatpush3.bf16.msra.mxu0 %v21417_v53  ;;  %17321 = vmatprep.mubr.msk.f32.mxu1 %vm20217_vm2, %v20218_v25 }
0x22ed   :  { %19383 = vmatprep.subr.bf16.mxu0 %v20216_v11  ;;  %17340 = vmatprep.mubr.msk.f32.mxu0 %vm20217_vm2, %v20218_v25 }
0x22ee   :  { %19370 = vmatpush3.bf16.msra.mxu1 %v19369_v19  ;;  %v13364_v19 = vld [vmem:[%s23246_s10 + $0x3b0] sm:$0xff] }
0x22ef   :  { %19371 = vmatprep.subr.bf16.mxu1 %v20216_v11  ;;  %v19426_v37 = vpack.c.bf16 %v13365_v34, %v13364_v19 }
0x22f0   :  { %19385 = vmatpush3.bf16.msra.mxu0 %v21444_v13 }
0x22f1   :  { %19386 = vmatprep.subr.bf16.mxu0 %v20216_v11 }
0x22f2   :  { %19373 = vmatpush3.bf16.msra.mxu1 %v19372_v40 }
0x22f3   :  { %19374 = vmatprep.subr.bf16.mxu1 %v20216_v11 }
0x22f4   :  { %19388 = vmatpush3.bf16.msra.mxu0 %v21472_v63 }
0x22f5   :  { %19389 = vmatprep.subr.bf16.mxu0 %v20216_v11 }
0x22f6   :  { %19376 = vmatpush3.bf16.msra.mxu1 %v19375_v48 }
0x22f7   :  { %19377 = vmatprep.subr.bf16.mxu1 %v20216_v11 }
0x22f8   :  { %19391 = vmatpush3.bf16.msra.mxu0 %v21498_v42 }
0x22f9   :  { %19404 = vmatprep.subr.bf16.mxu0 %v20216_v11 }
0x22fa   :  { %19379 = vmatpush3.bf16.msra.mxu1 %v19378_v52 }
0x22fb   :  { %19392 = vmatprep.subr.bf16.mxu1 %v20216_v11 }
0x23ae   :  { %v10340_v54 = vpop.f32.mrb[128].mxu1  ;;  %v10412_v56 = vpop.f32.mrb[136].mxu0 }
0x23af   :  { %v22684_v57 = vadd.f32 %v10340_v54, %v22604_v59  ;;  %v10416_v58 = vadd.f32 %v10412_v56, %v10345_v55  ;;  %v17247_v45 = vpop.f32.mrb[129].mxu1  ;;  %v17266_v7 = vpop.f32.mrb[137].mxu0 }
0x23b1   :  { %v13340_v18 = vmul.f32 -1.442695, %v10416_v58  ;;  %v10740_v58 = vld [vmem:[#allocation3 + $0x1c] sm:$0x3] }
0x23b3   :  { %20079 = vpow2.f32 %v13340_v18 }
0x23bd   :  { %v20080_v24 = vpop.eup %20079 }
0x23be   :  { %v10420_v23 = vadd.f32 1.0, %v20080_v24  ;;  %v10490_v50 = vpop.f32.mrb[130].mxu1  ;;  %v10568_v30 = vpop.f32.mrb[138].mxu0 }
0x23bf   :  { %v10494_v0 = vadd.f32 %v10490_v50, %v10423_v62  ;;  %v17285_v1 = vpop.f32.mrb[131].mxu1  ;;  %v17304_v36 = vpop.f32.mrb[139].mxu0  ;;  %v10569_v4 = vadd.f32 %v22609_v3, %v10568_v30 }
0x23c0   :  { %20081 = vrcp.f32 %v10420_v23  ;;  %v10818_v1 = vld [vmem:[#allocation4 + $0x1c] sm:$0x3] }
0x23c1   :  { %v13342_v61 = vmul.f32 -1.442695, %v10494_v0 }
0x23c3   :  { %20083 = vpow2.f32 %v13342_v61 }
0x23ca   :  { %v20082_v59 = vpop.eup %20081 }
0x23cb   :  { %v10572_v5 = vmul.f32 %v20082_v59, %v10569_v4 }
0x23cd   :  { %v20084_v6 = vpop.eup %20083  ;;  %v10573_v14 = vadd.f32 %v10572_v5, %v10501_v8 }
0x23ce   :  { %v10498_v10 = vadd.f32 1.0, %v20084_v6 }
0x23d0   :  { %20085 = vrcp.f32 %v10498_v10 }
0x23d1   :  { %20087 = vtanh.f32 %v10573_v14  ;;  %v13372_v14 = vld [vmem:[%s23246_s10 + $0x3c0] sm:$0xff] }
0x23da   :  { %v20086_v2 = vpop.eup %20085 }
0x23db   :  { %v10575_v9 = vsub.f32 1.0, %v20086_v2  ;;  %v20088_v16 = vpop.eup %20087  ;;  %v10577_v33 = vmul.f32 %v20086_v2, %v22613_v49  ;;  %v13362_v49 = vld [vmem:[%s23246_s10 + $0x3a0] sm:$0xff]  ;;  %v13373_v2 = vld [vmem:[%s23246_s10 + $0x3c8] sm:$0xff] }
0x23dc   :  { %v19423_v43 = vpack.c.bf16 %v13363_v32, %v13362_v49  ;;  %v10979_v49 = vld [vmem:[#allocation2 + $0x1e] sm:$0x3] }
0x23dd   :  { %v10576_v39 = vmul.f32 %v20088_v16, %v10575_v9  ;;  %v19465_v9 = vpack.c.bf16 %v13373_v2, %v13372_v14  ;;  %v13374_v16 = vld [vmem:[%s23246_s10 + $0x3d0] sm:$0xff]  ;;  %v13391_v14 = vld [vmem:[%s23246_s10 + $0x428] sm:$0xff] }
0x23df   :  { %v22688_v46 = vadd.f32 %v10577_v33, %v10576_v39  ;;  %v13375_v39 = vld [vmem:[%s23246_s10 + $0x3d8] sm:$0xff] }
0x23e0   :  { %v19468_v33 = vpack.c.bf16 %v13375_v39, %v13374_v16  ;;  %v13393_v16 = vld [vmem:[%s23246_s10 + $0x438] sm:$0xff] }
0x23e1   :  { %17322 = vmatmul.mubr.msk.f32.vlgmr.msra.gmra.mrb[132].mxu1 %vm177_vm3, %v22688_v46  ;;  %17341 = vmatmul.mubr.msk.f32.vlgmr.msra.gmra.mrb[140].mxu0 %vm177_vm3, %v22688_v46 }
0x23e2   :  { %19394 = vmatpush3.bf16.msra.mxu1 %v21515_v12  ;;  %19406 = vmatpush3.bf16.msra.mxu0 %v21582_v31 }
0x23e3   :  { %19395 = vmatprep.subr.bf16.mxu1 %v20216_v11  ;;  %19407 = vmatprep.subr.bf16.mxu0 %v20216_v11 }
0x23e4   :  { %17359 = vmatprep.mubr.msk.f32.mxu1 %vm20217_vm2, %v20218_v25  ;;  %17378 = vmatprep.mubr.msk.f32.mxu0 %vm20217_vm2, %v20218_v25 }
0x23e6   :  { %19397 = vmatpush3.bf16.msra.mxu1 %v21535_v17  ;;  %19409 = vmatpush3.bf16.msra.mxu0 %v21597_v35 }
0x23e7   :  { %19398 = vmatprep.subr.bf16.mxu1 %v20216_v11  ;;  %19410 = vmatprep.subr.bf16.mxu0 %v20216_v11 }
0x23ea   :  { %19400 = vmatpush3.bf16.msra.mxu1 %v21557_v20  ;;  %19412 = vmatpush3.bf16.msra.mxu0 %v21615_v41 }
0x23eb   :  { %19401 = vmatprep.subr.bf16.mxu1 %v20216_v11  ;;  %19413 = vmatprep.subr.bf16.mxu0 %v20216_v11 }
0x23ee   :  { %19403 = vmatpush3.bf16.msra.mxu1 %v21571_v27  ;;  %19415 = vmatpush3.bf16.msra.mxu0 %v21631_v47 }
0x23ef   :  { %19416 = vmatprep.subr.bf16.mxu1 %v20216_v11  ;;  %19428 = vmatprep.subr.bf16.mxu0 %v20216_v11 }
0x23f1   :  { %17360 = vmatmul.mubr.msk.f32.vlgmr.msra.gmra.mrb[134].mxu1 %vm177_vm3, %v22688_v46  ;;  %17379 = vmatmul.mubr.msk.f32.vlgmr.msra.gmra.mrb[142].mxu0 %vm177_vm3, %v22688_v46 }
0x23f2   :  { %19430 = vmatpush3.bf16.msra.mxu0 %v21417_v53  ;;  %17397 = vmatprep.mubr.msk.f32.mxu1 %vm20217_vm2, %v20218_v25 }
0x23f3   :  { %19431 = vmatprep.subr.bf16.mxu0 %v20216_v11  ;;  %17416 = vmatprep.mubr.msk.f32.mxu0 %vm20217_vm2, %v20218_v25 }
0x23f4   :  { %19418 = vmatpush3.bf16.msra.mxu1 %v19417_v15  ;;  %v13378_v15 = vld [vmem:[%s23246_s10 + $0x3f0] sm:$0xff] }
0x23f5   :  { %19419 = vmatprep.subr.bf16.mxu1 %v20216_v11  ;;  %v19474_v22 = vpack.c.bf16 %v13379_v26, %v13378_v15 }
0x23f6   :  { %19433 = vmatpush3.bf16.msra.mxu0 %v21444_v13 }
0x23f7   :  { %19434 = vmatprep.subr.bf16.mxu0 %v20216_v11 }
0x23f8   :  { %19421 = vmatpush3.bf16.msra.mxu1 %v19420_v28 }
0x23f9   :  { %19422 = vmatprep.subr.bf16.mxu1 %v20216_v11 }
0x23fa   :  { %19436 = vmatpush3.bf16.msra.mxu0 %v21472_v63 }
0x23fb   :  { %19437 = vmatprep.subr.bf16.mxu0 %v20216_v11 }
0x23fc   :  { %19424 = vmatpush3.bf16.msra.mxu1 %v19423_v43 }
0x23fd   :  { %19425 = vmatprep.subr.bf16.mxu1 %v20216_v11 }
0x23fe   :  { %19439 = vmatpush3.bf16.msra.mxu0 %v21498_v42 }
0x23ff   :  { %19452 = vmatprep.subr.bf16.mxu0 %v20216_v11 }
0x2400   :  { %19427 = vmatpush3.bf16.msra.mxu1 %v19426_v37 }
0x2401   :  { %19440 = vmatprep.subr.bf16.mxu1 %v20216_v11 }
0x24b4   :  { %v10657_v40 = vpop.f32.mrb[132].mxu1  ;;  %v10729_v60 = vpop.f32.mrb[140].mxu0 }
0x24b5   :  { %v22759_v48 = vadd.f32 %v10657_v40, %v22684_v57  ;;  %v10733_v51 = vadd.f32 %v10729_v60, %v10662_v44  ;;  %v17323_v29 = vpop.f32.mrb[133].mxu1  ;;  %v17342_v52 = vpop.f32.mrb[141].mxu0 }
0x24b7   :  { %v13354_v54 = vmul.f32 -1.442695, %v10733_v51  ;;  %v11057_v51 = vld [vmem:[#allocation3 + $0x1e] sm:$0x3] }
0x24b9   :  { %20089 = vpow2.f32 %v13354_v54 }
0x24c3   :  { %v20090_v55 = vpop.eup %20089 }
0x24c4   :  { %v10737_v56 = vadd.f32 1.0, %v20090_v55  ;;  %v10807_v45 = vpop.f32.mrb[134].mxu1  ;;  %v10885_v7 = vpop.f32.mrb[142].mxu0 }
0x24c5   :  { %v10811_v18 = vadd.f32 %v10807_v45, %v10740_v58  ;;  %v17361_v24 = vpop.f32.mrb[135].mxu1  ;;  %v17380_v23 = vpop.f32.mrb[143].mxu0  ;;  %v10886_v50 = vadd.f32 %v22609_v3, %v10885_v7 }
0x24c6   :  { %20091 = vrcp.f32 %v10737_v56  ;;  %v11135_v24 = vld [vmem:[#allocation4 + $0x1e] sm:$0x3] }
0x24c7   :  { %v13356_v62 = vmul.f32 -1.442695, %v10811_v18 }
0x24c9   :  { %20093 = vpow2.f32 %v13356_v62 }
0x24d0   :  { %v20092_v57 = vpop.eup %20091 }
0x24d1   :  { %v10889_v30 = vmul.f32 %v20092_v57, %v10886_v50 }
0x24d3   :  { %v20094_v0 = vpop.eup %20093  ;;  %v10890_v61 = vadd.f32 %v10889_v30, %v10818_v1 }
0x24d4   :  { %v10815_v36 = vadd.f32 1.0, %v20094_v0 }
0x24d6   :  { %20095 = vrcp.f32 %v10815_v36 }
0x24d7   :  { %20097 = vtanh.f32 %v10890_v61  ;;  %v13386_v61 = vld [vmem:[%s23246_s10 + $0x400] sm:$0xff] }
0x24e0   :  { %v20096_v4 = vpop.eup %20095 }
0x24e1   :  { %v10892_v59 = vsub.f32 1.0, %v20096_v4  ;;  %v20098_v5 = vpop.eup %20097  ;;  %v10894_v8 = vmul.f32 %v20096_v4, %v22688_v46  ;;  %v13376_v46 = vld [vmem:[%s23246_s10 + $0x3e0] sm:$0xff]  ;;  %v13387_v4 = vld [vmem:[%s23246_s10 + $0x408] sm:$0xff] }
0x24e2   :  { %v19471_v21 = vpack.c.bf16 %v13377_v38, %v13376_v46  ;;  %v11296_v46 = vld [vmem:[#allocation2 + $0x20] sm:$0x3] }
0x24e3   :  { %v10893_v6 = vmul.f32 %v20098_v5, %v10892_v59  ;;  %v19513_v59 = vpack.c.bf16 %v13387_v4, %v13386_v61  ;;  %v13388_v5 = vld [vmem:[%s23246_s10 + $0x410] sm:$0xff]  ;;  %v13405_v61 = vld [vmem:[%s23246_s10 + $0x468] sm:$0xff] }
0x24e5   :  { %v22763_v10 = vadd.f32 %v10894_v8, %v10893_v6  ;;  %v13389_v6 = vld [vmem:[%s23246_s10 + $0x418] sm:$0xff] }
0x24e6   :  { %v19516_v8 = vpack.c.bf16 %v13389_v6, %v13388_v5  ;;  %v13407_v5 = vld [vmem:[%s23246_s10 + $0x478] sm:$0xff] }
0x24e7   :  { %17398 = vmatmul.mubr.msk.f32.vlgmr.msra.gmra.mrb[136].mxu1 %vm177_vm3, %v22763_v10  ;;  %17417 = vmatmul.mubr.msk.f32.vlgmr.msra.gmra.mrb[144].mxu0 %vm177_vm3, %v22763_v10 }
0x24e8   :  { %19442 = vmatpush3.bf16.msra.mxu1 %v21515_v12  ;;  %19454 = vmatpush3.bf16.msra.mxu0 %v21582_v31 }
0x24e9   :  { %19443 = vmatprep.subr.bf16.mxu1 %v20216_v11  ;;  %19455 = vmatprep.subr.bf16.mxu0 %v20216_v11 }
0x24ea   :  { %17435 = vmatprep.mubr.msk.f32.mxu1 %vm20217_vm2, %v20218_v25  ;;  %17454 = vmatprep.mubr.msk.f32.mxu0 %vm20217_vm2, %v20218_v25 }
0x24ec   :  { %19445 = vmatpush3.bf16.msra.mxu1 %v21535_v17  ;;  %19457 = vmatpush3.bf16.msra.mxu0 %v21597_v35 }
0x24ed   :  { %19446 = vmatprep.subr.bf16.mxu1 %v20216_v11  ;;  %19458 = vmatprep.subr.bf16.mxu0 %v20216_v11 }
0x24f0   :  { %19448 = vmatpush3.bf16.msra.mxu1 %v21557_v20  ;;  %19460 = vmatpush3.bf16.msra.mxu0 %v21615_v41 }
0x24f1   :  { %19449 = vmatprep.subr.bf16.mxu1 %v20216_v11  ;;  %19461 = vmatprep.subr.bf16.mxu0 %v20216_v11 }
0x24f4   :  { %19451 = vmatpush3.bf16.msra.mxu1 %v21571_v27  ;;  %19463 = vmatpush3.bf16.msra.mxu0 %v21631_v47 }
0x24f5   :  { %19464 = vmatprep.subr.bf16.mxu1 %v20216_v11  ;;  %19476 = vmatprep.subr.bf16.mxu0 %v20216_v11 }
0x24f7   :  { %17436 = vmatmul.mubr.msk.f32.vlgmr.msra.gmra.mrb[138].mxu1 %vm177_vm3, %v22763_v10  ;;  %17455 = vmatmul.mubr.msk.f32.vlgmr.msra.gmra.mrb[146].mxu0 %vm177_vm3, %v22763_v10 }
0x24f8   :  { %19478 = vmatpush3.bf16.msra.mxu0 %v21417_v53  ;;  %17473 = vmatprep.mubr.msk.f32.mxu1 %vm20217_vm2, %v20218_v25 }
0x24f9   :  { %19479 = vmatprep.subr.bf16.mxu0 %v20216_v11  ;;  %17492 = vmatprep.mubr.msk.f32.mxu0 %vm20217_vm2, %v20218_v25 }
0x24fa   :  { %19466 = vmatpush3.bf16.msra.mxu1 %v19465_v9  ;;  %v13392_v9 = vld [vmem:[%s23246_s10 + $0x430] sm:$0xff] }
0x24fb   :  { %19467 = vmatprep.subr.bf16.mxu1 %v20216_v11  ;;  %v19522_v39 = vpack.c.bf16 %v13393_v16, %v13392_v9 }
0x24fc   :  { %19481 = vmatpush3.bf16.msra.mxu0 %v21444_v13 }
0x24fd   :  { %19482 = vmatprep.subr.bf16.mxu0 %v20216_v11 }
0x24fe   :  { %19469 = vmatpush3.bf16.msra.mxu1 %v19468_v33 }
0x24ff   :  { %19470 = vmatprep.subr.bf16.mxu1 %v20216_v11 }
0x2500   :  { %19484 = vmatpush3.bf16.msra.mxu0 %v21472_v63 }
0x2501   :  { %19485 = vmatprep.subr.bf16.mxu0 %v20216_v11 }
0x2502   :  { %19472 = vmatpush3.bf16.msra.mxu1 %v19471_v21 }
0x2503   :  { %19473 = vmatprep.subr.bf16.mxu1 %v20216_v11 }
0x2504   :  { %19487 = vmatpush3.bf16.msra.mxu0 %v21498_v42 }
0x2505   :  { %19500 = vmatprep.subr.bf16.mxu0 %v20216_v11 }
0x2506   :  { %19475 = vmatpush3.bf16.msra.mxu1 %v19474_v22 }
0x2507   :  { %19488 = vmatprep.subr.bf16.mxu1 %v20216_v11 }
0x25ba   :  { %v10974_v28 = vpop.f32.mrb[136].mxu1  ;;  %v11046_v32 = vpop.f32.mrb[144].mxu0 }
0x25bb   :  { %v22834_v43 = vadd.f32 %v10974_v28, %v22759_v48  ;;  %v11050_v19 = vadd.f32 %v11046_v32, %v10979_v49  ;;  %v17399_v34 = vpop.f32.mrb[137].mxu1  ;;  %v17418_v37 = vpop.f32.mrb[145].mxu0 }
0x25bd   :  { %v13368_v40 = vmul.f32 -1.442695, %v11050_v19  ;;  %v11374_v19 = vld [vmem:[#allocation3 + $0x20] sm:$0x3] }
0x25bf   :  { %20099 = vpow2.f32 %v13368_v40 }
0x25c9   :  { %v20100_v44 = vpop.eup %20099 }
0x25ca   :  { %v11054_v60 = vadd.f32 1.0, %v20100_v44  ;;  %v11124_v29 = vpop.f32.mrb[138].mxu1  ;;  %v11202_v52 = vpop.f32.mrb[146].mxu0 }
0x25cb   :  { %v11128_v54 = vadd.f32 %v11124_v29, %v11057_v51  ;;  %v17437_v55 = vpop.f32.mrb[139].mxu1  ;;  %v17456_v56 = vpop.f32.mrb[147].mxu0  ;;  %v11203_v45 = vadd.f32 %v22609_v3, %v11202_v52 }
0x25cc   :  { %20101 = vrcp.f32 %v11054_v60  ;;  %v11452_v55 = vld [vmem:[#allocation4 + $0x20] sm:$0x3] }
0x25cd   :  { %v13370_v58 = vmul.f32 -1.442695, %v11128_v54 }
0x25cf   :  { %20103 = vpow2.f32 %v13370_v58 }
0x25d6   :  { %v20102_v48 = vpop.eup %20101 }
0x25d7   :  { %v11206_v7 = vmul.f32 %v20102_v48, %v11203_v45 }
0x25d9   :  { %v20104_v18 = vpop.eup %20103  ;;  %v11207_v62 = vadd.f32 %v11206_v7, %v11135_v24 }
0x25da   :  { %v11132_v23 = vadd.f32 1.0, %v20104_v18 }
0x25dc   :  { %20105 = vrcp.f32 %v11132_v23 }
0x25dd   :  { %20107 = vtanh.f32 %v11207_v62  ;;  %v13400_v62 = vld [vmem:[%s23246_s10 + $0x440] sm:$0xff] }
0x25e6   :  { %v20106_v50 = vpop.eup %20105 }
0x25e7   :  { %v11209_v57 = vsub.f32 1.0, %v20106_v50  ;;  %v20108_v30 = vpop.eup %20107  ;;  %v11211_v1 = vmul.f32 %v20106_v50, %v22763_v10  ;;  %v13390_v10 = vld [vmem:[%s23246_s10 + $0x420] sm:$0xff]  ;;  %v13401_v50 = vld [vmem:[%s23246_s10 + $0x448] sm:$0xff] }
0x25e8   :  { %v19519_v2 = vpack.c.bf16 %v13391_v14, %v13390_v10  ;;  %v11613_v10 = vld [vmem:[#allocation2 + $0x22] sm:$0x3] }
0x25e9   :  { %v11210_v0 = vmul.f32 %v20108_v30, %v11209_v57  ;;  %v19561_v57 = vpack.c.bf16 %v13401_v50, %v13400_v62  ;;  %v13402_v30 = vld [vmem:[%s23246_s10 + $0x450] sm:$0xff] }
0x25ea   :  { %v13420_v50 = vld [vmem:[%s23246_s10 + $0x4b0] sm:$0xff] }
0x25eb   :  { %v22838_v36 = vadd.f32 %v11211_v1, %v11210_v0  ;;  %v13403_v0 = vld [vmem:[%s23246_s10 + $0x458] sm:$0xff] }
0x25ec   :  { %v19564_v1 = vpack.c.bf16 %v13403_v0, %v13402_v30 }
0x25ed   :  { %17474 = vmatmul.mubr.msk.f32.vlgmr.msra.gmra.mrb[140].mxu1 %vm177_vm3, %v22838_v36  ;;  %17493 = vmatmul.mubr.msk.f32.vlgmr.msra.gmra.mrb[148].mxu0 %vm177_vm3, %v22838_v36 }
0x25ee   :  { %19490 = vmatpush3.bf16.msra.mxu1 %v21515_v12  ;;  %19502 = vmatpush3.bf16.msra.mxu0 %v21582_v31 }
0x25ef   :  { %19491 = vmatprep.subr.bf16.mxu1 %v20216_v11  ;;  %19503 = vmatprep.subr.bf16.mxu0 %v20216_v11 }
0x25f0   :  { %17511 = vmatprep.mubr.msk.f32.mxu1 %vm20217_vm2, %v20218_v25  ;;  %17530 = vmatprep.mubr.msk.f32.mxu0 %vm20217_vm2, %v20218_v25 }
0x25f2   :  { %19493 = vmatpush3.bf16.msra.mxu1 %v21535_v17  ;;  %19505 = vmatpush3.bf16.msra.mxu0 %v21597_v35 }
0x25f3   :  { %19494 = vmatprep.subr.bf16.mxu1 %v20216_v11  ;;  %19506 = vmatprep.subr.bf16.mxu0 %v20216_v11 }
0x25f6   :  { %19496 = vmatpush3.bf16.msra.mxu1 %v21557_v20  ;;  %19508 = vmatpush3.bf16.msra.mxu0 %v21615_v41 }
0x25f7   :  { %19497 = vmatprep.subr.bf16.mxu1 %v20216_v11  ;;  %19509 = vmatprep.subr.bf16.mxu0 %v20216_v11 }
0x25fa   :  { %19499 = vmatpush3.bf16.msra.mxu1 %v21571_v27  ;;  %19511 = vmatpush3.bf16.msra.mxu0 %v21631_v47 }
0x25fb   :  { %19512 = vmatprep.subr.bf16.mxu1 %v20216_v11  ;;  %19524 = vmatprep.subr.bf16.mxu0 %v20216_v11 }
0x25fd   :  { %17512 = vmatmul.mubr.msk.f32.vlgmr.msra.gmra.mrb[142].mxu1 %vm177_vm3, %v22838_v36  ;;  %17531 = vmatmul.mubr.msk.f32.vlgmr.msra.gmra.mrb[150].mxu0 %vm177_vm3, %v22838_v36 }
0x25fe   :  { %19526 = vmatpush3.bf16.msra.mxu0 %v21417_v53  ;;  %17549 = vmatprep.mubr.msk.f32.mxu1 %vm20217_vm2, %v20218_v25 }
0x25ff   :  { %19527 = vmatprep.subr.bf16.mxu0 %v20216_v11  ;;  %17568 = vmatprep.mubr.msk.f32.mxu0 %vm20217_vm2, %v20218_v25 }
0x2600   :  { %19514 = vmatpush3.bf16.msra.mxu1 %v19513_v59  ;;  %v13406_v59 = vld [vmem:[%s23246_s10 + $0x470] sm:$0xff] }
0x2601   :  { %19515 = vmatprep.subr.bf16.mxu1 %v20216_v11  ;;  %v19570_v6 = vpack.c.bf16 %v13407_v5, %v13406_v59 }
0x2602   :  { %19529 = vmatpush3.bf16.msra.mxu0 %v21444_v13 }
0x2603   :  { %19530 = vmatprep.subr.bf16.mxu0 %v20216_v11 }
0x2604   :  { %19517 = vmatpush3.bf16.msra.mxu1 %v19516_v8 }
0x2605   :  { %19518 = vmatprep.subr.bf16.mxu1 %v20216_v11 }
0x2606   :  { %19532 = vmatpush3.bf16.msra.mxu0 %v21472_v63 }
0x2607   :  { %19533 = vmatprep.subr.bf16.mxu0 %v20216_v11 }
0x2608   :  { %19520 = vmatpush3.bf16.msra.mxu1 %v19519_v2 }
0x2609   :  { %19521 = vmatprep.subr.bf16.mxu1 %v20216_v11 }
0x260a   :  { %19535 = vmatpush3.bf16.msra.mxu0 %v21498_v42 }
0x260b   :  { %19548 = vmatprep.subr.bf16.mxu0 %v20216_v11 }
0x260c   :  { %19523 = vmatpush3.bf16.msra.mxu1 %v19522_v39 }
0x260d   :  { %19536 = vmatprep.subr.bf16.mxu1 %v20216_v11 }
0x26c0   :  { %v11291_v33 = vpop.f32.mrb[140].mxu1  ;;  %v11363_v38 = vpop.f32.mrb[148].mxu0 }
0x26c1   :  { %v22909_v21 = vadd.f32 %v11291_v33, %v22834_v43  ;;  %v11367_v15 = vadd.f32 %v11363_v38, %v11296_v46  ;;  %v17475_v26 = vpop.f32.mrb[141].mxu1  ;;  %v17494_v22 = vpop.f32.mrb[149].mxu0 }
0x26c3   :  { %v13382_v28 = vmul.f32 -1.442695, %v11367_v15  ;;  %v11691_v15 = vld [vmem:[#allocation3 + $0x22] sm:$0x3] }
0x26c5   :  { %20109 = vpow2.f32 %v13382_v28 }
0x26cf   :  { %v20110_v49 = vpop.eup %20109 }
0x26d0   :  { %v11371_v32 = vadd.f32 1.0, %v20110_v49  ;;  %v11441_v34 = vpop.f32.mrb[142].mxu1  ;;  %v11519_v37 = vpop.f32.mrb[150].mxu0 }
0x26d1   :  { %v11445_v40 = vadd.f32 %v11441_v34, %v11374_v19  ;;  %v17513_v44 = vpop.f32.mrb[143].mxu1  ;;  %v17532_v60 = vpop.f32.mrb[151].mxu0  ;;  %v11520_v29 = vadd.f32 %v22609_v3, %v11519_v37 }
0x26d2   :  { %20111 = vrcp.f32 %v11371_v32  ;;  %v11769_v44 = vld [vmem:[#allocation4 + $0x22] sm:$0x3] }
0x26d3   :  { %v13384_v51 = vmul.f32 -1.442695, %v11445_v40 }
0x26d5   :  { %20113 = vpow2.f32 %v13384_v51 }
0x26dc   :  { %v20112_v43 = vpop.eup %20111 }
0x26dd   :  { %v11523_v52 = vmul.f32 %v20112_v43, %v11520_v29 }
0x26df   :  { %v20114_v54 = vpop.eup %20113  ;;  %v11524_v58 = vadd.f32 %v11523_v52, %v11452_v55 }
0x26e0   :  { %v11449_v56 = vadd.f32 1.0, %v20114_v54 }
0x26e2   :  { %20115 = vrcp.f32 %v11449_v56 }
0x26e3   :  { %20117 = vtanh.f32 %v11524_v58  ;;  %v13415_v58 = vld [vmem:[%s23246_s10 + $0x488] sm:$0xff] }
0x26ec   :  { %v20116_v45 = vpop.eup %20115 }
0x26ed   :  { %v11526_v48 = vsub.f32 1.0, %v20116_v45  ;;  %v20118_v7 = vpop.eup %20117  ;;  %v11528_v24 = vmul.f32 %v20116_v45, %v22838_v36  ;;  %v13404_v36 = vld [vmem:[%s23246_s10 + $0x460] sm:$0xff] }
0x26ee   :  { %v19567_v4 = vpack.c.bf16 %v13405_v61, %v13404_v36 }
0x26ef   :  { %v11527_v18 = vmul.f32 %v20118_v7, %v11526_v48  ;;  %v13416_v48 = vld [vmem:[%s23246_s10 + $0x490] sm:$0xff]  ;;  %v13417_v7 = vld [vmem:[%s23246_s10 + $0x498] sm:$0xff] }
0x26f1   :  { %v22913_v23 = vadd.f32 %v11528_v24, %v11527_v18  ;;  %v19612_v18 = vpack.c.bf16 %v13417_v7, %v13416_v48  ;;  %v13418_v24 = vld [vmem:[%s23246_s10 + $0x4a0] sm:$0xff] }
0x26f3   :  { %17550 = vmatmul.mubr.msk.f32.vlgmr.msra.gmra.mrb[144].mxu1 %vm177_vm3, %v22913_v23  ;;  %17569 = vmatmul.mubr.msk.f32.vlgmr.msra.gmra.mrb[152].mxu0 %vm177_vm3, %v22913_v23 }
0x26f4   :  { %19538 = vmatpush3.bf16.msra.mxu1 %v21515_v12  ;;  %19550 = vmatpush3.bf16.msra.mxu0 %v21582_v31 }
0x26f5   :  { %19539 = vmatprep.subr.bf16.mxu1 %v20216_v11  ;;  %19551 = vmatprep.subr.bf16.mxu0 %v20216_v11 }
0x26f6   :  { %17587 = vmatprep.mubr.msk.f32.mxu1 %vm20217_vm2, %v20218_v25  ;;  %17606 = vmatprep.mubr.msk.f32.mxu0 %vm20217_vm2, %v20218_v25 }
0x26f8   :  { %19541 = vmatpush3.bf16.msra.mxu1 %v21535_v17  ;;  %19553 = vmatpush3.bf16.msra.mxu0 %v21597_v35 }
0x26f9   :  { %19542 = vmatprep.subr.bf16.mxu1 %v20216_v11  ;;  %19554 = vmatprep.subr.bf16.mxu0 %v20216_v11 }
0x26fc   :  { %19544 = vmatpush3.bf16.msra.mxu1 %v21557_v20  ;;  %19556 = vmatpush3.bf16.msra.mxu0 %v21615_v41 }
0x26fd   :  { %19545 = vmatprep.subr.bf16.mxu1 %v20216_v11  ;;  %19557 = vmatprep.subr.bf16.mxu0 %v20216_v11 }
0x2700   :  { %19547 = vmatpush3.bf16.msra.mxu1 %v21571_v27  ;;  %19559 = vmatpush3.bf16.msra.mxu0 %v21631_v47 }
0x2701   :  { %19560 = vmatprep.subr.bf16.mxu1 %v20216_v11  ;;  %19572 = vmatprep.subr.bf16.mxu0 %v20216_v11 }
0x2703   :  { %17588 = vmatmul.mubr.msk.f32.vlgmr.msra.gmra.mrb[146].mxu1 %vm177_vm3, %v22913_v23  ;;  %17607 = vmatmul.mubr.msk.f32.vlgmr.msra.gmra.mrb[154].mxu0 %vm177_vm3, %v22913_v23 }
0x2704   :  { %19574 = vmatpush3.bf16.msra.mxu0 %v21417_v53  ;;  %17625 = vmatprep.mubr.msk.f32.mxu1 %vm20217_vm2, %v20218_v25 }
0x2705   :  { %19575 = vmatprep.subr.bf16.mxu0 %v20216_v11  ;;  %17644 = vmatprep.mubr.msk.f32.mxu0 %vm20217_vm2, %v20218_v25 }
0x2706   :  { %19562 = vmatpush3.bf16.msra.mxu1 %v19561_v57  ;;  %v13421_v57 = vld [vmem:[%s23246_s10 + $0x4b8] sm:$0xff] }
0x2707   :  { %19563 = vmatprep.subr.bf16.mxu1 %v20216_v11  ;;  %v19618_v30 = vpack.c.bf16 %v13421_v57, %v13420_v50 }
0x2708   :  { %19577 = vmatpush3.bf16.msra.mxu0 %v21444_v13 }
0x2709   :  { %19578 = vmatprep.subr.bf16.mxu0 %v20216_v11 }
0x270a   :  { %19565 = vmatpush3.bf16.msra.mxu1 %v19564_v1  ;;  %v11930_v1 = vld [vmem:[#allocation2 + $0x24] sm:$0x3] }
0x270b   :  { %19566 = vmatprep.subr.bf16.mxu1 %v20216_v11 }
0x270c   :  { %19580 = vmatpush3.bf16.msra.mxu0 %v21472_v63 }
0x270d   :  { %19581 = vmatprep.subr.bf16.mxu0 %v20216_v11 }
0x270e   :  { %19568 = vmatpush3.bf16.msra.mxu1 %v19567_v4 }
0x270f   :  { %19569 = vmatprep.subr.bf16.mxu1 %v20216_v11 }
0x2710   :  { %19583 = vmatpush3.bf16.msra.mxu0 %v21498_v42 }
0x2711   :  { %19596 = vmatprep.subr.bf16.mxu0 %v20216_v11 }
0x2712   :  { %19571 = vmatpush3.bf16.msra.mxu1 %v19570_v6 }
0x2713   :  { %19584 = vmatprep.subr.bf16.mxu1 %v20216_v11 }
0x27c6   :  { %v11608_v8 = vpop.f32.mrb[144].mxu1  ;;  %v11680_v14 = vpop.f32.mrb[152].mxu0 }
0x27c7   :  { %v22984_v2 = vadd.f32 %v11608_v8, %v22909_v21  ;;  %v11684_v9 = vadd.f32 %v11680_v14, %v11613_v10  ;;  %v17551_v16 = vpop.f32.mrb[145].mxu1  ;;  %v17570_v39 = vpop.f32.mrb[153].mxu0  ;;  %v12008_v14 = vld [vmem:[#allocation3 + $0x24] sm:$0x3] }
0x27c9   :  { %v13396_v33 = vmul.f32 -1.442695, %v11684_v9 }
0x27cb   :  { %20119 = vpow2.f32 %v13396_v33 }
0x27d5   :  { %v20120_v46 = vpop.eup %20119 }
0x27d6   :  { %v11688_v38 = vadd.f32 1.0, %v20120_v46  ;;  %v11758_v26 = vpop.f32.mrb[146].mxu1  ;;  %v11836_v22 = vpop.f32.mrb[154].mxu0 }
0x27d7   :  { %v11762_v28 = vadd.f32 %v11758_v26, %v11691_v15  ;;  %v17589_v49 = vpop.f32.mrb[147].mxu1  ;;  %v17608_v32 = vpop.f32.mrb[155].mxu0  ;;  %v11837_v34 = vadd.f32 %v22609_v3, %v11836_v22  ;;  %v13414_v3 = vld [vmem:[%s23246_s10 + $0x480] sm:$0xff] }
0x27d8   :  { %20121 = vrcp.f32 %v11688_v38  ;;  %v19609_v45 = vpack.c.bf16 %v13415_v58, %v13414_v3  ;;  %v12086_v49 = vld [vmem:[#allocation4 + $0x24] sm:$0x3] }
0x27d9   :  { %v13398_v19 = vmul.f32 -1.442695, %v11762_v28 }
0x27db   :  { %20123 = vpow2.f32 %v13398_v19 }
0x27e2   :  { %v20122_v21 = vpop.eup %20121 }
0x27e3   :  { %v11840_v37 = vmul.f32 %v20122_v21, %v11837_v34 }
0x27e5   :  { %v20124_v40 = vpop.eup %20123  ;;  %v11841_v51 = vadd.f32 %v11840_v37, %v11769_v44 }
0x27e6   :  { %v11766_v60 = vadd.f32 1.0, %v20124_v40 }
0x27e8   :  { %20125 = vrcp.f32 %v11766_v60 }
0x27e9   :  { %20127 = vtanh.f32 %v11841_v51  ;;  %v13429_v51 = vld [vmem:[%s23246_s10 + $0x4c8] sm:$0xff] }
0x27f2   :  { %v20126_v29 = vpop.eup %20125 }
0x27f3   :  { %v11843_v43 = vsub.f32 1.0, %v20126_v29  ;;  %v20128_v52 = vpop.eup %20127  ;;  %v11845_v55 = vmul.f32 %v20126_v29, %v22913_v23  ;;  %v13419_v23 = vld [vmem:[%s23246_s10 + $0x4a8] sm:$0xff] }
0x27f4   :  { %v19615_v62 = vpack.c.bf16 %v13419_v23, %v13418_v24 }
0x27f5   :  { %v11844_v54 = vmul.f32 %v20128_v52, %v11843_v43  ;;  %v13432_v43 = vld [vmem:[%s23246_s10 + $0x4e0] sm:$0xff]  ;;  %v13433_v52 = vld [vmem:[%s23246_s10 + $0x4e8] sm:$0xff] }
0x27f7   :  { %v22988_v56 = vadd.f32 %v11845_v55, %v11844_v54  ;;  %v19663_v54 = vpack.c.bf16 %v13433_v52, %v13432_v43  ;;  %v13434_v55 = vld [vmem:[%s23246_s10 + $0x4f0] sm:$0xff] }
0x27f9   :  { %17626 = vmatmul.mubr.msk.f32.vlgmr.msra.gmra.mrb[148].mxu1 %vm177_vm3, %v22988_v56  ;;  %17645 = vmatmul.mubr.msk.f32.vlgmr.msra.gmra.mrb[156].mxu0 %vm177_vm3, %v22988_v56 }
0x27fa   :  { %19586 = vmatpush3.bf16.msra.mxu1 %v21515_v12  ;;  %19598 = vmatpush3.bf16.msra.mxu0 %v21582_v31 }
0x27fb   :  { %19587 = vmatprep.subr.bf16.mxu1 %v20216_v11  ;;  %19599 = vmatprep.subr.bf16.mxu0 %v20216_v11 }
0x27fc   :  { %17663 = vmatprep.mubr.msk.f32.mxu1 %vm20217_vm2, %v20218_v25  ;;  %17682 = vmatprep.mubr.msk.f32.mxu0 %vm20217_vm2, %v20218_v25 }
0x27fe   :  { %19589 = vmatpush3.bf16.msra.mxu1 %v21535_v17  ;;  %19601 = vmatpush3.bf16.msra.mxu0 %v21597_v35 }
0x27ff   :  { %19590 = vmatprep.subr.bf16.mxu1 %v20216_v11  ;;  %19602 = vmatprep.subr.bf16.mxu0 %v20216_v11 }
0x2802   :  { %19592 = vmatpush3.bf16.msra.mxu1 %v21557_v20  ;;  %19604 = vmatpush3.bf16.msra.mxu0 %v21615_v41 }
0x2803   :  { %19593 = vmatprep.subr.bf16.mxu1 %v20216_v11  ;;  %19605 = vmatprep.subr.bf16.mxu0 %v20216_v11 }
0x2806   :  { %19595 = vmatpush3.bf16.msra.mxu1 %v21571_v27  ;;  %19607 = vmatpush3.bf16.msra.mxu0 %v21631_v47 }
0x2807   :  { %19608 = vmatprep.subr.bf16.mxu1 %v20216_v11  ;;  %19620 = vmatprep.subr.bf16.mxu0 %v20216_v11 }
0x2809   :  { %17664 = vmatmul.mubr.msk.f32.vlgmr.msra.gmra.mrb[150].mxu1 %vm177_vm3, %v22988_v56  ;;  %17683 = vmatmul.mubr.msk.f32.vlgmr.msra.gmra.mrb[158].mxu0 %vm177_vm3, %v22988_v56 }
0x280a   :  { %19622 = vmatpush3.bf16.msra.mxu0 %v21417_v53  ;;  %17701 = vmatprep.mubr.msk.f32.mxu1 %vm20217_vm2, %v20218_v25 }
0x280b   :  { %19623 = vmatprep.subr.bf16.mxu0 %v20216_v11  ;;  %17720 = vmatprep.mubr.msk.f32.mxu0 %vm20217_vm2, %v20218_v25 }
0x280c   :  { %19610 = vmatpush3.bf16.msra.mxu1 %v19609_v45  ;;  %v12247_v45 = vld [vmem:[#allocation2 + $0x26] sm:$0x3] }
0x280d   :  { %19611 = vmatprep.subr.bf16.mxu1 %v20216_v11 }
0x280e   :  { %19625 = vmatpush3.bf16.msra.mxu0 %v21444_v13 }
0x280f   :  { %19626 = vmatprep.subr.bf16.mxu0 %v20216_v11 }
0x2810   :  { %19613 = vmatpush3.bf16.msra.mxu1 %v19612_v18 }
0x2811   :  { %19614 = vmatprep.subr.bf16.mxu1 %v20216_v11 }
0x2812   :  { %19628 = vmatpush3.bf16.msra.mxu0 %v21472_v63 }
0x2813   :  { %19629 = vmatprep.subr.bf16.mxu0 %v20216_v11 }
0x2814   :  { %19616 = vmatpush3.bf16.msra.mxu1 %v19615_v62 }
0x2815   :  { %19617 = vmatprep.subr.bf16.mxu1 %v20216_v11 }
0x2816   :  { %19631 = vmatpush3.bf16.msra.mxu0 %v21498_v42 }
0x2817   :  { %19644 = vmatprep.subr.bf16.mxu0 %v20216_v11 }
0x2818   :  { %19619 = vmatpush3.bf16.msra.mxu1 %v19618_v30  ;;  %v12325_v30 = vld [vmem:[#allocation3 + $0x26] sm:$0x3] }
0x2819   :  { %19632 = vmatprep.subr.bf16.mxu1 %v20216_v11 }
0x28cc   :  { %v11925_v0 = vpop.f32.mrb[148].mxu1  ;;  %v11997_v36 = vpop.f32.mrb[156].mxu0 }
0x28cd   :  { %v23059_v61 = vadd.f32 %v11925_v0, %v22984_v2  ;;  %v12001_v4 = vadd.f32 %v11997_v36, %v11930_v1  ;;  %v17627_v59 = vpop.f32.mrb[149].mxu1  ;;  %v17646_v5 = vpop.f32.mrb[157].mxu0  ;;  %v23064_v2 = vld [vmem:[%s23245_s9] ss:$0 sm:$0xff] }
0x28cf   :  { %v13410_v6 = vmul.f32 -1.442695, %v12001_v4 }
0x28d1   :  { %20129 = vpow2.f32 %v13410_v6 }
0x28db   :  { %v20130_v8 = vpop.eup %20129 }
0x28dc   :  { %v12005_v10 = vadd.f32 1.0, %v20130_v8  ;;  %v12075_v9 = vpop.f32.mrb[150].mxu1  ;;  %v12153_v16 = vpop.f32.mrb[158].mxu0 }
0x28dd   :  { %v12079_v39 = vadd.f32 %v12075_v9, %v12008_v14  ;;  %v17665_v33 = vpop.f32.mrb[151].mxu1  ;;  %v17684_v46 = vpop.f32.mrb[159].mxu0  ;;  %v12154_v15 = vadd.f32 %v23064_v2, %v12153_v16  ;;  %v12403_v14 = vld [vmem:[#allocation4 + $0x26] sm:$0x3] }
0x28de   :  { %20131 = vrcp.f32 %v12005_v10 }
0x28df   :  { %v13412_v38 = vmul.f32 -1.442695, %v12079_v39 }
0x28e1   :  { %20133 = vpow2.f32 %v13412_v38 }
0x28e8   :  { %v20132_v26 = vpop.eup %20131 }
0x28e9   :  { %v12157_v22 = vmul.f32 %v20132_v26, %v12154_v15 }
0x28eb   :  { %v20134_v28 = vpop.eup %20133  ;;  %v12158_v19 = vadd.f32 %v12157_v22, %v12086_v49  ;;  %v13448_v22 = vld [vmem:[%s23246_s10 + $0x530] sm:$0xff] }
0x28ec   :  { %v12083_v32 = vadd.f32 1.0, %v20134_v28  ;;  %v13449_v28 = vld [vmem:[%s23246_s10 + $0x538] sm:$0xff] }
0x28ed   :  { %v19714_v49 = vpack.c.bf16 %v13449_v28, %v13448_v22 }
0x28ee   :  { %20135 = vrcp.f32 %v12083_v32 }
0x28ef   :  { %20137 = vtanh.f32 %v12158_v19  ;;  %v12564_v19 = vld [vmem:[#allocation2 + $0x28] sm:$0x3] }
0x28f8   :  { %v20136_v34 = vpop.eup %20135 }
0x28f9   :  { %v12160_v21 = vsub.f32 1.0, %v20136_v34  ;;  %v20138_v37 = vpop.eup %20137  ;;  %v12162_v44 = vmul.f32 %v20136_v34, %v22988_v56  ;;  %v13435_v56 = vld [vmem:[%s23246_s10 + $0x4f8] sm:$0xff] }
0x28fa   :  { %v19666_v3 = vpack.c.bf16 %v13435_v56, %v13434_v55 }
0x28fb   :  { %v12161_v40 = vmul.f32 %v20138_v37, %v12160_v21 }
0x28fd   :  { %v23068_v60 = vadd.f32 %v12162_v44, %v12161_v40 }
0x28ff   :  { %17702 = vmatmul.mubr.msk.f32.vlgmr.msra.gmra.mrb[152].mxu1 %vm177_vm3, %v23068_v60  ;;  %17721 = vmatmul.mubr.msk.f32.vlgmr.msra.gmra.mrb[160].mxu0 %vm177_vm3, %v23068_v60 }
0x2900   :  { %19634 = vmatpush3.bf16.msra.mxu1 %v21515_v12  ;;  %19646 = vmatpush3.bf16.msra.mxu0 %v21582_v31 }
0x2901   :  { %19635 = vmatprep.subr.bf16.mxu1 %v20216_v11  ;;  %19647 = vmatprep.subr.bf16.mxu0 %v20216_v11 }
0x2902   :  { %17739 = vmatprep.mubr.msk.f32.mxu1 %vm20217_vm2, %v20218_v25  ;;  %17758 = vmatprep.mubr.msk.f32.mxu0 %vm20217_vm2, %v20218_v25 }
0x2904   :  { %19637 = vmatpush3.bf16.msra.mxu1 %v21535_v17  ;;  %19649 = vmatpush3.bf16.msra.mxu0 %v21597_v35 }
0x2905   :  { %19638 = vmatprep.subr.bf16.mxu1 %v20216_v11  ;;  %19650 = vmatprep.subr.bf16.mxu0 %v20216_v11 }
0x2908   :  { %19640 = vmatpush3.bf16.msra.mxu1 %v21557_v20  ;;  %19652 = vmatpush3.bf16.msra.mxu0 %v21615_v41 }
0x2909   :  { %19641 = vmatprep.subr.bf16.mxu1 %v20216_v11  ;;  %19653 = vmatprep.subr.bf16.mxu0 %v20216_v11 }
0x290c   :  { %19643 = vmatpush3.bf16.msra.mxu1 %v21571_v27  ;;  %19655 = vmatpush3.bf16.msra.mxu0 %v21631_v47 }
0x290d   :  { %19656 = vmatprep.subr.bf16.mxu1 %v20216_v11  ;;  %19668 = vmatprep.subr.bf16.mxu0 %v20216_v11 }
0x290f   :  { %17740 = vmatmul.mubr.msk.f32.vlgmr.msra.gmra.mrb[154].mxu1 %vm177_vm3, %v23068_v60  ;;  %17759 = vmatmul.mubr.msk.f32.vlgmr.msra.gmra.mrb[162].mxu0 %vm177_vm3, %v23068_v60 }
0x2910   :  { %19670 = vmatpush3.bf16.msra.mxu0 %v21417_v53  ;;  %17777 = vmatprep.mubr.msk.f32.mxu1 %vm20217_vm2, %v20218_v25  ;;  %v13428_v53 = vld [vmem:[%s23246_s10 + $0x4c0] sm:$0xff] }
0x2911   :  { %19671 = vmatprep.subr.bf16.mxu0 %v20216_v11  ;;  %17796 = vmatprep.mubr.msk.f32.mxu0 %vm20217_vm2, %v20218_v25  ;;  %v19657_v29 = vpack.c.bf16 %v13429_v51, %v13428_v53  ;;  %v12642_v51 = vld [vmem:[#allocation3 + $0x28] sm:$0x3] }
0x2913   :  { %19658 = vmatpush3.bf16.msra.mxu1 %v19657_v29 }
0x2914   :  { %19673 = vmatpush3.bf16.msra.mxu0 %v21444_v13  ;;  %19659 = vmatprep.subr.bf16.mxu1 %v20216_v11  ;;  %v13430_v13 = vld [vmem:[%s23246_s10 + $0x4d0] sm:$0xff] }
0x2915   :  { %19674 = vmatprep.subr.bf16.mxu0 %v20216_v11 }
0x2918   :  { %19676 = vmatpush3.bf16.msra.mxu0 %v21472_v63  ;;  %v13431_v63 = vld [vmem:[%s23246_s10 + $0x4d8] sm:$0xff] }
0x2919   :  { %19677 = vmatprep.subr.bf16.mxu0 %v20216_v11 }
0x291c   :  { %19679 = vmatpush3.bf16.msra.mxu0 %v21498_v42  ;;  %v19660_v42 = vpack.c.bf16 %v13431_v63, %v13430_v13 }
0x291d   :  { %19692 = vmatprep.subr.bf16.mxu0 %v20216_v11 }
0x291e   :  { %19661 = vmatpush3.bf16.msra.mxu1 %v19660_v42 }
0x291f   :  { %19662 = vmatprep.subr.bf16.mxu1 %v20216_v11 }
0x2922   :  { %19664 = vmatpush3.bf16.msra.mxu1 %v19663_v54 }
0x2923   :  { %19665 = vmatprep.subr.bf16.mxu1 %v20216_v11 }
0x2926   :  { %19667 = vmatpush3.bf16.msra.mxu1 %v19666_v3 }
0x2927   :  { %19680 = vmatprep.subr.bf16.mxu1 %v20216_v11 }
0x29d2   :  { %v12242_v58 = vpop.f32.mrb[152].mxu1  ;;  %v12314_v48 = vpop.f32.mrb[160].mxu0 }
0x29d3   :  { %v23139_v7 = vadd.f32 %v12242_v58, %v23059_v61  ;;  %v12318_v18 = vadd.f32 %v12314_v48, %v12247_v45  ;;  %v17703_v24 = vpop.f32.mrb[153].mxu1  ;;  %v17722_v23 = vpop.f32.mrb[161].mxu0  ;;  %v12720_v58 = vld [vmem:[#allocation4 + $0x28] sm:$0x3] }
0x29d5   :  { %v13424_v62 = vmul.f32 -1.442695, %v12318_v18 }
0x29d7   :  { %20139 = vpow2.f32 %v13424_v62 }
0x29e1   :  { %v20140_v50 = vpop.eup %20139 }
0x29e2   :  { %v12322_v57 = vadd.f32 1.0, %v20140_v50  ;;  %v12392_v0 = vpop.f32.mrb[154].mxu1  ;;  %v12470_v1 = vpop.f32.mrb[162].mxu0 }
0x29e3   :  { %v12396_v36 = vadd.f32 %v12392_v0, %v12325_v30  ;;  %v17741_v4 = vpop.f32.mrb[155].mxu1  ;;  %v17760_v59 = vpop.f32.mrb[163].mxu0  ;;  %v12471_v6 = vadd.f32 %v23064_v2, %v12470_v1 }
0x29e4   :  { %20141 = vrcp.f32 %v12322_v57 }
0x29e5   :  { %v13426_v5 = vmul.f32 -1.442695, %v12396_v36 }
0x29e7   :  { %20143 = vpow2.f32 %v13426_v5 }
0x29ee   :  { %v20142_v61 = vpop.eup %20141 }
0x29ef   :  { %v12474_v8 = vmul.f32 %v20142_v61, %v12471_v6 }
0x29f1   :  { %v20144_v10 = vpop.eup %20143  ;;  %v12475_v16 = vadd.f32 %v12474_v8, %v12403_v14 }
0x29f2   :  { %v12400_v9 = vadd.f32 1.0, %v20144_v10 }
0x29f4   :  { %20145 = vrcp.f32 %v12400_v9 }
0x29f5   :  { %20147 = vtanh.f32 %v12475_v16 }
0x29fe   :  { %v20146_v39 = vpop.eup %20145 }
0x29ff   :  { %v12477_v33 = vsub.f32 1.0, %v20146_v39  ;;  %v20148_v46 = vpop.eup %20147  ;;  %v12479_v15 = vmul.f32 %v20146_v39, %v23068_v60 }
0x2a01   :  { %v12478_v38 = vmul.f32 %v20148_v46, %v12477_v33 }
0x2a03   :  { %v23143_v26 = vadd.f32 %v12479_v15, %v12478_v38 }
0x2a05   :  { %17778 = vmatmul.mubr.msk.f32.vlgmr.msra.gmra.mrb[156].mxu1 %vm177_vm3, %v23143_v26  ;;  %17797 = vmatmul.mubr.msk.f32.vlgmr.msra.gmra.mrb[164].mxu0 %vm177_vm3, %v23143_v26 }
0x2a06   :  { %19682 = vmatpush3.bf16.msra.mxu1 %v21515_v12  ;;  %19694 = vmatpush3.bf16.msra.mxu0 %v21582_v31  ;;  %v13442_v12 = vld [vmem:[%s23246_s10 + $0x500] sm:$0xff] }
0x2a07   :  { %19683 = vmatprep.subr.bf16.mxu1 %v20216_v11  ;;  %19695 = vmatprep.subr.bf16.mxu0 %v20216_v11 }
0x2a08   :  { %17815 = vmatprep.mubr.msk.f32.mxu1 %vm20217_vm2, %v20218_v25  ;;  %17834 = vmatprep.mubr.msk.f32.mxu0 %vm20217_vm2, %v20218_v25 }
0x2a0a   :  { %19685 = vmatpush3.bf16.msra.mxu1 %v21535_v17  ;;  %19697 = vmatpush3.bf16.msra.mxu0 %v21597_v35  ;;  %v13443_v17 = vld [vmem:[%s23246_s10 + $0x508] sm:$0xff]  ;;  %v13446_v35 = vld [vmem:[%s23246_s10 + $0x520] sm:$0xff] }
0x2a0b   :  { %19686 = vmatprep.subr.bf16.mxu1 %v20216_v11  ;;  %19698 = vmatprep.subr.bf16.mxu0 %v20216_v11 }
0x2a0e   :  { %19688 = vmatpush3.bf16.msra.mxu1 %v21557_v20  ;;  %19700 = vmatpush3.bf16.msra.mxu0 %v21615_v41  ;;  %v19705_v20 = vpack.c.bf16 %v13443_v17, %v13442_v12  ;;  %v13447_v41 = vld [vmem:[%s23246_s10 + $0x528] sm:$0xff] }
0x2a0f   :  { %19689 = vmatprep.subr.bf16.mxu1 %v20216_v11  ;;  %19701 = vmatprep.subr.bf16.mxu0 %v20216_v11 }
0x2a12   :  { %19691 = vmatpush3.bf16.msra.mxu1 %v21571_v27  ;;  %19703 = vmatpush3.bf16.msra.mxu0 %v21631_v47  ;;  %v13444_v27 = vld [vmem:[%s23246_s10 + $0x510] sm:$0xff]  ;;  %v19711_v47 = vpack.c.bf16 %v13447_v41, %v13446_v35 }
0x2a13   :  { %19704 = vmatprep.subr.bf16.mxu1 %v20216_v11 }
0x2a15   :  { %17816 = vmatmul.mubr.msk.f32.vlgmr.msra.gmra.mrb[158].mxu1 %vm177_vm3, %v23143_v26  ;;  %17835 = vmatmul.mubr.msk.f32.vlgmr.msra.gmra.mrb[166].mxu0 %vm177_vm3, %v23143_v26 }
0x2a16   :  { %17853 = vmatprep.mubr.msk.f32.mxu1 %vm20217_vm2, %v20218_v25  ;;  %19706 = vmatpush3.bf16.msra.mxu1 %v19705_v20  ;;  %v13445_v25 = vld [vmem:[%s23246_s10 + $0x518] sm:$0xff] }
0x2a17   :  { %19707 = vmatprep.subr.bf16.mxu1 %v20216_v11  ;;  %v19708_v31 = vpack.c.bf16 %v13445_v25, %v13444_v27 }
0x2a1a   :  { %19709 = vmatpush3.bf16.msra.mxu1 %v19708_v31 }
0x2a1b   :  { %19710 = vmatprep.subr.bf16.mxu1 %v20216_v11 }
0x2a1e   :  { %19712 = vmatpush3.bf16.msra.mxu1 %v19711_v47 }
0x2a1f   :  { %19713 = vmatprep.subr.bf16.mxu1 %v20216_v11 }
0x2a22   :  { %19715 = vmatpush3.bf16.msra.mxu1 %v19714_v49 }
0x2ad8   :  { %v12559_v32 = vpop.f32.mrb[156].mxu1  ;;  %v12631_v34 = vpop.f32.mrb[164].mxu0 }
0x2ad9   :  { %v12563_v21 = vadd.f32 %v12559_v32, %v23139_v7  ;;  %v12635_v37 = vadd.f32 %v12631_v34, %v12564_v19  ;;  %v17779_v40 = vpop.f32.mrb[157].mxu1  ;;  %v17798_v44 = vpop.f32.mrb[165].mxu0 }
0x2adb   :  { %v13438_v60 = vmul.f32 -1.442695, %v12635_v37 }
0x2add   :  { %20149 = vpow2.f32 %v13438_v60 }
0x2ae7   :  { %v20150_v11 = vpop.eup %20149 }
0x2ae8   :  { %v12639_v53 = vadd.f32 1.0, %v20150_v11  ;;  %v12709_v29 = vpop.f32.mrb[158].mxu1  ;;  %v12787_v13 = vpop.f32.mrb[166].mxu0 }
0x2ae9   :  { %v12713_v63 = vadd.f32 %v12709_v29, %v12642_v51  ;;  %v17817_v42 = vpop.f32.mrb[159].mxu1  ;;  %v17836_v43 = vpop.f32.mrb[167].mxu0  ;;  %v12788_v54 = vadd.f32 %v23064_v2, %v12787_v13  ;;  %v13451_v2 = vld [vmem:[%s23247_s11] ss:$0 sm:$0xff]  ;;  %s20168_s11 = scalar_lea.vmem %s12910_s23, 32 }
0x2aea   :  { %20151 = vrcp.f32 %v12639_v53  ;;  %p20169_p0 = scmp.ne.s32.totalorder %s12910_s23, %s20168_s11  ;;  %p20174_p2 = scmp.lt.s32.totalorder %s20168_s11, %s20168_s11 }
0x2aeb   :  { %v13440_v52 = vmul.f32 -1.442695, %v12713_v63 }
0x2aec   :  { %p20175_p3 = por %p20174_p2, %p20173_p1 }
0x2aed   :  { %20153 = vpow2.f32 %v13440_v52 }
0x2aee   :  { %p20176_p4 = pnand %p20175_p3, %p20169_p0 }
0x2af4   :  { %v20152_v55 = vpop.eup %20151 }
0x2af5   :  { %v12791_v56 = vmul.f32 %v20152_v55, %v12788_v54 }
0x2af7   :  { %v20154_v3 = vpop.eup %20153  ;;  %v12792_v48 = vadd.f32 %v12791_v56, %v12720_v58 }
0x2af8   :  { %v12717_v45 = vadd.f32 1.0, %v20154_v3 }
0x2afa   :  { %20155 = vrcp.f32 %v12717_v45 }
0x2afb   :  { %20157 = vtanh.f32 %v12792_v48 }
0x2b04   :  { %v20156_v7 = vpop.eup %20155 }
0x2b05   :  { %v12794_v18 = vsub.f32 1.0, %v20156_v7  ;;  %v20158_v24 = vpop.eup %20157  ;;  %v12796_v62 = vmul.f32 %v20156_v7, %v23143_v26 }
0x2b07   :  { %v12795_v23 = vmul.f32 %v20158_v24, %v12794_v18 }
0x2b09   :  { %v12797_v50 = vadd.f32 %v12796_v62, %v12795_v23 }
0x2b0b   :  { %17854 = vmatmul.mubr.msk.f32.vlgmr.msra.gmra.mrb[160].mxu1 %vm177_vm3, %v12797_v50 }
0x2bde   :  { %v12876_v57 = vpop.f32.mrb[160].mxu1 }
0x2bdf   :  { %v12880_v30 = vadd.f32 %v12876_v57, %v12563_v21  ;;  %v17855_v0 = vpop.f32.mrb[161].mxu1 }
0x2be1   :  { %v12888_v1 = vadd.f32 %v13451_v2, %v12880_v30 }
0x2be3   :  { %v12891_v36 = vsel %vm12889_vm5, %v12888_v1, -inf  ;;  %12890 = vst.msk [vmem:[#allocation7] sm:$0x3] %vm12889_vm5, %v12888_v1 }
0x2be4   :  { %12892 = vmax.xlane.f32.xlu0 %v12891_v36 }
0x2c71   :  { %v12893_v4 = vpop.xlane.xlu0 %12892 }
0x2c72   :  { %v12894_v59 = vsub.f32 %v12888_v1, %v12893_v4 }
0x2c74   :  { %v12895_v5 = vmul.f32 1.442695, %v12894_v59 }
0x2c76   :  { %20159 = vpow2.f32 %v12895_v5 }
0x2c80   :  { %v20160_v6 = vpop.eup %20159 }
0x2c81   :  { %v12897_v61 = vsel %vm12889_vm5, %v20160_v6, 0.0 }
0x2c82   :  { %12898 = vadd.xlane.f32.xlu0 %v12897_v61 }
0x2c83   :  { %20179 = shalt.err (!%p20176_p4)
}
0x2c84   :  { %s20180_s25 = scalar_lea.hbm %s23248_s12, 32 }
0x2c85   :  { %p20181_p5 = scmp.ne.s32.totalorder %s23248_s12, %s20180_s25  ;;  %p20184_p6 = scmp.lt.u32.totalorder %s20180_s25, %s23248_s12 }
0x2c87   :  { %p20186_p7 = pnand %p20184_p6, %p20181_p5 }
0x2c89   :  { %20189 = shalt.err (!%p20186_p7)
}
0x2c8a   :  { %12912 = dma.vmem_to_hbm [thread:$0]  %s12910_s23, 32, %s23248_s12, [#allocation8]  }
0x2c8b   :  { %s20220_s30 = smov [#allocation9]  }
0x2c8c   :  { %s12919_s6 = sshll.u32 %s20220_s30, 4  ;;  %s12920_s6 = int_to_ptr.vmem [resolvable:$true] %s12919_s6 }
0x2c8d   :  { %s20190_s14 = scalar_lea.vmem %s12920_s6, 32  ;;  %p20195_p9 = scmp.lt.s32.totalorder %s12920_s6, %s12920_s6 }
0x2c8e   :  { %p20191_p8 = scmp.ne.s32.totalorder %s12920_s6, %s20190_s14  ;;  %p20196_p10 = scmp.lt.s32.totalorder %s20190_s14, %s20190_s14 }
0x2c90   :  { %p20197_p11 = por %p20196_p10, %p20195_p9 }
0x2c92   :  { %p20198_p12 = pnand %p20197_p11, %p20191_p8 }
0x2d0f   :  { %v12899_v8 = vpop.xlane.xlu0 %12898 }
0x2d10   :  { %20161 = vrcp.f32 %v12899_v8 }
0x2d1a   :  { %v20162_v10 = vpop.eup %20161 }
0x2d1b   :  { %v12901_v14 = vmul.f32 %v20162_v10, %v20160_v6 }
0x2d1d   :  { %12902 = vst.msk [vmem:[#allocation9] sm:$0x3] %vm12889_vm5, %v12901_v14 }
0x2d1e   :  { %20201 = shalt.err (!%p20198_p12)
}
0x2d1f   :  { %s20202_s12 = scalar_lea.hbm %s23249_s13, 32 }
0x2d20   :  { %p20203_p13 = scmp.ne.s32.totalorder %s23249_s13, %s20202_s12  ;;  %p20206_p0 = scmp.lt.u32.totalorder %s20202_s12, %s23249_s13 }
0x2d22   :  { %p20208_p1 = pnand %p20206_p0, %p20203_p13 }
0x2d24   :  { %20211 = shalt.err (!%p20208_p1)
}
0x2d25   :  { %12922 = dma.vmem_to_hbm [thread:$0]  %s12920_s6, 32, %s23249_s13, [#allocation10]  }
0x2d26   :  { %20212 = dma.done.wait [#allocation8], 32  }
0x2d27   :  { %20213 = vsyncadd [#allocation8], 4294967264 }
0x2d28   :  { %20214 = dma.done.wait [#allocation10], 32  }
0x2d29   :  { %20215 = vsyncadd [#allocation10], 4294967264 }
0x2d2a   :  { %12929 = vsyncpa [#allocation8], 1 }
0x2d2b   :  { %12930 = vsyncpa [#allocation10], 1 }

</bundles_post_ra>
